<compile_context>
chip_gen: v7x
topology: tpu7x:2x2x1
jax: 0.10.0
libtpu: 0.0.40
codegen_flags: <defaults>
</compile_context>

<pallas_src>
import jax
import jax.numpy as jnp
from jax.experimental import pallas as pl
from jax.experimental.pallas import tpu as pltpu


def _se_proj_kernel(
    x_se_ref,    # (1, 480)     squeeze vector (x114)
    x_ref,       # (480, HW)    main feature map, channel-major (x113)
    w38t_ref,    # (480, 120)   conv2d38 weight, transposed (C_in, C_out)
    b38_ref,     # (1, 120)
    w39t_ref,    # (120, 480)   conv2d39 weight, transposed
    b39_ref,     # (1, 480)
    w40_ref,     # (112, 480)   conv2d40 weight (C_out, C_in)
    g32_ref,     # (112, 1)     BN32 gamma
    bt32_ref,    # (112, 1)     BN32 beta
    w41_ref,     # (672, 112)   conv2d41 weight (C_out, C_in)
    g33_ref,     # (672, 1)     BN33 gamma
    bt33_ref,    # (672, 1)     BN33 beta
    out_ref,     # (672, HW)
):
    eps = 0.001
    hw = x_ref.shape[1]
    inv_hw = 1.0 / hw

    # ---- SE branch: two tiny (M=1) matmuls on the squeeze vector ----
    se = x_se_ref[...]                                                   # (1,480)
    h = jnp.dot(se, w38t_ref[...], preferred_element_type=jnp.float32)   # (1,120)
    h = jnp.maximum(h + b38_ref[...], 0.0)                               # ReLU
    s = jnp.dot(h, w39t_ref[...], preferred_element_type=jnp.float32)    # (1,480)
    s = s + b39_ref[...]
    # Hardsigmoid: clip(x/6 + 1/2, 0, 1)
    s = jnp.clip(s * (1.0 / 6.0) + 0.5, 0.0, 1.0)                        # (1,480)

    # ---- conv2d40 with SE scale folded into the weight:
    #      y = W40 @ (diag(s) @ x) = (W40 * s) @ x  (scales 112x480 not 480x196)
    w40s = w40_ref[...] * s                                              # (112,480)
    y = jnp.dot(w40s, x_ref[...], preferred_element_type=jnp.float32)    # (112,HW)

    # ---- BatchNorm2d(112), training-mode stats, one pass (E[y^2]-mean^2) ----
    m1 = jnp.sum(y, axis=1, keepdims=True) * inv_hw                      # (112,1)
    e2_1 = jnp.sum(y * y, axis=1, keepdims=True) * inv_hw
    var1 = e2_1 - m1 * m1                                                # biased
    scale1 = jax.lax.rsqrt(var1 + eps) * g32_ref[...]
    shift1 = bt32_ref[...] - m1 * scale1
    y = y * scale1 + shift1                                              # (112,HW)

    # ---- conv2d41 (1x1, no bias) + BatchNorm2d(672), one-pass stats ----
    z = jnp.dot(w41_ref[...], y, preferred_element_type=jnp.float32)     # (672,HW)
    m2 = jnp.sum(z, axis=1, keepdims=True) * inv_hw
    e2_2 = jnp.sum(z * z, axis=1, keepdims=True) * inv_hw
    var2 = e2_2 - m2 * m2
    scale2 = jax.lax.rsqrt(var2 + eps) * g33_ref[...]
    shift2 = bt33_ref[...] - m2 * scale2
    out_ref[...] = z * scale2 + shift2


def se_proj_block(x114, x113, params):
    """x114: (1,480,1,1) NCHW, x113: (1,480,14,14) NCHW -> (1,672,14,14) NCHW."""
    n, c_in, h, w = x113.shape
    assert n == 1 and c_in == 480
    hw = h * w

    # Free reshapes only (channel-major layout kept end to end; no transposes).
    x_se = x114.reshape(1, c_in)         # (1, 480)
    x_chw = x113.reshape(c_in, hw)       # (480, 196)

    cost = pl.CostEstimate(
        flops=51_000_000,            # ~2*(112*480 + 672*112)*196 + SE matmuls
        transcendentals=800,         # rsqrt per BN channel
        bytes_accessed=1_900_000,    # x + out + weights
    )

    out = pl.pallas_call(
        _se_proj_kernel,
        out_shape=jax.ShapeDtypeStruct((672, hw), jnp.float32),
        # Tiny problem (<2 MiB total): whole arrays live in VMEM, no grid.
        in_specs=[pl.BlockSpec(memory_space=pltpu.VMEM)] * 12,
        out_specs=pl.BlockSpec(memory_space=pltpu.VMEM),
        cost_estimate=cost,
    )(
        x_se, x_chw,
        params["w38t"], params["b38"],
        params["w39t"], params["b39"],
        params["w40"], params["g32"], params["bt32"],
        params["w41"], params["g33"], params["bt33"],
    )

    # Free reshape back to NCHW.
    return out.reshape(n, 672, h, w)


def init_params(key):
    """Deterministic synthetic parameters with PyTorch-like scaling.

    SE conv weights stored transposed as (C_in, C_out); projection conv
    weights stored in native (C_out, C_in). BN affine params as (C, 1)
    (gamma=1, beta=0, like a fresh nn.BatchNorm2d).
    """
    ks = jax.random.split(key, 6)

    def u(k, shape, fan_in):
        bound = 1.0 / jnp.sqrt(fan_in)
        return jax.random.uniform(k, shape, jnp.float32, -bound, bound)

    return {
        "w38t": u(ks[0], (480, 120), 480), "b38": u(ks[1], (1, 120), 480),
        "w39t": u(ks[2], (120, 480), 120), "b39": u(ks[3], (1, 480), 120),
        "w40": u(ks[4], (112, 480), 480),
        "g32": jnp.ones((112, 1), jnp.float32),
        "bt32": jnp.zeros((112, 1), jnp.float32),
        "w41": u(ks[5], (672, 112), 112),
        "g33": jnp.ones((672, 1), jnp.float32),
        "bt33": jnp.zeros((672, 1), jnp.float32),
    }


def reference(x114, x113, p):
    """Pure-JAX reference of the PyTorch forward (sanity check)."""
    n, c, h, w = x113.shape
    hw = h * w
    se = x114.reshape(n, c)
    v = jnp.maximum(se @ p["w38t"] + p["b38"], 0.0)
    v = v @ p["w39t"] + p["b39"]
    s = jnp.clip(v / 6.0 + 0.5, 0.0, 1.0)                         # hardsigmoid
    x = x113.reshape(c, hw) * s.reshape(c, 1)                     # SE scaling
    y = p["w40"] @ x                                              # (112,HW)
    m1 = y.mean(1, keepdims=True)
    v1 = ((y - m1) ** 2).mean(1, keepdims=True)
    y = (y - m1) / jnp.sqrt(v1 + 1e-3) * p["g32"] + p["bt32"]
    z = p["w41"] @ y                                              # (672,HW)
    m2 = z.mean(1, keepdims=True)
    v2 = ((z - m2) ** 2).mean(1, keepdims=True)
    z = (z - m2) / jnp.sqrt(v2 + 1e-3) * p["g33"] + p["bt33"]
    return z.reshape(n, 672, h, w)


if __name__ == "__main__":
    key = jax.random.PRNGKey(0)
    k_x113, k_x114, k_params = jax.random.split(key, 3)

    # Same shapes as the PyTorch module's sample inputs (already small).
    x113 = jax.random.normal(k_x113, (1, 480, 14, 14), dtype=jnp.float32)
    x114 = jax.random.normal(k_x114, (1, 480, 1, 1), dtype=jnp.float32)
    params = init_params(k_params)

    out = jax.block_until_ready(se_proj_block(x114, x113, params))
    assert out.shape == (1, 672, 14, 14), out.shape

    ref = jax.block_until_ready(reference(x114, x113, params))
    err = float(jnp.max(jnp.abs(out - ref)))
    assert err < 1e-3, f"mismatch vs reference: {err}"

    print("KERNEL_OK")
</pallas_src>

<mosaic_0001>
module attributes {stable_mosaic.version = 11 : i64} {
  func.func @_se_proj_kernel(%arg0: memref<1x480xf32, #tpu.memory_space<vmem>>, %arg1: memref<480x196xf32, #tpu.memory_space<vmem>>, %arg2: memref<480x120xf32, #tpu.memory_space<vmem>>, %arg3: memref<1x120xf32, #tpu.memory_space<vmem>>, %arg4: memref<120x480xf32, #tpu.memory_space<vmem>>, %arg5: memref<1x480xf32, #tpu.memory_space<vmem>>, %arg6: memref<112x480xf32, #tpu.memory_space<vmem>>, %arg7: memref<112x1xf32, #tpu.memory_space<vmem>>, %arg8: memref<112x1xf32, #tpu.memory_space<vmem>>, %arg9: memref<672x112xf32, #tpu.memory_space<vmem>>, %arg10: memref<672x1xf32, #tpu.memory_space<vmem>>, %arg11: memref<672x1xf32, #tpu.memory_space<vmem>>, %arg12: memref<672x196xf32, #tpu.memory_space<vmem>>) attributes {dimension_semantics = [], scalar_prefetch = 0 : i64, scratch_operands = 0 : i64, tpu.core_type = #tpu.core_type<tc>} {
    %c0 = arith.constant 0 : index
    %c0_0 = arith.constant 0 : index
    %0 = vector.load %arg0[%c0, %c0_0] : memref<1x480xf32, #tpu.memory_space<vmem>>, vector<1x480xf32>
    %c0_1 = arith.constant 0 : index
    %c0_2 = arith.constant 0 : index
    %1 = vector.load %arg2[%c0_1, %c0_2] : memref<480x120xf32, #tpu.memory_space<vmem>>, vector<480x120xf32>
    %cst = arith.constant dense<0.000000e+00> : vector<1x120xf32>
    %2 = tpu.matmul %0, %1, %cst {dimension_numbers = #tpu.dot_dimension_numbers<[1], [0], [0], [1], [0, 0, 1, 1], [], []>} : vector<1x480xf32>, vector<480x120xf32>, vector<1x120xf32> -> vector<1x120xf32>
    %c0_3 = arith.constant 0 : index
    %c0_4 = arith.constant 0 : index
    %3 = vector.load %arg3[%c0_3, %c0_4] : memref<1x120xf32, #tpu.memory_space<vmem>>, vector<1x120xf32>
    %4 = arith.addf %2, %3 : vector<1x120xf32>
    %cst_5 = arith.constant 0.000000e+00 : f32
    %5 = vector.broadcast %cst_5 : f32 to vector<1x120xf32>
    %6 = arith.maximumf %4, %5 : vector<1x120xf32>
    %c0_6 = arith.constant 0 : index
    %c0_7 = arith.constant 0 : index
    %7 = vector.load %arg4[%c0_6, %c0_7] : memref<120x480xf32, #tpu.memory_space<vmem>>, vector<120x480xf32>
    %cst_8 = arith.constant dense<0.000000e+00> : vector<1x480xf32>
    %8 = tpu.matmul %6, %7, %cst_8 {dimension_numbers = #tpu.dot_dimension_numbers<[1], [0], [0], [1], [0, 0, 1, 1], [], []>} : vector<1x120xf32>, vector<120x480xf32>, vector<1x480xf32> -> vector<1x480xf32>
    %c0_9 = arith.constant 0 : index
    %c0_10 = arith.constant 0 : index
    %9 = vector.load %arg5[%c0_9, %c0_10] : memref<1x480xf32, #tpu.memory_space<vmem>>, vector<1x480xf32>
    %10 = arith.addf %8, %9 : vector<1x480xf32>
    %cst_11 = arith.constant 0.166666672 : f32
    %11 = vector.broadcast %cst_11 : f32 to vector<1x480xf32>
    %12 = arith.mulf %10, %11 : vector<1x480xf32>
    %cst_12 = arith.constant 5.000000e-01 : f32
    %13 = vector.broadcast %cst_12 : f32 to vector<1x480xf32>
    %14 = arith.addf %12, %13 : vector<1x480xf32>
    %cst_13 = arith.constant 0.000000e+00 : f32
    %cst_14 = arith.constant 1.000000e+00 : f32
    %15 = vector.broadcast %cst_13 : f32 to vector<1x480xf32>
    %16 = arith.maximumf %15, %14 : vector<1x480xf32>
    %17 = vector.broadcast %cst_14 : f32 to vector<1x480xf32>
    %18 = arith.minimumf %17, %16 : vector<1x480xf32>
    %c0_15 = arith.constant 0 : index
    %c0_16 = arith.constant 0 : index
    %19 = vector.load %arg6[%c0_15, %c0_16] : memref<112x480xf32, #tpu.memory_space<vmem>>, vector<112x480xf32>
    %20 = vector.broadcast %18 : vector<1x480xf32> to vector<112x480xf32>
    %21 = arith.mulf %19, %20 : vector<112x480xf32>
    %c0_17 = arith.constant 0 : index
    %c0_18 = arith.constant 0 : index
    %22 = vector.load %arg1[%c0_17, %c0_18] : memref<480x196xf32, #tpu.memory_space<vmem>>, vector<480x196xf32>
    %cst_19 = arith.constant dense<0.000000e+00> : vector<112x196xf32>
    %23 = tpu.matmul %21, %22, %cst_19 {dimension_numbers = #tpu.dot_dimension_numbers<[1], [0], [0], [1], [0, 0, 1, 1], [], []>} : vector<112x480xf32>, vector<480x196xf32>, vector<112x196xf32> -> vector<112x196xf32>
    %cst_20 = arith.constant dense<0.000000e+00> : vector<112xf32>
    %24 = vector.multi_reduction <add>, %23, %cst_20 [1] : vector<112x196xf32> to vector<112xf32>
    %25 = vector.shape_cast %24 : vector<112xf32> to vector<112x1xf32>
    %cst_21 = arith.constant 0.00510204071 : f32
    %26 = vector.broadcast %cst_21 : f32 to vector<112x1xf32>
    %27 = arith.mulf %25, %26 : vector<112x1xf32>
    %28 = arith.mulf %23, %23 : vector<112x196xf32>
    %cst_22 = arith.constant dense<0.000000e+00> : vector<112xf32>
    %29 = vector.multi_reduction <add>, %28, %cst_22 [1] : vector<112x196xf32> to vector<112xf32>
    %30 = vector.shape_cast %29 : vector<112xf32> to vector<112x1xf32>
    %cst_23 = arith.constant 0.00510204071 : f32
    %31 = vector.broadcast %cst_23 : f32 to vector<112x1xf32>
    %32 = arith.mulf %30, %31 : vector<112x1xf32>
    %33 = arith.mulf %27, %27 : vector<112x1xf32>
    %34 = arith.subf %32, %33 : vector<112x1xf32>
    %cst_24 = arith.constant 1.000000e-03 : f32
    %35 = vector.broadcast %cst_24 : f32 to vector<112x1xf32>
    %36 = arith.addf %34, %35 : vector<112x1xf32>
    %37 = math.rsqrt %36 : vector<112x1xf32>
    %c0_25 = arith.constant 0 : index
    %c0_26 = arith.constant 0 : index
    %38 = vector.load %arg7[%c0_25, %c0_26] : memref<112x1xf32, #tpu.memory_space<vmem>>, vector<112x1xf32>
    %39 = arith.mulf %37, %38 : vector<112x1xf32>
    %c0_27 = arith.constant 0 : index
    %c0_28 = arith.constant 0 : index
    %40 = vector.load %arg8[%c0_27, %c0_28] : memref<112x1xf32, #tpu.memory_space<vmem>>, vector<112x1xf32>
    %41 = arith.mulf %27, %39 : vector<112x1xf32>
    %42 = arith.subf %40, %41 : vector<112x1xf32>
    %43 = vector.broadcast %39 : vector<112x1xf32> to vector<112x196xf32>
    %44 = arith.mulf %23, %43 : vector<112x196xf32>
    %45 = vector.broadcast %42 : vector<112x1xf32> to vector<112x196xf32>
    %46 = arith.addf %44, %45 : vector<112x196xf32>
    %c0_29 = arith.constant 0 : index
    %c0_30 = arith.constant 0 : index
    %47 = vector.load %arg9[%c0_29, %c0_30] : memref<672x112xf32, #tpu.memory_space<vmem>>, vector<672x112xf32>
    %cst_31 = arith.constant dense<0.000000e+00> : vector<672x196xf32>
    %48 = tpu.matmul %47, %46, %cst_31 {dimension_numbers = #tpu.dot_dimension_numbers<[1], [0], [0], [1], [0, 0, 1, 1], [], []>} : vector<672x112xf32>, vector<112x196xf32>, vector<672x196xf32> -> vector<672x196xf32>
    %cst_32 = arith.constant dense<0.000000e+00> : vector<672xf32>
    %49 = vector.multi_reduction <add>, %48, %cst_32 [1] : vector<672x196xf32> to vector<672xf32>
    %50 = vector.shape_cast %49 : vector<672xf32> to vector<672x1xf32>
    %cst_33 = arith.constant 0.00510204071 : f32
    %51 = vector.broadcast %cst_33 : f32 to vector<672x1xf32>
    %52 = arith.mulf %50, %51 : vector<672x1xf32>
    %53 = arith.mulf %48, %48 : vector<672x196xf32>
    %cst_34 = arith.constant dense<0.000000e+00> : vector<672xf32>
    %54 = vector.multi_reduction <add>, %53, %cst_34 [1] : vector<672x196xf32> to vector<672xf32>
    %55 = vector.shape_cast %54 : vector<672xf32> to vector<672x1xf32>
    %cst_35 = arith.constant 0.00510204071 : f32
    %56 = vector.broadcast %cst_35 : f32 to vector<672x1xf32>
    %57 = arith.mulf %55, %56 : vector<672x1xf32>
    %58 = arith.mulf %52, %52 : vector<672x1xf32>
    %59 = arith.subf %57, %58 : vector<672x1xf32>
    %cst_36 = arith.constant 1.000000e-03 : f32
    %60 = vector.broadcast %cst_36 : f32 to vector<672x1xf32>
    %61 = arith.addf %59, %60 : vector<672x1xf32>
    %62 = math.rsqrt %61 : vector<672x1xf32>
    %c0_37 = arith.constant 0 : index
    %c0_38 = arith.constant 0 : index
    %63 = vector.load %arg10[%c0_37, %c0_38] : memref<672x1xf32, #tpu.memory_space<vmem>>, vector<672x1xf32>
    %64 = arith.mulf %62, %63 : vector<672x1xf32>
    %c0_39 = arith.constant 0 : index
    %c0_40 = arith.constant 0 : index
    %65 = vector.load %arg11[%c0_39, %c0_40] : memref<672x1xf32, #tpu.memory_space<vmem>>, vector<672x1xf32>
    %66 = arith.mulf %52, %64 : vector<672x1xf32>
    %67 = arith.subf %65, %66 : vector<672x1xf32>
    %68 = vector.broadcast %64 : vector<672x1xf32> to vector<672x196xf32>
    %69 = arith.mulf %48, %68 : vector<672x196xf32>
    %70 = vector.broadcast %67 : vector<672x1xf32> to vector<672x196xf32>
    %71 = arith.addf %69, %70 : vector<672x196xf32>
    %c0_41 = arith.constant 0 : index
    %c0_42 = arith.constant 0 : index
    %72 = vector.load %arg12[%c0_41, %c0_42] : memref<672x196xf32, #tpu.memory_space<vmem>>, vector<672x196xf32>
    tpu.vector_store %arg12[%c0_41, %c0_42], %71 {strides = array<i32>} : memref<672x196xf32, #tpu.memory_space<vmem>>, vector<672x196xf32>,
    return
  }
}

</mosaic_0001>

<bundles_post_ra>
// kernel: tpu_custom_call.1
= control target key start
LH: loop header
LB: loop body
LE: loop exit
PB: predicated region body
PF: predicated region fallthrough
CT: control target
= control target key end

     0   :  { %v6265_v0 = vmov 0.0|0.0   ;;  %v104_v25 = vlaneseq  ;;  %vm123_vm0 = vcmask 785408   ;;  %vm349_vm1 = vcmask 982016   ;;  %s11953_s2 = inlined_call_operand.vmem [shape: f32[480,120], index: 2, kind: input, shape index: {}]   ;;  %s11954_s0 = inlined_call_operand.vmem [shape: f32[1,480], index: 0, kind: input, shape index: {}]   ;;  %s11955_s4 = inlined_call_operand.vmem [shape: f32[120,480], index: 4, kind: input, shape index: {}]   ;;  %s11956_s1 = inlined_call_operand.vmem [shape: f32[480,196], index: 1, kind: input, shape index: {}]   ;;  %s11957_s3 = inlined_call_operand.vmem [shape: f32[1,120], index: 3, kind: input, shape index: {}]   ;;  %s11958_s5 = inlined_call_operand.vmem [shape: f32[1,480], index: 5, kind: input, shape index: {}]   ;;  %s11959_s6 = inlined_call_operand.vmem [shape: f32[112,480], index: 6, kind: input, shape index: {}]   ;;  %s11960_s7 = inlined_call_operand.vmem [shape: f32[112,1], index: 7, kind: input, shape index: {}]   ;;  %s11961_s8 = inlined_call_operand.vmem [shape: f32[112,1], index: 8, kind: input, shape index: {}]   ;;  %s11962_s9 = inlined_call_operand.vmem [shape: f32[672,112], index: 9, kind: input, shape index: {}]   ;;  %s11963_s10 = inlined_call_operand.vmem [shape: f32[672,1], index: 10, kind: input, shape index: {}]   ;;  %s11964_s11 = inlined_call_operand.vmem [shape: f32[672,1], index: 11, kind: input, shape index: {}]   ;;  %s11965_s12 = inlined_call_operand.vmem [shape: f32[672,196], index: 12, kind: output, shape index: {}]  }
   0x1   :  { %5776 = vmatprep.subr.bf16.mxu1 %v6265_v0  ;;  %v74_v1 = vld [vmem:[%s11953_s2 + $0x100] sm:$0xff]  ;;  %v75_v2 = vld [vmem:[%s11953_s2 + $0x108] sm:$0xff]  ;;  %v76_v3 = vld [vmem:[%s11953_s2 + $0x110] sm:$0xff]  ;;  %vm1099_vm2 = vcmask 556032   ;;  %vm1674_vm3 = vcmask 916480  }
   0x2   :  { %v5777_v4 = vpack.c.bf16 %v75_v2, %v74_v1  ;;  %v77_v5 = vld [vmem:[%s11953_s2 + $0x118] sm:$0xff]  ;;  %v78_v7 = vld [vmem:[%s11953_s2 + $0x120] sm:$0xff]  ;;  %v59_v9 = vld [vmem:[%s11953_s2 + $0x88] sm:$0xff]  ;;  %v6405_v35 = vshrl.u32 %v104_v25, 7 }
   0x3   :  { %v5780_v6 = vpack.c.bf16 %v77_v5, %v76_v3  ;;  %v58_v8 = vld [vmem:[%s11953_s2 + $0x80] sm:$0xff]  ;;  %v79_v10 = vld [vmem:[%s11953_s2 + $0x128] sm:$0xff]  ;;  %v60_v15 = vld [vmem:[%s11953_s2 + $0x90] sm:$0xff] }
   0x4   :  { %5778 = vmatpush1.bf16.msra.mxu1 %v5777_v4  ;;  %v5744_v11 = vpack.c.bf16 %v59_v9, %v58_v8  ;;  %v42_v12 = vld [vmem:[%s11953_s2] sm:$0xff]  ;;  %v43_v13 = vld [vmem:[%s11953_s2 + $0x8] sm:$0xff]  ;;  %v61_v16 = vld [vmem:[%s11953_s2 + $0x98] sm:$0xff]  ;;  %v5783_v20 = vpack.c.bf16 %v79_v10, %v78_v7  ;;  %v110_v45 = vsub.s32 1, %v6405_v35  ;;  %v118_v50 = vsub.s32 3, %v6405_v35 }
   0x5   :  { %5779 = vmatprep.subr.bf16.mxu1 %v6265_v0  ;;  %v5746_v14 = vpack.c.bf16 %v43_v13, %v42_v12  ;;  %v5748_v17 = vpack.c.bf16 %v61_v16, %v60_v15  ;;  %v44_v18 = vld [vmem:[%s11953_s2 + $0x10] sm:$0xff]  ;;  %v45_v19 = vld [vmem:[%s11953_s2 + $0x18] sm:$0xff]  ;;  %v62_v23 = vld [vmem:[%s11953_s2 + $0xa0] sm:$0xff] }
   0x6   :  { %5745 = vmatprep.subr.bf16.mxu0 %v5744_v11  ;;  %v80_v21 = vld [vmem:[%s11953_s2 + $0x130] sm:$0xff]  ;;  %v5750_v22 = vpack.c.bf16 %v45_v19, %v44_v18  ;;  %v63_v24 = vld [vmem:[%s11953_s2 + $0xa8] sm:$0xff]  ;;  %v81_v26 = vld [vmem:[%s11953_s2 + $0x138] sm:$0xff] }
   0x7   :  { %5747 = vmatpush3.bf16.msra.mxu0 %v5746_v14  ;;  %v5752_v27 = vpack.c.bf16 %v63_v24, %v62_v23  ;;  %v46_v28 = vld [vmem:[%s11953_s2 + $0x20] sm:$0xff]  ;;  %v47_v29 = vld [vmem:[%s11953_s2 + $0x28] sm:$0xff]  ;;  %v64_v30 = vld [vmem:[%s11953_s2 + $0xb0] sm:$0xff]  ;;  %v5786_v32 = vpack.c.bf16 %v81_v26, %v80_v21 }
   0x8   :  { %5781 = vmatpush1.bf16.msra.mxu1 %v5780_v6  ;;  %5749 = vmatprep.subr.bf16.mxu0 %v5748_v17  ;;  %v65_v31 = vld [vmem:[%s11953_s2 + $0xb8] sm:$0xff]  ;;  %v82_v33 = vld [vmem:[%s11953_s2 + $0x140] sm:$0xff]  ;;  %v5754_v34 = vpack.c.bf16 %v47_v29, %v46_v28  ;;  %v83_v36 = vld [vmem:[%s11953_s2 + $0x148] sm:$0xff] }
   0x9   :  { %5782 = vmatprep.subr.bf16.mxu1 %v6265_v0  ;;  %v5756_v37 = vpack.c.bf16 %v65_v31, %v64_v30  ;;  %v48_v38 = vld [vmem:[%s11953_s2 + $0x30] sm:$0xff]  ;;  %v49_v39 = vld [vmem:[%s11953_s2 + $0x38] sm:$0xff]  ;;  %v66_v40 = vld [vmem:[%s11953_s2 + $0xc0] sm:$0xff]  ;;  %v5789_v42 = vpack.c.bf16 %v83_v36, %v82_v33 }
   0xa   :  { %v67_v41 = vld [vmem:[%s11953_s2 + $0xc8] sm:$0xff]  ;;  %v84_v43 = vld [vmem:[%s11953_s2 + $0x150] sm:$0xff]  ;;  %v5758_v44 = vpack.c.bf16 %v49_v39, %v48_v38  ;;  %v85_v46 = vld [vmem:[%s11953_s2 + $0x158] sm:$0xff] }
   0xb   :  { %5751 = vmatpush3.bf16.msra.mxu0 %v5750_v22  ;;  %v5760_v47 = vpack.c.bf16 %v67_v41, %v66_v40  ;;  %v50_v48 = vld [vmem:[%s11953_s2 + $0x40] sm:$0xff]  ;;  %v51_v49 = vld [vmem:[%s11953_s2 + $0x48] sm:$0xff]  ;;  %v68_v51 = vld [vmem:[%s11953_s2 + $0xd0] sm:$0xff]  ;;  %v5792_v54 = vpack.c.bf16 %v85_v46, %v84_v43 }
   0xc   :  { %5784 = vmatpush1.bf16.msra.mxu1 %v5783_v20  ;;  %5753 = vmatprep.subr.bf16.mxu0 %v5752_v27  ;;  %v69_v52 = vld [vmem:[%s11953_s2 + $0xd8] sm:$0xff]  ;;  %v6447_v53 = vld [vmem:[%s11954_s0] sm:$0xf]  ;;  %v5762_v56 = vpack.c.bf16 %v51_v49, %v50_v48  ;;  %v87_v58 = vld [vmem:[%s11953_s2 + $0x168] sm:$0xff]  ;;  %v6514_v20 = vsub.s32 0, %v6405_v35 }
   0xd   :  { %5785 = vmatprep.subr.bf16.mxu1 %v6265_v0  ;;  %v86_v55 = vld [vmem:[%s11953_s2 + $0x160] sm:$0xff]  ;;  %v111_v57 = vrot.slane %v6447_v53, %v110_v45  ;;  %v5764_v59 = vpack.c.bf16 %v69_v52, %v68_v51  ;;  %v52_v60 = vld [vmem:[%s11953_s2 + $0x50] sm:$0xff]  ;;  %v53_v61 = vld [vmem:[%s11953_s2 + $0x58] sm:$0xff]  ;;  %v119_v62 = vrot.slane %v6447_v53, %v118_v50 }
   0xe   :  { %v70_v63 = vld [vmem:[%s11953_s2 + $0xe0] sm:$0xff]  ;;  %v71_v1 = vld [vmem:[%s11953_s2 + $0xe8] sm:$0xff]  ;;  %v5795_v2 = vpack.c.bf16 %v87_v58, %v86_v55  ;;  %v88_v3 = vld [vmem:[%s11953_s2 + $0x170] sm:$0xff]  ;;  %v5766_v4 = vpack.c.bf16 %v53_v61, %v52_v60  ;;  %v107_v30 = vrot.slane %v6447_v53, %v6514_v20 }
   0xf   :  { %5755 = vmatpush3.bf16.msra.mxu0 %v5754_v34  ;;  %190 = vmatprep.mubr.f32.mxu0 %v111_v57  ;;  %v89_v5 = vld [vmem:[%s11953_s2 + $0x178] sm:$0xff]  ;;  %v5768_v6 = vpack.c.bf16 %v71_v1, %v70_v63  ;;  %v54_v7 = vld [vmem:[%s11953_s2 + $0x60] sm:$0xff]  ;;  %v55_v8 = vld [vmem:[%s11953_s2 + $0x68] sm:$0xff] }
  0x10   :  { %5787 = vmatpush1.bf16.msra.mxu1 %v5786_v32  ;;  %5757 = vmatprep.subr.bf16.mxu0 %v5756_v37  ;;  %v72_v9 = vld [vmem:[%s11953_s2 + $0xf0] sm:$0xff]  ;;  %v73_v10 = vld [vmem:[%s11953_s2 + $0xf8] sm:$0xff]  ;;  %v5798_v11 = vpack.c.bf16 %v89_v5, %v88_v3  ;;  %v90_v12 = vld [vmem:[%s11953_s2 + $0x180] sm:$0xff]  ;;  %v5770_v13 = vpack.c.bf16 %v55_v8, %v54_v7  ;;  %v114_v8 = vsub.s32 2, %v6405_v35 }
  0x11   :  { %5788 = vmatprep.subr.bf16.mxu1 %v6265_v0  ;;  %5608 = vmatprep.mubr.msk.f32.mxu1 %vm123_vm0, %v119_v62  ;;  %v91_v14 = vld [vmem:[%s11953_s2 + $0x188] sm:$0xff]  ;;  %v5772_v15 = vpack.c.bf16 %v73_v10, %v72_v9  ;;  %v56_v16 = vld [vmem:[%s11953_s2 + $0x70] sm:$0xff]  ;;  %v57_v17 = vld [vmem:[%s11953_s2 + $0x78] sm:$0xff] }
  0x12   :  { %v268_v18 = vld [vmem:[%s11955_s4 + $0x8] sm:$0xff]  ;;  %v5801_v21 = vpack.c.bf16 %v91_v14, %v90_v12  ;;  %v92_v22 = vld [vmem:[%s11953_s2 + $0x190] sm:$0xff]  ;;  %v5774_v23 = vpack.c.bf16 %v57_v17, %v56_v16  ;;  %v93_v24 = vld [vmem:[%s11953_s2 + $0x198] sm:$0xff] }
  0x13   :  { %5759 = vmatpush3.bf16.msra.mxu0 %v5758_v44  ;;  %v272_v19 = vld [vmem:[%s11955_s4 + $0x28] sm:$0xff]  ;;  %v267_v26 = vld [vmem:[%s11955_s4] sm:$0xff]  ;;  %v5804_v31 = vpack.c.bf16 %v93_v24, %v92_v22  ;;  %v97_v44 = vld [vmem:[%s11953_s2 + $0x1b8] sm:$0xff] }
  0x14   :  { %5790 = vmatpush1.bf16.msra.mxu1 %v5789_v42  ;;  %5761 = vmatprep.subr.bf16.mxu0 %v5760_v47  ;;  %v5818_v25 = vpack.c.bf16 %v272_v19, %v268_v18  ;;  %v271_v27 = vld [vmem:[%s11955_s4 + $0x20] sm:$0xff]  ;;  %v276_v28 = vld [vmem:[%s11955_s4 + $0x48] sm:$0xff]  ;;  %v96_v42 = vld [vmem:[%s11953_s2 + $0x1b0] sm:$0xff] }
  0x15   :  { %5791 = vmatprep.subr.bf16.mxu1 %v6265_v0  ;;  %v280_v29 = vld [vmem:[%s11955_s4 + $0x68] sm:$0xff]  ;;  %v94_v32 = vld [vmem:[%s11953_s2 + $0x1a0] sm:$0xff]  ;;  %v5820_v33 = vpack.c.bf16 %v271_v27, %v267_v26  ;;  %v5810_v52 = vpack.c.bf16 %v97_v44, %v96_v42  ;;  %v100_v63 = vld [vmem:[%s11953_s2 + $0x1d0] sm:$0xff] }
  0x16   :  { %v95_v34 = vld [vmem:[%s11953_s2 + $0x1a8] sm:$0xff]  ;;  %v5822_v36 = vpack.c.bf16 %v280_v29, %v276_v28  ;;  %v275_v37 = vld [vmem:[%s11955_s4 + $0x40] sm:$0xff]  ;;  %v274_v7 = vld [vmem:[%s11955_s4 + $0x38] sm:$0xff] }
  0x17   :  { %5763 = vmatpush3.bf16.msra.mxu0 %v5762_v56  ;;  %v279_v38 = vld [vmem:[%s11955_s4 + $0x60] sm:$0xff]  ;;  %v284_v39 = vld [vmem:[%s11955_s4 + $0x88] sm:$0xff]  ;;  %v5807_v41 = vpack.c.bf16 %v95_v34, %v94_v32  ;;  %v269_v12 = vld [vmem:[%s11955_s4 + $0x10] sm:$0xff] }
  0x18   :  { %5793 = vmatpush1.bf16.msra.mxu1 %v5792_v54  ;;  %5765 = vmatprep.subr.bf16.mxu0 %v5764_v59  ;;  %v288_v40 = vld [vmem:[%s11955_s4 + $0xa8] sm:$0xff]  ;;  %v5824_v43 = vpack.c.bf16 %v279_v38, %v275_v37  ;;  %v283_v47 = vld [vmem:[%s11955_s4 + $0x80] sm:$0xff]  ;;  %v278_v14 = vld [vmem:[%s11955_s4 + $0x58] sm:$0xff] }
  0x19   :  { %5794 = vmatprep.subr.bf16.mxu1 %v6265_v0  ;;  %v5826_v46 = vpack.c.bf16 %v288_v40, %v284_v39  ;;  %v287_v48 = vld [vmem:[%s11955_s4 + $0xa0] sm:$0xff]  ;;  %v292_v49 = vld [vmem:[%s11955_s4 + $0xc8] sm:$0xff]  ;;  %v277_v18 = vld [vmem:[%s11955_s4 + $0x50] sm:$0xff] }
  0x1a   :  { %v296_v51 = vld [vmem:[%s11955_s4 + $0xe8] sm:$0xff]  ;;  %v98_v54 = vld [vmem:[%s11953_s2 + $0x1c0] sm:$0xff]  ;;  %v5828_v55 = vpack.c.bf16 %v287_v48, %v283_v47  ;;  %v281_v19 = vld [vmem:[%s11955_s4 + $0x70] sm:$0xff] }
  0x1b   :  { %5767 = vmatpush3.bf16.msra.mxu0 %v5766_v4  ;;  %v99_v56 = vld [vmem:[%s11953_s2 + $0x1c8] sm:$0xff]  ;;  %v5830_v57 = vpack.c.bf16 %v296_v51, %v292_v49  ;;  %v291_v58 = vld [vmem:[%s11955_s4 + $0xc0] sm:$0xff]  ;;  %v5852_v22 = vpack.c.bf16 %v281_v19, %v277_v18  ;;  %v285_v24 = vld [vmem:[%s11955_s4 + $0x90] sm:$0xff] }
  0x1c   :  { %5796 = vmatpush1.bf16.msra.mxu1 %v5795_v2  ;;  %5769 = vmatprep.subr.bf16.mxu0 %v5768_v6  ;;  %v295_v59 = vld [vmem:[%s11955_s4 + $0xe0] sm:$0xff]  ;;  %v300_v60 = vld [vmem:[%s11955_s4 + $0x108] sm:$0xff]  ;;  %v5813_v62 = vpack.c.bf16 %v99_v56, %v98_v54  ;;  %v101_v2 = vld [vmem:[%s11953_s2 + $0x1d8] sm:$0xff] }
  0x1d   :  { %5797 = vmatprep.subr.bf16.mxu1 %v6265_v0  ;;  %v304_v61 = vld [vmem:[%s11955_s4 + $0x128] sm:$0xff]  ;;  %v5832_v1 = vpack.c.bf16 %v295_v59, %v291_v58  ;;  %v299_v4 = vld [vmem:[%s11955_s4 + $0x100] sm:$0xff]  ;;  %v270_v6 = vld [vmem:[%s11955_s4 + $0x18] sm:$0xff]  ;;  %v5816_v9 = vpack.c.bf16 %v101_v2, %v100_v63 }
  0x1e   :  { %v5834_v3 = vpack.c.bf16 %v304_v61, %v300_v60  ;;  %v303_v5 = vld [vmem:[%s11955_s4 + $0x120] sm:$0xff]  ;;  %v294_v26 = vld [vmem:[%s11955_s4 + $0xd8] sm:$0xff]  ;;  %v301_v37 = vld [vmem:[%s11955_s4 + $0x110] sm:$0xff] }
  0x1f   :  { %5771 = vmatpush3.bf16.msra.mxu0 %v5770_v13  ;;  %v5836_v10 = vpack.c.bf16 %v303_v5, %v299_v4  ;;  %v273_v13 = vld [vmem:[%s11955_s4 + $0x30] sm:$0xff]  ;;  %v298_v27 = vld [vmem:[%s11955_s4 + $0xf8] sm:$0xff]  ;;  %v308_v40 = vld [vmem:[%s11955_s4 + $0x148] sm:$0xff] }
  0x20   :  { %5799 = vmatpush1.bf16.msra.mxu1 %v5798_v11  ;;  %5773 = vmatprep.subr.bf16.mxu0 %v5772_v15  ;;  %v5846_v11 = vpack.c.bf16 %v274_v7, %v270_v6  ;;  %v282_v15 = vld [vmem:[%s11955_s4 + $0x78] sm:$0xff]  ;;  %v5848_v16 = vpack.c.bf16 %v273_v13, %v269_v12  ;;  %v5858_v29 = vpack.c.bf16 %v298_v27, %v294_v26  ;;  %v305_v38 = vld [vmem:[%s11955_s4 + $0x130] sm:$0xff]  ;;  %v311_v47 = vld [vmem:[%s11955_s4 + $0x160] sm:$0xff] }
  0x21   :  { %5800 = vmatprep.subr.bf16.mxu1 %v6265_v0  ;;  %v5850_v17 = vpack.c.bf16 %v282_v15, %v278_v14  ;;  %v302_v32 = vld [vmem:[%s11955_s4 + $0x118] sm:$0xff]  ;;  %v5864_v39 = vpack.c.bf16 %v305_v38, %v301_v37  ;;  %v309_v51 = vld [vmem:[%s11955_s4 + $0x150] sm:$0xff]  ;;  %v316_v54 = vld [vmem:[%s11955_s4 + $0x188] sm:$0xff] }
  0x22   :  { %v310_v42 = vld [vmem:[%s11955_s4 + $0x158] sm:$0xff]  ;;  %v320_v56 = vld [vmem:[%s11955_s4 + $0x1a8] sm:$0xff]  ;;  %v315_v61 = vld [vmem:[%s11955_s4 + $0x180] sm:$0xff] }
  0x23   :  { %5775 = vmatpush3.bf16.msra.mxu0 %v5774_v23  ;;  %v314_v44 = vld [vmem:[%s11955_s4 + $0x178] sm:$0xff]  ;;  %v5842_v59 = vpack.c.bf16 %v320_v56, %v316_v54  ;;  %v317_v63 = vld [vmem:[%s11955_s4 + $0x190] sm:$0xff]  ;;  %v324_v4 = vld [vmem:[%s11955_s4 + $0x1c8] sm:$0xff] }
  0x24   :  { %5802 = vmatpush1.bf16.msra.mxu1 %v5801_v21  ;;  %5819 = vmatprep.subr.bf16.mxu0 %v5818_v25  ;;  %v286_v21 = vld [vmem:[%s11955_s4 + $0x98] sm:$0xff]  ;;  %v289_v25 = vld [vmem:[%s11955_s4 + $0xb0] sm:$0xff]  ;;  %v5866_v48 = vpack.c.bf16 %v314_v44, %v310_v42  ;;  %v323_v6 = vld [vmem:[%s11955_s4 + $0x1c0] sm:$0xff] }
  0x25   :  { %5803 = vmatprep.subr.bf16.mxu1 %v6265_v0  ;;  %v5856_v28 = vpack.c.bf16 %v289_v25, %v285_v24  ;;  %v322_v58 = vld [vmem:[%s11955_s4 + $0x1b8] sm:$0xff]  ;;  %v321_v2 = vld [vmem:[%s11955_s4 + $0x1b0] sm:$0xff]  ;;  %v643_v27 = vld [vmem:[%s11956_s1 + $0x20] sm:$0xff] }
  0x26   :  { %191 = vmatmul.mubr.f32.vlgmr.msra.gmra.mrb[0].mxu0 %v107_v30  ;;  %v293_v30 = vld [vmem:[%s11955_s4 + $0xd0] sm:$0xff]  ;;  %v326_v5 = vld [vmem:[%s11955_s4 + $0x1d8] sm:$0xff]  ;;  %v656_v42 = vld [vmem:[%s11956_s1 + $0x88] sm:$0xff] }
  0x27   :  { %5821 = vmatpush1.bf16.msra.mxu0 %v5820_v33  ;;  %v306_v33 = vld [vmem:[%s11955_s4 + $0x138] sm:$0xff]  ;;  %v325_v7 = vld [vmem:[%s11955_s4 + $0x1d0] sm:$0xff] }
  0x28   :  { %5805 = vmatpush1.bf16.msra.mxu1 %v5804_v31  ;;  %5823 = vmatprep.subr.bf16.mxu0 %v5822_v36  ;;  %v297_v31 = vld [vmem:[%s11955_s4 + $0xf0] sm:$0xff]  ;;  %v5862_v36 = vpack.c.bf16 %v306_v33, %v302_v32  ;;  %v647_v33 = vld [vmem:[%s11956_s1 + $0x40] sm:$0xff]  ;;  %v654_v37 = vld [vmem:[%s11956_s1 + $0x78] sm:$0xff] }
  0x29   :  { %5806 = vmatprep.subr.bf16.mxu1 %v6265_v0  ;;  %v5860_v34 = vpack.c.bf16 %v297_v31, %v293_v30  ;;  %v641_v18 = vld [vmem:[%s11956_s1 + $0x10] sm:$0xff]  ;;  %v650_v30 = vld [vmem:[%s11956_s1 + $0x58] sm:$0xff] }
  0x2a   :  { %v661_v56 = vld [vmem:[%s11956_s1 + $0xb0] sm:$0xff] }
  0x2b   :  { %5825 = vmatpush1.bf16.msra.mxu0 %v5824_v43 }
  0x2c   :  { %5808 = vmatpush1.bf16.msra.mxu1 %v5807_v41  ;;  %5827 = vmatprep.subr.bf16.mxu0 %v5826_v46  ;;  %v312_v41 = vld [vmem:[%s11955_s4 + $0x168] sm:$0xff]  ;;  %v307_v46 = vld [vmem:[%s11955_s4 + $0x140] sm:$0xff] }
  0x2d   :  { %5809 = vmatprep.subr.bf16.mxu1 %v6265_v0  ;;  %v5838_v43 = vpack.c.bf16 %v312_v41, %v308_v40  ;;  %v5840_v49 = vpack.c.bf16 %v311_v47, %v307_v46  ;;  %v651_v40 = vld [vmem:[%s11956_s1 + $0x60] sm:$0xff]  ;;  %v653_v41 = vld [vmem:[%s11956_s1 + $0x70] sm:$0xff] }
  0x2e   :  { %v5888_v44 = vpack.c.bf16 %v653_v41, %v651_v40  ;;  %v655_v47 = vld [vmem:[%s11956_s1 + $0x80] sm:$0xff]  ;;  %v694_v40 = vld [vmem:[%s11956_s1 + $0x1b8] sm:$0xff] }
  0x2f   :  { %5829 = vmatpush1.bf16.msra.mxu0 %v5828_v55 }
  0x30   :  { %5811 = vmatpush1.bf16.msra.mxu1 %v5810_v52  ;;  %5831 = vmatprep.subr.bf16.mxu0 %v5830_v57  ;;  %v313_v52 = vld [vmem:[%s11955_s4 + $0x170] sm:$0xff]  ;;  %v318_v57 = vld [vmem:[%s11955_s4 + $0x198] sm:$0xff] }
  0x31   :  { %5812 = vmatprep.subr.bf16.mxu1 %v6265_v0  ;;  %v5868_v55 = vpack.c.bf16 %v313_v52, %v309_v51  ;;  %v5870_v60 = vpack.c.bf16 %v322_v58, %v318_v57  ;;  %v662_v51 = vld [vmem:[%s11956_s1 + $0xb8] sm:$0xff]  ;;  %v664_v57 = vld [vmem:[%s11956_s1 + $0xc8] sm:$0xff] }
  0x32   :  { %v666_v58 = vld [vmem:[%s11956_s1 + $0xd8] sm:$0xff] }
  0x33   :  { %5833 = vmatpush1.bf16.msra.mxu0 %v5832_v1 }
  0x34   :  { %5814 = vmatpush1.bf16.msra.mxu1 %v5813_v62  ;;  %5835 = vmatprep.subr.bf16.mxu0 %v5834_v3  ;;  %v319_v62 = vld [vmem:[%s11955_s4 + $0x1a0] sm:$0xff]  ;;  %v5872_v3 = vpack.c.bf16 %v321_v2, %v317_v63  ;;  %v668_v63 = vld [vmem:[%s11956_s1 + $0xe8] sm:$0xff] }
  0x35   :  { %5815 = vmatprep.subr.bf16.mxu1 %v6265_v0  ;;  %v115_v0 = vrot.slane %v6447_v53, %v114_v8  ;;  %v290_v53 = vld [vmem:[%s11955_s4 + $0xb8] sm:$0xff]  ;;  %v5844_v1 = vpack.c.bf16 %v319_v62, %v315_v61  ;;  %v663_v61 = vld [vmem:[%s11956_s1 + $0xc0] sm:$0xff]  ;;  %v665_v62 = vld [vmem:[%s11956_s1 + $0xd0] sm:$0xff] }
  0x36   :  { %v5854_v23 = vpack.c.bf16 %v290_v53, %v286_v21  ;;  %v644_v21 = vld [vmem:[%s11956_s1 + $0x28] sm:$0xff]  ;;  %v646_v53 = vld [vmem:[%s11956_s1 + $0x38] sm:$0xff]  ;;  %v5900_v2 = vpack.c.bf16 %v665_v62, %v663_v61 }
  0x37   :  { %5837 = vmatpush1.bf16.msra.mxu0 %v5836_v10  ;;  %v640_v10 = vld [vmem:[%s11956_s1 + $0x8] sm:$0xff]  ;;  %v5878_v26 = vpack.c.bf16 %v646_v53, %v644_v21  ;;  %v682_v21 = vld [vmem:[%s11956_s1 + $0x158] sm:$0xff] }
  0x38   :  { %5817 = vmatpush1.bf16.msra.mxu1 %v5816_v9  ;;  %5839 = vmatprep.subr.bf16.mxu0 %v5838_v43  ;;  %v11966_v9 = vmov 0.0   ;;  %v658_v43 = vld [vmem:[%s11956_s1 + $0x98] sm:$0xff] }
  0x39   :  { %5847 = vmatprep.subr.bf16.mxu1 %v5846_v11  ;;  %417 = vmatprep.mubr.f32.mxu0 %v11966_v9  ;;  %v642_v11 = vld [vmem:[%s11956_s1 + $0x18] sm:$0xff]  ;;  %v5890_v46 = vpack.c.bf16 %v658_v43, %v656_v42  ;;  %v691_v42 = vld [vmem:[%s11956_s1 + $0x1a0] sm:$0xff]  ;;  %v693_v43 = vld [vmem:[%s11956_s1 + $0x1b0] sm:$0xff] }
  0x3a   :  { %v5874_v12 = vpack.c.bf16 %v642_v11, %v640_v10  ;;  %v706_v61 = vld [vmem:[%s11956_s1 + $0x218] sm:$0xff] }
  0x3b   :  { %261 = vmatmul.mubr.f32.vlgmr.msra.gmra.mrb[0].mxu1 %v115_v0  ;;  %5841 = vmatpush1.bf16.msra.mxu0 %v5840_v49  ;;  %v102_v0 = vld [vmem:[%s11957_s3] sm:$0x1]  ;;  %v660_v49 = vld [vmem:[%s11956_s1 + $0xa8] sm:$0xff] }
  0x3c   :  { %5849 = vmatpush1.bf16.msra.mxu1 %v5848_v16  ;;  %5843 = vmatprep.subr.bf16.mxu0 %v5842_v59  ;;  %v5894_v54 = vpack.c.bf16 %v662_v51, %v660_v49  ;;  %v695_v49 = vld [vmem:[%s11956_s1 + $0x1c0] sm:$0xff]  ;;  %v697_v51 = vld [vmem:[%s11956_s1 + $0x1d0] sm:$0xff] }
  0x3d   :  { %5851 = vmatprep.subr.bf16.mxu1 %v5850_v17  ;;  %488 = vmatprep.mubr.f32.mxu1 %v11966_v9  ;;  %v639_v17 = vld [vmem:[%s11956_s1] sm:$0xff] }
  0x3e   :  { %v5876_v24 = vpack.c.bf16 %v641_v18, %v639_v17  ;;  %v675_v17 = vld [vmem:[%s11956_s1 + $0x120] sm:$0xff]  ;;  %v677_v18 = vld [vmem:[%s11956_s1 + $0x130] sm:$0xff] }
  0x3f   :  { %5845 = vmatpush1.bf16.msra.mxu0 %v5844_v1  ;;  %v670_v1 = vld [vmem:[%s11956_s1 + $0xf8] sm:$0xff]  ;;  %v5912_v53 = vpack.c.bf16 %v677_v18, %v675_v17 }
  0x40   :  { %5853 = vmatpush1.bf16.msra.mxu1 %v5852_v22  ;;  %381 = vmatprep.subr.mxu0 %v324_v4  ;;  %v667_v4 = vld [vmem:[%s11956_s1 + $0xe0] sm:$0xff] }
  0x41   :  { %5855 = vmatprep.subr.bf16.mxu1 %v5854_v23 }
  0x43   :  { %382 = vmatpush1.msra.mxu0 %v323_v6  ;;  %v672_v6 = vld [vmem:[%s11956_s1 + $0x108] sm:$0xff] }
  0x44   :  { %5857 = vmatpush1.bf16.msra.mxu1 %v5856_v28  ;;  %5875 = vmatprep.subr.bf16.mxu0 %v5874_v12  ;;  %v645_v28 = vld [vmem:[%s11956_s1 + $0x30] sm:$0xff]  ;;  %v671_v12 = vld [vmem:[%s11956_s1 + $0x100] sm:$0xff] }
  0x45   :  { %5859 = vmatprep.subr.bf16.mxu1 %v5858_v29  ;;  %v648_v29 = vld [vmem:[%s11956_s1 + $0x48] sm:$0xff]  ;;  %v5880_v31 = vpack.c.bf16 %v645_v28, %v643_v27 }
  0x46   :  { %v5882_v32 = vpack.c.bf16 %v650_v30, %v648_v29  ;;  %v683_v29 = vld [vmem:[%s11956_s1 + $0x160] sm:$0xff]  ;;  %v685_v30 = vld [vmem:[%s11956_s1 + $0x170] sm:$0xff] }
  0x48   :  { %5861 = vmatpush1.bf16.msra.mxu1 %v5860_v34  ;;  %v649_v34 = vld [vmem:[%s11956_s1 + $0x50] sm:$0xff] }
  0x49   :  { %5863 = vmatprep.subr.bf16.mxu1 %v5862_v36  ;;  %v652_v36 = vld [vmem:[%s11956_s1 + $0x68] sm:$0xff]  ;;  %v5884_v38 = vpack.c.bf16 %v649_v34, %v647_v33  ;;  %v690_v33 = vld [vmem:[%s11956_s1 + $0x198] sm:$0xff] }
  0x4c   :  { %5865 = vmatpush1.bf16.msra.mxu1 %v5864_v39  ;;  %v5886_v39 = vpack.c.bf16 %v654_v37, %v652_v36  ;;  %v687_v36 = vld [vmem:[%s11956_s1 + $0x180] sm:$0xff]  ;;  %v689_v37 = vld [vmem:[%s11956_s1 + $0x190] sm:$0xff] }
  0x4d   :  { %5867 = vmatprep.subr.bf16.mxu1 %v5866_v48  ;;  %v657_v48 = vld [vmem:[%s11956_s1 + $0x90] sm:$0xff] }
  0x4e   :  { %v5892_v52 = vpack.c.bf16 %v657_v48, %v655_v47  ;;  %v698_v47 = vld [vmem:[%s11956_s1 + $0x1d8] sm:$0xff] }
  0x50   :  { %5869 = vmatpush1.bf16.msra.mxu1 %v5868_v55  ;;  %v659_v55 = vld [vmem:[%s11956_s1 + $0xa0] sm:$0xff] }
  0x51   :  { %5871 = vmatprep.subr.bf16.mxu1 %v5870_v60  ;;  %v5896_v59 = vpack.c.bf16 %v661_v56, %v659_v55  ;;  %v5898_v60 = vpack.c.bf16 %v666_v58, %v664_v57  ;;  %v702_v55 = vld [vmem:[%s11956_s1 + $0x1f8] sm:$0xff]  ;;  %v699_v57 = vld [vmem:[%s11956_s1 + $0x1e0] sm:$0xff]  ;;  %v701_v58 = vld [vmem:[%s11956_s1 + $0x1f0] sm:$0xff] }
  0x54   :  { %5873 = vmatpush1.bf16.msra.mxu1 %v5872_v3  ;;  %v5902_v3 = vpack.c.bf16 %v670_v1, %v668_v63  ;;  %v327_v63 = vld [vmem:[%s11958_s5] sm:$0xf] }
  0x55   :  { %452 = vmatprep.subr.mxu1 %v326_v5  ;;  %v669_v5 = vld [vmem:[%s11956_s1 + $0xf0] sm:$0xff]  ;;  %v332_v1 = vrot.slane %v327_v63, %v6514_v20 }
  0x56   :  { %v5904_v10 = vpack.c.bf16 %v669_v5, %v667_v4  ;;  %v344_v4 = vrot.slane %v327_v63, %v118_v50 }
  0x58   :  { %453 = vmatpush1.msra.mxu1 %v325_v7  ;;  %v674_v7 = vld [vmem:[%s11956_s1 + $0x118] sm:$0xff] }
  0x59   :  { %v5906_v11 = vpack.c.bf16 %v674_v7, %v672_v6 }
  0xf9   :  { %v5741_v13 = vpop.f32.mrb[0].mxu0 }
  0xfa   :  { %v5742_v14 = vpop.f32.mrb[1].mxu0 }
  0xfb   :  { %v5743_v15 = vadd.f32 %v5742_v14, %v5741_v13  ;;  %v673_v13 = vld [vmem:[%s11956_s1 + $0x110] sm:$0xff]  ;;  %v676_v14 = vld [vmem:[%s11956_s1 + $0x128] sm:$0xff] }
  0xfd   :  { %v193_v16 = vadd.f32 %v5743_v15, %v102_v0  ;;  %v678_v15 = vld [vmem:[%s11956_s1 + $0x138] sm:$0xff]  ;;  %v5908_v0 = vpack.c.bf16 %v673_v13, %v671_v12 }
 0x10e   :  { %v262_v19 = vpop.f32.mrb[0].mxu1 }
 0x10f   :  { %v263_v22 = vadd.f32 %v262_v19, %v193_v16  ;;  %v264_v23 = vpop.f32.mrb[1].mxu1  ;;  %v5910_v16 = vpack.c.bf16 %v678_v15, %v676_v14  ;;  %v680_v19 = vld [vmem:[%s11956_s1 + $0x148] sm:$0xff] }
 0x110   :  { %v679_v23 = vld [vmem:[%s11956_s1 + $0x140] sm:$0xff] }
 0x111   :  { %v266_v25 = vmax.f32 %v263_v22, 0.0  ;;  %v5914_v22 = vpack.c.bf16 %v682_v21, %v680_v19 }
 0x113   :  { %5609 = vmatmul.mubr.msk.f32.vlgmr.msra.gmra.mrb[2].mxu0 %vm349_vm1, %v266_v25  ;;  %5610 = vmatmul.mubr.msk.f32.vlgmr.msra.gmra.mrb[2].mxu1 %vm349_vm1, %v266_v25  ;;  %v684_v25 = vld [vmem:[%s11956_s1 + $0x168] sm:$0xff] }
 0x114   :  { %5877 = vmatpush1.bf16.msra.mxu0 %v5876_v24  ;;  %2147 = vmatprep.mubr.f32.mxu1 %v11966_v9  ;;  %v681_v24 = vld [vmem:[%s11956_s1 + $0x150] sm:$0xff] }
 0x115   :  { %5879 = vmatprep.subr.bf16.mxu0 %v5878_v26  ;;  %v686_v26 = vld [vmem:[%s11956_s1 + $0x178] sm:$0xff]  ;;  %v5916_v27 = vpack.c.bf16 %v681_v24, %v679_v23 }
 0x116   :  { %v5918_v28 = vpack.c.bf16 %v686_v26, %v684_v25  ;;  %v512_v25 = vld [vmem:[%s11959_s6 + $0x8] sm:$0xff]  ;;  %v703_v26 = vld [vmem:[%s11956_s1 + $0x200] sm:$0xff] }
 0x118   :  { %5881 = vmatpush1.bf16.msra.mxu0 %v5880_v31  ;;  %v5920_v31 = vpack.c.bf16 %v685_v30, %v683_v29  ;;  %v511_v29 = vld [vmem:[%s11959_s6] sm:$0xff]  ;;  %v708_v30 = vld [vmem:[%s11956_s1 + $0x228] sm:$0xff] }
 0x119   :  { %5883 = vmatprep.subr.bf16.mxu0 %v5882_v32  ;;  %v688_v32 = vld [vmem:[%s11956_s1 + $0x188] sm:$0xff] }
 0x11a   :  { %v5922_v34 = vpack.c.bf16 %v690_v33, %v688_v32 }
 0x11c   :  { %5885 = vmatpush1.bf16.msra.mxu0 %v5884_v38  ;;  %v5924_v38 = vpack.c.bf16 %v689_v37, %v687_v36  ;;  %v707_v36 = vld [vmem:[%s11956_s1 + $0x220] sm:$0xff]  ;;  %v709_v37 = vld [vmem:[%s11956_s1 + $0x230] sm:$0xff] }
 0x11d   :  { %5887 = vmatprep.subr.bf16.mxu0 %v5886_v39  ;;  %v692_v39 = vld [vmem:[%s11956_s1 + $0x1a8] sm:$0xff] }
 0x11e   :  { %v5926_v41 = vpack.c.bf16 %v694_v40, %v692_v39  ;;  %v515_v40 = vld [vmem:[%s11959_s6 + $0x20] sm:$0xff] }
 0x120   :  { %5889 = vmatpush1.bf16.msra.mxu0 %v5888_v44  ;;  %v5928_v44 = vpack.c.bf16 %v693_v43, %v691_v42  ;;  %v714_v42 = vld [vmem:[%s11956_s1 + $0x258] sm:$0xff]  ;;  %v6992_v43 = vld [vmem:[%s11956_s1 + $0x240] sm:$0xff] }
 0x121   :  { %5891 = vmatprep.subr.bf16.mxu0 %v5890_v46  ;;  %v696_v46 = vld [vmem:[%s11956_s1 + $0x1c8] sm:$0xff] }
 0x122   :  { %v5930_v48 = vpack.c.bf16 %v698_v47, %v696_v46  ;;  %v520_v47 = vld [vmem:[%s11959_s6 + $0x48] sm:$0xff] }
 0x124   :  { %5893 = vmatpush1.bf16.msra.mxu0 %v5892_v52  ;;  %v5932_v52 = vpack.c.bf16 %v697_v51, %v695_v49  ;;  %v7006_v49 = vld [vmem:[%s11956_s1 + $0x268] sm:$0xff]  ;;  %v7011_v51 = vld [vmem:[%s11956_s1 + $0x278] sm:$0xff] }
 0x125   :  { %5895 = vmatprep.subr.bf16.mxu0 %v5894_v54  ;;  %v700_v54 = vld [vmem:[%s11956_s1 + $0x1e8] sm:$0xff] }
 0x126   :  { %v5934_v56 = vpack.c.bf16 %v702_v55, %v700_v54  ;;  %v519_v54 = vld [vmem:[%s11959_s6 + $0x40] sm:$0xff]  ;;  %v524_v55 = vld [vmem:[%s11959_s6 + $0x68] sm:$0xff] }
 0x128   :  { %5897 = vmatpush1.bf16.msra.mxu0 %v5896_v59  ;;  %v5936_v59 = vpack.c.bf16 %v701_v58, %v699_v57  ;;  %v7028_v57 = vld [vmem:[%s11956_s1 + $0x270] sm:$0xff] }
 0x129   :  { %5899 = vmatprep.subr.bf16.mxu0 %v5898_v60  ;;  %v704_v60 = vld [vmem:[%s11956_s1 + $0x208] sm:$0xff]  ;;  %v521_v58 = vld [vmem:[%s11959_s6 + $0x50] sm:$0xff] }
 0x12a   :  { %v5938_v62 = vpack.c.bf16 %v706_v61, %v704_v60  ;;  %v7042_v61 = vld [vmem:[%s11956_s1 + $0x288] sm:$0xff] }
 0x12c   :  { %5901 = vmatpush1.bf16.msra.mxu0 %v5900_v2  ;;  %v340_v2 = vrot.slane %v327_v63, %v114_v8 }
 0x12d   :  { %5903 = vmatprep.subr.bf16.mxu0 %v5902_v3  ;;  %v336_v3 = vrot.slane %v327_v63, %v110_v45  ;;  %v526_v63 = vld [vmem:[%s11959_s6 + $0x78] sm:$0xff] }
 0x130   :  { %5905 = vmatpush1.bf16.msra.mxu0 %v5904_v10 }
 0x131   :  { %5907 = vmatprep.subr.bf16.mxu0 %v5906_v11 }
 0x134   :  { %5909 = vmatpush1.bf16.msra.mxu0 %v5908_v0 }
 0x135   :  { %5911 = vmatprep.subr.bf16.mxu0 %v5910_v16 }
 0x138   :  { %5913 = vmatpush1.bf16.msra.mxu0 %v5912_v53 }
 0x139   :  { %5915 = vmatprep.subr.bf16.mxu0 %v5914_v22 }
 0x13c   :  { %5917 = vmatpush1.bf16.msra.mxu0 %v5916_v27  ;;  %v705_v27 = vld [vmem:[%s11956_s1 + $0x210] sm:$0xff] }
 0x13d   :  { %5919 = vmatprep.subr.bf16.mxu0 %v5918_v28  ;;  %v5940_v39 = vpack.c.bf16 %v705_v27, %v703_v26  ;;  %v549_v26 = vld [vmem:[%s11959_s6 + $0x130] sm:$0xff]  ;;  %v554_v27 = vld [vmem:[%s11959_s6 + $0x158] sm:$0xff] }
 0x140   :  { %5921 = vmatpush1.bf16.msra.mxu0 %v5920_v31  ;;  %v710_v31 = vld [vmem:[%s11956_s1 + $0x238] sm:$0xff] }
 0x141   :  { %5923 = vmatprep.subr.bf16.mxu0 %v5922_v34  ;;  %v516_v34 = vld [vmem:[%s11959_s6 + $0x28] sm:$0xff]  ;;  %v5942_v46 = vpack.c.bf16 %v710_v31, %v708_v30 }
 0x144   :  { %5925 = vmatpush1.bf16.msra.mxu0 %v5924_v38 }
 0x145   :  { %5927 = vmatprep.subr.bf16.mxu0 %v5926_v41  ;;  %v712_v41 = vld [vmem:[%s11956_s1 + $0x248] sm:$0xff] }
 0x148   :  { %5929 = vmatpush1.bf16.msra.mxu0 %v5928_v44 }
 0x149   :  { %5931 = vmatprep.subr.bf16.mxu0 %v5930_v48  ;;  %v7001_v48 = vld [vmem:[%s11956_s1 + $0x250] sm:$0xff] }
 0x14c   :  { %5933 = vmatpush1.bf16.msra.mxu0 %v5932_v52 }
 0x14d   :  { %5935 = vmatprep.subr.bf16.mxu0 %v5934_v56  ;;  %v7023_v56 = vld [vmem:[%s11956_s1 + $0x260] sm:$0xff] }
 0x150   :  { %5937 = vmatpush1.bf16.msra.mxu0 %v5936_v59 }
 0x151   :  { %5939 = vmatprep.subr.bf16.mxu0 %v5938_v62  ;;  %v7047_v62 = vld [vmem:[%s11956_s1 + $0x298] sm:$0xff] }
 0x1e6   :  { %v419_v5 = vpop.f32.mrb[2].mxu0  ;;  %v490_v6 = vpop.f32.mrb[2].mxu1 }
 0x1e7   :  { %v420_v7 = vadd.f32 %v419_v5, %v332_v1  ;;  %v491_v10 = vadd.f32 %v490_v6, %v340_v2  ;;  %v421_v11 = vpop.f32.mrb[3].mxu0  ;;  %v492_v12 = vpop.f32.mrb[3].mxu1  ;;  %v5944_v1 = vpack.c.bf16 %v709_v37, %v707_v36  ;;  %v530_v2 = vld [vmem:[%s11959_s6 + $0x98] sm:$0xff]  ;;  %v5946_v5 = vpack.c.bf16 %v714_v42, %v712_v41  ;;  %v557_v36 = vld [vmem:[%s11959_s6 + $0x170] sm:$0xff] }
 0x1e8   :  { %v422_v13 = vadd.f32 %v421_v11, %v336_v3  ;;  %v493_v14 = vadd.f32 %v492_v12, %v344_v4  ;;  %v529_v3 = vld [vmem:[%s11959_s6 + $0x90] sm:$0xff]  ;;  %v5948_v6 = vpack.c.bf16 %v7001_v48, %v6992_v43  ;;  %v538_v11 = vld [vmem:[%s11959_s6 + $0xd8] sm:$0xff] }
 0x1e9   :  { %v495_v15 = vmul.f32 0.16666667, %v420_v7  ;;  %v497_v0 = vmul.f32 0.16666667, %v491_v10  ;;  %v534_v7 = vld [vmem:[%s11959_s6 + $0xb8] sm:$0xff]  ;;  %v533_v10 = vld [vmem:[%s11959_s6 + $0xb0] sm:$0xff] }
 0x1ea   :  { %v496_v16 = vmul.f32 0.16666667, %v422_v13  ;;  %v498_v17 = vmul.f32 0.16666667, %v493_v14  ;;  %v5950_v13 = vpack.c.bf16 %v7011_v51, %v7006_v49  ;;  %v5952_v14 = vpack.c.bf16 %v7028_v57, %v7023_v56  ;;  %v562_v37 = vld [vmem:[%s11959_s6 + $0x198] sm:$0xff]  ;;  %v561_v42 = vld [vmem:[%s11959_s6 + $0x190] sm:$0xff] }
 0x1eb   :  { %v499_v18 = vadd.f32 0.5, %v495_v15  ;;  %v501_v8 = vadd.f32 0.5, %v497_v0  ;;  %v5954_v15 = vpack.c.bf16 %v7047_v62, %v7042_v61  ;;  %v537_v0 = vld [vmem:[%s11959_s6 + $0xd0] sm:$0xff]  ;;  %v566_v43 = vld [vmem:[%s11959_s6 + $0x1b8] sm:$0xff]  ;;  %v719_v57 = vld [vmem:[%s11956_s1 + $0x280] sm:$0xff] }
 0x1ec   :  { %v500_v19 = vadd.f32 0.5, %v496_v16  ;;  %v502_v21 = vadd.f32 0.5, %v498_v17  ;;  %v542_v16 = vld [vmem:[%s11959_s6 + $0xf8] sm:$0xff]  ;;  %v541_v17 = vld [vmem:[%s11959_s6 + $0xf0] sm:$0xff]  ;;  %v728_v61 = vld [vmem:[%s11956_s1 + $0x2c8] sm:$0xff] }
 0x1ed   :  { %v503_v45 = vmax.f32 %v499_v18, 0.0  ;;  %v505_v50 = vmax.f32 %v501_v8, 0.0  ;;  %v730_v62 = vld [vmem:[%s11956_s1 + $0x2d8] sm:$0xff] }
 0x1ee   :  { %v504_v53 = vmax.f32 %v500_v19, 0.0  ;;  %v506_v22 = vmax.f32 %v502_v21, 0.0 }
 0x1ef   :  { %v507_v35 = vmin.f32 %v503_v45, 1.0  ;;  %v509_v32 = vmin.f32 %v505_v50, 1.0  ;;  %v546_v45 = vld [vmem:[%s11959_s6 + $0x118] sm:$0xff]  ;;  %v523_v50 = vld [vmem:[%s11959_s6 + $0x60] sm:$0xff] }
 0x1f0   :  { %v508_v23 = vmin.f32 %v504_v53, 1.0  ;;  %v510_v33 = vmin.f32 %v506_v22, 1.0  ;;  %v545_v53 = vld [vmem:[%s11959_s6 + $0x110] sm:$0xff] }
 0x1f1   :  { %v6947_v24 = vrot.slane %v507_v35, %v6514_v20  ;;  %v7034_v59 = vrot.slane %v509_v32, %v6514_v20  ;;  %v550_v35 = vld [vmem:[%s11959_s6 + $0x138] sm:$0xff] }
 0x1f2   :  { %v6959_v28 = vrot.slane %v508_v23, %v6514_v20  ;;  %v7037_v60 = vrot.slane %v510_v33, %v6514_v20  ;;  %v525_v20 = vld [vmem:[%s11959_s6 + $0x70] sm:$0xff] }
 0x1f3   :  { %v583_v44 = vmul.f32 %v6947_v24, %v511_v29  ;;  %v587_v4 = vmul.f32 %v6947_v24, %v515_v40  ;;  %v591_v18 = vmul.f32 %v6947_v24, %v519_v54  ;;  %v7092_v19 = vmul.f32 %v7034_v59, %v521_v58  ;;  %v553_v29 = vld [vmem:[%s11959_s6 + $0x150] sm:$0xff] }
 0x1f4   :  { %v584_v38 = vmul.f32 %v6959_v28, %v512_v25  ;;  %v588_v52 = vmul.f32 %v6959_v28, %v516_v34  ;;  %v592_v12 = vmul.f32 %v6959_v28, %v520_v47  ;;  %v596_v8 = vmul.f32 %v6959_v28, %v524_v55  ;;  %v558_v34 = vld [vmem:[%s11959_s6 + $0x178] sm:$0xff]  ;;  %v721_v58 = vld [vmem:[%s11956_s1 + $0x290] sm:$0xff] }
 0x1f5   :  { %v7095_v21 = vmul.f32 %v7037_v60, %v526_v63  ;;  %v7110_v22 = vmul.f32 %v7034_v59, %v525_v20  ;;  %v7113_v23 = vmul.f32 %v7037_v60, %v530_v2  ;;  %v7116_v25 = vmul.f32 %v7034_v59, %v529_v3  ;;  %v527_v3 = vld [vmem:[%s11959_s6 + $0x80] sm:$0xff] }
 0x1f6   :  { %865 = vmatprep.mubr.f32.mxu0 %v584_v38  ;;  %v7128_v30 = vmul.f32 %v7037_v60, %v534_v7  ;;  %v7131_v31 = vmul.f32 %v7034_v59, %v533_v10  ;;  %v7134_v32 = vmul.f32 %v7037_v60, %v538_v11  ;;  %v7137_v33 = vmul.f32 %v7034_v59, %v537_v0 }
 0x1f7   :  { %866 = vmatmul.mubr.f32.vlgmr.msra.gmra.mrb[4].mxu0 %v583_v44  ;;  %v7149_v38 = vmul.f32 %v7037_v60, %v542_v16  ;;  %v7155_v40 = vmul.f32 %v7037_v60, %v546_v45  ;;  %v7158_v41 = vmul.f32 %v7034_v59, %v545_v53  ;;  %v565_v44 = vld [vmem:[%s11959_s6 + $0x1b0] sm:$0xff]  ;;  %v7173_v47 = vmul.f32 %v7037_v60, %v550_v35  ;;  %v535_v35 = vld [vmem:[%s11959_s6 + $0xc0] sm:$0xff] }
 0x1f8   :  { %871 = vmatprep.mubr.f32.mxu0 %v588_v52  ;;  %5941 = vmatpush1.bf16.msra.mxu0 %v5940_v39  ;;  %v7152_v39 = vmul.f32 %v7034_v59, %v541_v17  ;;  %v7176_v48 = vmul.f32 %v7034_v59, %v549_v26  ;;  %v7179_v49 = vmul.f32 %v7037_v60, %v554_v27  ;;  %v729_v45 = vld [vmem:[%s11956_s1 + $0x2d0] sm:$0xff]  ;;  %v734_v26 = vld [vmem:[%s11956_s1 + $0x2f8] sm:$0xff]  ;;  %v540_v27 = vld [vmem:[%s11959_s6 + $0xe8] sm:$0xff] }
 0x1f9   :  { %5943 = vmatprep.subr.bf16.mxu0 %v5942_v46  ;;  %v528_v46 = vld [vmem:[%s11959_s6 + $0x88] sm:$0xff]  ;;  %v7182_v51 = vmul.f32 %v7034_v59, %v553_v29  ;;  %v7185_v52 = vmul.f32 %v7037_v60, %v558_v34  ;;  %v7188_v54 = vmul.f32 %v7034_v59, %v557_v36  ;;  %v7191_v55 = vmul.f32 %v7037_v60, %v562_v37  ;;  %v731_v37 = vld [vmem:[%s11956_s1 + $0x2e0] sm:$0xff] }
 0x1fa   :  { %v595_v56 = vmul.f32 %v6947_v24, %v523_v50  ;;  %v7201_v63 = vmul.f32 %v7034_v59, %v561_v42  ;;  %v7207_v20 = vmul.f32 %v7034_v59, %v565_v44  ;;  %v600_v2 = vmul.f32 %v6959_v28, %v528_v46  ;;  %v732_v50 = vld [vmem:[%s11956_s1 + $0x2e8] sm:$0xff]  ;;  %v733_v42 = vld [vmem:[%s11956_s1 + $0x2f0] sm:$0xff]  ;;  %v539_v44 = vld [vmem:[%s11959_s6 + $0xe0] sm:$0xff] }
 0x1fb   :  { %872 = vmatmul.mubr.f32.gmra.mrb[6].mxu0 %v587_v4  ;;  %v724_v4 = vld [vmem:[%s11956_s1 + $0x2a8] sm:$0xff]  ;;  %v5956_v7 = vpack.c.bf16 %v721_v58, %v719_v57  ;;  %v599_v10 = vmul.f32 %v6947_v24, %v527_v3  ;;  %v607_v34 = vmul.f32 %v6947_v24, %v535_v35  ;;  %v5966_v36 = vpack.c.bf16 %v734_v26, %v732_v50  ;;  %v743_v50 = vld [vmem:[%s11956_s1 + $0x340] sm:$0xff]  ;;  %v745_v26 = vld [vmem:[%s11956_s1 + $0x350] sm:$0xff] }
 0x1fc   :  { %877 = vmatprep.mubr.f32.mxu0 %v592_v12  ;;  %5945 = vmatpush1.bf16.msra.mxu0 %v5944_v1  ;;  %v7204_v1 = vmul.f32 %v7037_v60, %v566_v43  ;;  %v723_v12 = vld [vmem:[%s11956_s1 + $0x2a0] sm:$0xff]  ;;  %v612_v43 = vmul.f32 %v6959_v28, %v540_v27  ;;  %v736_v46 = vld [vmem:[%s11956_s1 + $0x308] sm:$0xff]  ;;  %v5968_v58 = vpack.c.bf16 %v733_v42, %v731_v37 }
 0x1fd   :  { %5947 = vmatprep.subr.bf16.mxu0 %v5946_v5  ;;  %v726_v5 = vld [vmem:[%s11956_s1 + $0x2b8] sm:$0xff]  ;;  %v544_v57 = vld [vmem:[%s11959_s6 + $0x108] sm:$0xff]  ;;  %v5980_v42 = vpack.c.bf16 %v745_v26, %v743_v50 }
 0x1fe   :  { %v5958_v11 = vpack.c.bf16 %v726_v5, %v724_v4  ;;  %v735_v4 = vld [vmem:[%s11956_s1 + $0x300] sm:$0xff]  ;;  %v737_v5 = vld [vmem:[%s11956_s1 + $0x310] sm:$0xff]  ;;  %v556_v37 = vld [vmem:[%s11959_s6 + $0x168] sm:$0xff] }
 0x1ff   :  { %878 = vmatmul.mubr.f32.gmra.mrb[8].mxu0 %v591_v18  ;;  %v5962_v18 = vpack.c.bf16 %v730_v62, %v728_v61  ;;  %v739_v61 = vld [vmem:[%s11956_s1 + $0x320] sm:$0xff]  ;;  %v741_v62 = vld [vmem:[%s11956_s1 + $0x330] sm:$0xff] }
 0x200   :  { %883 = vmatprep.mubr.f32.mxu0 %v596_v8  ;;  %5949 = vmatpush1.bf16.msra.mxu0 %v5948_v6  ;;  %v532_v6 = vld [vmem:[%s11959_s6 + $0xa8] sm:$0xff]  ;;  %v727_v8 = vld [vmem:[%s11956_s1 + $0x2c0] sm:$0xff] }
 0x201   :  { %5951 = vmatprep.subr.bf16.mxu0 %v5950_v13  ;;  %v725_v13 = vld [vmem:[%s11956_s1 + $0x2b0] sm:$0xff]  ;;  %v604_v0 = vmul.f32 %v6959_v28, %v532_v6  ;;  %v5964_v29 = vpack.c.bf16 %v729_v45, %v727_v8  ;;  %v616_v6 = vmul.f32 %v6959_v28, %v544_v57  ;;  %v552_v8 = vld [vmem:[%s11959_s6 + $0x148] sm:$0xff]  ;;  %v5976_v45 = vpack.c.bf16 %v741_v62, %v739_v61 }
 0x202   :  { %v5960_v16 = vpack.c.bf16 %v725_v13, %v723_v12  ;;  %v548_v12 = vld [vmem:[%s11959_s6 + $0x128] sm:$0xff]  ;;  %v5972_v13 = vpack.c.bf16 %v737_v5, %v735_v4  ;;  %v624_v27 = vmul.f32 %v6959_v28, %v552_v8  ;;  %v628_v57 = vmul.f32 %v6959_v28, %v556_v37 }
 0x203   :  { %884 = vmatmul.mubr.f32.gmra.mrb[10].mxu0 %v595_v56  ;;  %v738_v56 = vld [vmem:[%s11956_s1 + $0x318] sm:$0xff]  ;;  %v560_v4 = vld [vmem:[%s11959_s6 + $0x188] sm:$0xff] }
 0x204   :  { %889 = vmatprep.mubr.f32.mxu0 %v600_v2  ;;  %5953 = vmatpush1.bf16.msra.mxu0 %v5952_v14  ;;  %v531_v14 = vld [vmem:[%s11959_s6 + $0xa0] sm:$0xff]  ;;  %v611_v2 = vmul.f32 %v6947_v24, %v539_v44  ;;  %v5970_v3 = vpack.c.bf16 %v738_v56, %v736_v46  ;;  %v749_v56 = vld [vmem:[%s11956_s1 + $0x370] sm:$0xff]  ;;  %v564_v61 = vld [vmem:[%s11959_s6 + $0x1a8] sm:$0xff] }
 0x205   :  { %5955 = vmatprep.subr.bf16.mxu0 %v5954_v15  ;;  %v536_v15 = vld [vmem:[%s11959_s6 + $0xc8] sm:$0xff]  ;;  %v603_v17 = vmul.f32 %v6947_v24, %v531_v14  ;;  %v747_v46 = vld [vmem:[%s11956_s1 + $0x360] sm:$0xff]  ;;  %v636_v8 = vmul.f32 %v6959_v28, %v564_v61 }
 0x206   :  { %v608_v53 = vmul.f32 %v6959_v28, %v536_v15  ;;  %v620_v15 = vmul.f32 %v6959_v28, %v548_v12  ;;  %v5984_v5 = vpack.c.bf16 %v749_v56, %v747_v46  ;;  %v632_v12 = vmul.f32 %v6959_v28, %v560_v4  ;;  %v513_v28 = vld [vmem:[%s11959_s6 + $0x10] sm:$0xff] }
 0x207   :  { %890 = vmatmul.mubr.f32.gmra.mrb[12].mxu0 %v599_v10  ;;  %v740_v10 = vld [vmem:[%s11956_s1 + $0x328] sm:$0xff] }
 0x208   :  { %895 = vmatprep.mubr.f32.mxu0 %v604_v0  ;;  %5957 = vmatpush1.bf16.msra.mxu0 %v5956_v7  ;;  %v543_v7 = vld [vmem:[%s11959_s6 + $0x100] sm:$0xff] }
 0x209   :  { %5959 = vmatprep.subr.bf16.mxu0 %v5958_v11  ;;  %v742_v11 = vld [vmem:[%s11956_s1 + $0x338] sm:$0xff]  ;;  %v615_v0 = vmul.f32 %v6947_v24, %v543_v7 }
 0x20a   :  { %v5974_v14 = vpack.c.bf16 %v742_v11, %v740_v10  ;;  %v751_v10 = vld [vmem:[%s11956_s1 + $0x380] sm:$0xff]  ;;  %v753_v11 = vld [vmem:[%s11956_s1 + $0x390] sm:$0xff] }
 0x20b   :  { %896 = vmatmul.mubr.f32.gmra.mrb[14].mxu0 %v603_v17  ;;  %v744_v17 = vld [vmem:[%s11956_s1 + $0x348] sm:$0xff]  ;;  %v5988_v62 = vpack.c.bf16 %v753_v11, %v751_v10 }
 0x20c   :  { %901 = vmatprep.mubr.f32.mxu0 %v608_v53  ;;  %5961 = vmatpush1.bf16.msra.mxu0 %v5960_v16  ;;  %v547_v16 = vld [vmem:[%s11959_s6 + $0x120] sm:$0xff] }
 0x20d   :  { %5963 = vmatprep.subr.bf16.mxu0 %v5962_v18  ;;  %v746_v18 = vld [vmem:[%s11956_s1 + $0x358] sm:$0xff]  ;;  %v619_v53 = vmul.f32 %v6947_v24, %v547_v16 }
 0x20e   :  { %v5978_v35 = vpack.c.bf16 %v746_v18, %v744_v17  ;;  %v755_v17 = vld [vmem:[%s11956_s1 + $0x3a0] sm:$0xff]  ;;  %v757_v18 = vld [vmem:[%s11956_s1 + $0x3b0] sm:$0xff] }
 0x20f   :  { %902 = vmatmul.mubr.f32.gmra.mrb[16].mxu0 %v607_v34  ;;  %v748_v34 = vld [vmem:[%s11956_s1 + $0x368] sm:$0xff] }
 0x210   :  { %907 = vmatprep.mubr.f32.mxu0 %v612_v43  ;;  %5965 = vmatpush1.bf16.msra.mxu0 %v5964_v29  ;;  %v551_v29 = vld [vmem:[%s11959_s6 + $0x140] sm:$0xff] }
 0x211   :  { %5967 = vmatprep.subr.bf16.mxu0 %v5966_v36  ;;  %v750_v36 = vld [vmem:[%s11956_s1 + $0x378] sm:$0xff]  ;;  %v623_v43 = vmul.f32 %v6947_v24, %v551_v29  ;;  %v585_v29 = vmul.f32 %v7034_v59, %v513_v28 }
 0x212   :  { %v5982_v44 = vpack.c.bf16 %v750_v36, %v748_v34  ;;  %v522_v36 = vld [vmem:[%s11959_s6 + $0x58] sm:$0xff] }
 0x213   :  { %908 = vmatmul.mubr.f32.gmra.mrb[18].mxu0 %v611_v2  ;;  %v752_v2 = vld [vmem:[%s11956_s1 + $0x388] sm:$0xff] }
 0x214   :  { %913 = vmatprep.mubr.f32.mxu0 %v616_v6  ;;  %5969 = vmatpush1.bf16.msra.mxu0 %v5968_v58  ;;  %v555_v58 = vld [vmem:[%s11959_s6 + $0x160] sm:$0xff] }
 0x215   :  { %5971 = vmatprep.subr.bf16.mxu0 %v5970_v3  ;;  %v754_v3 = vld [vmem:[%s11956_s1 + $0x398] sm:$0xff]  ;;  %v627_v6 = vmul.f32 %v6947_v24, %v555_v58 }
 0x216   :  { %v5986_v7 = vpack.c.bf16 %v754_v3, %v752_v2 }
 0x217   :  { %914 = vmatmul.mubr.f32.gmra.mrb[20].mxu0 %v615_v0  ;;  %v756_v0 = vld [vmem:[%s11956_s1 + $0x3a8] sm:$0xff] }
 0x218   :  { %919 = vmatprep.mubr.f32.mxu0 %v620_v15  ;;  %5973 = vmatpush1.bf16.msra.mxu0 %v5972_v13  ;;  %v559_v13 = vld [vmem:[%s11959_s6 + $0x180] sm:$0xff] }
 0x219   :  { %5975 = vmatprep.subr.bf16.mxu0 %v5974_v14  ;;  %v758_v14 = vld [vmem:[%s11956_s1 + $0x3b8] sm:$0xff]  ;;  %v631_v15 = vmul.f32 %v6947_v24, %v559_v13 }
 0x21a   :  { %v5990_v16 = vpack.c.bf16 %v758_v14, %v756_v0 }
 0x21b   :  { %920 = vmatmul.mubr.f32.gmra.mrb[22].mxu0 %v619_v53  ;;  %v514_v53 = vld [vmem:[%s11959_s6 + $0x18] sm:$0xff] }
 0x21c   :  { %925 = vmatprep.mubr.f32.mxu0 %v624_v27  ;;  %5977 = vmatpush1.bf16.msra.mxu0 %v5976_v45  ;;  %v563_v45 = vld [vmem:[%s11959_s6 + $0x1a0] sm:$0xff]  ;;  %v586_v26 = vmul.f32 %v7037_v60, %v514_v53  ;;  %v518_v27 = vld [vmem:[%s11959_s6 + $0x38] sm:$0xff] }
 0x21d   :  { %5979 = vmatprep.subr.bf16.mxu0 %v5978_v35  ;;  %v5992_v35 = vpack.c.bf16 %v757_v18, %v755_v17  ;;  %v635_v50 = vmul.f32 %v6947_v24, %v563_v45  ;;  %v590_v34 = vmul.f32 %v7037_v60, %v518_v27  ;;  %v517_v24 = vld [vmem:[%s11959_s6 + $0x30] sm:$0xff] }
 0x21e   :  { %v589_v37 = vmul.f32 %v7034_v59, %v517_v24 }
 0x21f   :  { %926 = vmatmul.mubr.f32.gmra.mrb[24].mxu0 %v623_v43 }
 0x220   :  { %931 = vmatprep.mubr.f32.mxu0 %v628_v57  ;;  %5981 = vmatpush1.bf16.msra.mxu0 %v5980_v42  ;;  %v594_v42 = vmul.f32 %v7037_v60, %v522_v36 }
 0x221   :  { %5983 = vmatprep.subr.bf16.mxu0 %v5982_v44 }
 0x223   :  { %932 = vmatmul.mubr.f32.gmra.mrb[26].mxu0 %v627_v6 }
 0x224   :  { %937 = vmatprep.mubr.f32.mxu0 %v632_v12  ;;  %5985 = vmatpush1.bf16.msra.mxu0 %v5984_v5 }
 0x225   :  { %5987 = vmatprep.subr.bf16.mxu0 %v5986_v7 }
 0x227   :  { %938 = vmatmul.mubr.f32.gmra.mrb[28].mxu0 %v631_v15 }
 0x228   :  { %943 = vmatprep.mubr.f32.mxu0 %v636_v8  ;;  %5989 = vmatpush1.bf16.msra.mxu0 %v5988_v62 }
 0x229   :  { %5991 = vmatprep.subr.bf16.mxu0 %v5990_v16 }
 0x22b   :  { %944 = vmatmul.mubr.f32.gmra.mrb[30].mxu0 %v635_v50 }
 0x22c   :  { %5993 = vmatpush1.bf16.msra.mxu0 %v5992_v35  ;;  %5611 = vmatprep.mubr.msk.f32.mxu0 %vm123_vm0, %v586_v26 }
 0x22f   :  { %1015 = vmatmul.mubr.f32.vlgmr.msra.gmra.mrb[4].mxu0 %v585_v29 }
 0x230   :  { %5612 = vmatprep.mubr.msk.f32.mxu0 %vm123_vm0, %v590_v34 }
 0x233   :  { %1021 = vmatmul.mubr.f32.gmra.mrb[6].mxu0 %v589_v37 }
 0x234   :  { %5613 = vmatprep.mubr.msk.f32.mxu0 %vm123_vm0, %v594_v42 }
 0x237   :  { %1027 = vmatmul.mubr.f32.gmra.mrb[8].mxu0 %v7092_v19 }
 0x238   :  { %5614 = vmatprep.mubr.msk.f32.mxu0 %vm123_vm0, %v7095_v21 }
 0x23b   :  { %1033 = vmatmul.mubr.f32.gmra.mrb[10].mxu0 %v7110_v22 }
 0x23c   :  { %5615 = vmatprep.mubr.msk.f32.mxu0 %vm123_vm0, %v7113_v23 }
 0x23f   :  { %1039 = vmatmul.mubr.f32.gmra.mrb[12].mxu0 %v7116_v25 }
 0x240   :  { %5616 = vmatprep.mubr.msk.f32.mxu0 %vm123_vm0, %v7128_v30 }
 0x243   :  { %1045 = vmatmul.mubr.f32.gmra.mrb[14].mxu0 %v7131_v31 }
 0x244   :  { %5617 = vmatprep.mubr.msk.f32.mxu0 %vm123_vm0, %v7134_v32 }
 0x247   :  { %1051 = vmatmul.mubr.f32.gmra.mrb[16].mxu0 %v7137_v33 }
 0x248   :  { %5618 = vmatprep.mubr.msk.f32.mxu0 %vm123_vm0, %v7149_v38 }
 0x24b   :  { %1057 = vmatmul.mubr.f32.gmra.mrb[18].mxu0 %v7152_v39 }
 0x24c   :  { %5619 = vmatprep.mubr.msk.f32.mxu0 %vm123_vm0, %v7155_v40 }
 0x24f   :  { %1063 = vmatmul.mubr.f32.gmra.mrb[20].mxu0 %v7158_v41 }
 0x250   :  { %5620 = vmatprep.mubr.msk.f32.mxu0 %vm123_vm0, %v7173_v47 }
 0x253   :  { %1069 = vmatmul.mubr.f32.gmra.mrb[22].mxu0 %v7176_v48 }
 0x254   :  { %5621 = vmatprep.mubr.msk.f32.mxu0 %vm123_vm0, %v7179_v49 }
 0x257   :  { %1075 = vmatmul.mubr.f32.gmra.mrb[24].mxu0 %v7182_v51 }
 0x258   :  { %5622 = vmatprep.mubr.msk.f32.mxu0 %vm123_vm0, %v7185_v52 }
 0x25b   :  { %1081 = vmatmul.mubr.f32.gmra.mrb[26].mxu0 %v7188_v54 }
 0x25c   :  { %5623 = vmatprep.mubr.msk.f32.mxu0 %vm123_vm0, %v7191_v55 }
 0x25f   :  { %1087 = vmatmul.mubr.f32.gmra.mrb[28].mxu0 %v7201_v63 }
 0x260   :  { %5624 = vmatprep.mubr.msk.f32.mxu0 %vm123_vm0, %v7204_v1 }
 0x263   :  { %1093 = vmatmul.mubr.f32.gmra.mrb[30].mxu0 %v7207_v20 }
 0x264   :  { %1991 = vmatprep.mubr.f32.mxu0 %v11966_v9 }
 0x302   :  { %v7455_v59 = vpop.f32.mrb[4].mxu0 }
 0x303   :  { %v7457_v60 = vpop.f32.mrb[5].mxu0  ;;  %v1170_v23 = vmul.f32 %v7455_v59, %v7455_v59 }
 0x304   :  { %v1171_v19 = vmul.f32 %v7457_v60, %v7457_v60  ;;  %v1100_v21 = vsel %vm1099_vm2, %v7457_v60, 0.0 }
 0x305   :  { %v1101_v22 = vadd.f32 %v1100_v21, %v7455_v59 }
 0x306   :  { %v7466_v25 = vpop.f32.mrb[6].mxu0  ;;  %v1198_v30 = vsel %vm1099_vm2, %v1171_v19, 0.0 }
 0x307   :  { %1102 = vadd.xlane.f32.xlu0 %v1101_v22  ;;  %v7469_v31 = vpop.f32.mrb[7].mxu0  ;;  %v1199_v32 = vadd.f32 %v1198_v30, %v1170_v23  ;;  %v1172_v39 = vmul.f32 %v7466_v25, %v7466_v25 }
 0x308   :  { %v1173_v33 = vmul.f32 %v7469_v31, %v7469_v31  ;;  %v1104_v38 = vsel %vm1099_vm2, %v7469_v31, 0.0 }
 0x309   :  { %v1105_v40 = vadd.f32 %v1104_v38, %v7466_v25 }
 0x30a   :  { %v7478_v41 = vpop.f32.mrb[8].mxu0  ;;  %v1202_v47 = vsel %vm1099_vm2, %v1173_v33, 0.0 }
 0x30b   :  { %1200 = vadd.xlane.f32.xlu0 %v1199_v32  ;;  %v7481_v48 = vpop.f32.mrb[9].mxu0  ;;  %v1203_v49 = vadd.f32 %v1202_v47, %v1172_v39  ;;  %v1174_v55 = vmul.f32 %v7478_v41, %v7478_v41 }
 0x30c   :  { %v1175_v51 = vmul.f32 %v7481_v48, %v7481_v48  ;;  %v1108_v52 = vsel %vm1099_vm2, %v7481_v48, 0.0 }
 0x30d   :  { %1204 = vadd.xlane.f32.xlu1 %v1203_v49  ;;  %v1109_v54 = vadd.f32 %v1108_v52, %v7478_v41 }
 0x30e   :  { %v7490_v63 = vpop.f32.mrb[10].mxu0  ;;  %v1206_v1 = vsel %vm1099_vm2, %v1175_v51, 0.0 }
 0x30f   :  { %1106 = vadd.xlane.f32.xlu0 %v1105_v40  ;;  %v7493_v20 = vpop.f32.mrb[11].mxu0  ;;  %v1207_v43 = vadd.f32 %v1206_v1, %v1174_v55  ;;  %v1176_v57 = vmul.f32 %v7490_v63, %v7490_v63 }
 0x310   :  { %v1177_v44 = vmul.f32 %v7493_v20, %v7493_v20  ;;  %v1112_v46 = vsel %vm1099_vm2, %v7493_v20, 0.0 }
 0x311   :  { %1110 = vadd.xlane.f32.xlu1 %v1109_v54  ;;  %v1113_v56 = vadd.f32 %v1112_v46, %v7490_v63 }
 0x312   :  { %v7502_v58 = vpop.f32.mrb[12].mxu0  ;;  %v1210_v2 = vsel %vm1099_vm2, %v1177_v44, 0.0 }
 0x313   :  { %1208 = vadd.xlane.f32.xlu0 %v1207_v43  ;;  %v7505_v3 = vpop.f32.mrb[13].mxu0  ;;  %v1211_v4 = vadd.f32 %v1210_v2, %v1176_v57  ;;  %v1178_v10 = vmul.f32 %v7502_v58, %v7502_v58 }
 0x314   :  { %v1179_v5 = vmul.f32 %v7505_v3, %v7505_v3  ;;  %v1116_v6 = vsel %vm1099_vm2, %v7505_v3, 0.0 }
 0x315   :  { %1114 = vadd.xlane.f32.xlu1 %v1113_v56  ;;  %v1117_v7 = vadd.f32 %v1116_v6, %v7502_v58 }
 0x316   :  { %v7514_v11 = vpop.f32.mrb[14].mxu0  ;;  %v1214_v12 = vsel %vm1099_vm2, %v1179_v5, 0.0 }
 0x317   :  { %1118 = vadd.xlane.f32.xlu0 %v1117_v7  ;;  %v7517_v13 = vpop.f32.mrb[15].mxu0  ;;  %v1215_v0 = vadd.f32 %v1214_v12, %v1178_v10  ;;  %v1180_v15 = vmul.f32 %v7514_v11, %v7514_v11 }
 0x318   :  { %v1181_v14 = vmul.f32 %v7517_v13, %v7517_v13  ;;  %v1120_v61 = vsel %vm1099_vm2, %v7517_v13, 0.0 }
 0x319   :  { %1212 = vadd.xlane.f32.xlu1 %v1211_v4  ;;  %v1121_v62 = vadd.f32 %v1120_v61, %v7514_v11 }
 0x31a   :  { %v7526_v16 = vpop.f32.mrb[16].mxu0  ;;  %v1218_v17 = vsel %vm1099_vm2, %v1181_v14, 0.0 }
 0x31b   :  { %1216 = vadd.xlane.f32.xlu0 %v1215_v0  ;;  %v7529_v18 = vpop.f32.mrb[17].mxu0  ;;  %v1219_v8 = vadd.f32 %v1218_v17, %v1180_v15  ;;  %v1182_v50 = vmul.f32 %v7526_v16, %v7526_v16 }
 0x31c   :  { %v1183_v45 = vmul.f32 %v7529_v18, %v7529_v18  ;;  %v1124_v53 = vsel %vm1099_vm2, %v7529_v18, 0.0 }
 0x31d   :  { %1122 = vadd.xlane.f32.xlu1 %v1121_v62  ;;  %v1125_v35 = vadd.f32 %v1124_v53, %v7526_v16 }
 0x31e   :  { %v7538_v26 = vpop.f32.mrb[18].mxu0  ;;  %v1222_v28 = vsel %vm1099_vm2, %v1183_v45, 0.0 }
 0x31f   :  { %1126 = vadd.xlane.f32.xlu0 %v1125_v35  ;;  %v7541_v27 = vpop.f32.mrb[19].mxu0  ;;  %v1223_v29 = vadd.f32 %v1222_v28, %v1182_v50  ;;  %v1184_v37 = vmul.f32 %v7538_v26, %v7538_v26 }
 0x320   :  { %v1185_v34 = vmul.f32 %v7541_v27, %v7541_v27  ;;  %v1128_v24 = vsel %vm1099_vm2, %v7541_v27, 0.0 }
 0x321   :  { %1220 = vadd.xlane.f32.xlu1 %v1219_v8  ;;  %v1129_v36 = vadd.f32 %v1128_v24, %v7538_v26  ;;  %v6267_v8 = vmov 0  }
 0x322   :  { %v7550_v42 = vpop.f32.mrb[20].mxu0  ;;  %v1226_v19 = vsel %vm1099_vm2, %v1185_v34, 0.0  ;;  %6068 = vset.pattern.permute.xlu1 %v6267_v8  ;;  %6067 = vset.pattern.permute.xlu0 %v6267_v8 }
 0x323   :  { %1224 = vadd.xlane.f32.xlu0 %v1223_v29  ;;  %v7553_v21 = vpop.f32.mrb[21].mxu0  ;;  %v1227_v22 = vadd.f32 %v1226_v19, %v1184_v37  ;;  %v1186_v33 = vmul.f32 %v7550_v42, %v7550_v42 }
 0x324   :  { %v1187_v23 = vmul.f32 %v7553_v21, %v7553_v21  ;;  %v1132_v30 = vsel %vm1099_vm2, %v7553_v21, 0.0 }
 0x325   :  { %1130 = vadd.xlane.f32.xlu1 %v1129_v36  ;;  %v1133_v32 = vadd.f32 %v1132_v30, %v7550_v42 }
 0x326   :  { %v7562_v38 = vpop.f32.mrb[22].mxu0  ;;  %v1230_v39 = vsel %vm1099_vm2, %v1187_v23, 0.0 }
 0x327   :  { %1134 = vadd.xlane.f32.xlu0 %v1133_v32  ;;  %v7565_v40 = vpop.f32.mrb[23].mxu0  ;;  %v1231_v47 = vadd.f32 %v1230_v39, %v1186_v33  ;;  %v1188_v54 = vmul.f32 %v7562_v38, %v7562_v38 }
 0x328   :  { %v1189_v49 = vmul.f32 %v7565_v40, %v7565_v40  ;;  %v1136_v51 = vsel %vm1099_vm2, %v7565_v40, 0.0 }
 0x329   :  { %1228 = vadd.xlane.f32.xlu1 %v1227_v22  ;;  %v1137_v52 = vadd.f32 %v1136_v51, %v7562_v38 }
 0x32a   :  { %v7574_v55 = vpop.f32.mrb[24].mxu0  ;;  %v1234_v1 = vsel %vm1099_vm2, %v1189_v49, 0.0 }
 0x32b   :  { %1232 = vadd.xlane.f32.xlu0 %v1231_v47  ;;  %v7577_v43 = vpop.f32.mrb[25].mxu0  ;;  %v1235_v44 = vadd.f32 %v1234_v1, %v1188_v54  ;;  %v1190_v2 = vmul.f32 %v7574_v55, %v7574_v55 }
 0x32c   :  { %v1191_v46 = vmul.f32 %v7577_v43, %v7577_v43  ;;  %v1140_v56 = vsel %vm1099_vm2, %v7577_v43, 0.0 }
 0x32d   :  { %1138 = vadd.xlane.f32.xlu1 %v1137_v52  ;;  %v1141_v57 = vadd.f32 %v1140_v56, %v7574_v55 }
 0x32e   :  { %v7586_v4 = vpop.f32.mrb[26].mxu0  ;;  %v1238_v5 = vsel %vm1099_vm2, %v1191_v46, 0.0 }
 0x32f   :  { %1142 = vadd.xlane.f32.xlu0 %v1141_v57  ;;  %v7589_v6 = vpop.f32.mrb[27].mxu0  ;;  %v1239_v7 = vadd.f32 %v1238_v5, %v1190_v2  ;;  %v1192_v14 = vmul.f32 %v7586_v4, %v7586_v4 }
 0x330   :  { %v1193_v10 = vmul.f32 %v7589_v6, %v7589_v6  ;;  %v1144_v12 = vsel %vm1099_vm2, %v7589_v6, 0.0 }
 0x331   :  { %1236 = vadd.xlane.f32.xlu1 %v1235_v44  ;;  %v1145_v0 = vadd.f32 %v1144_v12, %v7586_v4 }
 0x332   :  { %v7598_v61 = vpop.f32.mrb[28].mxu0  ;;  %v1242_v62 = vsel %vm1099_vm2, %v1193_v10, 0.0 }
 0x333   :  { %1240 = vadd.xlane.f32.xlu0 %v1239_v7  ;;  %v7601_v15 = vpop.f32.mrb[29].mxu0  ;;  %v1243_v17 = vadd.f32 %v1242_v62, %v1192_v14  ;;  %v1194_v50 = vmul.f32 %v7598_v61, %v7598_v61 }
 0x334   :  { %v1195_v45 = vmul.f32 %v7601_v15, %v7601_v15  ;;  %v1148_v53 = vsel %vm1099_vm2, %v7601_v15, 0.0 }
 0x335   :  { %1146 = vadd.xlane.f32.xlu1 %v1145_v0  ;;  %v1149_v35 = vadd.f32 %v1148_v53, %v7598_v61 }
 0x336   :  { %v7610_v28 = vpop.f32.mrb[30].mxu0  ;;  %v1246_v29 = vsel %vm1099_vm2, %v1195_v45, 0.0 }
 0x337   :  { %1150 = vadd.xlane.f32.xlu0 %v1149_v35  ;;  %v7613_v34 = vpop.f32.mrb[31].mxu0  ;;  %v1247_v24 = vadd.f32 %v1246_v29, %v1194_v50  ;;  %v1196_v22 = vmul.f32 %v7610_v28, %v7610_v28  ;;  %v1324_v29 = vld [vmem:[%s11960_s7] sm:$0xff] }
 0x338   :  { %v1197_v36 = vmul.f32 %v7613_v34, %v7613_v34  ;;  %v1152_v37 = vsel %vm1099_vm2, %v7613_v34, 0.0 }
 0x339   :  { %1244 = vadd.xlane.f32.xlu1 %v1243_v17  ;;  %v1153_v19 = vadd.f32 %v1152_v37, %v7610_v28 }
 0x33a   :  { %v1250_v23 = vsel %vm1099_vm2, %v1197_v36, 0.0 }
 0x33b   :  { %1248 = vadd.xlane.f32.xlu0 %v1247_v24  ;;  %v1251_v30 = vadd.f32 %v1250_v23, %v1196_v22 }
 0x33d   :  { %1154 = vadd.xlane.f32.xlu1 %v1153_v19 }
 0x341   :  { %1252 = vadd.xlane.f32.xlu1 %v1251_v30 }
 0x394   :  { %v1103_v32 = vpop.xlane.xlu0 %1102 }
 0x395   :  { %v1156_v33 = vmul.f32 0.0051020407, %v1103_v32 }
 0x397   :  { %v1268_v47 = vmul.f32 %v1156_v33, %v1156_v33 }
 0x398   :  { %v1201_v39 = vpop.xlane.xlu0 %1200 }
 0x399   :  { %v1254_v49 = vmul.f32 0.0051020407, %v1201_v39 }
 0x39a   :  { %v1205_v51 = vpop.xlane.xlu1 %1204 }
 0x39b   :  { %v1282_v52 = vsub.f32 %v1254_v49, %v1268_v47  ;;  %v1255_v56 = vmul.f32 0.0051020407, %v1205_v51  ;;  %v1325_v49 = vld [vmem:[%s11960_s7 + $0x8] sm:$0xff] }
 0x39c   :  { %v1107_v54 = vpop.xlane.xlu0 %1106 }
 0x39d   :  { %v1296_v1 = vadd.f32 0.001, %v1282_v52  ;;  %v1157_v44 = vmul.f32 0.0051020407, %v1107_v54 }
 0x39e   :  { %v1111_v46 = vpop.xlane.xlu1 %1110 }
 0x39f   :  { %6069 = vrsqrt.f32 %v1296_v1  ;;  %v1269_v57 = vmul.f32 %v1157_v44, %v1157_v44  ;;  %v7623_v2 = vmul.f32 0.0051020407, %v1111_v46 }
 0x3a0   :  { %v1209_v5 = vpop.xlane.xlu0 %1208 }
 0x3a1   :  { %v1283_v7 = vsub.f32 %v1255_v56, %v1269_v57  ;;  %v1270_v10 = vmul.f32 %v7623_v2, %v7623_v2  ;;  %v1256_v12 = vmul.f32 0.0051020407, %v1209_v5 }
 0x3a2   :  { %v1115_v0 = vpop.xlane.xlu1 %1114 }
 0x3a3   :  { %v1297_v14 = vadd.f32 0.001, %v1283_v7  ;;  %v1284_v62 = vsub.f32 %v1256_v12, %v1270_v10  ;;  %v7627_v17 = vmul.f32 0.0051020407, %v1115_v0  ;;  %v1353_v12 = vld [vmem:[%s11961_s8 + $0x8] sm:$0xff]  ;;  %v1352_v0 = vld [vmem:[%s11961_s8] sm:$0xff] }
 0x3a4   :  { %v1119_v8 = vpop.xlane.xlu0 %1118 }
 0x3a5   :  { %6071 = vrsqrt.f32 %v1297_v14  ;;  %v1298_v53 = vadd.f32 0.001, %v1284_v62  ;;  %v1271_v35 = vmul.f32 %v7627_v17, %v7627_v17  ;;  %v7634_v37 = vmul.f32 0.0051020407, %v1119_v8 }
 0x3a6   :  { %v1213_v45 = vpop.xlane.xlu1 %1212 }
 0x3a7   :  { %v1257_v50 = vmul.f32 0.0051020407, %v1213_v45  ;;  %6073 = vrsqrt.f32 %v1298_v53  ;;  %v1272_v51 = vmul.f32 %v7634_v37, %v7634_v37 }
 0x3a8   :  { %v1217_v24 = vpop.xlane.xlu0 %1216 }
 0x3a9   :  { %v6070_v36 = vpop.eup %6069  ;;  %v1285_v19 = vsub.f32 %v1257_v50, %v1271_v35  ;;  %v1258_v32 = vmul.f32 0.0051020407, %v1217_v24 }
 0x3aa   :  { %v1123_v22 = vpop.xlane.xlu1 %1122  ;;  %v1338_v23 = vmul.f32 %v6070_v36, %v1324_v29  ;;  %v1326_v36 = vld [vmem:[%s11960_s7 + $0x10] sm:$0xff] }
 0x3ab   :  { %v1299_v30 = vadd.f32 0.001, %v1285_v19  ;;  %v7636_v39 = vmul.f32 0.0051020407, %v1123_v22  ;;  %v1286_v1 = vsub.f32 %v1258_v32, %v1272_v51 }
 0x3ac   :  { %v1127_v47 = vpop.xlane.xlu0 %1126  ;;  %1396 = vperm.xlu0 %6067, %v1338_v23   ;;  %v1366_v7 = vmul.f32 %v1338_v23, %v1156_v33 }
 0x3ad   :  { %6075 = vrsqrt.f32 %v1299_v30  ;;  %v1273_v46 = vmul.f32 %v7636_v39, %v7636_v39  ;;  %v1300_v8 = vadd.f32 0.001, %v1286_v1  ;;  %v7653_v24 = vmul.f32 0.0051020407, %v1127_v47  ;;  %v1355_v1 = vld [vmem:[%s11961_s8 + $0x18] sm:$0xff] }
 0x3ae   :  { %v1221_v52 = vpop.xlane.xlu1 %1220  ;;  %v1380_v29 = vsub.f32 %v1352_v0, %v1366_v7 }
 0x3af   :  { %v6072_v54 = vpop.eup %6071  ;;  %v1259_v56 = vmul.f32 0.0051020407, %v1221_v52  ;;  %v1274_v52 = vmul.f32 %v7653_v24, %v7653_v24 }
 0x3b0   :  { %v1339_v57 = vmul.f32 %v6072_v54, %v1325_v49  ;;  %v1225_v5 = vpop.xlane.xlu0 %1224 }
 0x3b1   :  { %v1287_v10 = vsub.f32 %v1259_v56, %v1273_v46  ;;  %v6074_v33 = vpop.eup %6073  ;;  %v1260_v23 = vmul.f32 0.0051020407, %v1225_v5 }
 0x3b2   :  { %v1367_v14 = vmul.f32 %v1339_v57, %v1157_v44  ;;  %v1131_v62 = vpop.xlane.xlu1 %1130  ;;  %1401 = vperm.xlu1 %6068, %v1339_v57   ;;  %v1327_v44 = vld [vmem:[%s11960_s7 + $0x18] sm:$0xff]  ;;  %v1340_v49 = vmul.f32 %v6074_v33, %v1326_v36 }
 0x3b3   :  { %v1301_v45 = vadd.f32 0.001, %v1287_v10  ;;  %v7651_v53 = vmul.f32 0.0051020407, %v1131_v62  ;;  %v1288_v57 = vsub.f32 %v1260_v23, %v1274_v52  ;;  %v1354_v62 = vld [vmem:[%s11961_s8 + $0x10] sm:$0xff] }
 0x3b4   :  { %v1135_v35 = vpop.xlane.xlu0 %1134  ;;  %v1381_v50 = vsub.f32 %v1353_v12, %v1367_v14  ;;  %v1368_v0 = vmul.f32 %v1340_v49, %v7623_v2 }
 0x3b5   :  { %6077 = vrsqrt.f32 %v1301_v45  ;;  %v1275_v30 = vmul.f32 %v7651_v53, %v7651_v53  ;;  %v7672_v14 = vmul.f32 0.0051020407, %v1135_v35 }
 0x3b6   :  { %v1229_v19 = vpop.xlane.xlu1 %1228  ;;  %1499 = vperm.xlu0 %6067, %v1381_v50   ;;  %1494 = vperm.xlu1 %6068, %v1380_v29   ;;  %6079 = vrsqrt.f32 %v1300_v8  ;;  %v1329_v8 = vld [vmem:[%s11960_s7 + $0x28] sm:$0xff]  ;;  %v1302_v50 = vadd.f32 0.001, %v1288_v57  ;;  %v1382_v36 = vsub.f32 %v1354_v62, %v1368_v0  ;;  %v1331_v57 = vld [vmem:[%s11960_s7 + $0x38] sm:$0xff] }
 0x3b7   :  { %v6076_v22 = vpop.eup %6075  ;;  %v1261_v32 = vmul.f32 0.0051020407, %v1229_v19 }
 0x3b8   :  { %v1233_v47 = vpop.xlane.xlu0 %1232  ;;  %v1341_v51 = vmul.f32 %v6076_v22, %v1327_v44  ;;  %v1276_v22 = vmul.f32 %v7672_v14, %v7672_v14 }
 0x3b9   :  { %v1289_v54 = vsub.f32 %v1261_v32, %v1275_v30  ;;  %v1262_v29 = vmul.f32 0.0051020407, %v1233_v47  ;;  %v1357_v30 = vld [vmem:[%s11961_s8 + $0x28] sm:$0xff]  ;;  %v1328_v32 = vld [vmem:[%s11960_s7 + $0x20] sm:$0xff] }
 0x3ba   :  { %v1139_v46 = vpop.xlane.xlu1 %1138  ;;  %1406 = vperm.xlu1 %6068, %v1340_v49   ;;  %v1369_v56 = vmul.f32 %v1341_v51, %v7627_v17 }
 0x3bb   :  { %v1303_v5 = vadd.f32 0.001, %v1289_v54  ;;  %v7669_v7 = vmul.f32 0.0051020407, %v1139_v46 }
 0x3bc   :  { %v1143_v10 = vpop.xlane.xlu0 %1142  ;;  %v1383_v12 = vsub.f32 %v1355_v1, %v1369_v56 }
 0x3bd   :  { %6081 = vrsqrt.f32 %v1303_v5  ;;  %v1277_v2 = vmul.f32 %v7669_v7, %v7669_v7  ;;  %v7693_v56 = vmul.f32 0.0051020407, %v1143_v10 }
 0x3be   :  { %v1237_v17 = vpop.xlane.xlu1 %1236  ;;  %1509 = vperm.xlu0 %6067, %v1383_v12   ;;  %1411 = vperm.xlu1 %6068, %v1341_v51   ;;  %6083 = vrsqrt.f32 %v1302_v50  ;;  %v1290_v51 = vsub.f32 %v1262_v29, %v1276_v22 }
 0x3bf   :  { %v6078_v45 = vpop.eup %6077  ;;  %v1263_v35 = vmul.f32 0.0051020407, %v1237_v17  ;;  %v1278_v50 = vmul.f32 %v7693_v56, %v7693_v56 }
 0x3c0   :  { %v1241_v33 = vpop.xlane.xlu0 %1240  ;;  %v1343_v44 = vmul.f32 %v6078_v45, %v1329_v8  ;;  %v6080_v19 = vpop.eup %6079 }
 0x3c1   :  { %v1291_v23 = vsub.f32 %v1263_v35, %v1277_v2  ;;  %v1342_v46 = vmul.f32 %v6080_v19, %v1328_v32  ;;  %v1264_v62 = vmul.f32 0.0051020407, %v1241_v33  ;;  %v1359_v2 = vld [vmem:[%s11961_s8 + $0x38] sm:$0xff]  ;;  %v1356_v35 = vld [vmem:[%s11961_s8 + $0x20] sm:$0xff] }
 0x3c2   :  { %v1147_v47 = vpop.xlane.xlu1 %1146  ;;  %1504 = vperm.xlu1 %6068, %v1382_v36   ;;  %v1371_v49 = vmul.f32 %v1343_v44, %v7636_v39  ;;  %v1304_v39 = vadd.f32 0.001, %v1290_v51  ;;  %v1333_v51 = vld [vmem:[%s11960_s7 + $0x48] sm:$0xff] }
 0x3c3   :  { %v1305_v52 = vadd.f32 0.001, %v1291_v23  ;;  %v7691_v54 = vmul.f32 0.0051020407, %v1147_v47  ;;  %v1370_v10 = vmul.f32 %v1342_v46, %v7634_v37  ;;  %v1292_v19 = vsub.f32 %v1264_v62, %v1278_v50 }
 0x3c4   :  { %v1385_v1 = vsub.f32 %v1357_v30, %v1371_v49  ;;  %v1151_v5 = vpop.xlane.xlu0 %1150 }
 0x3c5   :  { %6085 = vrsqrt.f32 %v1305_v52  ;;  %v1279_v8 = vmul.f32 %v7691_v54, %v7691_v54  ;;  %v1384_v32 = vsub.f32 %v1356_v35, %v1370_v10  ;;  %v7710_v49 = vmul.f32 0.0051020407, %v1151_v5 }
 0x3c6   :  { %v1245_v12 = vpop.xlane.xlu1 %1244  ;;  %1519 = vperm.xlu0 %6067, %v1385_v1   ;;  %1416 = vperm.xlu1 %6068, %v1342_v46   ;;  %6087 = vrsqrt.f32 %v1304_v39  ;;  %v1306_v1 = vadd.f32 0.001, %v1292_v19 }
 0x3c7   :  { %v6082_v0 = vpop.eup %6081  ;;  %v1265_v17 = vmul.f32 0.0051020407, %v1245_v12  ;;  %v1280_v39 = vmul.f32 %v7710_v49, %v7710_v49 }
 0x3c8   :  { %v1345_v45 = vmul.f32 %v6082_v0, %v1331_v57  ;;  %v1249_v23 = vpop.xlane.xlu0 %1248  ;;  %v6084_v47 = vpop.eup %6083 }
 0x3c9   :  { %v1293_v29 = vsub.f32 %v1265_v17, %v1279_v8  ;;  %v1266_v46 = vmul.f32 0.0051020407, %v1249_v23  ;;  %v1361_v8 = vld [vmem:[%s11961_s8 + $0x48] sm:$0xff] }
 0x3ca   :  { %1421 = vperm.xlu1 %6068, %v1343_v44   ;;  %v1155_v33 = vpop.xlane.xlu1 %1154  ;;  %v1373_v36 = vmul.f32 %v1345_v45, %v7651_v53  ;;  %v1330_v44 = vld [vmem:[%s11960_s7 + $0x30] sm:$0xff] }
 0x3cb   :  { %v1307_v22 = vadd.f32 0.001, %v1293_v29  ;;  %v1169_v37 = vmul.f32 0.0051020407, %v1155_v33  ;;  %v1344_v5 = vmul.f32 %v6084_v47, %v1330_v44  ;;  %v1294_v10 = vsub.f32 %v1266_v46, %v1280_v39  ;;  %v1335_v33 = vld [vmem:[%s11960_s7 + $0x58] sm:$0xff] }
 0x3cc   :  { %v1387_v30 = vsub.f32 %v1359_v2, %v1373_v36  ;;  %v1358_v36 = vld [vmem:[%s11961_s8 + $0x30] sm:$0xff] }
 0x3cd   :  { %6089 = vrsqrt.f32 %v1307_v22  ;;  %v1281_v57 = vmul.f32 %v1169_v37, %v1169_v37  ;;  %v1372_v2 = vmul.f32 %v1344_v5, %v7653_v24  ;;  %v1308_v22 = vadd.f32 0.001, %v1294_v10 }
 0x3ce   :  { %1529 = vperm.xlu0 %6067, %v1387_v30   ;;  %1514 = vperm.xlu1 %6068, %v1384_v32   ;;  %v1253_v53 = vpop.xlane.xlu1 %1252  ;;  %6091 = vrsqrt.f32 %v1306_v1  ;;  %v1363_v32 = vld [vmem:[%s11961_s8 + $0x58] sm:$0xff]  ;;  %v1334_v1 = vld [vmem:[%s11960_s7 + $0x50] sm:$0xff] }
 0x3cf   :  { %v6086_v52 = vpop.eup %6085  ;;  %v1267_v12 = vmul.f32 0.0051020407, %v1253_v53  ;;  %v1386_v24 = vsub.f32 %v1358_v36, %v1372_v2 }
 0x3d0   :  { %v1347_v0 = vmul.f32 %v6086_v52, %v1333_v51  ;;  %v6088_v35 = vpop.eup %6087  ;;  %v1337_v52 = vld [vmem:[%s11960_s7 + $0x68] sm:$0xff] }
 0x3d1   :  { %v1295_v62 = vsub.f32 %v1267_v12, %v1281_v57 }
 0x3d2   :  { %1441 = vperm.xlu0 %6067, %v1347_v0   ;;  %1426 = vperm.xlu1 %6068, %v1344_v5   ;;  %v1375_v17 = vmul.f32 %v1347_v0, %v7669_v7  ;;  %v1332_v7 = vld [vmem:[%s11960_s7 + $0x40] sm:$0xff] }
 0x3d3   :  { %v1309_v50 = vadd.f32 0.001, %v1295_v62  ;;  %v1346_v30 = vmul.f32 %v6088_v35, %v1332_v7 }
 0x3d4   :  { %v1389_v29 = vsub.f32 %v1361_v8, %v1375_v17  ;;  %v1362_v8 = vld [vmem:[%s11961_s8 + $0x50] sm:$0xff]  ;;  %v1336_v17 = vld [vmem:[%s11960_s7 + $0x60] sm:$0xff] }
 0x3d5   :  { %6093 = vrsqrt.f32 %v1309_v50  ;;  %v1374_v44 = vmul.f32 %v1346_v30, %v7672_v14  ;;  %v1365_v14 = vld [vmem:[%s11961_s8 + $0x68] sm:$0xff] }
 0x3d6   :  { %1539 = vperm.xlu0 %6067, %v1389_v29   ;;  %1431 = vperm.xlu1 %6068, %v1345_v45   ;;  %6095 = vrsqrt.f32 %v1308_v22  ;;  %v1360_v45 = vld [vmem:[%s11961_s8 + $0x40] sm:$0xff] }
 0x3d7   :  { %v6090_v19 = vpop.eup %6089  ;;  %v1388_v46 = vsub.f32 %v1360_v45, %v1374_v44 }
 0x3d8   :  { %v1349_v23 = vmul.f32 %v6090_v19, %v1335_v33  ;;  %v6092_v53 = vpop.eup %6091 }
 0x3d9   :  { %v1348_v12 = vmul.f32 %v6092_v53, %v1334_v1 }
 0x3da   :  { %1451 = vperm.xlu0 %6067, %v1349_v23   ;;  %1524 = vperm.xlu1 %6068, %v1386_v24   ;;  %v1377_v47 = vmul.f32 %v1349_v23, %v7691_v54 }
 0x3db   :  { %v1376_v39 = vmul.f32 %v1348_v12, %v7693_v56  ;;  %v1364_v56 = vld [vmem:[%s11961_s8 + $0x60] sm:$0xff] }
 0x3dc   :  { %v1391_v51 = vsub.f32 %v1363_v32, %v1377_v47 }
 0x3dd   :  { %v1390_v10 = vsub.f32 %v1362_v8, %v1376_v39 }
 0x3de   :  { %1549 = vperm.xlu0 %6067, %v1391_v51   ;;  %1436 = vperm.xlu1 %6068, %v1346_v30  }
 0x3df   :  { %v6094_v54 = vpop.eup %6093 }
 0x3e0   :  { %v1351_v57 = vmul.f32 %v6094_v54, %v1337_v52  ;;  %v6096_v62 = vpop.eup %6095 }
 0x3e1   :  { %v1350_v50 = vmul.f32 %v6096_v62, %v1336_v17 }
 0x3e2   :  { %1534 = vperm.xlu1 %6068, %v1388_v46   ;;  %1461 = vperm.xlu0 %6067, %v1351_v57   ;;  %v1379_v0 = vmul.f32 %v1351_v57, %v1169_v37 }
 0x3e3   :  { %v1378_v29 = vmul.f32 %v1350_v50, %v7710_v49 }
 0x3e4   :  { %v1393_v5 = vsub.f32 %v1365_v14, %v1379_v0 }
 0x3e5   :  { %v1392_v37 = vsub.f32 %v1364_v56, %v1378_v29 }
 0x3e6   :  { %1446 = vperm.xlu1 %6068, %v1348_v12   ;;  %1559 = vperm.xlu0 %6067, %v1393_v5  }
 0x3ea   :  { %1544 = vperm.xlu1 %6068, %v1390_v10  }
 0x3ee   :  { %1456 = vperm.xlu1 %6068, %v1350_v50  }
 0x3f2   :  { %1554 = vperm.xlu1 %6068, %v1392_v37  }
 0x42b   :  { %v1397_v2 = vpop.permute.xlu0 %1396 }
 0x42c   :  { %v1464_v33 = vmul.f32 %v1397_v2, %v7455_v59  ;;  %v1465_v36 = vmul.f32 %v1397_v2, %v7457_v60 }
 0x431   :  { %v1402_v35 = vpop.permute.xlu1 %1401 }
 0x432   :  { %v1466_v7 = vmul.f32 %v1402_v35, %v7466_v25  ;;  %v1467_v19 = vmul.f32 %v1402_v35, %v7469_v31 }
 0x435   :  { %v1500_v22 = vpop.permute.xlu0 %1499  ;;  %v1495_v23 = vpop.permute.xlu1 %1494 }
 0x436   :  { %v1564_v49 = vadd.f32 %v1500_v22, %v1466_v7  ;;  %v1565_v24 = vadd.f32 %v1500_v22, %v1467_v19  ;;  %v1562_v30 = vadd.f32 %v1495_v23, %v1464_v33  ;;  %v1563_v32 = vadd.f32 %v1495_v23, %v1465_v36 }
 0x438   :  { %v5996_v47 = vpack.c.bf16 %v1564_v49, %v1562_v30  ;;  %v5994_v51 = vpack.c.bf16 %v1565_v24, %v1563_v32 }
 0x439   :  { %v1407_v44 = vpop.permute.xlu1 %1406 }
 0x43a   :  { %5995 = vmatprep.subr.bf16.mxu0 %v5994_v51  ;;  %6022 = vmatprep.subr.bf16.mxu1 %v5994_v51  ;;  %v1468_v31 = vmul.f32 %v1407_v44, %v7478_v41  ;;  %v1469_v53 = vmul.f32 %v1407_v44, %v7481_v48 }
 0x43b   :  { %5997 = vmatpush1.bf16.msra.mxu0 %v5996_v47  ;;  %6029 = vmatpush1.bf16.msra.mxu1 %v5996_v47 }
 0x43d   :  { %v1412_v59 = vpop.permute.xlu1 %1411  ;;  %v1510_v45 = vpop.permute.xlu0 %1509 }
 0x43e   :  { %v1470_v60 = vmul.f32 %v1412_v59, %v7490_v63  ;;  %v1471_v25 = vmul.f32 %v1412_v59, %v7493_v20 }
 0x440   :  { %v1568_v1 = vadd.f32 %v1510_v45, %v1470_v60  ;;  %v1569_v54 = vadd.f32 %v1510_v45, %v1471_v25 }
 0x441   :  { %v1505_v52 = vpop.permute.xlu1 %1504 }
 0x442   :  { %v1566_v46 = vadd.f32 %v1505_v52, %v1468_v31  ;;  %v1567_v57 = vadd.f32 %v1505_v52, %v1469_v53 }
 0x444   :  { %v6000_v12 = vpack.c.bf16 %v1568_v1, %v1566_v46  ;;  %v5998_v14 = vpack.c.bf16 %v1569_v54, %v1567_v57 }
 0x445   :  { %v1417_v0 = vpop.permute.xlu1 %1416  ;;  %v1520_v63 = vpop.permute.xlu0 %1519 }
 0x446   :  { %5999 = vmatprep.subr.bf16.mxu0 %v5998_v14  ;;  %6023 = vmatprep.subr.bf16.mxu1 %v5998_v14  ;;  %v1472_v48 = vmul.f32 %v1417_v0, %v7502_v58  ;;  %v1473_v39 = vmul.f32 %v1417_v0, %v7505_v3 }
 0x447   :  { %6001 = vmatpush1.bf16.msra.mxu0 %v6000_v12  ;;  %6030 = vmatpush1.bf16.msra.mxu1 %v6000_v12 }
 0x449   :  { %v1422_v5 = vpop.permute.xlu1 %1421 }
 0x44a   :  { %v1474_v20 = vmul.f32 %v1422_v5, %v7514_v11  ;;  %v1475_v41 = vmul.f32 %v1422_v5, %v7517_v13 }
 0x44c   :  { %v1572_v17 = vadd.f32 %v1520_v63, %v1474_v20  ;;  %v1573_v10 = vadd.f32 %v1520_v63, %v1475_v41 }
 0x44d   :  { %v1530_v62 = vpop.permute.xlu0 %1529  ;;  %v1515_v8 = vpop.permute.xlu1 %1514 }
 0x44e   :  { %v1570_v50 = vadd.f32 %v1515_v8, %v1472_v48  ;;  %v1571_v29 = vadd.f32 %v1515_v8, %v1473_v39 }
 0x450   :  { %v6004_v56 = vpack.c.bf16 %v1572_v17, %v1570_v50  ;;  %v6002_v37 = vpack.c.bf16 %v1573_v10, %v1571_v29  ;;  %v1592_v50 = vld [vmem:[%s11962_s9 + $0x10] sm:$0xff]  ;;  %v1618_v29 = vld [vmem:[%s11962_s9 + $0xe0] sm:$0xff] }
 0x451   :  { %v1442_v2 = vpop.permute.xlu0 %1441  ;;  %v1427_v35 = vpop.permute.xlu1 %1426 }
 0x452   :  { %6003 = vmatprep.subr.bf16.mxu0 %v6002_v37  ;;  %6024 = vmatprep.subr.bf16.mxu1 %v6002_v37  ;;  %v1476_v33 = vmul.f32 %v1427_v35, %v7526_v16  ;;  %v1477_v36 = vmul.f32 %v1427_v35, %v7529_v18  ;;  %v1619_v37 = vld [vmem:[%s11962_s9 + $0xe8] sm:$0xff]  ;;  %v1620_v35 = vld [vmem:[%s11962_s9 + $0xf0] sm:$0xff] }
 0x453   :  { %6005 = vmatpush1.bf16.msra.mxu0 %v6004_v56  ;;  %6031 = vmatpush1.bf16.msra.mxu1 %v6004_v56  ;;  %v1593_v56 = vld [vmem:[%s11962_s9 + $0x18] sm:$0xff] }
 0x455   :  { %v1432_v11 = vpop.permute.xlu1 %1431  ;;  %v1540_v3 = vpop.permute.xlu0 %1539 }
 0x456   :  { %v1478_v13 = vmul.f32 %v1432_v11, %v7538_v26  ;;  %v1479_v58 = vmul.f32 %v1432_v11, %v7541_v27  ;;  %v1482_v26 = vmul.f32 %v1442_v2, %v7562_v38  ;;  %v1483_v27 = vmul.f32 %v1442_v2, %v7565_v40  ;;  %v1594_v2 = vld [vmem:[%s11962_s9 + $0x20] sm:$0xff]  ;;  %v1595_v11 = vld [vmem:[%s11962_s9 + $0x28] sm:$0xff] }
 0x458   :  { %v1576_v19 = vadd.f32 %v1530_v62, %v1478_v13  ;;  %v1577_v22 = vadd.f32 %v1530_v62, %v1479_v58  ;;  %v1580_v44 = vadd.f32 %v1540_v3, %v1482_v26  ;;  %v1581_v59 = vadd.f32 %v1540_v3, %v1483_v27  ;;  %v1621_v13 = vld [vmem:[%s11962_s9 + $0xf8] sm:$0xff]  ;;  %v1596_v58 = vld [vmem:[%s11962_s9 + $0x30] sm:$0xff]  ;;  %v1622_v3 = vld [vmem:[%s11962_s9 + $0x100] sm:$0xff] }
 0x459   :  { %v1525_v7 = vpop.permute.xlu1 %1524  ;;  %v1452_v32 = vpop.permute.xlu0 %1451  ;;  %v1628_v26 = vld [vmem:[%s11962_s9 + $0x130] sm:$0xff]  ;;  %v1603_v27 = vld [vmem:[%s11962_s9 + $0x68] sm:$0xff] }
 0x45a   :  { %v1574_v23 = vadd.f32 %v1525_v7, %v1476_v33  ;;  %v1575_v49 = vadd.f32 %v1525_v7, %v1477_v36  ;;  %v1486_v38 = vmul.f32 %v1452_v32, %v7586_v4  ;;  %v1487_v40 = vmul.f32 %v1452_v32, %v7589_v6  ;;  %v1597_v33 = vld [vmem:[%s11962_s9 + $0x38] sm:$0xff]  ;;  %v1623_v36 = vld [vmem:[%s11962_s9 + $0x108] sm:$0xff]  ;;  %v1598_v7 = vld [vmem:[%s11962_s9 + $0x40] sm:$0xff] }
 0x45b   :  { %v1627_v32 = vld [vmem:[%s11962_s9 + $0x128] sm:$0xff] }
 0x45c   :  { %v6008_v24 = vpack.c.bf16 %v1576_v19, %v1574_v23  ;;  %v6006_v30 = vpack.c.bf16 %v1577_v22, %v1575_v49  ;;  %v1624_v19 = vld [vmem:[%s11962_s9 + $0x110] sm:$0xff]  ;;  %v1599_v22 = vld [vmem:[%s11962_s9 + $0x48] sm:$0xff]  ;;  %v1625_v23 = vld [vmem:[%s11962_s9 + $0x118] sm:$0xff] }
 0x45d   :  { %v1437_v47 = vpop.permute.xlu1 %1436  ;;  %v1550_v31 = vpop.permute.xlu0 %1549  ;;  %v1600_v49 = vld [vmem:[%s11962_s9 + $0x50] sm:$0xff] }
 0x45e   :  { %6007 = vmatprep.subr.bf16.mxu0 %v6006_v30  ;;  %6025 = vmatprep.subr.bf16.mxu1 %v6006_v30  ;;  %v1480_v16 = vmul.f32 %v1437_v47, %v7550_v42  ;;  %v1481_v18 = vmul.f32 %v1437_v47, %v7553_v21  ;;  %v1584_v46 = vadd.f32 %v1550_v31, %v1486_v38  ;;  %v1601_v30 = vld [vmem:[%s11962_s9 + $0x58] sm:$0xff]  ;;  %v1602_v47 = vld [vmem:[%s11962_s9 + $0x60] sm:$0xff] }
 0x45f   :  { %6009 = vmatpush1.bf16.msra.mxu0 %v6008_v24  ;;  %6032 = vmatpush1.bf16.msra.mxu1 %v6008_v24  ;;  %v1585_v57 = vadd.f32 %v1550_v31, %v1487_v40  ;;  %v1626_v24 = vld [vmem:[%s11962_s9 + $0x120] sm:$0xff]  ;;  %v1607_v31 = vld [vmem:[%s11962_s9 + $0x88] sm:$0xff]  ;;  %v1609_v38 = vld [vmem:[%s11962_s9 + $0x98] sm:$0xff] }
 0x460   :  { %v1635_v40 = vld [vmem:[%s11962_s9 + $0x168] sm:$0xff] }
 0x461   :  { %v1535_v51 = vpop.permute.xlu1 %1534  ;;  %v1462_v1 = vpop.permute.xlu0 %1461 }
 0x462   :  { %v1578_v60 = vadd.f32 %v1535_v51, %v1480_v16  ;;  %v1579_v25 = vadd.f32 %v1535_v51, %v1481_v18  ;;  %v1490_v4 = vmul.f32 %v1462_v1, %v7610_v28  ;;  %v1590_v28 = vld [vmem:[%s11962_s9] sm:$0xff]  ;;  %v1629_v16 = vld [vmem:[%s11962_s9 + $0x138] sm:$0xff]  ;;  %v1604_v18 = vld [vmem:[%s11962_s9 + $0x70] sm:$0xff] }
 0x463   :  { %v1630_v51 = vld [vmem:[%s11962_s9 + $0x140] sm:$0xff] }
 0x464   :  { %v6012_v53 = vpack.c.bf16 %v1580_v44, %v1578_v60  ;;  %v6010_v45 = vpack.c.bf16 %v1581_v59, %v1579_v25  ;;  %v1605_v44 = vld [vmem:[%s11962_s9 + $0x78] sm:$0xff]  ;;  %v1631_v59 = vld [vmem:[%s11962_s9 + $0x148] sm:$0xff]  ;;  %v1606_v60 = vld [vmem:[%s11962_s9 + $0x80] sm:$0xff] }
 0x465   :  { %v1447_v52 = vpop.permute.xlu1 %1446  ;;  %v1560_v20 = vpop.permute.xlu0 %1559  ;;  %v1632_v25 = vld [vmem:[%s11962_s9 + $0x150] sm:$0xff] }
 0x466   :  { %6011 = vmatprep.subr.bf16.mxu0 %v6010_v45  ;;  %6026 = vmatprep.subr.bf16.mxu1 %v6010_v45  ;;  %v1484_v42 = vmul.f32 %v1447_v52, %v7574_v55  ;;  %v1485_v21 = vmul.f32 %v1447_v52, %v7577_v43  ;;  %v1491_v55 = vmul.f32 %v1462_v1, %v7613_v34  ;;  %v1591_v34 = vld [vmem:[%s11962_s9 + $0x8] sm:$0xff]  ;;  %v1608_v45 = vld [vmem:[%s11962_s9 + $0x90] sm:$0xff]  ;;  %v1634_v52 = vld [vmem:[%s11962_s9 + $0x160] sm:$0xff] }
 0x467   :  { %6013 = vmatpush1.bf16.msra.mxu0 %v6012_v53  ;;  %6033 = vmatpush1.bf16.msra.mxu1 %v6012_v53  ;;  %v1588_v48 = vadd.f32 %v1560_v20, %v1490_v4  ;;  %v1633_v53 = vld [vmem:[%s11962_s9 + $0x158] sm:$0xff]  ;;  %v1611_v1 = vld [vmem:[%s11962_s9 + $0xa8] sm:$0xff]  ;;  %v1642_v4 = vld [vmem:[%s11962_s9 + $0x1a0] sm:$0xff] }
 0x468   :  { %v1589_v39 = vadd.f32 %v1560_v20, %v1491_v55  ;;  %v1641_v20 = vld [vmem:[%s11962_s9 + $0x198] sm:$0xff]  ;;  %v1643_v55 = vld [vmem:[%s11962_s9 + $0x1a8] sm:$0xff] }
 0x469   :  { %v1545_v54 = vpop.permute.xlu1 %1544 }
 0x46a   :  { %v1582_v12 = vadd.f32 %v1545_v54, %v1484_v42  ;;  %v1583_v14 = vadd.f32 %v1545_v54, %v1485_v21  ;;  %v1610_v42 = vld [vmem:[%s11962_s9 + $0xa0] sm:$0xff]  ;;  %v1636_v21 = vld [vmem:[%s11962_s9 + $0x170] sm:$0xff]  ;;  %v1637_v54 = vld [vmem:[%s11962_s9 + $0x178] sm:$0xff] }
 0x46c   :  { %v6016_v0 = vpack.c.bf16 %v1584_v46, %v1582_v12  ;;  %v6014_v63 = vpack.c.bf16 %v1585_v57, %v1583_v14  ;;  %v1612_v46 = vld [vmem:[%s11962_s9 + $0xb0] sm:$0xff]  ;;  %v1638_v57 = vld [vmem:[%s11962_s9 + $0x180] sm:$0xff]  ;;  %v1613_v12 = vld [vmem:[%s11962_s9 + $0xb8] sm:$0xff] }
 0x46d   :  { %v1457_v5 = vpop.permute.xlu1 %1456  ;;  %v1639_v14 = vld [vmem:[%s11962_s9 + $0x188] sm:$0xff] }
 0x46e   :  { %6015 = vmatprep.subr.bf16.mxu0 %v6014_v63  ;;  %6027 = vmatprep.subr.bf16.mxu1 %v6014_v63  ;;  %v1488_v43 = vmul.f32 %v1457_v5, %v7598_v61  ;;  %v1489_v6 = vmul.f32 %v1457_v5, %v7601_v15  ;;  %v1616_v61 = vld [vmem:[%s11962_s9 + $0xd0] sm:$0xff]  ;;  %v1617_v15 = vld [vmem:[%s11962_s9 + $0xd8] sm:$0xff]  ;;  %v1615_v5 = vld [vmem:[%s11962_s9 + $0xc8] sm:$0xff] }
 0x46f   :  { %6017 = vmatpush1.bf16.msra.mxu0 %v6016_v0  ;;  %6034 = vmatpush1.bf16.msra.mxu1 %v6016_v0  ;;  %v1614_v0 = vld [vmem:[%s11962_s9 + $0xc0] sm:$0xff]  ;;  %v1640_v63 = vld [vmem:[%s11962_s9 + $0x190] sm:$0xff] }
 0x471   :  { %v1555_v41 = vpop.permute.xlu1 %1554 }
 0x472   :  { %v1586_v62 = vadd.f32 %v1555_v41, %v1488_v43  ;;  %v1587_v8 = vadd.f32 %v1555_v41, %v1489_v6  ;;  %v1644_v43 = vld [vmem:[%s11962_s9 + $0x1b0] sm:$0xff]  ;;  %v1645_v6 = vld [vmem:[%s11962_s9 + $0x1b8] sm:$0xff]  ;;  %v1646_v41 = vld [vmem:[%s11962_s9 + $0x1c0] sm:$0xff] }
 0x474   :  { %v6020_v17 = vpack.c.bf16 %v1588_v48, %v1586_v62  ;;  %v6018_v10 = vpack.c.bf16 %v1589_v39, %v1587_v8  ;;  %v1647_v48 = vld [vmem:[%s11962_s9 + $0x1c8] sm:$0xff]  ;;  %v1648_v39 = vld [vmem:[%s11962_s9 + $0x1d0] sm:$0xff]  ;;  %v1649_v62 = vld [vmem:[%s11962_s9 + $0x1d8] sm:$0xff] }
 0x475   :  { %v1650_v8 = vld [vmem:[%s11962_s9 + $0x1e0] sm:$0xff] }
 0x476   :  { %6019 = vmatprep.subr.bf16.mxu0 %v6018_v10  ;;  %6028 = vmatprep.subr.bf16.mxu1 %v6018_v10  ;;  %v1652_v10 = vld [vmem:[%s11962_s9 + $0x1f0] sm:$0xff] }
 0x477   :  { %6021 = vmatpush1.bf16.msra.mxu0 %v6020_v17  ;;  %6035 = vmatpush1.bf16.msra.mxu1 %v6020_v17  ;;  %v1651_v17 = vld [vmem:[%s11962_s9 + $0x1e8] sm:$0xff] }
 0x47a   :  { %5625 = vmatmul.mubr.msk.f32.vlgmr.msra.gmra.mrb[32].mxu0 %vm1674_vm3, %v1590_v28  ;;  %5651 = vmatmul.mubr.msk.f32.vlgmr.msra.gmra.mrb[4].mxu1 %vm1674_vm3, %v1616_v61  ;;  %v1653_v28 = vld [vmem:[%s11962_s9 + $0x1f8] sm:$0xff]  ;;  %v1654_v61 = vld [vmem:[%s11962_s9 + $0x200] sm:$0xff] }
 0x47b   :  { %2153 = vmatprep.mubr.f32.mxu1 %v11966_v9  ;;  %1997 = vmatprep.mubr.f32.mxu0 %v11966_v9 }
 0x47e   :  { %5652 = vmatmul.mubr.msk.f32.gmra.mrb[6].mxu1 %vm1674_vm3, %v1617_v15  ;;  %5626 = vmatmul.mubr.msk.f32.gmra.mrb[34].mxu0 %vm1674_vm3, %v1591_v34  ;;  %v1655_v15 = vld [vmem:[%s11962_s9 + $0x208] sm:$0xff]  ;;  %v1656_v34 = vld [vmem:[%s11962_s9 + $0x210] sm:$0xff] }
 0x47f   :  { %2003 = vmatprep.mubr.f32.mxu0 %v11966_v9  ;;  %2159 = vmatprep.mubr.f32.mxu1 %v11966_v9 }
 0x482   :  { %5627 = vmatmul.mubr.msk.f32.gmra.mrb[36].mxu0 %vm1674_vm3, %v1592_v50  ;;  %5653 = vmatmul.mubr.msk.f32.gmra.mrb[8].mxu1 %vm1674_vm3, %v1618_v29  ;;  %v1657_v50 = vld [vmem:[%s11962_s9 + $0x218] sm:$0xff]  ;;  %v1658_v29 = vld [vmem:[%s11962_s9 + $0x220] sm:$0xff] }
 0x483   :  { %2009 = vmatprep.mubr.f32.mxu0 %v11966_v9  ;;  %2165 = vmatprep.mubr.f32.mxu1 %v11966_v9 }
 0x486   :  { %5628 = vmatmul.mubr.msk.f32.gmra.mrb[38].mxu0 %vm1674_vm3, %v1593_v56  ;;  %5654 = vmatmul.mubr.msk.f32.gmra.mrb[10].mxu1 %vm1674_vm3, %v1619_v37 }
 0x487   :  { %2015 = vmatprep.mubr.f32.mxu0 %v11966_v9  ;;  %2171 = vmatprep.mubr.f32.mxu1 %v11966_v9 }
 0x48a   :  { %5629 = vmatmul.mubr.msk.f32.gmra.mrb[40].mxu0 %vm1674_vm3, %v1594_v2  ;;  %5655 = vmatmul.mubr.msk.f32.gmra.mrb[12].mxu1 %vm1674_vm3, %v1620_v35 }
 0x48b   :  { %2021 = vmatprep.mubr.f32.mxu0 %v11966_v9  ;;  %2177 = vmatprep.mubr.f32.mxu1 %v11966_v9 }
 0x48e   :  { %5630 = vmatmul.mubr.msk.f32.gmra.mrb[42].mxu0 %vm1674_vm3, %v1595_v11  ;;  %5656 = vmatmul.mubr.msk.f32.gmra.mrb[14].mxu1 %vm1674_vm3, %v1621_v13 }
 0x48f   :  { %2027 = vmatprep.mubr.f32.mxu0 %v11966_v9  ;;  %2183 = vmatprep.mubr.f32.mxu1 %v11966_v9 }
 0x492   :  { %5631 = vmatmul.mubr.msk.f32.gmra.mrb[44].mxu0 %vm1674_vm3, %v1596_v58  ;;  %5657 = vmatmul.mubr.msk.f32.gmra.mrb[16].mxu1 %vm1674_vm3, %v1622_v3 }
 0x493   :  { %2033 = vmatprep.mubr.f32.mxu0 %v11966_v9  ;;  %2189 = vmatprep.mubr.f32.mxu1 %v11966_v9 }
 0x496   :  { %5632 = vmatmul.mubr.msk.f32.gmra.mrb[46].mxu0 %vm1674_vm3, %v1597_v33  ;;  %5658 = vmatmul.mubr.msk.f32.gmra.mrb[18].mxu1 %vm1674_vm3, %v1623_v36 }
 0x497   :  { %2039 = vmatprep.mubr.f32.mxu0 %v11966_v9  ;;  %2195 = vmatprep.mubr.f32.mxu1 %v11966_v9 }
 0x49a   :  { %5633 = vmatmul.mubr.msk.f32.gmra.mrb[48].mxu0 %vm1674_vm3, %v1598_v7  ;;  %5659 = vmatmul.mubr.msk.f32.gmra.mrb[20].mxu1 %vm1674_vm3, %v1624_v19 }
 0x49b   :  { %2045 = vmatprep.mubr.f32.mxu0 %v11966_v9  ;;  %2201 = vmatprep.mubr.f32.mxu1 %v11966_v9 }
 0x49e   :  { %5634 = vmatmul.mubr.msk.f32.gmra.mrb[50].mxu0 %vm1674_vm3, %v1599_v22  ;;  %5660 = vmatmul.mubr.msk.f32.gmra.mrb[22].mxu1 %vm1674_vm3, %v1625_v23 }
 0x49f   :  { %2051 = vmatprep.mubr.f32.mxu0 %v11966_v9  ;;  %2207 = vmatprep.mubr.f32.mxu1 %v11966_v9 }
 0x4a2   :  { %5635 = vmatmul.mubr.msk.f32.gmra.mrb[52].mxu0 %vm1674_vm3, %v1600_v49  ;;  %5661 = vmatmul.mubr.msk.f32.gmra.mrb[24].mxu1 %vm1674_vm3, %v1626_v24 }
 0x4a3   :  { %2057 = vmatprep.mubr.f32.mxu0 %v11966_v9  ;;  %2213 = vmatprep.mubr.f32.mxu1 %v11966_v9 }
 0x4a6   :  { %5636 = vmatmul.mubr.msk.f32.gmra.mrb[54].mxu0 %vm1674_vm3, %v1601_v30  ;;  %5662 = vmatmul.mubr.msk.f32.gmra.mrb[26].mxu1 %vm1674_vm3, %v1627_v32 }
 0x4a7   :  { %2063 = vmatprep.mubr.f32.mxu0 %v11966_v9  ;;  %2219 = vmatprep.mubr.f32.mxu1 %v11966_v9 }
 0x4aa   :  { %5637 = vmatmul.mubr.msk.f32.gmra.mrb[56].mxu0 %vm1674_vm3, %v1602_v47  ;;  %5663 = vmatmul.mubr.msk.f32.gmra.mrb[28].mxu1 %vm1674_vm3, %v1628_v26 }
 0x4ab   :  { %2069 = vmatprep.mubr.f32.mxu0 %v11966_v9  ;;  %2225 = vmatprep.mubr.f32.mxu1 %v11966_v9 }
 0x4ae   :  { %5638 = vmatmul.mubr.msk.f32.gmra.mrb[58].mxu0 %vm1674_vm3, %v1603_v27  ;;  %5664 = vmatmul.mubr.msk.f32.gmra.mrb[30].mxu1 %vm1674_vm3, %v1629_v16 }
 0x4af   :  { %2075 = vmatprep.mubr.f32.mxu0 %v11966_v9  ;;  %2231 = vmatprep.mubr.f32.mxu1 %v11966_v9 }
 0x4b2   :  { %5639 = vmatmul.mubr.msk.f32.gmra.mrb[60].mxu0 %vm1674_vm3, %v1604_v18  ;;  %5665 = vmatmul.mubr.msk.f32.gmra.mrb[32].mxu1 %vm1674_vm3, %v1630_v51 }
 0x4b3   :  { %2081 = vmatprep.mubr.f32.mxu0 %v11966_v9  ;;  %2237 = vmatprep.mubr.f32.mxu1 %v11966_v9 }
 0x4b6   :  { %5640 = vmatmul.mubr.msk.f32.gmra.mrb[62].mxu0 %vm1674_vm3, %v1605_v44  ;;  %5666 = vmatmul.mubr.msk.f32.gmra.mrb[34].mxu1 %vm1674_vm3, %v1631_v59 }
 0x4b7   :  { %2087 = vmatprep.mubr.f32.mxu0 %v11966_v9  ;;  %2243 = vmatprep.mubr.f32.mxu1 %v11966_v9 }
 0x4ba   :  { %5641 = vmatmul.mubr.msk.f32.gmra.mrb[64].mxu0 %vm1674_vm3, %v1606_v60  ;;  %5667 = vmatmul.mubr.msk.f32.gmra.mrb[36].mxu1 %vm1674_vm3, %v1632_v25 }
 0x4bb   :  { %2093 = vmatprep.mubr.f32.mxu0 %v11966_v9  ;;  %2249 = vmatprep.mubr.f32.mxu1 %v11966_v9 }
 0x4be   :  { %5642 = vmatmul.mubr.msk.f32.gmra.mrb[66].mxu0 %vm1674_vm3, %v1607_v31  ;;  %5668 = vmatmul.mubr.msk.f32.gmra.mrb[38].mxu1 %vm1674_vm3, %v1633_v53 }
 0x4bf   :  { %2099 = vmatprep.mubr.f32.mxu0 %v11966_v9  ;;  %2255 = vmatprep.mubr.f32.mxu1 %v11966_v9 }
 0x4c2   :  { %5643 = vmatmul.mubr.msk.f32.gmra.mrb[68].mxu0 %vm1674_vm3, %v1608_v45  ;;  %5669 = vmatmul.mubr.msk.f32.gmra.mrb[40].mxu1 %vm1674_vm3, %v1634_v52 }
 0x4c3   :  { %2105 = vmatprep.mubr.f32.mxu0 %v11966_v9  ;;  %2261 = vmatprep.mubr.f32.mxu1 %v11966_v9 }
 0x4c6   :  { %5644 = vmatmul.mubr.msk.f32.gmra.mrb[70].mxu0 %vm1674_vm3, %v1609_v38  ;;  %5670 = vmatmul.mubr.msk.f32.gmra.mrb[42].mxu1 %vm1674_vm3, %v1635_v40 }
 0x4c7   :  { %2111 = vmatprep.mubr.f32.mxu0 %v11966_v9  ;;  %2267 = vmatprep.mubr.f32.mxu1 %v11966_v9 }
 0x4ca   :  { %5645 = vmatmul.mubr.msk.f32.gmra.mrb[72].mxu0 %vm1674_vm3, %v1610_v42  ;;  %5671 = vmatmul.mubr.msk.f32.gmra.mrb[44].mxu1 %vm1674_vm3, %v1636_v21 }
 0x4cb   :  { %2117 = vmatprep.mubr.f32.mxu0 %v11966_v9  ;;  %2273 = vmatprep.mubr.f32.mxu1 %v11966_v9 }
 0x4ce   :  { %5646 = vmatmul.mubr.msk.f32.gmra.mrb[74].mxu0 %vm1674_vm3, %v1611_v1  ;;  %5672 = vmatmul.mubr.msk.f32.gmra.mrb[46].mxu1 %vm1674_vm3, %v1637_v54 }
 0x4cf   :  { %2123 = vmatprep.mubr.f32.mxu0 %v11966_v9  ;;  %2279 = vmatprep.mubr.f32.mxu1 %v11966_v9 }
 0x4d2   :  { %5647 = vmatmul.mubr.msk.f32.gmra.mrb[76].mxu0 %vm1674_vm3, %v1612_v46  ;;  %5673 = vmatmul.mubr.msk.f32.gmra.mrb[48].mxu1 %vm1674_vm3, %v1638_v57 }
 0x4d3   :  { %2129 = vmatprep.mubr.f32.mxu0 %v11966_v9  ;;  %2285 = vmatprep.mubr.f32.mxu1 %v11966_v9 }
 0x4d6   :  { %5648 = vmatmul.mubr.msk.f32.gmra.mrb[78].mxu0 %vm1674_vm3, %v1613_v12  ;;  %5674 = vmatmul.mubr.msk.f32.gmra.mrb[50].mxu1 %vm1674_vm3, %v1639_v14 }
 0x4d7   :  { %2135 = vmatprep.mubr.f32.mxu0 %v11966_v9  ;;  %2291 = vmatprep.mubr.f32.mxu1 %v11966_v9 }
 0x4da   :  { %5649 = vmatmul.mubr.msk.f32.gmra.mrb[80].mxu0 %vm1674_vm3, %v1614_v0  ;;  %5675 = vmatmul.mubr.msk.f32.gmra.mrb[52].mxu1 %vm1674_vm3, %v1640_v63 }
 0x4db   :  { %2141 = vmatprep.mubr.f32.mxu0 %v11966_v9  ;;  %2297 = vmatprep.mubr.f32.mxu1 %v11966_v9 }
 0x4de   :  { %5650 = vmatmul.mubr.msk.f32.gmra.mrb[82].mxu0 %vm1674_vm3, %v1615_v5  ;;  %5676 = vmatmul.mubr.msk.f32.gmra.mrb[54].mxu1 %vm1674_vm3, %v1641_v20 }
 0x4df   :  { %2303 = vmatprep.mubr.f32.mxu1 %v11966_v9 }
 0x4e2   :  { %5677 = vmatmul.mubr.msk.f32.gmra.mrb[56].mxu1 %vm1674_vm3, %v1642_v4 }
 0x4e3   :  { %2309 = vmatprep.mubr.f32.mxu1 %v11966_v9 }
 0x4e6   :  { %5678 = vmatmul.mubr.msk.f32.gmra.mrb[58].mxu1 %vm1674_vm3, %v1643_v55 }
 0x4e7   :  { %2315 = vmatprep.mubr.f32.mxu1 %v11966_v9 }
 0x4ea   :  { %5679 = vmatmul.mubr.msk.f32.gmra.mrb[60].mxu1 %vm1674_vm3, %v1644_v43 }
 0x4eb   :  { %2321 = vmatprep.mubr.f32.mxu1 %v11966_v9 }
 0x4ee   :  { %5680 = vmatmul.mubr.msk.f32.gmra.mrb[62].mxu1 %vm1674_vm3, %v1645_v6 }
 0x4ef   :  { %2327 = vmatprep.mubr.f32.mxu1 %v11966_v9 }
 0x4f2   :  { %5681 = vmatmul.mubr.msk.f32.gmra.mrb[64].mxu1 %vm1674_vm3, %v1646_v41 }
 0x4f3   :  { %2333 = vmatprep.mubr.f32.mxu1 %v11966_v9 }
 0x4f6   :  { %5682 = vmatmul.mubr.msk.f32.gmra.mrb[66].mxu1 %vm1674_vm3, %v1647_v48 }
 0x4f7   :  { %2339 = vmatprep.mubr.f32.mxu1 %v11966_v9 }
 0x4fa   :  { %5683 = vmatmul.mubr.msk.f32.gmra.mrb[68].mxu1 %vm1674_vm3, %v1648_v39 }
 0x4fb   :  { %2345 = vmatprep.mubr.f32.mxu1 %v11966_v9 }
 0x4fe   :  { %5684 = vmatmul.mubr.msk.f32.gmra.mrb[70].mxu1 %vm1674_vm3, %v1649_v62 }
 0x4ff   :  { %2351 = vmatprep.mubr.f32.mxu1 %v11966_v9 }
 0x502   :  { %5685 = vmatmul.mubr.msk.f32.gmra.mrb[72].mxu1 %vm1674_vm3, %v1650_v8 }
 0x503   :  { %2357 = vmatprep.mubr.f32.mxu1 %v11966_v9 }
 0x506   :  { %5686 = vmatmul.mubr.msk.f32.gmra.mrb[74].mxu1 %vm1674_vm3, %v1651_v17 }
 0x507   :  { %2363 = vmatprep.mubr.f32.mxu1 %v11966_v9 }
 0x50a   :  { %5687 = vmatmul.mubr.msk.f32.gmra.mrb[76].mxu1 %vm1674_vm3, %v1652_v10 }
 0x50b   :  { %2369 = vmatprep.mubr.f32.mxu1 %v11966_v9 }
 0x50e   :  { %5688 = vmatmul.mubr.msk.f32.gmra.mrb[78].mxu1 %vm1674_vm3, %v1653_v28 }
 0x50f   :  { %2375 = vmatprep.mubr.f32.mxu1 %v11966_v9 }
 0x512   :  { %5689 = vmatmul.mubr.msk.f32.gmra.mrb[80].mxu1 %vm1674_vm3, %v1654_v61 }
 0x513   :  { %2381 = vmatprep.mubr.f32.mxu1 %v11966_v9 }
 0x516   :  { %5690 = vmatmul.mubr.msk.f32.gmra.mrb[82].mxu1 %vm1674_vm3, %v1655_v15 }
 0x517   :  { %2387 = vmatprep.mubr.f32.mxu1 %v11966_v9 }
 0x51a   :  { %5691 = vmatmul.mubr.msk.f32.gmra.mrb[84].mxu1 %vm1674_vm3, %v1656_v34 }
 0x51b   :  { %2393 = vmatprep.mubr.f32.mxu1 %v11966_v9 }
 0x51e   :  { %5692 = vmatmul.mubr.msk.f32.gmra.mrb[86].mxu1 %vm1674_vm3, %v1657_v50 }
 0x51f   :  { %2399 = vmatprep.mubr.f32.mxu1 %v11966_v9 }
 0x522   :  { %5693 = vmatmul.mubr.msk.f32.gmra.mrb[88].mxu1 %vm1674_vm3, %v1658_v29 }
 0x523   :  { %2405 = vmatprep.mubr.f32.mxu1 %v11966_v9 }
 0x54d   :  { %v8134_v56 = vpop.f32.mrb[32].mxu0  ;;  %v8136_v37 = vpop.f32.mrb[4].mxu1 }
 0x54e   :  { %12139 = vst [vmem:[#allocation2_spill] sm:$0xff] %v8134_v56  ;;  %12140 = vst [vmem:[#allocation3_spill] sm:$0xff] %v8136_v37  ;;  %v8138_v2 = vpop.f32.mrb[33].mxu0  ;;  %v8140_v35 = vpop.f32.mrb[5].mxu1  ;;  %v2916_v7 = vmul.f32 %v8134_v56, %v8134_v56  ;;  %v2968_v19 = vmul.f32 %v8136_v37, %v8136_v37 }
 0x54f   :  { %12141 = vst [vmem:[#allocation4_spill] sm:$0xff] %v8138_v2  ;;  %12142 = vst [vmem:[#allocation5_spill] sm:$0xff] %v8140_v35  ;;  %v2917_v11 = vmul.f32 %v8138_v2, %v8138_v2  ;;  %v2969_v13 = vmul.f32 %v8140_v35, %v8140_v35  ;;  %v2600_v58 = vsel %vm1099_vm2, %v8140_v35, 0.0  ;;  %v2496_v3 = vsel %vm1099_vm2, %v8138_v2, 0.0 }
 0x550   :  { %v2601_v33 = vadd.f32 %v2600_v58, %v8136_v37  ;;  %v2497_v36 = vadd.f32 %v2496_v3, %v8134_v56 }
 0x551   :  { %v8156_v22 = vpop.f32.mrb[6].mxu1  ;;  %v8158_v23 = vpop.f32.mrb[34].mxu0  ;;  %v3084_v49 = vsel %vm1099_vm2, %v2917_v11, 0.0  ;;  %v3188_v24 = vsel %vm1099_vm2, %v2969_v13, 0.0 }
 0x552   :  { %12143 = vst [vmem:[#allocation6_spill] sm:$0xff] %v8156_v22  ;;  %12144 = vst [vmem:[#allocation7_spill] sm:$0xff] %v8158_v23  ;;  %2602 = vadd.xlane.f32.xlu0 %v2601_v33  ;;  %v8162_v30 = vpop.f32.mrb[7].mxu1  ;;  %2498 = vadd.xlane.f32.xlu1 %v2497_v36  ;;  %v8164_v32 = vpop.f32.mrb[35].mxu0  ;;  %v3085_v47 = vadd.f32 %v3084_v49, %v2916_v7  ;;  %v3189_v26 = vadd.f32 %v3188_v24, %v2968_v19 }
 0x553   :  { %12145 = vst [vmem:[#allocation8_spill] sm:$0xff] %v8162_v30  ;;  %12146 = vst [vmem:[#allocation9_spill] sm:$0xff] %v8164_v32  ;;  %v2918_v27 = vmul.f32 %v8158_v23, %v8158_v23  ;;  %v2971_v16 = vmul.f32 %v8162_v30, %v8162_v30  ;;  %v2919_v18 = vmul.f32 %v8164_v32, %v8164_v32  ;;  %v2604_v51 = vsel %vm1099_vm2, %v8162_v30, 0.0 }
 0x554   :  { %v2605_v44 = vadd.f32 %v2604_v51, %v8156_v22  ;;  %v2970_v59 = vmul.f32 %v8156_v22, %v8156_v22  ;;  %v2500_v60 = vsel %vm1099_vm2, %v8164_v32, 0.0 }
 0x555   :  { %v3088_v25 = vsel %vm1099_vm2, %v2919_v18, 0.0  ;;  %v8180_v31 = vpop.f32.mrb[36].mxu0  ;;  %v3192_v53 = vsel %vm1099_vm2, %v2971_v16, 0.0  ;;  %v2501_v45 = vadd.f32 %v2500_v60, %v8158_v23  ;;  %v8184_v52 = vpop.f32.mrb[8].mxu1 }
 0x556   :  { %12147 = vst [vmem:[#allocation10_spill] sm:$0xff] %v8180_v31  ;;  %12148 = vst [vmem:[#allocation11_spill] sm:$0xff] %v8184_v52  ;;  %3086 = vadd.xlane.f32.xlu0 %v3085_v47  ;;  %2606 = vadd.xlane.f32.xlu1 %v2605_v44  ;;  %v3089_v38 = vadd.f32 %v3088_v25, %v2918_v27  ;;  %v8186_v40 = vpop.f32.mrb[37].mxu0  ;;  %v3193_v42 = vadd.f32 %v3192_v53, %v2970_v59  ;;  %v8188_v21 = vpop.f32.mrb[9].mxu1 }
 0x557   :  { %12149 = vst [vmem:[#allocation12_spill] sm:$0xff] %v8186_v40  ;;  %12150 = vst [vmem:[#allocation13_spill] sm:$0xff] %v8188_v21  ;;  %v2920_v1 = vmul.f32 %v8180_v31, %v8180_v31  ;;  %v2921_v54 = vmul.f32 %v8186_v40, %v8186_v40  ;;  %v2973_v46 = vmul.f32 %v8188_v21, %v8188_v21  ;;  %v2504_v57 = vsel %vm1099_vm2, %v8186_v40, 0.0 }
 0x558   :  { %v2608_v12 = vsel %vm1099_vm2, %v8188_v21, 0.0  ;;  %v2505_v14 = vadd.f32 %v2504_v57, %v8180_v31  ;;  %v2972_v63 = vmul.f32 %v8184_v52, %v8184_v52 }
 0x559   :  { %v2609_v0 = vadd.f32 %v2608_v12, %v8184_v52  ;;  %v8204_v5 = vpop.f32.mrb[38].mxu0  ;;  %v8206_v20 = vpop.f32.mrb[10].mxu1  ;;  %v3092_v4 = vsel %vm1099_vm2, %v2921_v54, 0.0  ;;  %v3196_v55 = vsel %vm1099_vm2, %v2973_v46, 0.0 }
 0x55a   :  { %12151 = vst [vmem:[#allocation14_spill] sm:$0xff] %v8204_v5  ;;  %12152 = vst [vmem:[#allocation15_spill] sm:$0xff] %v8206_v20  ;;  %3190 = vadd.xlane.f32.xlu0 %v3189_v26  ;;  %3090 = vadd.xlane.f32.xlu1 %v3089_v38  ;;  %v8210_v43 = vpop.f32.mrb[39].mxu0  ;;  %v8212_v6 = vpop.f32.mrb[11].mxu1  ;;  %v8214_v41 = vadd.f32 %v3092_v4, %v2920_v1  ;;  %v2922_v48 = vmul.f32 %v8204_v5, %v8204_v5 }
 0x55b   :  { %12153 = vst [vmem:[#allocation16_spill] sm:$0xff] %v8210_v43  ;;  %12154 = vst [vmem:[#allocation17_spill] sm:$0xff] %v8212_v6  ;;  %v8218_v39 = vadd.f32 %v3196_v55, %v2972_v63  ;;  %v2923_v62 = vmul.f32 %v8210_v43, %v8210_v43  ;;  %v2975_v8 = vmul.f32 %v8212_v6, %v8212_v6  ;;  %v2508_v17 = vsel %vm1099_vm2, %v8210_v43, 0.0 }
 0x55c   :  { %v2612_v10 = vsel %vm1099_vm2, %v8212_v6, 0.0  ;;  %v2509_v28 = vadd.f32 %v2508_v17, %v8204_v5  ;;  %v2974_v15 = vmul.f32 %v8206_v20, %v8206_v20 }
 0x55d   :  { %v2613_v61 = vadd.f32 %v2612_v10, %v8206_v20  ;;  %v3096_v34 = vsel %vm1099_vm2, %v2923_v62, 0.0  ;;  %v8233_v50 = vpop.f32.mrb[40].mxu0  ;;  %v3200_v29 = vsel %vm1099_vm2, %v2975_v8, 0.0  ;;  %v8236_v11 = vpop.f32.mrb[12].mxu1 }
 0x55e   :  { %12155 = vst [vmem:[#allocation18_spill] sm:$0xff] %v8233_v50  ;;  %12156 = vst [vmem:[#allocation19_spill] sm:$0xff] %v8236_v11  ;;  %3194 = vadd.xlane.f32.xlu1 %v3193_v42  ;;  %2502 = vadd.xlane.f32.xlu0 %v2501_v45  ;;  %v3097_v13 = vadd.f32 %v3096_v34, %v2922_v48  ;;  %v8238_v58 = vpop.f32.mrb[41].mxu0  ;;  %v8240_v3 = vadd.f32 %v3200_v29, %v2974_v15  ;;  %v8242_v33 = vpop.f32.mrb[13].mxu1 }
 0x55f   :  { %12157 = vst [vmem:[#allocation20_spill] sm:$0xff] %v8238_v58  ;;  %12158 = vst [vmem:[#allocation21_spill] sm:$0xff] %v8242_v33  ;;  %v2924_v36 = vmul.f32 %v8233_v50, %v8233_v50  ;;  %v2925_v7 = vmul.f32 %v8238_v58, %v8238_v58  ;;  %v2977_v19 = vmul.f32 %v8242_v33, %v8242_v33  ;;  %v2512_v49 = vsel %vm1099_vm2, %v8238_v58, 0.0 }
 0x560   :  { %v2616_v24 = vsel %vm1099_vm2, %v8242_v33, 0.0  ;;  %v8255_v47 = vadd.f32 %v2512_v49, %v8233_v50  ;;  %v2976_v27 = vmul.f32 %v8236_v11, %v8236_v11 }
 0x561   :  { %v8258_v26 = vadd.f32 %v2616_v24, %v8236_v11  ;;  %v8262_v16 = vpop.f32.mrb[42].mxu0  ;;  %v8264_v18 = vpop.f32.mrb[14].mxu1  ;;  %v3100_v51 = vsel %vm1099_vm2, %v2925_v7, 0.0  ;;  %v3204_v44 = vsel %vm1099_vm2, %v2977_v19, 0.0 }
 0x562   :  { %12159 = vst [vmem:[#allocation22_spill] sm:$0xff] %v8262_v16  ;;  %12160 = vst [vmem:[#allocation23_spill] sm:$0xff] %v8264_v18  ;;  %2506 = vadd.xlane.f32.xlu0 %v2505_v14  ;;  %2510 = vadd.xlane.f32.xlu1 %v2509_v28  ;;  %v8268_v59 = vpop.f32.mrb[43].mxu0  ;;  %v8270_v60 = vpop.f32.mrb[15].mxu1  ;;  %v8272_v25 = vadd.f32 %v3100_v51, %v2924_v36  ;;  %v2926_v53 = vmul.f32 %v8262_v16, %v8262_v16 }
 0x563   :  { %12161 = vst [vmem:[#allocation24_spill] sm:$0xff] %v8268_v59  ;;  %12162 = vst [vmem:[#allocation25_spill] sm:$0xff] %v8270_v60  ;;  %v8276_v45 = vadd.f32 %v3204_v44, %v2976_v27  ;;  %v2927_v38 = vmul.f32 %v8268_v59, %v8268_v59  ;;  %v2979_v42 = vmul.f32 %v8270_v60, %v8270_v60  ;;  %v2516_v1 = vsel %vm1099_vm2, %v8268_v59, 0.0 }
 0x564   :  { %v2620_v54 = vsel %vm1099_vm2, %v8270_v60, 0.0  ;;  %v2517_v46 = vadd.f32 %v2516_v1, %v8262_v16  ;;  %v2978_v12 = vmul.f32 %v8264_v18, %v8264_v18  ;;  %v1659_v60 = vld [vmem:[%s11962_s9 + $0x228] sm:$0xff]  ;;  %v12197_v16 = vmov 0.0  }
 0x565   :  { %v8288_v57 = vadd.f32 %v2620_v54, %v8264_v18  ;;  %v3104_v14 = vsel %vm1099_vm2, %v2927_v38, 0.0  ;;  %v8293_v63 = vpop.f32.mrb[44].mxu0  ;;  %v3208_v4 = vsel %vm1099_vm2, %v2979_v42, 0.0  ;;  %v8296_v55 = vpop.f32.mrb[16].mxu1  ;;  %5694 = vmatmul.mubr.msk.f32.gmra.mrb[90].mxu1 %vm1674_vm3, %v1659_v60 }
 0x566   :  { %12163 = vst [vmem:[#allocation26_spill] sm:$0xff] %v8293_v63  ;;  %12164 = vst [vmem:[#allocation27_spill] sm:$0xff] %v8296_v55  ;;  %2610 = vadd.xlane.f32.xlu0 %v2609_v0  ;;  %2614 = vadd.xlane.f32.xlu1 %v2613_v61  ;;  %v8298_v48 = vadd.f32 %v3104_v14, %v2926_v53  ;;  %v8300_v62 = vpop.f32.mrb[45].mxu0  ;;  %v8302_v8 = vadd.f32 %v3208_v4, %v2978_v12  ;;  %v8304_v17 = vpop.f32.mrb[17].mxu1 }
 0x567   :  { %12165 = vst [vmem:[#allocation28_spill] sm:$0xff] %v8300_v62  ;;  %12166 = vst [vmem:[#allocation29_spill] sm:$0xff] %v8304_v17  ;;  %v2928_v10 = vmul.f32 %v8293_v63, %v8293_v63  ;;  %v2929_v28 = vmul.f32 %v8300_v62, %v8300_v62  ;;  %v2981_v15 = vmul.f32 %v8304_v17, %v8304_v17  ;;  %v2520_v0 = vsel %vm1099_vm2, %v8300_v62, 0.0 }
 0x568   :  { %v2624_v61 = vsel %vm1099_vm2, %v8304_v17, 0.0  ;;  %v8317_v34 = vadd.f32 %v2520_v0, %v8293_v63  ;;  %v2980_v36 = vmul.f32 %v8296_v55, %v8296_v55  ;;  %2411 = vmatprep.mubr.f32.mxu1 %v12197_v16 }
 0x569   :  { %v8320_v29 = vadd.f32 %v2624_v61, %v8296_v55  ;;  %v8324_v7 = vpop.f32.mrb[46].mxu0  ;;  %v8326_v19 = vpop.f32.mrb[18].mxu1  ;;  %v3108_v49 = vsel %vm1099_vm2, %v2929_v28, 0.0  ;;  %v3212_v24 = vsel %vm1099_vm2, %v2981_v15, 0.0 }
 0x56a   :  { %12167 = vst [vmem:[#allocation30_spill] sm:$0xff] %v8324_v7  ;;  %12168 = vst [vmem:[#allocation31_spill] sm:$0xff] %v8326_v19  ;;  %3094 = vadd.xlane.f32.xlu0 %v8214_v41  ;;  %3098 = vadd.xlane.f32.xlu1 %v3097_v13  ;;  %v8331_v27 = vpop.f32.mrb[47].mxu0  ;;  %v8333_v51 = vpop.f32.mrb[19].mxu1  ;;  %v8335_v44 = vadd.f32 %v3108_v49, %v2928_v10  ;;  %v2930_v53 = vmul.f32 %v8324_v7, %v8324_v7 }
 0x56b   :  { %12169 = vst [vmem:[#allocation32_spill] sm:$0xff] %v8331_v27  ;;  %12170 = vst [vmem:[#allocation33_spill] sm:$0xff] %v8333_v51  ;;  %v8339_v38 = vadd.f32 %v3212_v24, %v2980_v36  ;;  %v2931_v42 = vmul.f32 %v8331_v27, %v8331_v27  ;;  %v2983_v1 = vmul.f32 %v8333_v51, %v8333_v51  ;;  %v2524_v41 = vsel %vm1099_vm2, %v8331_v27, 0.0 }
 0x56c   :  { %v2628_v13 = vsel %vm1099_vm2, %v8333_v51, 0.0  ;;  %v8350_v54 = vadd.f32 %v2524_v41, %v8324_v7  ;;  %v2982_v14 = vmul.f32 %v8326_v19, %v8326_v19 }
 0x56d   :  { %v8353_v12 = vadd.f32 %v2628_v13, %v8326_v19  ;;  %v3112_v4 = vsel %vm1099_vm2, %v2931_v42, 0.0  ;;  %v8358_v10 = vpop.f32.mrb[48].mxu0  ;;  %v3216_v28 = vsel %vm1099_vm2, %v2983_v1, 0.0  ;;  %v8361_v15 = vpop.f32.mrb[20].mxu1 }
 0x56e   :  { %12171 = vst [vmem:[#allocation34_spill] sm:$0xff] %v8358_v10  ;;  %12172 = vst [vmem:[#allocation35_spill] sm:$0xff] %v8361_v15  ;;  %3198 = vadd.xlane.f32.xlu0 %v8218_v39  ;;  %3202 = vadd.xlane.f32.xlu1 %v8240_v3  ;;  %v8365_v0 = vadd.f32 %v3112_v4, %v2930_v53  ;;  %v8367_v61 = vpop.f32.mrb[49].mxu0  ;;  %v8369_v36 = vadd.f32 %v3216_v28, %v2982_v14  ;;  %v8371_v49 = vpop.f32.mrb[21].mxu1 }
 0x56f   :  { %12173 = vst [vmem:[#allocation36_spill] sm:$0xff] %v8367_v61  ;;  %12174 = vst [vmem:[#allocation37_spill] sm:$0xff] %v8371_v49  ;;  %v2932_v24 = vmul.f32 %v8358_v10, %v8358_v10  ;;  %v2933_v42 = vmul.f32 %v8367_v61, %v8367_v61  ;;  %v2985_v1 = vmul.f32 %v8371_v49, %v8371_v49  ;;  %v2528_v39 = vsel %vm1099_vm2, %v8367_v61, 0.0 }
 0x570   :  { %v2632_v3 = vsel %vm1099_vm2, %v8371_v49, 0.0  ;;  %v8384_v53 = vadd.f32 %v2528_v39, %v8358_v10  ;;  %v2984_v13 = vmul.f32 %v8361_v15, %v8361_v15 }
 0x571   :  { %v8387_v41 = vadd.f32 %v2632_v3, %v8361_v15  ;;  %v8391_v14 = vpop.f32.mrb[50].mxu0  ;;  %v8393_v4 = vpop.f32.mrb[22].mxu1  ;;  %v3116_v28 = vsel %vm1099_vm2, %v2933_v42, 0.0  ;;  %v3220_v9 = vsel %vm1099_vm2, %v2985_v1, 0.0 }
 0x572   :  { %12175 = vst [vmem:[#allocation38_spill] sm:$0xff] %v8391_v14  ;;  %12176 = vst [vmem:[#allocation39_spill] sm:$0xff] %v8393_v4  ;;  %2514 = vadd.xlane.f32.xlu0 %v8255_v47  ;;  %2518 = vadd.xlane.f32.xlu1 %v2517_v46  ;;  %v2934_v39 = vmul.f32 %v8391_v14, %v8391_v14  ;;  %v8400_v49 = vpop.f32.mrb[51].mxu0  ;;  %v2986_v3 = vmul.f32 %v8393_v4, %v8393_v4  ;;  %v8404_v15 = vpop.f32.mrb[23].mxu1 }
 0x573   :  { %12177 = vst [vmem:[#allocation40_spill] sm:$0xff] %v8400_v49  ;;  %12178 = vst [vmem:[#allocation41_spill] sm:$0xff] %v8404_v15  ;;  %v8406_v61 = vadd.f32 %v3116_v28, %v2932_v24  ;;  %v2935_v42 = vmul.f32 %v8400_v49, %v8400_v49  ;;  %v2987_v1 = vmul.f32 %v8404_v15, %v8404_v15  ;;  %v2532_v47 = vsel %vm1099_vm2, %v8400_v49, 0.0 }
 0x574   :  { %v2636_v46 = vsel %vm1099_vm2, %v8404_v15, 0.0  ;;  %v8417_v10 = vadd.f32 %v2532_v47, %v8391_v14  ;;  %v8422_v24 = vadd.f32 %v3220_v9, %v2984_v13 }
 0x575   :  { %v8420_v51 = vadd.f32 %v2636_v46, %v8393_v4  ;;  %v3120_v28 = vsel %vm1099_vm2, %v2935_v42, 0.0  ;;  %v8425_v19 = vpop.f32.mrb[52].mxu0  ;;  %v3224_v27 = vsel %vm1099_vm2, %v2987_v1, 0.0  ;;  %v8428_v7 = vpop.f32.mrb[24].mxu1 }
 0x576   :  { %12179 = vst [vmem:[#allocation42_spill] sm:$0xff] %v8425_v19  ;;  %12180 = vst [vmem:[#allocation43_spill] sm:$0xff] %v8428_v7  ;;  %2618 = vadd.xlane.f32.xlu0 %v8258_v26  ;;  %2622 = vadd.xlane.f32.xlu1 %v8288_v57  ;;  %v8432_v15 = vadd.f32 %v3120_v28, %v2934_v39  ;;  %v8434_v47 = vpop.f32.mrb[53].mxu0  ;;  %v8436_v46 = vadd.f32 %v3224_v27, %v2986_v3  ;;  %v8438_v9 = vpop.f32.mrb[25].mxu1 }
 0x577   :  { %12181 = vst [vmem:[#allocation44_spill] sm:$0xff] %v8434_v47  ;;  %12182 = vst [vmem:[#allocation45_spill] sm:$0xff] %v8438_v9  ;;  %v2936_v13 = vmul.f32 %v8425_v19, %v8425_v19  ;;  %v2937_v42 = vmul.f32 %v8434_v47, %v8434_v47  ;;  %v2989_v1 = vmul.f32 %v8438_v9, %v8438_v9  ;;  %v2536_v26 = vsel %vm1099_vm2, %v8434_v47, 0.0 }
 0x578   :  { %v2640_v57 = vsel %vm1099_vm2, %v8438_v9, 0.0  ;;  %v8451_v27 = vadd.f32 %v2536_v26, %v8425_v19  ;;  %v2988_v3 = vmul.f32 %v8428_v7, %v8428_v7 }
 0x579   :  { %v8454_v39 = vadd.f32 %v2640_v57, %v8428_v7  ;;  %v8458_v28 = vpop.f32.mrb[54].mxu0  ;;  %v8460_v4 = vpop.f32.mrb[26].mxu1  ;;  %v3124_v49 = vsel %vm1099_vm2, %v2937_v42, 0.0  ;;  %v3228_v47 = vsel %vm1099_vm2, %v2989_v1, 0.0 }
 0x57a   :  { %12183 = vst [vmem:[#allocation46_spill] sm:$0xff] %v8458_v28  ;;  %12184 = vst [vmem:[#allocation47_spill] sm:$0xff] %v8460_v4  ;;  %3102 = vadd.xlane.f32.xlu0 %v8272_v25  ;;  %3106 = vadd.xlane.f32.xlu1 %v8298_v48  ;;  %v2938_v26 = vmul.f32 %v8458_v28, %v8458_v28  ;;  %v8468_v57 = vpop.f32.mrb[55].mxu0  ;;  %v2990_v9 = vmul.f32 %v8460_v4, %v8460_v4  ;;  %v8472_v7 = vpop.f32.mrb[27].mxu1 }
 0x57b   :  { %12185 = vst [vmem:[#allocation48_spill] sm:$0xff] %v8468_v57  ;;  %12186 = vst [vmem:[#allocation49_spill] sm:$0xff] %v8472_v7  ;;  %v8474_v19 = vadd.f32 %v3124_v49, %v2936_v13  ;;  %v2540_v42 = vsel %vm1099_vm2, %v8468_v57, 0.0  ;;  %v2939_v25 = vmul.f32 %v8468_v57, %v8468_v57  ;;  %v2644_v48 = vsel %vm1099_vm2, %v8472_v7, 0.0 }
 0x57c   :  { %v2991_v1 = vmul.f32 %v8472_v7, %v8472_v7  ;;  %v8485_v14 = vadd.f32 %v2540_v42, %v8458_v28  ;;  %v8488_v17 = vadd.f32 %v2644_v48, %v8460_v4  ;;  %v8490_v49 = vadd.f32 %v3228_v47, %v2988_v3 }
 0x57d   :  { %v3128_v13 = vsel %vm1099_vm2, %v2939_v25, 0.0  ;;  %v8493_v55 = vpop.f32.mrb[56].mxu0  ;;  %v8496_v62 = vpop.f32.mrb[28].mxu1 }
 0x57e   :  { %12187 = vst [vmem:[#allocation50_spill] sm:$0xff] %v8493_v55  ;;  %v3232_v57 = vsel %vm1099_vm2, %v2991_v1, 0.0  ;;  %12188 = vst [vmem:[#allocation51_spill] sm:$0xff] %v8496_v62  ;;  %3206 = vadd.xlane.f32.xlu0 %v8276_v45  ;;  %3210 = vadd.xlane.f32.xlu1 %v8302_v8  ;;  %v8500_v7 = vadd.f32 %v3128_v13, %v2938_v26  ;;  %v2940_v42 = vmul.f32 %v8493_v55, %v8493_v55  ;;  %v8504_v48 = vpop.f32.mrb[57].mxu0  ;;  %v8508_v3 = vpop.f32.mrb[29].mxu1 }
 0x57f   :  { %12189 = vst [vmem:[#allocation52_spill] sm:$0xff] %v8504_v48  ;;  %v8506_v47 = vadd.f32 %v3232_v57, %v2990_v9  ;;  %12190 = vst [vmem:[#allocation53_spill] sm:$0xff] %v8508_v3  ;;  %v2544_v25 = vsel %vm1099_vm2, %v8504_v48, 0.0  ;;  %v2941_v1 = vmul.f32 %v8504_v48, %v8504_v48  ;;  %v2648_v45 = vsel %vm1099_vm2, %v8508_v3, 0.0 }
 0x580   :  { %v2992_v8 = vmul.f32 %v8496_v62, %v8496_v62  ;;  %v2993_v26 = vmul.f32 %v8508_v3, %v8508_v3  ;;  %v8521_v9 = vadd.f32 %v2544_v25, %v8493_v55  ;;  %v8524_v57 = vadd.f32 %v2648_v45, %v8496_v62 }
 0x581   :  { %v8526_v13 = vpop.f32.mrb[58].mxu0  ;;  %v8528_v4 = vpop.f32.mrb[30].mxu1  ;;  %v3132_v48 = vsel %vm1099_vm2, %v2941_v1, 0.0 }
 0x582   :  { %12191 = vst [vmem:[#allocation54_spill] sm:$0xff] %v8526_v13  ;;  %12192 = vst [vmem:[#allocation55_spill] sm:$0xff] %v8528_v4  ;;  %2522 = vadd.xlane.f32.xlu0 %v8317_v34  ;;  %2526 = vadd.xlane.f32.xlu1 %v8350_v54  ;;  %v2942_v28 = vmul.f32 %v8526_v13, %v8526_v13  ;;  %v8535_v3 = vpop.f32.mrb[59].mxu0  ;;  %v2994_v25 = vmul.f32 %v8528_v4, %v8528_v4  ;;  %v8539_v45 = vpop.f32.mrb[31].mxu1  ;;  %v3236_v55 = vsel %vm1099_vm2, %v2993_v26, 0.0 }
 0x583   :  { %12193 = vst [vmem:[#allocation56_spill] sm:$0xff] %v8535_v3  ;;  %12194 = vst [vmem:[#allocation57_spill] sm:$0xff] %v8539_v45  ;;  %v8541_v62 = vadd.f32 %v3132_v48, %v2940_v42  ;;  %v2548_v1 = vsel %vm1099_vm2, %v8535_v3, 0.0  ;;  %v2943_v34 = vmul.f32 %v8535_v3, %v8535_v3  ;;  %v2652_v54 = vsel %vm1099_vm2, %v8539_v45, 0.0 }
 0x584   :  { %v2995_v63 = vmul.f32 %v8539_v45, %v8539_v45  ;;  %v8556_v42 = vadd.f32 %v2548_v1, %v8526_v13  ;;  %v8559_v48 = vadd.f32 %v2652_v54, %v8528_v4  ;;  %v8561_v26 = vadd.f32 %v3236_v55, %v2992_v8 }
 0x585   :  { %v3136_v3 = vsel %vm1099_vm2, %v2943_v34, 0.0  ;;  %v8565_v18 = vpop.f32.mrb[60].mxu0  ;;  %v8568_v59 = vpop.f32.mrb[32].mxu1 }
 0x586   :  { %12195 = vst [vmem:[#allocation58_spill] sm:$0xff] %v8565_v18  ;;  %v3240_v45 = vsel %vm1099_vm2, %v2995_v63, 0.0  ;;  %12196 = vst [vmem:[#allocation59_spill] sm:$0xff] %v8568_v59  ;;  %2626 = vadd.xlane.f32.xlu0 %v8320_v29  ;;  %2630 = vadd.xlane.f32.xlu1 %v8353_v12  ;;  %v8573_v1 = vadd.f32 %v3136_v3, %v2942_v28  ;;  %v2944_v55 = vmul.f32 %v8565_v18, %v8565_v18  ;;  %v8577_v60 = vpop.f32.mrb[61].mxu0  ;;  %v8581_v34 = vpop.f32.mrb[33].mxu1  ;;  %v1660_v63 = vld [vmem:[%s11962_s9 + $0x230] sm:$0xff] }
 0x587   :  { %12198 = vst [vmem:[#allocation60_spill] sm:$0xff] %v8577_v60  ;;  %v8579_v8 = vadd.f32 %v3240_v45, %v2994_v25  ;;  %12199 = vst [vmem:[#allocation61_spill] sm:$0xff] %v8581_v34  ;;  %v2552_v29 = vsel %vm1099_vm2, %v8577_v60, 0.0  ;;  %v2945_v12 = vmul.f32 %v8577_v60, %v8577_v60  ;;  %v2656_v28 = vsel %vm1099_vm2, %v8581_v34, 0.0  ;;  %5695 = vmatmul.mubr.msk.f32.gmra.mrb[92].mxu1 %vm1674_vm3, %v1660_v63 }
 0x588   :  { %v2996_v3 = vmul.f32 %v8568_v59, %v8568_v59  ;;  %v2997_v25 = vmul.f32 %v8581_v34, %v8581_v34  ;;  %v8597_v45 = vadd.f32 %v2552_v29, %v8565_v18  ;;  %v8600_v54 = vadd.f32 %v2656_v28, %v8568_v59  ;;  %2417 = vmatprep.mubr.f32.mxu1 %v12197_v16 }
 0x589   :  { %v8603_v4 = vpop.f32.mrb[62].mxu0  ;;  %v8605_v60 = vpop.f32.mrb[34].mxu1  ;;  %v3140_v13 = vsel %vm1099_vm2, %v2945_v12, 0.0 }
 0x58a   :  { %12200 = vst [vmem:[#allocation62_spill] sm:$0xff] %v8603_v4  ;;  %12201 = vst [vmem:[#allocation63_spill] sm:$0xff] %v8605_v60  ;;  %3110 = vadd.xlane.f32.xlu0 %v8335_v44  ;;  %3114 = vadd.xlane.f32.xlu1 %v8365_v0  ;;  %v2946_v29 = vmul.f32 %v8603_v4, %v8603_v4  ;;  %v8613_v34 = vpop.f32.mrb[63].mxu0  ;;  %v2998_v63 = vmul.f32 %v8605_v60, %v8605_v60  ;;  %v8617_v28 = vpop.f32.mrb[35].mxu1  ;;  %v3244_v12 = vsel %vm1099_vm2, %v2997_v25, 0.0 }
 0x58b   :  { %12202 = vst [vmem:[#allocation64_spill] sm:$0xff] %v8613_v34  ;;  %12203 = vst [vmem:[#allocation65_spill] sm:$0xff] %v8617_v28  ;;  %v8619_v59 = vadd.f32 %v3140_v13, %v2944_v55  ;;  %v2556_v18 = vsel %vm1099_vm2, %v8613_v34, 0.0  ;;  %v2947_v44 = vmul.f32 %v8613_v34, %v8613_v34  ;;  %v2660_v0 = vsel %vm1099_vm2, %v8617_v28, 0.0 }
 0x58c   :  { %v2999_v33 = vmul.f32 %v8617_v28, %v8617_v28  ;;  %v8631_v11 = vadd.f32 %v2556_v18, %v8603_v4  ;;  %v8634_v13 = vadd.f32 %v2660_v0, %v8605_v60  ;;  %v8636_v55 = vadd.f32 %v3244_v12, %v2996_v3 }
 0x58d   :  { %v3144_v25 = vsel %vm1099_vm2, %v2947_v44, 0.0  ;;  %v8639_v58 = vpop.f32.mrb[64].mxu0  ;;  %v8642_v50 = vpop.f32.mrb[36].mxu1 }
 0x58e   :  { %12204 = vst [vmem:[#allocation66_spill] sm:$0xff] %v8639_v58  ;;  %v3248_v34 = vsel %vm1099_vm2, %v2999_v33, 0.0  ;;  %12205 = vst [vmem:[#allocation67_spill] sm:$0xff] %v8642_v50  ;;  %3214 = vadd.xlane.f32.xlu0 %v8339_v38  ;;  %3218 = vadd.xlane.f32.xlu1 %v8369_v36  ;;  %v8646_v28 = vadd.f32 %v3144_v25, %v2946_v29  ;;  %v2948_v18 = vmul.f32 %v8639_v58, %v8639_v58  ;;  %v8650_v0 = vpop.f32.mrb[65].mxu0  ;;  %v8654_v12 = vpop.f32.mrb[37].mxu1 }
 0x58f   :  { %12206 = vst [vmem:[#allocation68_spill] sm:$0xff] %v8650_v0  ;;  %v8652_v3 = vadd.f32 %v3248_v34, %v2998_v63  ;;  %12207 = vst [vmem:[#allocation69_spill] sm:$0xff] %v8654_v12  ;;  %v2560_v33 = vsel %vm1099_vm2, %v8650_v0, 0.0  ;;  %v2949_v44 = vmul.f32 %v8650_v0, %v8650_v0  ;;  %v2664_v38 = vsel %vm1099_vm2, %v8654_v12, 0.0 }
 0x590   :  { %v3000_v36 = vmul.f32 %v8642_v50, %v8642_v50  ;;  %v3001_v29 = vmul.f32 %v8654_v12, %v8654_v12  ;;  %v8667_v34 = vadd.f32 %v2560_v33, %v8639_v58  ;;  %v8670_v63 = vadd.f32 %v2664_v38, %v8642_v50 }
 0x591   :  { %v8672_v25 = vpop.f32.mrb[66].mxu0  ;;  %v8674_v60 = vpop.f32.mrb[38].mxu1  ;;  %v3148_v0 = vsel %vm1099_vm2, %v2949_v44, 0.0 }
 0x592   :  { %12208 = vst [vmem:[#allocation70_spill] sm:$0xff] %v8672_v25  ;;  %12209 = vst [vmem:[#allocation71_spill] sm:$0xff] %v8674_v60  ;;  %2530 = vadd.xlane.f32.xlu0 %v8384_v53  ;;  %2534 = vadd.xlane.f32.xlu1 %v8417_v10  ;;  %v2950_v4 = vmul.f32 %v8672_v25, %v8672_v25  ;;  %v8681_v12 = vpop.f32.mrb[67].mxu0  ;;  %v3002_v33 = vmul.f32 %v8674_v60, %v8674_v60  ;;  %v8685_v38 = vpop.f32.mrb[39].mxu1  ;;  %v3252_v58 = vsel %vm1099_vm2, %v3001_v29, 0.0 }
 0x593   :  { %12210 = vst [vmem:[#allocation72_spill] sm:$0xff] %v8681_v12  ;;  %12211 = vst [vmem:[#allocation73_spill] sm:$0xff] %v8685_v38  ;;  %v8687_v50 = vadd.f32 %v3148_v0, %v2948_v18  ;;  %v2564_v44 = vsel %vm1099_vm2, %v8681_v12, 0.0  ;;  %v2951_v10 = vmul.f32 %v8681_v12, %v8681_v12  ;;  %v2668_v53 = vsel %vm1099_vm2, %v8685_v38, 0.0 }
 0x594   :  { %v3003_v6 = vmul.f32 %v8685_v38, %v8685_v38  ;;  %v8699_v20 = vadd.f32 %v2564_v44, %v8672_v25  ;;  %v8702_v18 = vadd.f32 %v2668_v53, %v8674_v60  ;;  %v8704_v0 = vadd.f32 %v3252_v58, %v3000_v36 }
 0x595   :  { %v3152_v29 = vsel %vm1099_vm2, %v2951_v10, 0.0  ;;  %v8707_v43 = vpop.f32.mrb[68].mxu0  ;;  %v8710_v5 = vpop.f32.mrb[40].mxu1 }
 0x596   :  { %12212 = vst [vmem:[#allocation74_spill] sm:$0xff] %v8707_v43  ;;  %v3256_v12 = vsel %vm1099_vm2, %v3003_v6, 0.0  ;;  %12213 = vst [vmem:[#allocation75_spill] sm:$0xff] %v8710_v5  ;;  %2634 = vadd.xlane.f32.xlu0 %v8387_v41  ;;  %2638 = vadd.xlane.f32.xlu1 %v8420_v51  ;;  %v8714_v38 = vadd.f32 %v3152_v29, %v2950_v4  ;;  %v2952_v44 = vmul.f32 %v8707_v43, %v8707_v43  ;;  %v8718_v53 = vpop.f32.mrb[69].mxu0  ;;  %v8722_v36 = vpop.f32.mrb[41].mxu1 }
 0x597   :  { %12214 = vst [vmem:[#allocation76_spill] sm:$0xff] %v8718_v53  ;;  %v8720_v58 = vadd.f32 %v3256_v12, %v3002_v33  ;;  %12215 = vst [vmem:[#allocation77_spill] sm:$0xff] %v8722_v36  ;;  %v2568_v6 = vsel %vm1099_vm2, %v8718_v53, 0.0  ;;  %v2953_v10 = vmul.f32 %v8718_v53, %v8718_v53  ;;  %v2672_v51 = vsel %vm1099_vm2, %v8722_v36, 0.0 }
 0x598   :  { %v3004_v41 = vmul.f32 %v8710_v5, %v8710_v5  ;;  %v3005_v4 = vmul.f32 %v8722_v36, %v8722_v36  ;;  %v8735_v12 = vadd.f32 %v2568_v6, %v8707_v43  ;;  %v8738_v33 = vadd.f32 %v2672_v51, %v8710_v5 }
 0x599   :  { %v8740_v29 = vpop.f32.mrb[70].mxu0  ;;  %v8742_v60 = vpop.f32.mrb[42].mxu1  ;;  %v3156_v53 = vsel %vm1099_vm2, %v2953_v10, 0.0 }
 0x59a   :  { %12216 = vst [vmem:[#allocation78_spill] sm:$0xff] %v8740_v29  ;;  %12217 = vst [vmem:[#allocation79_spill] sm:$0xff] %v8742_v60  ;;  %3118 = vadd.xlane.f32.xlu0 %v8406_v61  ;;  %3122 = vadd.xlane.f32.xlu1 %v8432_v15  ;;  %v2954_v25 = vmul.f32 %v8740_v29, %v8740_v29  ;;  %v8749_v36 = vpop.f32.mrb[71].mxu0  ;;  %v3006_v6 = vmul.f32 %v8742_v60, %v8742_v60  ;;  %v8753_v51 = vpop.f32.mrb[43].mxu1  ;;  %v3260_v43 = vsel %vm1099_vm2, %v3005_v4, 0.0 }
 0x59b   :  { %12218 = vst [vmem:[#allocation80_spill] sm:$0xff] %v8749_v36  ;;  %12219 = vst [vmem:[#allocation81_spill] sm:$0xff] %v8753_v51  ;;  %v8755_v5 = vadd.f32 %v3156_v53, %v2952_v44  ;;  %v2572_v10 = vsel %vm1099_vm2, %v8749_v36, 0.0  ;;  %v2955_v15 = vmul.f32 %v8749_v36, %v8749_v36  ;;  %v2676_v61 = vsel %vm1099_vm2, %v8753_v51, 0.0 }
 0x59c   :  { %v3007_v21 = vmul.f32 %v8753_v51, %v8753_v51  ;;  %v8767_v52 = vadd.f32 %v2572_v10, %v8740_v29  ;;  %v8770_v44 = vadd.f32 %v2676_v61, %v8742_v60  ;;  %v8772_v53 = vadd.f32 %v3260_v43, %v3004_v41 }
 0x59d   :  { %v3160_v4 = vsel %vm1099_vm2, %v2955_v15, 0.0  ;;  %v8775_v40 = vpop.f32.mrb[72].mxu0  ;;  %v8778_v31 = vpop.f32.mrb[44].mxu1 }
 0x59e   :  { %12220 = vst [vmem:[#allocation82_spill] sm:$0xff] %v8775_v40  ;;  %v3264_v36 = vsel %vm1099_vm2, %v3007_v21, 0.0  ;;  %12221 = vst [vmem:[#allocation83_spill] sm:$0xff] %v8778_v31  ;;  %3222 = vadd.xlane.f32.xlu0 %v8422_v24  ;;  %3226 = vadd.xlane.f32.xlu1 %v8436_v46  ;;  %v8782_v51 = vadd.f32 %v3160_v4, %v2954_v25  ;;  %v2956_v10 = vmul.f32 %v8775_v40, %v8775_v40  ;;  %v8786_v61 = vpop.f32.mrb[73].mxu0  ;;  %v8790_v41 = vpop.f32.mrb[45].mxu1 }
 0x59f   :  { %12222 = vst [vmem:[#allocation84_spill] sm:$0xff] %v8786_v61  ;;  %v8788_v43 = vadd.f32 %v3264_v36, %v3006_v6  ;;  %12223 = vst [vmem:[#allocation85_spill] sm:$0xff] %v8790_v41  ;;  %v2576_v21 = vsel %vm1099_vm2, %v8786_v61, 0.0  ;;  %v2957_v15 = vmul.f32 %v8786_v61, %v8786_v61  ;;  %v2680_v24 = vsel %vm1099_vm2, %v8790_v41, 0.0 }
 0x5a0   :  { %v3008_v46 = vmul.f32 %v8778_v31, %v8778_v31  ;;  %v3009_v25 = vmul.f32 %v8790_v41, %v8790_v41  ;;  %v8803_v36 = vadd.f32 %v2576_v21, %v8775_v40  ;;  %v8806_v6 = vadd.f32 %v2680_v24, %v8778_v31 }
 0x5a1   :  { %v8808_v4 = vpop.f32.mrb[74].mxu0  ;;  %v8810_v60 = vpop.f32.mrb[46].mxu1  ;;  %v3164_v61 = vsel %vm1099_vm2, %v2957_v15, 0.0 }
 0x5a2   :  { %12224 = vst [vmem:[#allocation86_spill] sm:$0xff] %v8808_v4  ;;  %12225 = vst [vmem:[#allocation87_spill] sm:$0xff] %v8810_v60  ;;  %2538 = vadd.xlane.f32.xlu0 %v8451_v27  ;;  %2542 = vadd.xlane.f32.xlu1 %v8485_v14  ;;  %v2958_v29 = vmul.f32 %v8808_v4, %v8808_v4  ;;  %v8817_v41 = vpop.f32.mrb[75].mxu0  ;;  %v3010_v21 = vmul.f32 %v8810_v60, %v8810_v60  ;;  %v8821_v24 = vpop.f32.mrb[47].mxu1  ;;  %v3268_v40 = vsel %vm1099_vm2, %v3009_v25, 0.0 }
 0x5a3   :  { %12226 = vst [vmem:[#allocation88_spill] sm:$0xff] %v8817_v41  ;;  %12227 = vst [vmem:[#allocation89_spill] sm:$0xff] %v8821_v24  ;;  %v8823_v31 = vadd.f32 %v3164_v61, %v2956_v10  ;;  %v2580_v15 = vsel %vm1099_vm2, %v8817_v41, 0.0  ;;  %v2959_v14 = vmul.f32 %v8817_v41, %v8817_v41  ;;  %v2684_v27 = vsel %vm1099_vm2, %v8821_v24, 0.0 }
 0x5a4   :  { %v3011_v30 = vmul.f32 %v8821_v24, %v8821_v24  ;;  %v8835_v22 = vadd.f32 %v2580_v15, %v8808_v4  ;;  %v8838_v10 = vadd.f32 %v2684_v27, %v8810_v60  ;;  %v8840_v61 = vadd.f32 %v3268_v40, %v3008_v46 }
 0x5a5   :  { %v3168_v25 = vsel %vm1099_vm2, %v2959_v14, 0.0  ;;  %v8843_v32 = vpop.f32.mrb[76].mxu0  ;;  %v8846_v23 = vpop.f32.mrb[48].mxu1 }
 0x5a6   :  { %12228 = vst [vmem:[#allocation90_spill] sm:$0xff] %v8843_v32  ;;  %v3272_v41 = vsel %vm1099_vm2, %v3011_v30, 0.0  ;;  %12229 = vst [vmem:[#allocation91_spill] sm:$0xff] %v8846_v23  ;;  %2642 = vadd.xlane.f32.xlu0 %v8454_v39  ;;  %2646 = vadd.xlane.f32.xlu1 %v8488_v17  ;;  %v8850_v24 = vadd.f32 %v3168_v25, %v2958_v29  ;;  %v2960_v15 = vmul.f32 %v8843_v32, %v8843_v32  ;;  %v8854_v27 = vpop.f32.mrb[77].mxu0  ;;  %v8858_v46 = vpop.f32.mrb[49].mxu1 }
 0x5a7   :  { %12230 = vst [vmem:[#allocation92_spill] sm:$0xff] %v8854_v27  ;;  %v8856_v40 = vadd.f32 %v3272_v41, %v3010_v21  ;;  %12231 = vst [vmem:[#allocation93_spill] sm:$0xff] %v8858_v46  ;;  %v2584_v30 = vsel %vm1099_vm2, %v8854_v27, 0.0  ;;  %v2961_v14 = vmul.f32 %v8854_v27, %v8854_v27  ;;  %v2688_v17 = vsel %vm1099_vm2, %v8858_v46, 0.0 }
 0x5a8   :  { %v3012_v39 = vmul.f32 %v8846_v23, %v8846_v23  ;;  %v3013_v29 = vmul.f32 %v8858_v46, %v8858_v46  ;;  %v8871_v41 = vadd.f32 %v2584_v30, %v8843_v32  ;;  %v8874_v21 = vadd.f32 %v2688_v17, %v8846_v23 }
 0x5a9   :  { %v8876_v25 = vpop.f32.mrb[78].mxu0  ;;  %v8878_v60 = vpop.f32.mrb[50].mxu1  ;;  %v3172_v27 = vsel %vm1099_vm2, %v2961_v14, 0.0 }
 0x5aa   :  { %12232 = vst [vmem:[#allocation94_spill] sm:$0xff] %v8876_v25  ;;  %12233 = vst [vmem:[#allocation95_spill] sm:$0xff] %v8878_v60  ;;  %3126 = vadd.xlane.f32.xlu0 %v8474_v19  ;;  %3130 = vadd.xlane.f32.xlu1 %v8500_v7  ;;  %v2962_v4 = vmul.f32 %v8876_v25, %v8876_v25  ;;  %v8885_v46 = vpop.f32.mrb[79].mxu0  ;;  %v3014_v30 = vmul.f32 %v8878_v60, %v8878_v60  ;;  %v8889_v17 = vpop.f32.mrb[51].mxu1  ;;  %v3276_v32 = vsel %vm1099_vm2, %v3013_v29, 0.0 }
 0x5ab   :  { %12234 = vst [vmem:[#allocation96_spill] sm:$0xff] %v8885_v46  ;;  %12235 = vst [vmem:[#allocation97_spill] sm:$0xff] %v8889_v17  ;;  %v8891_v23 = vadd.f32 %v3172_v27, %v2960_v15  ;;  %v2588_v14 = vsel %vm1099_vm2, %v8885_v46, 0.0  ;;  %v2963_v7 = vmul.f32 %v8885_v46, %v8885_v46  ;;  %v2692_v19 = vsel %vm1099_vm2, %v8889_v17, 0.0 }
 0x5ac   :  { %v3015_v35 = vmul.f32 %v8889_v17, %v8889_v17  ;;  %v8903_v37 = vadd.f32 %v2588_v14, %v8876_v25  ;;  %v8906_v15 = vadd.f32 %v2692_v19, %v8878_v60  ;;  %v8908_v27 = vadd.f32 %v3276_v32, %v3012_v39 }
 0x5ad   :  { %v3176_v29 = vsel %vm1099_vm2, %v2963_v7, 0.0  ;;  %v8911_v2 = vpop.f32.mrb[80].mxu0  ;;  %v8914_v56 = vpop.f32.mrb[52].mxu1 }
 0x5ae   :  { %12236 = vst [vmem:[#allocation98_spill] sm:$0xff] %v8911_v2  ;;  %v3280_v46 = vsel %vm1099_vm2, %v3015_v35, 0.0  ;;  %12237 = vst [vmem:[#allocation99_spill] sm:$0xff] %v8914_v56  ;;  %3230 = vadd.xlane.f32.xlu0 %v8490_v49  ;;  %3234 = vadd.xlane.f32.xlu1 %v8506_v47  ;;  %v8918_v17 = vadd.f32 %v3176_v29, %v2962_v4  ;;  %v2964_v14 = vmul.f32 %v8911_v2, %v8911_v2  ;;  %v8922_v19 = vpop.f32.mrb[81].mxu0  ;;  %v8926_v39 = vpop.f32.mrb[53].mxu1 }
 0x5af   :  { %12238 = vst [vmem:[#allocation100_spill] sm:$0xff] %v8922_v19  ;;  %v8924_v32 = vadd.f32 %v3280_v46, %v3014_v30  ;;  %12240 = vst [vmem:[#allocation102_spill] sm:$0xff] %v8926_v39  ;;  %v2592_v35 = vsel %vm1099_vm2, %v8922_v19, 0.0  ;;  %v2965_v7 = vmul.f32 %v8922_v19, %v8922_v19  ;;  %v2696_v49 = vsel %vm1099_vm2, %v8926_v39, 0.0 }
 0x5b0   :  { %v3016_v47 = vmul.f32 %v8914_v56, %v8914_v56  ;;  %v3017_v4 = vmul.f32 %v8926_v39, %v8926_v39  ;;  %v8939_v46 = vadd.f32 %v2592_v35, %v8911_v2  ;;  %v8942_v30 = vadd.f32 %v2696_v49, %v8914_v56 }
 0x5b1   :  { %12239 = vst [vmem:[#allocation101_spill] sm:$0xff] %v8924_v32  ;;  %v8944_v29 = vpop.f32.mrb[82].mxu0  ;;  %v8946_v60 = vpop.f32.mrb[54].mxu1  ;;  %v3180_v19 = vsel %vm1099_vm2, %v2965_v7, 0.0 }
 0x5b2   :  { %12241 = vst [vmem:[#allocation103_spill] sm:$0xff] %v8939_v46  ;;  %12242 = vst [vmem:[#allocation104_spill] sm:$0xff] %v8942_v30  ;;  %2546 = vadd.xlane.f32.xlu0 %v8521_v9  ;;  %2550 = vadd.xlane.f32.xlu1 %v8556_v42  ;;  %v2966_v25 = vmul.f32 %v8944_v29, %v8944_v29  ;;  %v8953_v39 = vpop.f32.mrb[83].mxu0  ;;  %v3018_v35 = vmul.f32 %v8946_v60, %v8946_v60  ;;  %v8957_v49 = vpop.f32.mrb[55].mxu1  ;;  %v3284_v2 = vsel %vm1099_vm2, %v3017_v4, 0.0 }
 0x5b3   :  { %12243 = vst [vmem:[#allocation105_spill] sm:$0xff] %v8944_v29  ;;  %12244 = vst [vmem:[#allocation106_spill] sm:$0xff] %v8946_v60  ;;  %v8959_v56 = vadd.f32 %v3180_v19, %v2964_v14  ;;  %v2596_v7 = vsel %vm1099_vm2, %v8953_v39, 0.0  ;;  %v2967_v9 = vmul.f32 %v8953_v39, %v8953_v39  ;;  %v2700_v42 = vsel %vm1099_vm2, %v8957_v49, 0.0 }
 0x5b4   :  { %12245 = vst [vmem:[#allocation107_spill] sm:$0xff] %v8953_v39  ;;  %12246 = vst [vmem:[#allocation108_spill] sm:$0xff] %v8957_v49  ;;  %v3019_v30 = vmul.f32 %v8957_v49, %v8957_v49  ;;  %v8971_v46 = vadd.f32 %v2596_v7, %v8944_v29  ;;  %v8974_v14 = vadd.f32 %v2700_v42, %v8946_v60 }
 0x5b5   :  { %12247 = vst [vmem:[#allocation109_spill] sm:$0xff] %v8959_v56  ;;  %v8976_v19 = vadd.f32 %v3284_v2, %v3016_v47  ;;  %v3184_v4 = vsel %vm1099_vm2, %v2967_v9, 0.0  ;;  %v8979_v56 = vpop.f32.mrb[56].mxu1 }
 0x5b6   :  { %12248 = vst [vmem:[#allocation110_spill] sm:$0xff] %v8979_v56  ;;  %v3288_v39 = vsel %vm1099_vm2, %v3019_v30, 0.0  ;;  %2650 = vadd.xlane.f32.xlu0 %v8524_v57  ;;  %2654 = vadd.xlane.f32.xlu1 %v8559_v48  ;;  %v8984_v32 = vadd.f32 %v3184_v4, %v2966_v25  ;;  %v3020_v7 = vmul.f32 %v8979_v56, %v8979_v56  ;;  %v8988_v49 = vpop.f32.mrb[57].mxu1 }
 0x5b7   :  { %12249 = vst [vmem:[#allocation111_spill] sm:$0xff] %v8988_v49  ;;  %v8990_v42 = vadd.f32 %v3288_v39, %v3018_v35  ;;  %v2704_v2 = vsel %vm1099_vm2, %v8988_v49, 0.0  ;;  %v3021_v47 = vmul.f32 %v8988_v49, %v8988_v49 }
 0x5b8   :  { %v8997_v30 = vadd.f32 %v2704_v2, %v8979_v56 }
 0x5b9   :  { %v8999_v57 = vpop.f32.mrb[58].mxu1  ;;  %v3292_v48 = vsel %vm1099_vm2, %v3021_v47, 0.0 }
 0x5ba   :  { %12250 = vst [vmem:[#allocation112_spill] sm:$0xff] %v8999_v57  ;;  %3134 = vadd.xlane.f32.xlu0 %v8541_v62  ;;  %3138 = vadd.xlane.f32.xlu1 %v8573_v1  ;;  %v3022_v25 = vmul.f32 %v8999_v57, %v8999_v57  ;;  %v9006_v39 = vpop.f32.mrb[59].mxu1  ;;  %v9008_v35 = vadd.f32 %v3292_v48, %v3020_v7 }
 0x5bb   :  { %12251 = vst [vmem:[#allocation113_spill] sm:$0xff] %v9006_v39  ;;  %v2708_v9 = vsel %vm1099_vm2, %v9006_v39, 0.0  ;;  %v3023_v4 = vmul.f32 %v9006_v39, %v9006_v39 }
 0x5bc   :  { %v9015_v2 = vadd.f32 %v2708_v9, %v8999_v57 }
 0x5bd   :  { %v9017_v47 = vpop.f32.mrb[60].mxu1  ;;  %v3296_v62 = vsel %vm1099_vm2, %v3023_v4, 0.0 }
 0x5be   :  { %12252 = vst [vmem:[#allocation114_spill] sm:$0xff] %v9017_v47  ;;  %3238 = vadd.xlane.f32.xlu0 %v8561_v26  ;;  %3242 = vadd.xlane.f32.xlu1 %v8579_v8  ;;  %v3024_v1 = vmul.f32 %v9017_v47, %v9017_v47  ;;  %v9024_v7 = vpop.f32.mrb[61].mxu1  ;;  %v9026_v48 = vadd.f32 %v3296_v62, %v3022_v25 }
 0x5bf   :  { %12253 = vst [vmem:[#allocation115_spill] sm:$0xff] %v9024_v7  ;;  %v2712_v49 = vsel %vm1099_vm2, %v9024_v7, 0.0  ;;  %v3025_v9 = vmul.f32 %v9024_v7, %v9024_v7 }
 0x5c0   :  { %v9033_v56 = vadd.f32 %v2712_v49, %v9017_v47 }
 0x5c1   :  { %v9035_v4 = vpop.f32.mrb[62].mxu1  ;;  %v3300_v26 = vsel %vm1099_vm2, %v3025_v9, 0.0  ;;  %v1661_v9 = vld [vmem:[%s11962_s9 + $0x238] sm:$0xff] }
 0x5c2   :  { %12254 = vst [vmem:[#allocation116_spill] sm:$0xff] %v9035_v4  ;;  %2554 = vadd.xlane.f32.xlu0 %v8597_v45  ;;  %2558 = vadd.xlane.f32.xlu1 %v8631_v11  ;;  %v3026_v8 = vmul.f32 %v9035_v4, %v9035_v4  ;;  %v9042_v25 = vpop.f32.mrb[63].mxu1  ;;  %v9044_v62 = vadd.f32 %v3300_v26, %v3024_v1 }
 0x5c3   :  { %12255 = vst [vmem:[#allocation117_spill] sm:$0xff] %v9042_v25  ;;  %v2716_v7 = vsel %vm1099_vm2, %v9042_v25, 0.0  ;;  %v3027_v49 = vmul.f32 %v9042_v25, %v9042_v25  ;;  %5696 = vmatmul.mubr.msk.f32.gmra.mrb[94].mxu1 %vm1674_vm3, %v1661_v9 }
 0x5c4   :  { %v9054_v45 = vadd.f32 %v2716_v7, %v9035_v4  ;;  %2423 = vmatprep.mubr.f32.mxu1 %v12197_v16 }
 0x5c5   :  { %v9057_v11 = vpop.f32.mrb[64].mxu1  ;;  %v3304_v1 = vsel %vm1099_vm2, %v3027_v49, 0.0 }
 0x5c6   :  { %12256 = vst [vmem:[#allocation118_spill] sm:$0xff] %v9057_v11  ;;  %2658 = vadd.xlane.f32.xlu0 %v8600_v54  ;;  %2662 = vadd.xlane.f32.xlu1 %v8634_v13  ;;  %v3028_v26 = vmul.f32 %v9057_v11, %v9057_v11  ;;  %v9065_v47 = vpop.f32.mrb[65].mxu1  ;;  %v9067_v25 = vadd.f32 %v3304_v1, %v3026_v8 }
 0x5c7   :  { %12257 = vst [vmem:[#allocation119_spill] sm:$0xff] %v9065_v47  ;;  %v2720_v7 = vsel %vm1099_vm2, %v9065_v47, 0.0  ;;  %v3029_v9 = vmul.f32 %v9065_v47, %v9065_v47 }
 0x5c8   :  { %v9074_v49 = vadd.f32 %v2720_v7, %v9057_v11 }
 0x5c9   :  { %v9076_v4 = vpop.f32.mrb[66].mxu1  ;;  %v3308_v54 = vsel %vm1099_vm2, %v3029_v9, 0.0 }
 0x5ca   :  { %12258 = vst [vmem:[#allocation120_spill] sm:$0xff] %v9076_v4  ;;  %3142 = vadd.xlane.f32.xlu0 %v8619_v59  ;;  %3146 = vadd.xlane.f32.xlu1 %v8646_v28  ;;  %v3030_v13 = vmul.f32 %v9076_v4, %v9076_v4  ;;  %v9083_v8 = vpop.f32.mrb[67].mxu1  ;;  %v9085_v1 = vadd.f32 %v3308_v54, %v3028_v26 }
 0x5cb   :  { %12259 = vst [vmem:[#allocation121_spill] sm:$0xff] %v9083_v8  ;;  %v2724_v47 = vsel %vm1099_vm2, %v9083_v8, 0.0  ;;  %v3031_v7 = vmul.f32 %v9083_v8, %v9083_v8 }
 0x5cc   :  { %v9092_v11 = vadd.f32 %v2724_v47, %v9076_v4 }
 0x5cd   :  { %v9094_v9 = vpop.f32.mrb[68].mxu1  ;;  %v3312_v59 = vsel %vm1099_vm2, %v3031_v7, 0.0  ;;  %v1662_v7 = vld [vmem:[%s11962_s9 + $0x240] sm:$0xff] }
 0x5ce   :  { %12260 = vst [vmem:[#allocation122_spill] sm:$0xff] %v9094_v9  ;;  %3246 = vadd.xlane.f32.xlu0 %v8636_v55  ;;  %3250 = vadd.xlane.f32.xlu1 %v8652_v3  ;;  %v3032_v28 = vmul.f32 %v9094_v9, %v9094_v9  ;;  %v9101_v26 = vpop.f32.mrb[69].mxu1  ;;  %v9103_v54 = vadd.f32 %v3312_v59, %v3030_v13 }
 0x5cf   :  { %12261 = vst [vmem:[#allocation123_spill] sm:$0xff] %v9101_v26  ;;  %v2728_v8 = vsel %vm1099_vm2, %v9101_v26, 0.0  ;;  %v3033_v47 = vmul.f32 %v9101_v26, %v9101_v26  ;;  %5697 = vmatmul.mubr.msk.f32.gmra.mrb[96].mxu1 %vm1674_vm3, %v1662_v7 }
 0x5d0   :  { %v9113_v55 = vadd.f32 %v2728_v8, %v9094_v9  ;;  %2429 = vmatprep.mubr.f32.mxu1 %v12197_v16 }
 0x5d1   :  { %v9116_v3 = vpop.f32.mrb[70].mxu1  ;;  %v3316_v13 = vsel %vm1099_vm2, %v3033_v47, 0.0 }
 0x5d2   :  { %12262 = vst [vmem:[#allocation124_spill] sm:$0xff] %v9116_v3  ;;  %2562 = vadd.xlane.f32.xlu0 %v8667_v34  ;;  %2566 = vadd.xlane.f32.xlu1 %v8699_v20  ;;  %v3034_v59 = vmul.f32 %v9116_v3, %v9116_v3  ;;  %v9124_v26 = vpop.f32.mrb[71].mxu1  ;;  %v9126_v4 = vadd.f32 %v3316_v13, %v3032_v28 }
 0x5d3   :  { %12263 = vst [vmem:[#allocation125_spill] sm:$0xff] %v9124_v26  ;;  %v2732_v8 = vsel %vm1099_vm2, %v9124_v26, 0.0  ;;  %v3035_v7 = vmul.f32 %v9124_v26, %v9124_v26 }
 0x5d4   :  { %v9133_v47 = vadd.f32 %v2732_v8, %v9116_v3 }
 0x5d5   :  { %v9135_v9 = vpop.f32.mrb[72].mxu1  ;;  %v3320_v20 = vsel %vm1099_vm2, %v3035_v7, 0.0 }
 0x5d6   :  { %12264 = vst [vmem:[#allocation126_spill] sm:$0xff] %v9135_v9  ;;  %2666 = vadd.xlane.f32.xlu0 %v8670_v63  ;;  %2670 = vadd.xlane.f32.xlu1 %v8702_v18  ;;  %v3036_v34 = vmul.f32 %v9135_v9, %v9135_v9  ;;  %v9142_v28 = vpop.f32.mrb[73].mxu1  ;;  %v9144_v13 = vadd.f32 %v3320_v20, %v3034_v59 }
 0x5d7   :  { %12265 = vst [vmem:[#allocation127_spill] sm:$0xff] %v9142_v28  ;;  %v2736_v26 = vsel %vm1099_vm2, %v9142_v28, 0.0  ;;  %v3037_v8 = vmul.f32 %v9142_v28, %v9142_v28 }
 0x5d8   :  { %v9151_v3 = vadd.f32 %v2736_v26, %v9135_v9 }
 0x5d9   :  { %v9153_v7 = vpop.f32.mrb[74].mxu1  ;;  %v3324_v63 = vsel %vm1099_vm2, %v3037_v8, 0.0 }
 0x5da   :  { %12266 = vst [vmem:[#allocation128_spill] sm:$0xff] %v9153_v7  ;;  %3150 = vadd.xlane.f32.xlu0 %v8687_v50  ;;  %3154 = vadd.xlane.f32.xlu1 %v8714_v38  ;;  %v3038_v18 = vmul.f32 %v9153_v7, %v9153_v7  ;;  %v9160_v59 = vpop.f32.mrb[75].mxu1  ;;  %v9162_v20 = vadd.f32 %v3324_v63, %v3036_v34 }
 0x5db   :  { %12267 = vst [vmem:[#allocation129_spill] sm:$0xff] %v9160_v59  ;;  %v2740_v28 = vsel %vm1099_vm2, %v9160_v59, 0.0  ;;  %v3039_v26 = vmul.f32 %v9160_v59, %v9160_v59 }
 0x5dc   :  { %12268 = vst [vmem:[#allocation130_spill] sm:$0xff] %v9162_v20  ;;  %v9169_v9 = vadd.f32 %v2740_v28, %v9153_v7 }
 0x5dd   :  { %v9171_v8 = vpop.f32.mrb[76].mxu1  ;;  %v3328_v50 = vsel %vm1099_vm2, %v3039_v26, 0.0 }
 0x5de   :  { %12269 = vst [vmem:[#allocation131_spill] sm:$0xff] %v9171_v8  ;;  %3254 = vadd.xlane.f32.xlu0 %v8704_v0  ;;  %3258 = vadd.xlane.f32.xlu1 %v8720_v58  ;;  %v9176_v38 = vpop.f32.mrb[77].mxu1  ;;  %v9178_v34 = vadd.f32 %v3328_v50, %v3038_v18  ;;  %v3040_v59 = vmul.f32 %v9171_v8, %v9171_v8 }
 0x5df   :  { %12270 = vst [vmem:[#allocation132_spill] sm:$0xff] %v9176_v38  ;;  %v2603_v63 = vpop.xlane.xlu0 %2602  ;;  %v2499_v39 = vpop.xlane.xlu1 %2498  ;;  %v2744_v28 = vsel %vm1099_vm2, %v9176_v38, 0.0  ;;  %v3041_v7 = vmul.f32 %v9176_v38, %v9176_v38 }
 0x5e0   :  { %12271 = vst [vmem:[#allocation133_spill] sm:$0xff] %v9178_v34  ;;  %v9186_v26 = vmul.f32 0.0051020407, %v2499_v39  ;;  %v9189_v0 = vadd.f32 %v2744_v28, %v9171_v8 }
 0x5e1   :  { %v9191_v58 = vpop.f32.mrb[78].mxu1  ;;  %v3332_v18 = vsel %vm1099_vm2, %v3041_v7, 0.0  ;;  %v9206_v7 = vmul.f32 0.0051020407, %v2603_v63 }
 0x5e2   :  { %12272 = vst [vmem:[#allocation134_spill] sm:$0xff] %v9189_v0  ;;  %12273 = vst [vmem:[#allocation135_spill] sm:$0xff] %v9191_v58  ;;  %2570 = vadd.xlane.f32.xlu0 %v8735_v12  ;;  %2574 = vadd.xlane.f32.xlu1 %v8767_v52  ;;  %v9196_v50 = vpop.f32.mrb[79].mxu1  ;;  %v3042_v38 = vmul.f32 %v9191_v58, %v9191_v58  ;;  %v9204_v8 = vadd.f32 %v3332_v18, %v3040_v59 }
 0x5e3   :  { %12274 = vst [vmem:[#allocation136_spill] sm:$0xff] %v9196_v50  ;;  %v3087_v57 = vpop.xlane.xlu0 %3086  ;;  %v2607_v60 = vpop.xlane.xlu1 %2606  ;;  %v2748_v39 = vsel %vm1099_vm2, %v9196_v50, 0.0  ;;  %v3043_v28 = vmul.f32 %v9196_v50, %v9196_v50  ;;  %v3504_v52 = vmul.f32 %v9186_v26, %v9186_v26 }
 0x5e4   :  { %12275 = vst [vmem:[#allocation137_spill] sm:$0xff] %v9204_v8  ;;  %v3420_v12 = vmul.f32 0.0051020407, %v3087_v57  ;;  %v9211_v29 = vadd.f32 %v2748_v39, %v9191_v58  ;;  %v9222_v18 = vmul.f32 0.0051020407, %v2607_v60 }
 0x5e5   :  { %v9213_v0 = vpop.f32.mrb[80].mxu1  ;;  %v3336_v34 = vsel %vm1099_vm2, %v3043_v28, 0.0 }
 0x5e6   :  { %12276 = vst [vmem:[#allocation138_spill] sm:$0xff] %v9211_v29  ;;  %12277 = vst [vmem:[#allocation139_spill] sm:$0xff] %v9213_v0  ;;  %v3588_v20 = vsub.f32 %v3420_v12, %v3504_v52  ;;  %2674 = vadd.xlane.f32.xlu0 %v8738_v33  ;;  %2678 = vadd.xlane.f32.xlu1 %v8770_v44  ;;  %v3044_v59 = vmul.f32 %v9213_v0, %v9213_v0  ;;  %v9220_v63 = vpop.f32.mrb[81].mxu1 }
 0x5e7   :  { %12278 = vst [vmem:[#allocation140_spill] sm:$0xff] %v9220_v63  ;;  %v3191_v57 = vpop.xlane.xlu0 %3190  ;;  %v3091_v50 = vpop.xlane.xlu1 %3090  ;;  %v2752_v39 = vsel %vm1099_vm2, %v9220_v63, 0.0  ;;  %v3045_v28 = vmul.f32 %v9220_v63, %v9220_v63  ;;  %v9228_v52 = vadd.f32 %v3336_v34, %v3042_v38  ;;  %v3530_v33 = vmul.f32 %v9206_v7, %v9206_v7 }
 0x5e8   :  { %v3672_v44 = vadd.f32 0.001, %v3588_v20  ;;  %v3446_v12 = vmul.f32 0.0051020407, %v3191_v57  ;;  %v9233_v58 = vadd.f32 %v2752_v39, %v9213_v0  ;;  %v3531_v20 = vmul.f32 %v9222_v18, %v9222_v18 }
 0x5e9   :  { %v9235_v60 = vpop.f32.mrb[82].mxu1  ;;  %v3340_v8 = vsel %vm1099_vm2, %v3045_v28, 0.0  ;;  %v3421_v0 = vmul.f32 0.0051020407, %v3091_v50 }
 0x5ea   :  { %12279 = vst [vmem:[#allocation141_spill] sm:$0xff] %v9233_v58  ;;  %12280 = vst [vmem:[#allocation142_spill] sm:$0xff] %v9235_v60  ;;  %6097 = vrsqrt.f32 %v3672_v44  ;;  %v3614_v29 = vsub.f32 %v3446_v12, %v3530_v33  ;;  %3158 = vadd.xlane.f32.xlu0 %v8755_v5  ;;  %3162 = vadd.xlane.f32.xlu1 %v8782_v51  ;;  %v9240_v38 = vpop.f32.mrb[83].mxu1  ;;  %v9242_v34 = vadd.f32 %v3340_v8, %v3044_v59 }
 0x5eb   :  { %12281 = vst [vmem:[#allocation143_spill] sm:$0xff] %v9240_v38  ;;  %v3195_v57 = vpop.xlane.xlu1 %3194  ;;  %v2503_v39 = vpop.xlane.xlu0 %2502  ;;  %v3046_v63 = vmul.f32 %v9235_v60, %v9235_v60  ;;  %v2756_v28 = vsel %vm1099_vm2, %v9240_v38, 0.0  ;;  %v3047_v5 = vmul.f32 %v9240_v38, %v9240_v38 }
 0x5ec   :  { %12282 = vst [vmem:[#allocation144_spill] sm:$0xff] %v9242_v34  ;;  %v3698_v33 = vadd.f32 0.001, %v3614_v29  ;;  %v3447_v51 = vmul.f32 0.0051020407, %v3195_v57  ;;  %v9255_v8 = vadd.f32 %v2756_v28, %v9235_v60  ;;  %v3840_v60 = vld [vmem:[%s11963_s10] sm:$0xff] }
 0x5ed   :  { %v9252_v44 = vmul.f32 0.0051020407, %v2503_v39  ;;  %v9257_v59 = vpop.f32.mrb[84].mxu1  ;;  %v3344_v12 = vsel %vm1099_vm2, %v3047_v5, 0.0 }
 0x5ee   :  { %12283 = vst [vmem:[#allocation145_spill] sm:$0xff] %v9257_v59  ;;  %6099 = vrsqrt.f32 %v3698_v33  ;;  %v3615_v34 = vsub.f32 %v3447_v51, %v3531_v20  ;;  %3262 = vadd.xlane.f32.xlu0 %v8772_v53  ;;  %3266 = vadd.xlane.f32.xlu1 %v8788_v43  ;;  %v9264_v29 = vpop.f32.mrb[85].mxu1  ;;  %v3048_v28 = vmul.f32 %v9257_v59, %v9257_v59 }
 0x5ef   :  { %v3505_v58 = vmul.f32 %v9252_v44, %v9252_v44  ;;  %12284 = vst [vmem:[#allocation146_spill] sm:$0xff] %v9264_v29  ;;  %v2507_v57 = vpop.xlane.xlu0 %2506  ;;  %v2511_v39 = vpop.xlane.xlu1 %2510  ;;  %v2760_v5 = vsel %vm1099_vm2, %v9264_v29, 0.0  ;;  %v3049_v50 = vmul.f32 %v9264_v29, %v9264_v29  ;;  %v9272_v20 = vadd.f32 %v3344_v12, %v3046_v63 }
 0x5f0   :  { %v3699_v33 = vadd.f32 0.001, %v3615_v34  ;;  %v9275_v53 = vadd.f32 %v2760_v5, %v9257_v59  ;;  %v9283_v29 = vmul.f32 0.0051020407, %v2507_v57  ;;  %v9287_v12 = vmul.f32 0.0051020407, %v2511_v39 }
 0x5f1   :  { %v3589_v51 = vsub.f32 %v3421_v0, %v3505_v58  ;;  %v3348_v43 = vsel %vm1099_vm2, %v3049_v50, 0.0 }
 0x5f2   :  { %6101 = vrsqrt.f32 %v3699_v33  ;;  %2578 = vadd.xlane.f32.xlu0 %v8803_v36  ;;  %2582 = vadd.xlane.f32.xlu1 %v8835_v22  ;;  %v9285_v0 = vadd.f32 %v3348_v43, %v3048_v28  ;;  %v3866_v22 = vld [vmem:[%s11963_s10 + $0xd0] sm:$0xff]  ;;  %v3506_v36 = vmul.f32 %v9283_v29, %v9283_v29 }
 0x5f3   :  { %v3673_v38 = vadd.f32 0.001, %v3589_v51  ;;  %v2611_v63 = vpop.xlane.xlu0 %2610  ;;  %v2615_v34 = vpop.xlane.xlu1 %2614 }
 0x5f4   :  { %v6098_v58 = vpop.eup %6097  ;;  %v9306_v33 = vmul.f32 0.0051020407, %v2615_v34 }
 0x5f5   :  { %6103 = vrsqrt.f32 %v3673_v38  ;;  %v9289_v5 = vmul.f32 %v6098_v58, %v3840_v60  ;;  %v3507_v60 = vmul.f32 %v9287_v12, %v9287_v12 }
 0x5f6   :  { %2682 = vadd.xlane.f32.xlu0 %v8806_v6  ;;  %2686 = vadd.xlane.f32.xlu1 %v8838_v10  ;;  %v9304_v6 = vmul.f32 0.0051020407, %v2611_v63  ;;  %v3841_v63 = vld [vmem:[%s11963_s10 + $0x8] sm:$0xff] }
 0x5f7   :  { %v3095_v57 = vpop.xlane.xlu0 %3094  ;;  %v3099_v28 = vpop.xlane.xlu1 %3098  ;;  %v9300_v38 = vmul.f32 %v9289_v5, %v9186_v26  ;;  %v3867_v26 = vld [vmem:[%s11963_s10 + $0xd8] sm:$0xff] }
 0x5f8   :  { %v6100_v39 = vpop.eup %6099  ;;  %v3422_v10 = vmul.f32 0.0051020407, %v3095_v57  ;;  %v3423_v50 = vmul.f32 0.0051020407, %v3099_v28 }
 0x5f9   :  { %12285 = vst [vmem:[#allocation147_spill] sm:$0xff] %v9300_v38  ;;  %v9308_v51 = vmul.f32 %v6100_v39, %v3866_v22 }
 0x5fa   :  { %v3590_v43 = vsub.f32 %v3422_v10, %v3506_v36  ;;  %v3591_v58 = vsub.f32 %v3423_v50, %v3507_v60  ;;  %3166 = vadd.xlane.f32.xlu0 %v8823_v31  ;;  %3170 = vadd.xlane.f32.xlu1 %v8850_v24  ;;  %v3532_v31 = vmul.f32 %v9304_v6, %v9304_v6 }
 0x5fb   :  { %v3199_v57 = vpop.xlane.xlu0 %3198  ;;  %v3203_v28 = vpop.xlane.xlu1 %3202  ;;  %v9320_v34 = vmul.f32 %v9308_v51, %v9206_v7  ;;  %v3533_v60 = vmul.f32 %v9306_v33, %v9306_v33 }
 0x5fc   :  { %v6102_v22 = vpop.eup %6101  ;;  %v3674_v36 = vadd.f32 0.001, %v3590_v43  ;;  %v3675_v24 = vadd.f32 0.001, %v3591_v58  ;;  %v3448_v39 = vmul.f32 0.0051020407, %v3199_v57 }
 0x5fd   :  { %12286 = vst [vmem:[#allocation148_spill] sm:$0xff] %v9320_v34  ;;  %v3449_v10 = vmul.f32 0.0051020407, %v3203_v28  ;;  %v9326_v50 = vmul.f32 %v6102_v22, %v3867_v26 }
 0x5fe   :  { %6105 = vrsqrt.f32 %v3674_v36  ;;  %v3616_v38 = vsub.f32 %v3448_v39, %v3532_v31  ;;  %3270 = vadd.xlane.f32.xlu0 %v8840_v61  ;;  %3274 = vadd.xlane.f32.xlu1 %v8856_v40 }
 0x5ff   :  { %v6104_v59 = vpop.eup %6103  ;;  %6107 = vrsqrt.f32 %v3675_v24  ;;  %v3617_v34 = vsub.f32 %v3449_v10, %v3533_v60  ;;  %v2515_v43 = vpop.xlane.xlu0 %2514  ;;  %v9334_v57 = vmul.f32 %v9326_v50, %v9222_v18 }
 0x600   :  { %v9330_v7 = vmul.f32 %v6104_v59, %v3841_v63  ;;  %v2519_v58 = vpop.xlane.xlu1 %2518  ;;  %v3700_v28 = vadd.f32 0.001, %v3616_v38  ;;  %v9342_v59 = vmul.f32 0.0051020407, %v2515_v43  ;;  %v9348_v18 = vpop.f32.mrb[86].mxu1 }
 0x601   :  { %12287 = vst [vmem:[#allocation149_spill] sm:$0xff] %v9334_v57  ;;  %v3701_v22 = vadd.f32 0.001, %v3617_v34  ;;  %v9344_v63 = vmul.f32 0.0051020407, %v2519_v58  ;;  %12289 = vst [vmem:[#allocation151_spill] sm:$0xff] %v9348_v18 }
 0x602   :  { %v9338_v26 = vmul.f32 %v9330_v7, %v9252_v44  ;;  %6109 = vrsqrt.f32 %v3700_v28  ;;  %2586 = vadd.xlane.f32.xlu0 %v8871_v41  ;;  %2590 = vadd.xlane.f32.xlu1 %v8903_v37  ;;  %v1663_v44 = vld [vmem:[%s11962_s9 + $0x248] sm:$0xff]  ;;  %v3842_v37 = vld [vmem:[%s11963_s10 + $0x10] sm:$0xff]  ;;  %v3508_v31 = vmul.f32 %v9342_v59, %v9342_v59  ;;  %v9366_v60 = vpop.f32.mrb[87].mxu1 }
 0x603   :  { %6111 = vrsqrt.f32 %v3701_v22  ;;  %v2619_v61 = vpop.xlane.xlu0 %2618  ;;  %5698 = vmatmul.mubr.msk.f32.gmra.mrb[98].mxu1 %vm1674_vm3, %v1663_v44  ;;  %v3509_v36 = vmul.f32 %v9344_v63, %v9344_v63  ;;  %12290 = vst [vmem:[#allocation152_spill] sm:$0xff] %v9366_v60 }
 0x604   :  { %12288 = vst [vmem:[#allocation150_spill] sm:$0xff] %v9338_v26  ;;  %v2623_v40 = vpop.xlane.xlu1 %2622  ;;  %v9356_v41 = vmul.f32 0.0051020407, %v2619_v61  ;;  %2435 = vmatprep.mubr.f32.mxu1 %v12197_v16  ;;  %v3868_v61 = vld [vmem:[%s11963_s10 + $0xe0] sm:$0xff] }
 0x605   :  { %v9369_v43 = vmul.f32 0.0051020407, %v2623_v40 }
 0x606   :  { %2690 = vadd.xlane.f32.xlu0 %v8874_v21  ;;  %2694 = vadd.xlane.f32.xlu1 %v8906_v15  ;;  %v3843_v21 = vld [vmem:[%s11963_s10 + $0x18] sm:$0xff] }
 0x607   :  { %v3103_v38 = vpop.xlane.xlu0 %3102 }
 0x608   :  { %v3107_v34 = vpop.xlane.xlu1 %3106  ;;  %v6106_v15 = vpop.eup %6105  ;;  %v3424_v24 = vmul.f32 0.0051020407, %v3103_v38  ;;  %v3534_v38 = vmul.f32 %v9356_v41, %v9356_v41 }
 0x609   :  { %v3425_v39 = vmul.f32 0.0051020407, %v3107_v34  ;;  %v6108_v10 = vpop.eup %6107  ;;  %v9371_v58 = vmul.f32 %v6106_v15, %v3842_v37  ;;  %v3869_v37 = vld [vmem:[%s11963_s10 + $0xe8] sm:$0xff] }
 0x60a   :  { %v3592_v28 = vsub.f32 %v3424_v24, %v3508_v31  ;;  %3174 = vadd.xlane.f32.xlu0 %v8891_v23  ;;  %3178 = vadd.xlane.f32.xlu1 %v8918_v17  ;;  %v9378_v44 = vmul.f32 %v6108_v10, %v3843_v21 }
 0x60b   :  { %v3593_v22 = vsub.f32 %v3425_v39, %v3509_v36  ;;  %v3207_v34 = vpop.xlane.xlu0 %3206  ;;  %v9387_v23 = vmul.f32 %v9371_v58, %v9283_v29  ;;  %v3535_v39 = vmul.f32 %v9369_v43, %v9369_v43  ;;  %v12295_v29 = vld [vmem:[#allocation101_spill] sm:$0xff] }
 0x60c   :  { %12291 = vst [vmem:[#allocation153_spill] sm:$0xff] %v9378_v44  ;;  %v3211_v40 = vpop.xlane.xlu1 %3210  ;;  %v6110_v17 = vpop.eup %6109  ;;  %v3676_v15 = vadd.f32 0.001, %v3592_v28  ;;  %v3450_v36 = vmul.f32 0.0051020407, %v3207_v34  ;;  %v9391_v21 = vmul.f32 %v9378_v44, %v9287_v12 }
 0x60d   :  { %12292 = vst [vmem:[#allocation154_spill] sm:$0xff] %v9387_v23  ;;  %v3677_v31 = vadd.f32 0.001, %v3593_v22  ;;  %v6112_v24 = vpop.eup %6111  ;;  %v3451_v10 = vmul.f32 0.0051020407, %v3211_v40  ;;  %v9395_v57 = vmul.f32 %v6110_v17, %v3868_v61 }
 0x60e   :  { %12293 = vst [vmem:[#allocation155_spill] sm:$0xff] %v9391_v21  ;;  %6113 = vrsqrt.f32 %v3676_v15  ;;  %v3618_v26 = vsub.f32 %v3450_v36, %v3534_v38  ;;  %3278 = vadd.xlane.f32.xlu0 %v8908_v27  ;;  %3282 = vadd.xlane.f32.xlu1 %v12295_v29  ;;  %v9399_v28 = vmul.f32 %v6112_v24, %v3869_v37  ;;  %v2764_v27 = vsel %vm1099_vm2, %v9366_v60, 0.0  ;;  %v12299_v15 = vld [vmem:[#allocation103_spill] sm:$0xff]  ;;  %v1664_v36 = vld [vmem:[%s11962_s9 + $0x250] sm:$0xff] }
 0x60f   :  { %12294 = vst [vmem:[#allocation156_spill] sm:$0xff] %v9395_v57  ;;  %6115 = vrsqrt.f32 %v3677_v31  ;;  %v3619_v22 = vsub.f32 %v3451_v10, %v3535_v39  ;;  %v2523_v34 = vpop.xlane.xlu0 %2522  ;;  %v3051_v21 = vmul.f32 %v9366_v60, %v9366_v60  ;;  %v9405_v40 = vmul.f32 %v9395_v57, %v9304_v6  ;;  %5699 = vmatmul.mubr.msk.f32.gmra.mrb[100].mxu1 %vm1674_vm3, %v1664_v36 }
 0x610   :  { %12296 = vst [vmem:[#allocation101_spill] sm:$0xff] %v9399_v28  ;;  %v2527_v12 = vpop.xlane.xlu1 %2526  ;;  %v3702_v61 = vadd.f32 0.001, %v3618_v26  ;;  %v3050_v38 = vmul.f32 %v9348_v18, %v9348_v18  ;;  %v9413_v37 = vmul.f32 %v9399_v28, %v9306_v33  ;;  %v9418_v26 = vadd.f32 %v2764_v27, %v9348_v18  ;;  %2441 = vmatprep.mubr.f32.mxu1 %v12197_v16 }
 0x611   :  { %12297 = vst [vmem:[#allocation157_spill] sm:$0xff] %v9405_v40  ;;  %v3703_v17 = vadd.f32 0.001, %v3619_v22  ;;  %v3352_v24 = vsel %vm1099_vm2, %v3051_v21, 0.0  ;;  %v9424_v33 = vmul.f32 0.0051020407, %v2523_v34 }
 0x612   :  { %12298 = vst [vmem:[#allocation158_spill] sm:$0xff] %v9413_v37  ;;  %6117 = vrsqrt.f32 %v3702_v61  ;;  %2594 = vadd.xlane.f32.xlu0 %v12299_v15  ;;  %2598 = vadd.xlane.f32.xlu1 %v8971_v46  ;;  %v9426_v39 = vmul.f32 0.0051020407, %v2527_v12  ;;  %v9429_v10 = vadd.f32 %v3352_v24, %v3050_v38  ;;  %v9431_v46 = vpop.f32.mrb[88].mxu1  ;;  %v12302_v22 = vld [vmem:[#allocation104_spill] sm:$0xff]  ;;  %v3844_v21 = vld [vmem:[%s11963_s10 + $0x20] sm:$0xff] }
 0x613   :  { %6119 = vrsqrt.f32 %v3703_v17  ;;  %v2627_v6 = vpop.xlane.xlu0 %2626  ;;  %12300 = vst [vmem:[#allocation103_spill] sm:$0xff] %v9431_v46  ;;  %v9433_v29 = vpop.f32.mrb[89].mxu1  ;;  %v3845_v38 = vld [vmem:[%s11963_s10 + $0x28] sm:$0xff]  ;;  %v3510_v17 = vmul.f32 %v9424_v33, %v9424_v33  ;;  %v12303_v37 = vld [vmem:[#allocation109_spill] sm:$0xff]  ;;  %v3870_v40 = vld [vmem:[%s11963_s10 + $0xf0] sm:$0xff] }
 0x614   :  { %v2631_v31 = vpop.xlane.xlu1 %2630  ;;  %12301 = vst [vmem:[#allocation159_spill] sm:$0xff] %v9433_v29  ;;  %v9441_v34 = vmul.f32 0.0051020407, %v2627_v6  ;;  %v3511_v15 = vmul.f32 %v9426_v39, %v9426_v39 }
 0x616   :  { %2698 = vadd.xlane.f32.xlu0 %v12302_v22  ;;  %2702 = vadd.xlane.f32.xlu1 %v8974_v14  ;;  %v9450_v22 = vmul.f32 0.0051020407, %v2631_v31 }
 0x617   :  { %v3111_v12 = vpop.xlane.xlu0 %3110 }
 0x618   :  { %v3115_v61 = vpop.xlane.xlu1 %3114  ;;  %v6114_v27 = vpop.eup %6113  ;;  %v3426_v14 = vmul.f32 0.0051020407, %v3111_v12  ;;  %v3536_v12 = vmul.f32 %v9441_v34, %v9441_v34 }
 0x619   :  { %v3427_v36 = vmul.f32 0.0051020407, %v3115_v61  ;;  %v6116_v24 = vpop.eup %6115  ;;  %v9452_v6 = vmul.f32 %v6114_v27, %v3844_v21  ;;  %v2768_v21 = vsel %vm1099_vm2, %v9433_v29, 0.0 }
 0x61a   :  { %v3594_v60 = vsub.f32 %v3426_v14, %v3510_v17  ;;  %3182 = vadd.xlane.f32.xlu0 %v12303_v37  ;;  %3186 = vadd.xlane.f32.xlu1 %v8984_v32  ;;  %v9459_v23 = vmul.f32 %v6116_v24, %v3845_v38  ;;  %v3871_v37 = vld [vmem:[%s11963_s10 + $0xf8] sm:$0xff]  ;;  %v3537_v24 = vmul.f32 %v9450_v22, %v9450_v22 }
 0x61b   :  { %v3595_v18 = vsub.f32 %v3427_v36, %v3511_v15  ;;  %v3215_v61 = vpop.xlane.xlu0 %3214  ;;  %v9470_v32 = vmul.f32 %v9452_v6, %v9342_v59  ;;  %v3053_v59 = vmul.f32 %v9433_v29, %v9433_v29 }
 0x61c   :  { %v3219_v31 = vpop.xlane.xlu1 %3218  ;;  %v6118_v27 = vpop.eup %6117  ;;  %v3678_v17 = vadd.f32 0.001, %v3594_v60  ;;  %v3452_v15 = vmul.f32 0.0051020407, %v3215_v61  ;;  %v9474_v14 = vmul.f32 %v9459_v23, %v9344_v63 }
 0x61d   :  { %v3679_v38 = vadd.f32 0.001, %v3595_v18  ;;  %v6120_v36 = vpop.eup %6119  ;;  %v3453_v28 = vmul.f32 0.0051020407, %v3219_v31  ;;  %v9478_v44 = vmul.f32 %v6118_v27, %v3870_v40 }
 0x61e   :  { %12304 = vst [vmem:[#allocation104_spill] sm:$0xff] %v9474_v14  ;;  %6121 = vrsqrt.f32 %v3678_v17  ;;  %v3620_v57 = vsub.f32 %v3452_v15, %v3536_v12  ;;  %3286 = vadd.xlane.f32.xlu0 %v8976_v19  ;;  %3290 = vadd.xlane.f32.xlu1 %v8990_v42  ;;  %v9484_v18 = vmul.f32 %v6120_v36, %v3871_v37 }
 0x61f   :  { %6123 = vrsqrt.f32 %v3679_v38  ;;  %v3621_v63 = vsub.f32 %v3453_v28, %v3537_v24  ;;  %v2531_v60 = vpop.xlane.xlu0 %2530  ;;  %v9487_v14 = vadd.f32 %v2768_v21, %v9431_v46  ;;  %v9491_v40 = vmul.f32 %v9478_v44, %v9356_v41  ;;  %v3847_v38 = vld [vmem:[%s11963_s10 + $0x38] sm:$0xff] }
 0x620   :  { %v2535_v61 = vpop.xlane.xlu1 %2534  ;;  %v3704_v12 = vadd.f32 0.001, %v3620_v57  ;;  %v3052_v19 = vmul.f32 %v9431_v46, %v9431_v46  ;;  %v9497_v42 = vmul.f32 %v9484_v18, %v9369_v43  ;;  %v3356_v41 = vsel %vm1099_vm2, %v3053_v59, 0.0 }
 0x621   :  { %v3705_v31 = vadd.f32 0.001, %v3621_v63  ;;  %v9504_v57 = vmul.f32 0.0051020407, %v2531_v60  ;;  %v9506_v37 = vmul.f32 0.0051020407, %v2535_v61 }
 0x622   :  { %6125 = vrsqrt.f32 %v3704_v12  ;;  %2706 = vadd.xlane.f32.xlu0 %v8997_v30  ;;  %2710 = vadd.xlane.f32.xlu1 %v9015_v2  ;;  %v9508_v27 = vadd.f32 %v3356_v41, %v3052_v19  ;;  %v3846_v30 = vld [vmem:[%s11963_s10 + $0x30] sm:$0xff]  ;;  %v3872_v12 = vld [vmem:[%s11963_s10 + $0x100] sm:$0xff] }
 0x623   :  { %6127 = vrsqrt.f32 %v3705_v31  ;;  %v2635_v28 = vpop.xlane.xlu0 %2634  ;;  %v3512_v36 = vmul.f32 %v9504_v57, %v9504_v57 }
 0x624   :  { %v9501_v21 = vpop.xlane.xlu1 %2638  ;;  %v9515_v2 = vmul.f32 0.0051020407, %v2635_v28 }
 0x626   :  { %3294 = vadd.xlane.f32.xlu0 %v9008_v35  ;;  %3298 = vadd.xlane.f32.xlu1 %v9026_v48  ;;  %v3513_v35 = vmul.f32 %v9506_v37, %v9506_v37  ;;  %v3538_v31 = vmul.f32 %v9515_v2, %v9515_v2 }
 0x627   :  { %v3119_v43 = vpop.xlane.xlu0 %3118 }
 0x628   :  { %v3123_v17 = vpop.xlane.xlu1 %3122  ;;  %v6122_v15 = vpop.eup %6121  ;;  %v3428_v48 = vmul.f32 0.0051020407, %v3119_v43 }
 0x629   :  { %v3429_v24 = vmul.f32 0.0051020407, %v3123_v17  ;;  %v6124_v59 = vpop.eup %6123  ;;  %v9524_v63 = vmul.f32 %v6122_v15, %v3846_v30  ;;  %v3873_v30 = vld [vmem:[%s11963_s10 + $0x108] sm:$0xff] }
 0x62a   :  { %v3596_v60 = vsub.f32 %v3428_v48, %v3512_v36  ;;  %2714 = vadd.xlane.f32.xlu0 %v9033_v56  ;;  %2718 = vadd.xlane.f32.xlu1 %v9054_v45  ;;  %v9531_v19 = vmul.f32 %v6124_v59, %v3847_v38 }
 0x62b   :  { %v3597_v61 = vsub.f32 %v3429_v24, %v3513_v35  ;;  %v3223_v28 = vpop.xlane.xlu0 %3222  ;;  %v9542_v56 = vmul.f32 %v9524_v63, %v9424_v33 }
 0x62c   :  { %v9535_v41 = vpop.xlane.xlu1 %3226  ;;  %v6126_v45 = vpop.eup %6125  ;;  %v3680_v43 = vadd.f32 0.001, %v3596_v60  ;;  %v3454_v15 = vmul.f32 0.0051020407, %v3223_v28  ;;  %v9546_v38 = vmul.f32 %v9531_v19, %v9426_v39 }
 0x62d   :  { %v3681_v17 = vadd.f32 0.001, %v3597_v61  ;;  %v6128_v36 = vpop.eup %6127  ;;  %v9548_v35 = vmul.f32 %v6126_v45, %v3872_v12 }
 0x62e   :  { %6129 = vrsqrt.f32 %v3680_v43  ;;  %v3622_v48 = vsub.f32 %v3454_v15, %v3538_v31  ;;  %3302 = vadd.xlane.f32.xlu0 %v9044_v62  ;;  %3306 = vadd.xlane.f32.xlu1 %v9067_v25  ;;  %v9552_v24 = vmul.f32 %v6128_v36, %v3873_v30 }
 0x62f   :  { %6131 = vrsqrt.f32 %v3681_v17  ;;  %v9554_v33 = vpop.xlane.xlu0 %2538  ;;  %v9560_v39 = vmul.f32 %v9548_v35, %v9441_v34  ;;  %v3848_v34 = vld [vmem:[%s11963_s10 + $0x40] sm:$0xff] }
 0x630   :  { %v9556_v59 = vpop.xlane.xlu1 %2542  ;;  %v3706_v60 = vadd.f32 0.001, %v3622_v48  ;;  %v9564_v61 = vmul.f32 %v9552_v24, %v9450_v22 }
 0x632   :  { %6133 = vrsqrt.f32 %v3706_v60  ;;  %2722 = vadd.xlane.f32.xlu0 %v9074_v49  ;;  %2726 = vadd.xlane.f32.xlu1 %v9092_v11  ;;  %v3849_v11 = vld [vmem:[%s11963_s10 + $0x48] sm:$0xff]  ;;  %v12305_v60 = vld [vmem:[#allocation130_spill] sm:$0xff] }
 0x633   :  { %v9568_v25 = vpop.xlane.xlu0 %2642 }
 0x634   :  { %v9570_v62 = vpop.xlane.xlu1 %2646 }
 0x636   :  { %3310 = vadd.xlane.f32.xlu0 %v9085_v1  ;;  %3314 = vadd.xlane.f32.xlu1 %v9103_v54  ;;  %v3874_v1 = vld [vmem:[%s11963_s10 + $0x110] sm:$0xff] }
 0x637   :  { %v9577_v12 = vpop.xlane.xlu0 %3126 }
 0x638   :  { %v9579_v22 = vpop.xlane.xlu1 %3130  ;;  %v6130_v49 = vpop.eup %6129 }
 0x639   :  { %v6132_v31 = vpop.eup %6131  ;;  %v9584_v28 = vmul.f32 %v6130_v49, %v3848_v34 }
 0x63a   :  { %2730 = vadd.xlane.f32.xlu0 %v9113_v55  ;;  %2734 = vadd.xlane.f32.xlu1 %v9133_v47  ;;  %v9591_v54 = vmul.f32 %v6132_v31, %v3849_v11  ;;  %v12307_v11 = vld [vmem:[#allocation134_spill] sm:$0xff]  ;;  %v12309_v31 = vld [vmem:[#allocation137_spill] sm:$0xff] }
 0x63b   :  { %v9593_v30 = vpop.xlane.xlu0 %3230  ;;  %v9599_v43 = vmul.f32 %v9584_v28, %v9504_v57 }
 0x63c   :  { %v9595_v45 = vpop.xlane.xlu1 %3234  ;;  %v6134_v17 = vpop.eup %6133  ;;  %v9603_v55 = vmul.f32 %v9591_v54, %v9506_v37 }
 0x63d   :  { %v9605_v47 = vmul.f32 %v6134_v17, %v3874_v1 }
 0x63e   :  { %3318 = vadd.xlane.f32.xlu0 %v9126_v4  ;;  %3322 = vadd.xlane.f32.xlu1 %v9144_v13  ;;  %v12306_v4 = vld [vmem:[#allocation133_spill] sm:$0xff] }
 0x63f   :  { %v9609_v15 = vpop.xlane.xlu0 %2546  ;;  %v9615_v48 = vmul.f32 %v9605_v47, %v9515_v2  ;;  %v12308_v2 = vld [vmem:[#allocation138_spill] sm:$0xff] }
 0x640   :  { %v9611_v36 = vpop.xlane.xlu1 %2550 }
 0x642   :  { %2738 = vadd.xlane.f32.xlu0 %v9151_v3  ;;  %2742 = vadd.xlane.f32.xlu1 %v9169_v9  ;;  %v1665_v9 = vld [vmem:[%s11962_s9 + $0x258] sm:$0xff] }
 0x643   :  { %v9619_v57 = vpop.xlane.xlu0 %2650  ;;  %5700 = vmatmul.mubr.msk.f32.gmra.mrb[102].mxu1 %vm1674_vm3, %v1665_v9 }
 0x644   :  { %v9621_v37 = vpop.xlane.xlu1 %2654  ;;  %2447 = vmatprep.mubr.f32.mxu1 %v12197_v16 }
 0x646   :  { %3326 = vadd.xlane.f32.xlu0 %v12305_v60  ;;  %3330 = vadd.xlane.f32.xlu1 %v12306_v4  ;;  %v12312_v60 = vld [vmem:[#allocation141_spill] sm:$0xff] }
 0x647   :  { %v9625_v13 = vpop.xlane.xlu0 %3134 }
 0x648   :  { %v9627_v34 = vpop.xlane.xlu1 %3138 }
 0x64a   :  { %2746 = vadd.xlane.f32.xlu0 %v12307_v11  ;;  %2750 = vadd.xlane.f32.xlu1 %v12308_v2  ;;  %v1666_v2 = vld [vmem:[%s11962_s9 + $0x260] sm:$0xff] }
 0x64b   :  { %v9631_v49 = vpop.xlane.xlu0 %3238  ;;  %5701 = vmatmul.mubr.msk.f32.gmra.mrb[104].mxu1 %vm1674_vm3, %v1666_v2 }
 0x64c   :  { %v9633_v3 = vpop.xlane.xlu1 %3242  ;;  %2453 = vmatprep.mubr.f32.mxu1 %v12197_v16 }
 0x64e   :  { %3334 = vadd.xlane.f32.xlu0 %v12309_v31  ;;  %3338 = vadd.xlane.f32.xlu1 %v9228_v52  ;;  %v12315_v52 = vld [vmem:[#allocation144_spill] sm:$0xff] }
 0x64f   :  { %v9642_v1 = vpop.xlane.xlu0 %2554 }
 0x650   :  { %12310 = vst [vmem:[#allocation109_spill] sm:$0xff] %v9642_v1  ;;  %v9644_v17 = vpop.xlane.xlu1 %2558 }
 0x651   :  { %12311 = vst [vmem:[#allocation130_spill] sm:$0xff] %v9644_v17 }
 0x652   :  { %2754 = vadd.xlane.f32.xlu0 %v12312_v60  ;;  %2758 = vadd.xlane.f32.xlu1 %v9255_v8  ;;  %v9663_v8 = vpop.f32.mrb[90].mxu1 }
 0x653   :  { %v9648_v4 = vpop.xlane.xlu0 %2658  ;;  %12318 = vst [vmem:[#allocation141_spill] sm:$0xff] %v9663_v8  ;;  %v9665_v60 = vpop.f32.mrb[91].mxu1  ;;  %v3054_v29 = vmul.f32 %v9663_v8, %v9663_v8 }
 0x654   :  { %12313 = vst [vmem:[#allocation133_spill] sm:$0xff] %v9648_v4  ;;  %v9650_v11 = vpop.xlane.xlu1 %2662  ;;  %12319 = vst [vmem:[#allocation144_spill] sm:$0xff] %v9665_v60  ;;  %v2772_v2 = vsel %vm1099_vm2, %v9665_v60, 0.0 }
 0x655   :  { %12314 = vst [vmem:[#allocation134_spill] sm:$0xff] %v9650_v11  ;;  %v9679_v11 = vadd.f32 %v2772_v2, %v9663_v8 }
 0x656   :  { %3342 = vadd.xlane.f32.xlu0 %v12315_v52  ;;  %3346 = vadd.xlane.f32.xlu1 %v9272_v20  ;;  %v3055_v52 = vmul.f32 %v9665_v60, %v9665_v60 }
 0x657   :  { %v9659_v9 = vpop.xlane.xlu0 %3142 }
 0x658   :  { %12316 = vst [vmem:[#allocation138_spill] sm:$0xff] %v9659_v9  ;;  %v9661_v31 = vpop.xlane.xlu1 %3146 }
 0x659   :  { %12317 = vst [vmem:[#allocation137_spill] sm:$0xff] %v9661_v31 }
 0x65a   :  { %2762 = vadd.xlane.f32.xlu0 %v9275_v53  ;;  %v9681_v31 = vpop.f32.mrb[92].mxu1  ;;  %v3360_v53 = vsel %vm1099_vm2, %v3055_v52, 0.0 }
 0x65b   :  { %v9674_v20 = vpop.xlane.xlu0 %3246  ;;  %12322 = vst [vmem:[#allocation162_spill] sm:$0xff] %v9681_v31  ;;  %v9685_v17 = vpop.f32.mrb[93].mxu1  ;;  %v9687_v4 = vadd.f32 %v3360_v53, %v3054_v29  ;;  %v3056_v2 = vmul.f32 %v9681_v31, %v9681_v31 }
 0x65c   :  { %12320 = vst [vmem:[#allocation160_spill] sm:$0xff] %v9674_v20  ;;  %v9676_v46 = vpop.xlane.xlu1 %3250  ;;  %12323 = vst [vmem:[#allocation163_spill] sm:$0xff] %v9685_v17  ;;  %v2776_v8 = vsel %vm1099_vm2, %v9685_v17, 0.0 }
 0x65d   :  { %12321 = vst [vmem:[#allocation161_spill] sm:$0xff] %v9676_v46  ;;  %v3057_v46 = vmul.f32 %v9685_v17, %v9685_v17  ;;  %v9704_v29 = vadd.f32 %v2776_v8, %v9681_v31 }
 0x65e   :  { %3350 = vadd.xlane.f32.xlu0 %v9285_v0 }
 0x65f   :  { %v9689_v9 = vpop.xlane.xlu0 %2562  ;;  %v3364_v53 = vsel %vm1099_vm2, %v3057_v46, 0.0 }
 0x660   :  { %12324 = vst [vmem:[#allocation164_spill] sm:$0xff] %v9689_v9  ;;  %v9691_v60 = vpop.xlane.xlu1 %2566  ;;  %v9707_v9 = vadd.f32 %v3364_v53, %v3056_v2 }
 0x661   :  { %12325 = vst [vmem:[#allocation165_spill] sm:$0xff] %v9691_v60 }
 0x663   :  { %v9699_v52 = vpop.xlane.xlu0 %2666 }
 0x664   :  { %12326 = vst [vmem:[#allocation166_spill] sm:$0xff] %v9699_v52  ;;  %v9701_v0 = vpop.xlane.xlu1 %2670 }
 0x665   :  { %12327 = vst [vmem:[#allocation167_spill] sm:$0xff] %v9701_v0 }
 0x667   :  { %v9709_v60 = vpop.xlane.xlu0 %3150  ;;  %4392 = vperm.xlu1 %6068, %v9308_v51  }
 0x668   :  { %v9711_v20 = vpop.xlane.xlu1 %3154 }
 0x66b   :  { %v9714_v1 = vpop.xlane.xlu0 %3254 }
 0x66c   :  { %v9716_v17 = vpop.xlane.xlu1 %3258 }
 0x66d   :  { %12328 = vst [vmem:[#allocation168_spill] sm:$0xff] %v9716_v17 }
 0x66f   :  { %v9718_v52 = vpop.xlane.xlu0 %2570 }
 0x670   :  { %12329 = vst [vmem:[#allocation169_spill] sm:$0xff] %v9718_v52  ;;  %v9720_v0 = vpop.xlane.xlu1 %2574 }
 0x671   :  { %12330 = vst [vmem:[#allocation170_spill] sm:$0xff] %v9720_v0 }
 0x673   :  { %v9722_v8 = vpop.xlane.xlu0 %2674 }
 0x674   :  { %12331 = vst [vmem:[#allocation171_spill] sm:$0xff] %v9722_v8  ;;  %v9724_v31 = vpop.xlane.xlu1 %2678  ;;  %4262 = vperm.xlu0 %6067, %v9289_v5   ;;  %v1667_v8 = vld [vmem:[%s11962_s9 + $0x268] sm:$0xff] }
 0x675   :  { %12332 = vst [vmem:[#allocation172_spill] sm:$0xff] %v9724_v31  ;;  %5702 = vmatmul.mubr.msk.f32.gmra.mrb[106].mxu1 %vm1674_vm3, %v1667_v8 }
 0x676   :  { %2459 = vmatprep.mubr.f32.mxu1 %v12197_v16 }
 0x677   :  { %v9727_v46 = vpop.xlane.xlu0 %3158 }
 0x678   :  { %12333 = vst [vmem:[#allocation173_spill] sm:$0xff] %v9727_v46  ;;  %v9729_v2 = vpop.xlane.xlu1 %3162  ;;  %4397 = vperm.xlu0 %6067, %v9326_v50   ;;  %v1668_v50 = vld [vmem:[%s11962_s9 + $0x270] sm:$0xff] }
 0x679   :  { %12334 = vst [vmem:[#allocation174_spill] sm:$0xff] %v9729_v2  ;;  %5703 = vmatmul.mubr.msk.f32.gmra.mrb[108].mxu1 %vm1674_vm3, %v1668_v50 }
 0x67a   :  { %2465 = vmatprep.mubr.f32.mxu1 %v12197_v16 }
 0x67b   :  { %v9732_v51 = vpop.xlane.xlu0 %3262 }
 0x67c   :  { %12335 = vst [vmem:[#allocation175_spill] sm:$0xff] %v9732_v51  ;;  %v9734_v53 = vpop.xlane.xlu1 %3266 }
 0x67d   :  { %12336 = vst [vmem:[#allocation176_spill] sm:$0xff] %v9734_v53 }
 0x67f   :  { %v9736_v17 = vpop.xlane.xlu0 %2578 }
 0x680   :  { %12337 = vst [vmem:[#allocation177_spill] sm:$0xff] %v9736_v17  ;;  %v9738_v52 = vpop.xlane.xlu1 %2582 }
 0x681   :  { %12338 = vst [vmem:[#allocation178_spill] sm:$0xff] %v9738_v52 }
 0x683   :  { %v9743_v31 = vpop.xlane.xlu0 %2682 }
 0x684   :  { %12339 = vst [vmem:[#allocation179_spill] sm:$0xff] %v9743_v31  ;;  %v9745_v5 = vpop.xlane.xlu1 %2686 }
 0x685   :  { %12340 = vst [vmem:[#allocation180_spill] sm:$0xff] %v9745_v5 }
 0x687   :  { %v9752_v51 = vpop.xlane.xlu0 %3166 }
 0x688   :  { %12341 = vst [vmem:[#allocation181_spill] sm:$0xff] %v9752_v51  ;;  %v9754_v17 = vpop.xlane.xlu1 %3170 }
 0x689   :  { %12342 = vst [vmem:[#allocation182_spill] sm:$0xff] %v9754_v17 }
 0x68b   :  { %v9758_v46 = vpop.xlane.xlu0 %3270  ;;  %2766 = vadd.xlane.f32.xlu1 %v9418_v26 }
 0x68c   :  { %12343 = vst [vmem:[#allocation183_spill] sm:$0xff] %v9758_v46  ;;  %v9760_v31 = vpop.xlane.xlu1 %3274 }
 0x68d   :  { %12344 = vst [vmem:[#allocation184_spill] sm:$0xff] %v9760_v31 }
 0x68f   :  { %v9763_v8 = vpop.xlane.xlu0 %2586  ;;  %3354 = vadd.xlane.f32.xlu1 %v9429_v10 }
 0x690   :  { %12345 = vst [vmem:[#allocation185_spill] sm:$0xff] %v9763_v8  ;;  %v9766_v5 = vpop.xlane.xlu1 %2590 }
 0x691   :  { %12346 = vst [vmem:[#allocation186_spill] sm:$0xff] %v9766_v5 }
 0x693   :  { %v9768_v52 = vpop.xlane.xlu0 %2690 }
 0x694   :  { %12347 = vst [vmem:[#allocation187_spill] sm:$0xff] %v9768_v52  ;;  %v9770_v51 = vpop.xlane.xlu1 %2694 }
 0x695   :  { %12348 = vst [vmem:[#allocation188_spill] sm:$0xff] %v9770_v51 }
 0x696   :  { %v9775_v50 = vpop.f32.mrb[94].mxu1 }
 0x697   :  { %v9772_v17 = vpop.xlane.xlu0 %3174  ;;  %2770 = vadd.xlane.f32.xlu0 %v9487_v14  ;;  %12350 = vst [vmem:[#allocation190_spill] sm:$0xff] %v9775_v50  ;;  %v9777_v46 = vpop.f32.mrb[95].mxu1  ;;  %v4008_v14 = vld [vmem:[%s11964_s11] sm:$0xff]  ;;  %v3058_v51 = vmul.f32 %v9775_v50, %v9775_v50 }
 0x698   :  { %12349 = vst [vmem:[#allocation189_spill] sm:$0xff] %v9772_v17  ;;  %12351 = vst [vmem:[#allocation191_spill] sm:$0xff] %v9777_v46  ;;  %v2780_v26 = vsel %vm1099_vm2, %v9777_v46, 0.0  ;;  %v9785_v8 = vpop.xlane.xlu1 %3178  ;;  %v3059_v17 = vmul.f32 %v9777_v46, %v9777_v46 }
 0x699   :  { %v9783_v10 = vadd.f32 %v2780_v26, %v9775_v50  ;;  %12352 = vst [vmem:[#allocation192_spill] sm:$0xff] %v9785_v8  ;;  %v12355_v26 = vld [vmem:[#allocation147_spill] sm:$0xff] }
 0x69a   :  { %v4176_v5 = vsub.f32 %v4008_v14, %v12355_v26  ;;  %v3368_v8 = vsel %vm1099_vm2, %v3059_v17, 0.0 }
 0x69b   :  { %3358 = vadd.xlane.f32.xlu0 %v9508_v27  ;;  %v9787_v52 = vpop.xlane.xlu0 %3278  ;;  %v9808_v46 = vadd.f32 %v3368_v8, %v3058_v51 }
 0x69c   :  { %12353 = vst [vmem:[#allocation193_spill] sm:$0xff] %v9787_v52  ;;  %v9797_v27 = vpop.xlane.xlu1 %3282  ;;  %v4034_v52 = vld [vmem:[%s11964_s11 + $0xd0] sm:$0xff] }
 0x69d   :  { %12354 = vst [vmem:[#allocation194_spill] sm:$0xff] %v9797_v27  ;;  %v12359_v27 = vld [vmem:[#allocation148_spill] sm:$0xff] }
 0x69e   :  { %v4202_v14 = vsub.f32 %v4034_v52, %v12359_v27  ;;  %v4009_v52 = vld [vmem:[%s11964_s11 + $0x8] sm:$0xff] }
 0x69f   :  { %v9800_v31 = vpop.xlane.xlu0 %2594 }
 0x6a0   :  { %4267 = vperm.xlu1 %6068, %v9330_v7   ;;  %12356 = vst [vmem:[#allocation147_spill] sm:$0xff] %v9800_v31 }
 0x6a2   :  { %v9806_v53 = vpop.f32.mrb[96].mxu1 }
 0x6a3   :  { %12357 = vst [vmem:[#allocation195_spill] sm:$0xff] %v9806_v53  ;;  %v3060_v7 = vmul.f32 %v9806_v53, %v9806_v53  ;;  %v9812_v50 = vpop.f32.mrb[97].mxu1  ;;  %v9825_v8 = vpop.xlane.xlu0 %2698 }
 0x6a4   :  { %4850 = vperm.xlu1 %6068, %v4176_v5   ;;  %12358 = vst [vmem:[#allocation196_spill] sm:$0xff] %v9812_v50  ;;  %v2784_v26 = vsel %vm1099_vm2, %v9812_v50, 0.0  ;;  %v3061_v31 = vmul.f32 %v9812_v50, %v9812_v50  ;;  %v9822_v5 = vpop.xlane.xlu1 %2598  ;;  %12361 = vst [vmem:[#allocation197_spill] sm:$0xff] %v9825_v8  ;;  %v12363_v50 = vld [vmem:[#allocation150_spill] sm:$0xff] }
 0x6a5   :  { %v9820_v17 = vadd.f32 %v2784_v26, %v9806_v53  ;;  %12360 = vst [vmem:[#allocation148_spill] sm:$0xff] %v9822_v5  ;;  %v4177_v26 = vsub.f32 %v4009_v52, %v12363_v50  ;;  %v12365_v5 = vld [vmem:[#allocation156_spill] sm:$0xff]  ;;  %v12372_v52 = vld [vmem:[#allocation101_spill] sm:$0xff] }
 0x6a6   :  { %v3372_v51 = vsel %vm1099_vm2, %v3061_v31, 0.0  ;;  %v4035_v31 = vld [vmem:[%s11964_s11 + $0xd8] sm:$0xff] }
 0x6a7   :  { %v9827_v2 = vadd.f32 %v3372_v51, %v3060_v7  ;;  %v9836_v53 = vpop.xlane.xlu0 %3182  ;;  %v12366_v7 = vld [vmem:[#allocation149_spill] sm:$0xff] }
 0x6a8   :  { %4980 = vperm.xlu1 %6068, %v4202_v14   ;;  %v9833_v27 = vpop.xlane.xlu1 %2702  ;;  %12364 = vst [vmem:[#allocation150_spill] sm:$0xff] %v9836_v53  ;;  %v4203_v14 = vsub.f32 %v4035_v31, %v12366_v7  ;;  %v1669_v7 = vld [vmem:[%s11962_s9 + $0x278] sm:$0xff] }
 0x6a9   :  { %12362 = vst [vmem:[#allocation198_spill] sm:$0xff] %v9833_v27  ;;  %5704 = vmatmul.mubr.msk.f32.gmra.mrb[110].mxu1 %vm1674_vm3, %v1669_v7 }
 0x6aa   :  { %2471 = vmatprep.mubr.f32.mxu1 %v12197_v16 }
 0x6ab   :  { %v9845_v8 = vpop.xlane.xlu0 %3286 }
 0x6ac   :  { %4272 = vperm.xlu1 %6068, %v9371_v58   ;;  %v9843_v51 = vpop.xlane.xlu1 %3186  ;;  %12368 = vst [vmem:[#allocation149_spill] sm:$0xff] %v9845_v8  ;;  %v12369_v58 = vld [vmem:[#allocation153_spill] sm:$0xff] }
 0x6ad   :  { %12367 = vst [vmem:[#allocation156_spill] sm:$0xff] %v9843_v51 }
 0x6af   :  { %v9850_v50 = vpop.xlane.xlu0 %2706 }
 0x6b0   :  { %4402 = vperm.xlu1 %6068, %v12365_v5   ;;  %v9848_v27 = vpop.xlane.xlu1 %3290  ;;  %12371 = vst [vmem:[#allocation199_spill] sm:$0xff] %v9850_v50 }
 0x6b1   :  { %4855 = vperm.xlu0 %6067, %v4177_v26   ;;  %12370 = vst [vmem:[#allocation153_spill] sm:$0xff] %v9848_v27 }
 0x6b3   :  { %v9855_v53 = vpop.xlane.xlu0 %3294 }
 0x6b4   :  { %v9853_v5 = vpop.xlane.xlu1 %2710  ;;  %12374 = vst [vmem:[#allocation200_spill] sm:$0xff] %v9855_v53 }
 0x6b5   :  { %4985 = vperm.xlu0 %6067, %v4203_v14   ;;  %12373 = vst [vmem:[#allocation101_spill] sm:$0xff] %v9853_v5  ;;  %v1670_v14 = vld [vmem:[%s11962_s9 + $0x280] sm:$0xff] }
 0x6b6   :  { %5705 = vmatmul.mubr.msk.f32.gmra.mrb[112].mxu1 %vm1674_vm3, %v1670_v14 }
 0x6b7   :  { %v9859_v31 = vpop.xlane.xlu0 %2714  ;;  %2477 = vmatprep.mubr.f32.mxu1 %v12197_v16 }
 0x6b8   :  { %v9857_v26 = vpop.xlane.xlu1 %3298  ;;  %12376 = vst [vmem:[#allocation202_spill] sm:$0xff] %v9859_v31 }
 0x6b9   :  { %4277 = vperm.xlu0 %6067, %v12369_v58   ;;  %12375 = vst [vmem:[#allocation201_spill] sm:$0xff] %v9857_v26 }
 0x6bc   :  { %v9869_v58 = vpop.xlane.xlu1 %2718 }
 0x6bd   :  { %4407 = vperm.xlu0 %6067, %v12372_v52   ;;  %12377 = vst [vmem:[#allocation203_spill] sm:$0xff] %v9869_v58  ;;  %v9872_v52 = vpop.xlane.xlu0 %3302 }
 0x6be   :  { %12378 = vst [vmem:[#allocation204_spill] sm:$0xff] %v9872_v52 }
 0x6c0   :  { %v9875_v31 = vpop.xlane.xlu1 %3306 }
 0x6c1   :  { %12379 = vst [vmem:[#allocation205_spill] sm:$0xff] %v9875_v31  ;;  %v9877_v53 = vpop.xlane.xlu0 %2722 }
 0x6c2   :  { %12380 = vst [vmem:[#allocation206_spill] sm:$0xff] %v9877_v53 }
 0x6c4   :  { %v9880_v7 = vpop.xlane.xlu1 %2726 }
 0x6c5   :  { %12381 = vst [vmem:[#allocation207_spill] sm:$0xff] %v9880_v7  ;;  %v9883_v50 = vpop.xlane.xlu0 %3310  ;;  %v4010_v7 = vld [vmem:[%s11964_s11 + $0x10] sm:$0xff] }
 0x6c6   :  { %12382 = vst [vmem:[#allocation208_spill] sm:$0xff] %v9883_v50 }
 0x6c8   :  { %v9892_v31 = vpop.xlane.xlu1 %3314 }
 0x6c9   :  { %12385 = vst [vmem:[#allocation211_spill] sm:$0xff] %v9892_v31 }
 0x6cc   :  { %v9904_v50 = vpop.xlane.xlu1 %2734 }
 0x6cd   :  { %12387 = vst [vmem:[#allocation213_spill] sm:$0xff] %v9904_v50 }
 0x6d0   :  { %v9924_v5 = vpop.xlane.xlu1 %3322 }
 0x6d1   :  { %12392 = vst [vmem:[#allocation216_spill] sm:$0xff] %v9924_v5 }
 0x6d4   :  { %2774 = vadd.xlane.f32.xlu1 %v9679_v11  ;;  %v9897_v11 = vpop.xlane.xlu0 %2730  ;;  %v9939_v51 = vpop.xlane.xlu1 %2742 }
 0x6d5   :  { %12386 = vst [vmem:[#allocation212_spill] sm:$0xff] %v9897_v11  ;;  %v12389_v11 = vld [vmem:[#allocation154_spill] sm:$0xff] }
 0x6d6   :  { %v9885_v8 = vpop.f32.mrb[98].mxu1 }
 0x6d7   :  { %12383 = vst [vmem:[#allocation209_spill] sm:$0xff] %v9885_v8  ;;  %v9888_v14 = vpop.f32.mrb[99].mxu1 }
 0x6d8   :  { %3362 = vadd.xlane.f32.xlu1 %v9687_v4  ;;  %12384 = vst [vmem:[#allocation210_spill] sm:$0xff] %v9888_v14  ;;  %v2788_v52 = vsel %vm1099_vm2, %v9888_v14, 0.0  ;;  %v3063_v4 = vmul.f32 %v9888_v14, %v9888_v14  ;;  %v4036_v14 = vld [vmem:[%s11964_s11 + $0xe0] sm:$0xff] }
 0x6d9   :  { %v9895_v53 = vadd.f32 %v2788_v52, %v9885_v8  ;;  %v9910_v52 = vpop.xlane.xlu0 %3318 }
 0x6da   :  { %v3376_v31 = vsel %vm1099_vm2, %v3063_v4, 0.0  ;;  %12388 = vst [vmem:[#allocation214_spill] sm:$0xff] %v9910_v52  ;;  %v12394_v4 = vld [vmem:[#allocation157_spill] sm:$0xff] }
 0x6db   :  { %12395 = vst [vmem:[#allocation157_spill] sm:$0xff] %v9939_v51  ;;  %v12417_v51 = vld [vmem:[#allocation5_spill] sm:$0xff] }
 0x6dc   :  { %2778 = vadd.xlane.f32.xlu0 %v9704_v29  ;;  %v3062_v29 = vmul.f32 %v9885_v8, %v9885_v8 }
 0x6de   :  { %v9912_v58 = vadd.f32 %v3376_v31, %v3062_v29  ;;  %v4204_v29 = vsub.f32 %v4036_v14, %v12394_v4  ;;  %v12400_v4 = vld [vmem:[#allocation158_spill] sm:$0xff] }
 0x6e0   :  { %3366 = vadd.xlane.f32.xlu0 %v9707_v9  ;;  %v4178_v9 = vsub.f32 %v4010_v7, %v12389_v11  ;;  %v9930_v11 = vpop.xlane.xlu0 %2738 }
 0x6e1   :  { %12393 = vst [vmem:[#allocation217_spill] sm:$0xff] %v9930_v11  ;;  %v12397_v11 = vld [vmem:[#allocation155_spill] sm:$0xff] }
 0x6e2   :  { %v9918_v26 = vpop.f32.mrb[100].mxu1 }
 0x6e3   :  { %12390 = vst [vmem:[#allocation154_spill] sm:$0xff] %v9918_v26  ;;  %v3064_v8 = vmul.f32 %v9918_v26, %v9918_v26  ;;  %v9922_v50 = vpop.f32.mrb[101].mxu1 }
 0x6e4   :  { %12391 = vst [vmem:[#allocation215_spill] sm:$0xff] %v9922_v50  ;;  %v2792_v31 = vsel %vm1099_vm2, %v9922_v50, 0.0  ;;  %v3065_v7 = vmul.f32 %v9922_v50, %v9922_v50  ;;  %v9941_v5 = vpop.xlane.xlu0 %3326  ;;  %v4011_v50 = vld [vmem:[%s11964_s11 + $0x18] sm:$0xff] }
 0x6e5   :  { %v9934_v52 = vadd.f32 %v2792_v31, %v9918_v26  ;;  %12396 = vst [vmem:[#allocation218_spill] sm:$0xff] %v9941_v5  ;;  %v4179_v14 = vsub.f32 %v4011_v50, %v12397_v11  ;;  %v4037_v31 = vld [vmem:[%s11964_s11 + $0xe8] sm:$0xff] }
 0x6e9   :  { %4860 = vperm.xlu1 %6068, %v4178_v9   ;;  %v3380_v9 = vsel %vm1099_vm2, %v3065_v7, 0.0  ;;  %v9954_v7 = vpop.xlane.xlu0 %2746 }
 0x6ea   :  { %v9937_v27 = vadd.f32 %v3380_v9, %v3064_v8  ;;  %v9952_v8 = vpop.xlane.xlu1 %3330  ;;  %12399 = vst [vmem:[#allocation219_spill] sm:$0xff] %v9954_v7 }
 0x6eb   :  { %12398 = vst [vmem:[#allocation155_spill] sm:$0xff] %v9952_v8  ;;  %v12416_v8 = vld [vmem:[#allocation3_spill] sm:$0xff] }
 0x6ed   :  { %4990 = vperm.xlu1 %6068, %v4204_v29   ;;  %v4205_v29 = vsub.f32 %v4037_v31, %v12400_v4  ;;  %v9959_v9 = vpop.xlane.xlu0 %3334  ;;  %v1671_v31 = vld [vmem:[%s11962_s9 + $0x288] sm:$0xff] }
 0x6ee   :  { %12402 = vst [vmem:[#allocation220_spill] sm:$0xff] %v9959_v9  ;;  %5706 = vmatmul.mubr.msk.f32.gmra.mrb[114].mxu1 %vm1674_vm3, %v1671_v31 }
 0x6ef   :  { %2483 = vmatprep.mubr.f32.mxu1 %v12197_v16 }
 0x6f1   :  { %4282 = vperm.xlu1 %6068, %v9452_v6   ;;  %v9957_v6 = vpop.xlane.xlu1 %2750 }
 0x6f2   :  { %12401 = vst [vmem:[#allocation158_spill] sm:$0xff] %v9957_v6 }
 0x6f5   :  { %4412 = vperm.xlu1 %6068, %v9478_v44   ;;  %v9962_v50 = vpop.xlane.xlu1 %3338  ;;  %v9965_v44 = vpop.xlane.xlu0 %2754 }
 0x6f6   :  { %4865 = vperm.xlu0 %6067, %v4179_v14   ;;  %12403 = vst [vmem:[#allocation221_spill] sm:$0xff] %v9962_v50  ;;  %12404 = vst [vmem:[#allocation222_spill] sm:$0xff] %v9965_v44 }
 0x6f9   :  { %v9967_v11 = vpop.xlane.xlu1 %2758  ;;  %v9969_v14 = vpop.xlane.xlu0 %3342 }
 0x6fa   :  { %4995 = vperm.xlu0 %6067, %v4205_v29   ;;  %12405 = vst [vmem:[#allocation223_spill] sm:$0xff] %v9967_v11  ;;  %12406 = vst [vmem:[#allocation224_spill] sm:$0xff] %v9969_v14 }
 0x6fd   :  { %v9974_v4 = vpop.xlane.xlu0 %2762  ;;  %v9977_v29 = vpop.xlane.xlu1 %3346 }
 0x6fe   :  { %4287 = vperm.xlu0 %6067, %v9459_v23   ;;  %12407 = vst [vmem:[#allocation225_spill] sm:$0xff] %v9974_v4  ;;  %12408 = vst [vmem:[#allocation226_spill] sm:$0xff] %v9977_v29  ;;  %v1672_v23 = vld [vmem:[%s11962_s9 + $0x290] sm:$0xff] }
 0x6ff   :  { %5707 = vmatmul.mubr.msk.f32.gmra.mrb[116].mxu1 %vm1674_vm3, %v1672_v23 }
 0x700   :  { %2489 = vmatprep.mubr.f32.mxu1 %v12197_v16 }
 0x701   :  { %v4393_v26 = vpop.permute.xlu1 %4392 }
 0x702   :  { %4417 = vperm.xlu0 %6067, %v9484_v18   ;;  %v9985_v18 = vpop.xlane.xlu0 %3350  ;;  %v4733_v0 = vmul.f32 %v4393_v26, %v12417_v51 }
 0x703   :  { %12409 = vst [vmem:[#allocation227_spill] sm:$0xff] %v9985_v18  ;;  %v12414_v18 = vld [vmem:[#allocation2_spill] sm:$0xff] }
 0x706   :  { %v4263_v4 = vpop.permute.xlu0 %4262 }
 0x70a   :  { %v4398_v44 = vpop.permute.xlu0 %4397 }
 0x716   :  { %v9993_v9 = vpop.f32.mrb[102].mxu1 }
 0x717   :  { %12412 = vst [vmem:[#allocation230_spill] sm:$0xff] %v9993_v9  ;;  %v9995_v5 = vpop.f32.mrb[103].mxu1  ;;  %v3066_v6 = vmul.f32 %v9993_v9, %v9993_v9 }
 0x718   :  { %v9987_v14 = vpop.xlane.xlu1 %2766  ;;  %12413 = vst [vmem:[#allocation231_spill] sm:$0xff] %v9995_v5  ;;  %v2796_v16 = vsel %vm1099_vm2, %v9995_v5, 0.0 }
 0x719   :  { %12410 = vst [vmem:[#allocation228_spill] sm:$0xff] %v9987_v14  ;;  %2782 = vadd.xlane.f32.xlu1 %v9783_v10  ;;  %v10001_v23 = vadd.f32 %v2796_v16, %v9993_v9  ;;  %v4680_v10 = vmul.f32 %v4263_v4, %v12414_v18  ;;  %v12415_v14 = vld [vmem:[#allocation4_spill] sm:$0xff]  ;;  %v4732_v16 = vmul.f32 %v4393_v26, %v12416_v8  ;;  %v4012_v8 = vld [vmem:[%s11964_s11 + $0x20] sm:$0xff] }
 0x71c   :  { %v9990_v31 = vpop.xlane.xlu1 %3354 }
 0x71d   :  { %12411 = vst [vmem:[#allocation229_spill] sm:$0xff] %v9990_v31  ;;  %3370 = vadd.xlane.f32.xlu1 %v9808_v46  ;;  %v4681_v31 = vmul.f32 %v4263_v4, %v12415_v14 }
 0x720   :  { %v4268_v7 = vpop.permute.xlu1 %4267 }
 0x721   :  { %2786 = vadd.xlane.f32.xlu0 %v9820_v17  ;;  %v3067_v17 = vmul.f32 %v9995_v5, %v9995_v5 }
 0x723   :  { %v3384_v51 = vsel %vm1099_vm2, %v3067_v17, 0.0  ;;  %v12421_v17 = vld [vmem:[#allocation9_spill] sm:$0xff] }
 0x724   :  { %v4851_v29 = vpop.permute.xlu1 %4850  ;;  %v10005_v46 = vpop.xlane.xlu0 %2770 }
 0x725   :  { %v5268_v11 = vadd.f32 %v4851_v29, %v4680_v10  ;;  %v5269_v50 = vadd.f32 %v4851_v29, %v4681_v31  ;;  %3374 = vadd.xlane.f32.xlu0 %v9827_v2  ;;  %v10021_v2 = vpop.f32.mrb[104].mxu1  ;;  %v12420_v31 = vld [vmem:[#allocation7_spill] sm:$0xff] }
 0x726   :  { %12418 = vst [vmem:[#allocation2_spill] sm:$0xff] %v10021_v2  ;;  %v10026_v18 = vpop.f32.mrb[105].mxu1  ;;  %v4682_v10 = vmul.f32 %v4268_v7, %v12420_v31  ;;  %v12422_v31 = vld [vmem:[#allocation6_spill] sm:$0xff] }
 0x727   :  { %5436 = vst [vmem:[%s11965_s12] sm:$0xff] %v5268_v11  ;;  %5437 = vst.msk [vmem:[%s11965_s12 + $0x8] sm:$0xff] %vm1099_vm2, %v5269_v50  ;;  %v10031_v11 = vadd.f32 %v3384_v51, %v3066_v6  ;;  %v4038_v50 = vld [vmem:[%s11964_s11 + $0xf0] sm:$0xff]  ;;  %v3069_v6 = vmul.f32 %v10026_v18, %v10026_v18  ;;  %v4734_v9 = vmul.f32 %v4398_v44, %v12422_v31 }
 0x728   :  { %v4981_v14 = vpop.permute.xlu1 %4980  ;;  %12419 = vst [vmem:[#allocation4_spill] sm:$0xff] %v10026_v18  ;;  %v10029_v26 = vpop.xlane.xlu0 %3358 }
 0x729   :  { %v5320_v4 = vadd.f32 %v4981_v14, %v4732_v16  ;;  %v5321_v29 = vadd.f32 %v4981_v14, %v4733_v0  ;;  %v4180_v0 = vsub.f32 %v4012_v8, %v9470_v32  ;;  %v4683_v16 = vmul.f32 %v4268_v7, %v12421_v17  ;;  %v12423_v7 = vld [vmem:[#allocation8_spill] sm:$0xff] }
 0x72a   :  { %v3068_v14 = vmul.f32 %v10021_v2, %v10021_v2  ;;  %v4206_v32 = vsub.f32 %v4038_v50, %v9491_v40  ;;  %v3388_v5 = vsel %vm1099_vm2, %v3069_v6, 0.0  ;;  %v4735_v17 = vmul.f32 %v4398_v44, %v12423_v7  ;;  %v4013_v44 = vld [vmem:[%s11964_s11 + $0x28] sm:$0xff]  ;;  %v12427_v7 = vld [vmem:[#allocation10_spill] sm:$0xff] }
 0x72b   :  { %5488 = vst [vmem:[%s11965_s12 + $0x1a0] sm:$0xff] %v5320_v4  ;;  %5489 = vst.msk [vmem:[%s11965_s12 + $0x1a8] sm:$0xff] %vm1099_vm2, %v5321_v29  ;;  %v2800_v4 = vsel %vm1099_vm2, %v10026_v18, 0.0 }
 0x72c   :  { %v10066_v40 = vadd.f32 %v3388_v5, %v3068_v14  ;;  %v12424_v5 = vld [vmem:[#allocation104_spill] sm:$0xff]  ;;  %v1673_v14 = vld [vmem:[%s11962_s9 + $0x298] sm:$0xff] }
 0x72d   :  { %v4181_v6 = vsub.f32 %v4013_v44, %v12424_v5  ;;  %5708 = vmatmul.mubr.msk.f32.gmra.mrb[118].mxu1 %vm1674_vm3, %v1673_v14  ;;  %v12431_v14 = vld [vmem:[#allocation13_spill] sm:$0xff] }
 0x72e   :  { %4870 = vperm.xlu1 %6068, %v4180_v0   ;;  %v10054_v0 = vadd.f32 %v2800_v4, %v10021_v2  ;;  %v12435_v2 = vld [vmem:[#allocation15_spill] sm:$0xff] }
 0x730   :  { %v4856_v29 = vpop.permute.xlu0 %4855 }
 0x731   :  { %v5270_v8 = vadd.f32 %v4856_v29, %v4682_v10  ;;  %v5271_v51 = vadd.f32 %v4856_v29, %v4683_v16 }
 0x732   :  { %5000 = vperm.xlu1 %6068, %v4206_v32  }
 0x733   :  { %5438 = vst [vmem:[%s11965_s12 + $0x10] sm:$0xff] %v5270_v8  ;;  %5439 = vst.msk [vmem:[%s11965_s12 + $0x18] sm:$0xff] %vm1099_vm2, %v5271_v51 }
 0x734   :  { %v4986_v50 = vpop.permute.xlu0 %4985 }
 0x735   :  { %v5322_v10 = vadd.f32 %v4986_v50, %v4734_v9  ;;  %v5323_v16 = vadd.f32 %v4986_v50, %v4735_v17  ;;  %v12428_v50 = vld [vmem:[#allocation12_spill] sm:$0xff] }
 0x736   :  { %4292 = vperm.xlu1 %6068, %v9524_v63   ;;  %v4039_v63 = vld [vmem:[%s11964_s11 + $0xf8] sm:$0xff] }
 0x737   :  { %5490 = vst [vmem:[%s11965_s12 + $0x1b0] sm:$0xff] %v5322_v10  ;;  %5491 = vst.msk [vmem:[%s11965_s12 + $0x1b8] sm:$0xff] %vm1099_vm2, %v5323_v16  ;;  %v4207_v9 = vsub.f32 %v4039_v63, %v9497_v42 }
 0x73a   :  { %4422 = vperm.xlu1 %6068, %v9548_v35   ;;  %v4273_v35 = vpop.permute.xlu1 %4272 }
 0x73b   :  { %4875 = vperm.xlu0 %6067, %v4181_v6   ;;  %v4684_v17 = vmul.f32 %v4273_v35, %v12427_v7  ;;  %v4685_v10 = vmul.f32 %v4273_v35, %v12428_v50 }
 0x73f   :  { %5005 = vperm.xlu0 %6067, %v4207_v9  }
 0x743   :  { %4297 = vperm.xlu0 %6067, %v9531_v19   ;;  %v4403_v19 = vpop.permute.xlu1 %4402 }
 0x747   :  { %4427 = vperm.xlu0 %6067, %v9552_v24   ;;  %v4278_v24 = vpop.permute.xlu0 %4277 }
 0x748   :  { %v10091_v4 = vpop.f32.mrb[106].mxu1 }
 0x749   :  { %12425 = vst [vmem:[#allocation3_spill] sm:$0xff] %v10091_v4  ;;  %v10093_v29 = vpop.f32.mrb[107].mxu1  ;;  %v3070_v63 = vmul.f32 %v10091_v4, %v10091_v4 }
 0x74a   :  { %12426 = vst [vmem:[#allocation5_spill] sm:$0xff] %v10093_v29  ;;  %v2804_v32 = vsel %vm1099_vm2, %v10093_v29, 0.0 }
 0x74b   :  { %v10098_v42 = vadd.f32 %v2804_v32, %v10091_v4  ;;  %v4408_v51 = vpop.permute.xlu0 %4407  ;;  %v4737_v32 = vmul.f32 %v4403_v19, %v12431_v14 }
 0x74c   :  { %v10109_v16 = vpop.f32.mrb[108].mxu1 }
 0x74d   :  { %12429 = vst [vmem:[#allocation7_spill] sm:$0xff] %v10109_v16  ;;  %v10130_v50 = vpop.f32.mrb[109].mxu1 }
 0x74e   :  { %12432 = vst [vmem:[#allocation9_spill] sm:$0xff] %v10130_v50 }
 0x75e   :  { %2790 = vadd.xlane.f32.xlu1 %v9895_v53 }
 0x761   :  { %v10101_v8 = vpop.xlane.xlu1 %2774 }
 0x762   :  { %3378 = vadd.xlane.f32.xlu1 %v9912_v58  ;;  %v3071_v58 = vmul.f32 %v10093_v29, %v10093_v29 }
 0x765   :  { %v10104_v31 = vpop.xlane.xlu1 %3362 }
 0x766   :  { %2794 = vadd.xlane.f32.xlu0 %v9934_v52  ;;  %v12430_v52 = vld [vmem:[#allocation11_spill] sm:$0xff] }
 0x767   :  { %v4736_v9 = vmul.f32 %v4403_v19, %v12430_v52  ;;  %v3392_v19 = vsel %vm1099_vm2, %v3071_v58, 0.0  ;;  %v3073_v52 = vmul.f32 %v10130_v50, %v10130_v50 }
 0x769   :  { %v4861_v44 = vpop.permute.xlu1 %4860  ;;  %v10111_v5 = vpop.xlane.xlu0 %2778 }
 0x76a   :  { %v5272_v53 = vadd.f32 %v4861_v44, %v4684_v17  ;;  %v5273_v6 = vadd.f32 %v4861_v44, %v4685_v10  ;;  %3382 = vadd.xlane.f32.xlu0 %v9937_v27  ;;  %v4014_v17 = vld [vmem:[%s11964_s11 + $0x30] sm:$0xff]  ;;  %v10134_v10 = vmul.f32 0.0051020407, %v9501_v21  ;;  %v4040_v21 = vld [vmem:[%s11964_s11 + $0x100] sm:$0xff] }
 0x76b   :  { %v4182_v58 = vsub.f32 %v4014_v17, %v9542_v56  ;;  %v2808_v56 = vsel %vm1099_vm2, %v10130_v50, 0.0  ;;  %v4208_v17 = vsub.f32 %v4040_v21, %v9560_v39 }
 0x76c   :  { %5440 = vst [vmem:[%s11965_s12 + $0x20] sm:$0xff] %v5272_v53  ;;  %5441 = vst.msk [vmem:[%s11965_s12 + $0x28] sm:$0xff] %vm1099_vm2, %v5273_v6  ;;  %v10138_v53 = vadd.f32 %v3392_v19, %v3070_v63  ;;  %v3455_v6 = vmul.f32 0.0051020407, %v9535_v41  ;;  %v3539_v63 = vmul.f32 %v10134_v10, %v10134_v10  ;;  %v3072_v41 = vmul.f32 %v10109_v16, %v10109_v16 }
 0x76d   :  { %v4991_v27 = vpop.permute.xlu1 %4990  ;;  %v10136_v44 = vpop.xlane.xlu0 %3366 }
 0x76e   :  { %v5324_v35 = vadd.f32 %v4991_v27, %v4736_v9  ;;  %v5325_v7 = vadd.f32 %v4991_v27, %v4737_v32  ;;  %v12433_v9 = vld [vmem:[#allocation14_spill] sm:$0xff]  ;;  %v12434_v32 = vld [vmem:[#allocation16_spill] sm:$0xff] }
 0x76f   :  { %v4686_v14 = vmul.f32 %v4278_v24, %v12433_v9  ;;  %v4687_v27 = vmul.f32 %v4278_v24, %v12434_v32  ;;  %v3396_v9 = vsel %vm1099_vm2, %v3073_v52, 0.0  ;;  %v4738_v24 = vmul.f32 %v4408_v51, %v12435_v2  ;;  %v12436_v32 = vld [vmem:[#allocation17_spill] sm:$0xff] }
 0x770   :  { %5492 = vst [vmem:[%s11965_s12 + $0x1c0] sm:$0xff] %v5324_v35  ;;  %5493 = vst.msk [vmem:[%s11965_s12 + $0x1c8] sm:$0xff] %vm1099_vm2, %v5325_v7  ;;  %v3623_v35 = vsub.f32 %v3455_v6, %v3539_v63  ;;  %v4739_v29 = vmul.f32 %v4408_v51, %v12436_v32  ;;  %v10176_v39 = vadd.f32 %v3396_v9, %v3072_v41  ;;  %v4015_v2 = vld [vmem:[%s11964_s11 + $0x38] sm:$0xff] }
 0x771   :  { %v3875_v52 = vld [vmem:[%s11963_s10 + $0x118] sm:$0xff] }
 0x772   :  { %v3707_v6 = vadd.f32 0.001, %v3623_v35 }
 0x773   :  { %4880 = vperm.xlu1 %6068, %v4182_v58   ;;  %v10164_v58 = vadd.f32 %v2808_v56, %v10109_v16 }
 0x774   :  { %6135 = vrsqrt.f32 %v3707_v6  ;;  %v3456_v6 = vmul.f32 0.0051020407, %v9593_v30 }
 0x775   :  { %v4866_v7 = vpop.permute.xlu0 %4865 }
 0x776   :  { %v5274_v19 = vadd.f32 %v4866_v7, %v4686_v14  ;;  %v5275_v18 = vadd.f32 %v4866_v7, %v4687_v27  ;;  %v10212_v7 = vmul.f32 0.0051020407, %v9554_v33 }
 0x777   :  { %5010 = vperm.xlu1 %6068, %v4208_v17   ;;  %v3430_v17 = vmul.f32 0.0051020407, %v9577_v12 }
 0x778   :  { %5442 = vst [vmem:[%s11965_s12 + $0x30] sm:$0xff] %v5274_v19  ;;  %5443 = vst.msk [vmem:[%s11965_s12 + $0x38] sm:$0xff] %vm1099_vm2, %v5275_v18  ;;  %v4183_v18 = vsub.f32 %v4015_v2, %v9546_v38  ;;  %v3514_v9 = vmul.f32 %v10212_v7, %v10212_v7 }
 0x779   :  { %v4996_v21 = vpop.permute.xlu0 %4995 }
 0x77a   :  { %v5326_v63 = vadd.f32 %v4996_v21, %v4738_v24  ;;  %v5327_v14 = vadd.f32 %v4996_v21, %v4739_v29  ;;  %v10221_v24 = vmul.f32 0.0051020407, %v9568_v25  ;;  %v3598_v32 = vsub.f32 %v3430_v17, %v3514_v9  ;;  %v12442_v17 = vld [vmem:[#allocation19_spill] sm:$0xff] }
 0x77b   :  { %4302 = vperm.xlu1 %6068, %v9584_v28   ;;  %v4041_v28 = vld [vmem:[%s11964_s11 + $0x108] sm:$0xff] }
 0x77c   :  { %5494 = vst [vmem:[%s11965_s12 + $0x1d0] sm:$0xff] %v5326_v63  ;;  %5495 = vst.msk [vmem:[%s11965_s12 + $0x1d8] sm:$0xff] %vm1099_vm2, %v5327_v14  ;;  %v4209_v29 = vsub.f32 %v4041_v28, %v9564_v61  ;;  %v10202_v38 = vpop.f32.mrb[110].mxu1  ;;  %v3682_v12 = vadd.f32 0.001, %v3598_v32  ;;  %v12439_v14 = vld [vmem:[#allocation18_spill] sm:$0xff] }
 0x77d   :  { %12437 = vst [vmem:[#allocation6_spill] sm:$0xff] %v10202_v38  ;;  %v10204_v41 = vpop.f32.mrb[111].mxu1  ;;  %v12443_v32 = vld [vmem:[#allocation21_spill] sm:$0xff] }
 0x77e   :  { %v6136_v51 = vpop.eup %6135  ;;  %12438 = vst [vmem:[#allocation8_spill] sm:$0xff] %v10204_v41  ;;  %v2812_v61 = vsel %vm1099_vm2, %v10204_v41, 0.0  ;;  %6137 = vrsqrt.f32 %v3682_v12  ;;  %v4016_v12 = vld [vmem:[%s11964_s11 + $0x40] sm:$0xff] }
 0x77f   :  { %4432 = vperm.xlu1 %6068, %v9605_v47   ;;  %v10199_v27 = vmul.f32 %v6136_v51, %v3875_v52  ;;  %v4283_v47 = vpop.permute.xlu1 %4282  ;;  %v10209_v56 = vadd.f32 %v2812_v61, %v10202_v38  ;;  %v3075_v52 = vmul.f32 %v10204_v41, %v10204_v41  ;;  %v3074_v61 = vmul.f32 %v10202_v38, %v10202_v38  ;;  %v12556_v38 = vld [vmem:[#allocation60_spill] sm:$0xff] }
 0x780   :  { %4885 = vperm.xlu0 %6067, %v4183_v18   ;;  %v4688_v2 = vmul.f32 %v4283_v47, %v12439_v14  ;;  %v12440_v18 = vld [vmem:[#allocation20_spill] sm:$0xff] }
 0x781   :  { %v4689_v25 = vmul.f32 %v4283_v47, %v12440_v18  ;;  %v10263_v18 = vmul.f32 0.0051020407, %v9570_v62  ;;  %v4184_v62 = vsub.f32 %v4016_v12, %v9599_v43 }
 0x783   :  { %v4413_v35 = vpop.permute.xlu1 %4412 }
 0x784   :  { %5015 = vperm.xlu0 %6067, %v4209_v29   ;;  %v4740_v9 = vmul.f32 %v4413_v35, %v12442_v17 }
 0x788   :  { %4307 = vperm.xlu0 %6067, %v9591_v54   ;;  %v4288_v54 = vpop.permute.xlu0 %4287 }
 0x789   :  { %v10232_v28 = vpop.f32.mrb[112].mxu1 }
 0x78a   :  { %12441 = vst [vmem:[#allocation104_spill] sm:$0xff] %v10232_v28 }
 0x78c   :  { %4437 = vperm.xlu0 %6067, %v10199_v27   ;;  %v4418_v33 = vpop.permute.xlu0 %4417 }
 0x7a3   :  { %2798 = vadd.xlane.f32.xlu1 %v10001_v23  ;;  %v3540_v23 = vmul.f32 %v10221_v24, %v10221_v24 }
 0x7a5   :  { %v3624_v63 = vsub.f32 %v3456_v6, %v3540_v23  ;;  %v4741_v6 = vmul.f32 %v4413_v35, %v12443_v32  ;;  %v3400_v35 = vsel %vm1099_vm2, %v3075_v52, 0.0  ;;  %v3541_v52 = vmul.f32 %v10263_v18, %v10263_v18 }
 0x7a6   :  { %v10216_v19 = vpop.xlane.xlu1 %2782 }
 0x7a7   :  { %3386 = vadd.xlane.f32.xlu1 %v10031_v11  ;;  %v3708_v47 = vadd.f32 0.001, %v3624_v63  ;;  %v10257_v63 = vpop.f32.mrb[113].mxu1 }
 0x7a8   :  { %12444 = vst [vmem:[#allocation10_spill] sm:$0xff] %v10257_v63  ;;  %v2816_v43 = vsel %vm1099_vm2, %v10257_v63, 0.0 }
 0x7a9   :  { %6139 = vrsqrt.f32 %v3708_v47  ;;  %v12445_v47 = vld [vmem:[#allocation22_spill] sm:$0xff] }
 0x7aa   :  { %v10225_v21 = vpop.xlane.xlu1 %3370  ;;  %v4690_v17 = vmul.f32 %v4288_v54, %v12445_v47  ;;  %v12447_v47 = vld [vmem:[#allocation23_spill] sm:$0xff] }
 0x7ab   :  { %2802 = vadd.xlane.f32.xlu0 %v10054_v0  ;;  %v10240_v0 = vmul.f32 0.0051020407, %v9556_v59  ;;  %v3431_v59 = vmul.f32 0.0051020407, %v9579_v22  ;;  %v10267_v22 = vadd.f32 %v3400_v35, %v3074_v61  ;;  %v3077_v61 = vmul.f32 %v10257_v63, %v10257_v63 }
 0x7ae   :  { %v4871_v11 = vpop.permute.xlu1 %4870  ;;  %v10234_v29 = vpop.xlane.xlu0 %2786 }
 0x7af   :  { %v5276_v30 = vadd.f32 %v4871_v11, %v4688_v2  ;;  %v5277_v51 = vadd.f32 %v4871_v11, %v4689_v25  ;;  %3390 = vadd.xlane.f32.xlu0 %v10066_v40  ;;  %v3515_v2 = vmul.f32 %v10240_v0, %v10240_v0 }
 0x7b1   :  { %5444 = vst [vmem:[%s11965_s12 + $0x40] sm:$0xff] %v5276_v30  ;;  %5445 = vst.msk [vmem:[%s11965_s12 + $0x48] sm:$0xff] %vm1099_vm2, %v5277_v51  ;;  %v3599_v11 = vsub.f32 %v3431_v59, %v3515_v2  ;;  %v3457_v30 = vmul.f32 0.0051020407, %v9595_v45  ;;  %v4042_v51 = vld [vmem:[%s11964_s11 + $0x110] sm:$0xff]  ;;  %v3076_v45 = vmul.f32 %v10232_v28, %v10232_v28 }
 0x7b2   :  { %v5001_v40 = vpop.permute.xlu1 %5000  ;;  %v10265_v25 = vpop.xlane.xlu0 %3374  ;;  %v3850_v2 = vld [vmem:[%s11963_s10 + $0x50] sm:$0xff] }
 0x7b3   :  { %v5328_v23 = vadd.f32 %v5001_v40, %v4740_v9  ;;  %v5329_v14 = vadd.f32 %v5001_v40, %v4741_v6  ;;  %v12446_v9 = vld [vmem:[#allocation24_spill] sm:$0xff]  ;;  %v3683_v6 = vadd.f32 0.001, %v3599_v11  ;;  %v3625_v59 = vsub.f32 %v3457_v30, %v3541_v52  ;;  %v12448_v11 = vld [vmem:[#allocation25_spill] sm:$0xff] }
 0x7b4   :  { %v4691_v32 = vmul.f32 %v4288_v54, %v12446_v9  ;;  %v10296_v54 = vadd.f32 %v2816_v43, %v10232_v28  ;;  %v4742_v9 = vmul.f32 %v4418_v33, %v12447_v47  ;;  %v4743_v30 = vmul.f32 %v4418_v33, %v12448_v11  ;;  %v3876_v33 = vld [vmem:[%s11963_s10 + $0x120] sm:$0xff] }
 0x7b5   :  { %5496 = vst [vmem:[%s11965_s12 + $0x1e0] sm:$0xff] %v5328_v23  ;;  %5497 = vst.msk [vmem:[%s11965_s12 + $0x1e8] sm:$0xff] %vm1099_vm2, %v5329_v14  ;;  %v4210_v23 = vsub.f32 %v4042_v51, %v9615_v48  ;;  %v6138_v14 = vpop.eup %6137  ;;  %6141 = vrsqrt.f32 %v3683_v6  ;;  %v3709_v51 = vadd.f32 0.001, %v3625_v59  ;;  %v4127_v59 = vmul.f32 %v10199_v27, %v10134_v10  ;;  %v3877_v10 = vld [vmem:[%s11963_s10 + $0x128] sm:$0xff] }
 0x7b6   :  { %v4293_v47 = vpop.permute.xlu1 %4292 }
 0x7b7   :  { %6143 = vrsqrt.f32 %v3709_v51 }
 0x7b8   :  { %4890 = vperm.xlu1 %6068, %v4184_v62   ;;  %v3404_v62 = vsel %vm1099_vm2, %v3077_v61, 0.0  ;;  %v6140_v61 = vpop.eup %6139 }
 0x7b9   :  { %v10308_v48 = vadd.f32 %v3404_v62, %v3076_v45  ;;  %v10326_v45 = vmul.f32 %v6140_v61, %v3876_v33 }
 0x7ba   :  { %v4876_v40 = vpop.permute.xlu0 %4875  ;;  %v4423_v51 = vpop.permute.xlu1 %4422 }
 0x7bb   :  { %v5278_v12 = vadd.f32 %v4876_v40, %v4690_v17  ;;  %v5279_v35 = vadd.f32 %v4876_v40, %v4691_v32  ;;  %v10310_v17 = vmul.f32 %v6138_v14, %v3850_v2  ;;  %v4017_v40 = vld [vmem:[%s11964_s11 + $0x48] sm:$0xff] }
 0x7bc   :  { %5020 = vperm.xlu1 %6068, %v4210_v23   ;;  %v4185_v6 = vsub.f32 %v4017_v40, %v9603_v55  ;;  %v4043_v23 = vld [vmem:[%s11964_s11 + $0x118] sm:$0xff]  ;;  %v10366_v40 = vmul.f32 0.0051020407, %v9619_v57 }
 0x7bd   :  { %5446 = vst [vmem:[%s11965_s12 + $0x50] sm:$0xff] %v5278_v12  ;;  %5447 = vst.msk [vmem:[%s11965_s12 + $0x58] sm:$0xff] %vm1099_vm2, %v5279_v35  ;;  %v4211_v14 = vsub.f32 %v4043_v23, %v4127_v59  ;;  %v3851_v35 = vld [vmem:[%s11963_s10 + $0x58] sm:$0xff]  ;;  %v3458_v59 = vmul.f32 0.0051020407, %v9631_v49 }
 0x7be   :  { %v5006_v52 = vpop.permute.xlu0 %5005 }
 0x7bf   :  { %v5330_v32 = vadd.f32 %v5006_v52, %v4742_v9  ;;  %v5331_v43 = vadd.f32 %v5006_v52, %v4743_v30  ;;  %v6142_v12 = vpop.eup %6141  ;;  %v10357_v52 = vmul.f32 0.0051020407, %v9609_v15 }
 0x7c0   :  { %4312 = vperm.xlu1 %6068, %v10310_v17   ;;  %v10338_v2 = vmul.f32 %v6142_v12, %v3851_v35  ;;  %v12451_v12 = vld [vmem:[#allocation26_spill] sm:$0xff] }
 0x7c1   :  { %5498 = vst [vmem:[%s11965_s12 + $0x1f0] sm:$0xff] %v5330_v32  ;;  %5499 = vst.msk [vmem:[%s11965_s12 + $0x1f8] sm:$0xff] %vm1099_vm2, %v5331_v43  ;;  %v6144_v55 = vpop.eup %6143  ;;  %v10347_v62 = vpop.f32.mrb[114].mxu1  ;;  %v3432_v32 = vmul.f32 0.0051020407, %v9625_v13  ;;  %v3516_v33 = vmul.f32 %v10357_v52, %v10357_v52  ;;  %v4692_v35 = vmul.f32 %v4293_v47, %v12451_v12  ;;  %v12455_v12 = vld [vmem:[#allocation29_spill] sm:$0xff] }
 0x7c2   :  { %v10344_v27 = vmul.f32 %v6144_v55, %v3877_v10  ;;  %12449 = vst [vmem:[#allocation12_spill] sm:$0xff] %v10347_v62  ;;  %v10349_v9 = vpop.f32.mrb[115].mxu1  ;;  %v4298_v61 = vpop.permute.xlu0 %4297  ;;  %v12452_v55 = vld [vmem:[#allocation28_spill] sm:$0xff] }
 0x7c3   :  { %12450 = vst [vmem:[#allocation11_spill] sm:$0xff] %v10349_v9  ;;  %v2820_v11 = vsel %vm1099_vm2, %v10349_v9, 0.0  ;;  %v4693_v57 = vmul.f32 %v4293_v47, %v12452_v55  ;;  %v4745_v55 = vmul.f32 %v4423_v51, %v12455_v12  ;;  %v12457_v12 = vld [vmem:[#allocation30_spill] sm:$0xff] }
 0x7c4   :  { %4442 = vperm.xlu1 %6068, %v10326_v45   ;;  %v10354_v30 = vadd.f32 %v2820_v11, %v10347_v62 }
 0x7c5   :  { %4895 = vperm.xlu0 %6067, %v4185_v6   ;;  %v3600_v6 = vsub.f32 %v3432_v32, %v3516_v33  ;;  %v3079_v33 = vmul.f32 %v10349_v9, %v10349_v9 }
 0x7c6   :  { %v4428_v15 = vpop.permute.xlu0 %4427 }
 0x7c7   :  { %v3684_v13 = vadd.f32 0.001, %v3600_v6  ;;  %v3078_v6 = vmul.f32 %v10347_v62, %v10347_v62  ;;  %v12555_v62 = vld [vmem:[#allocation58_spill] sm:$0xff] }
 0x7c9   :  { %5025 = vperm.xlu0 %6067, %v4211_v14   ;;  %6145 = vrsqrt.f32 %v3684_v13  ;;  %v4102_v13 = vmul.f32 %v10310_v17, %v10212_v7  ;;  %v3459_v17 = vmul.f32 0.0051020407, %v9633_v3 }
 0x7cd   :  { %4317 = vperm.xlu0 %6067, %v10338_v2  }
 0x7d1   :  { %4447 = vperm.xlu0 %6067, %v10344_v27  }
 0x7d2   :  { %v10377_v10 = vpop.f32.mrb[116].mxu1 }
 0x7d3   :  { %12453 = vst [vmem:[#allocation13_spill] sm:$0xff] %v10377_v10  ;;  %v3080_v3 = vmul.f32 %v10377_v10, %v10377_v10 }
 0x7e8   :  { %2806 = vadd.xlane.f32.xlu1 %v10098_v42  ;;  %v3542_v42 = vmul.f32 %v10366_v40, %v10366_v40 }
 0x7ea   :  { %v3626_v14 = vsub.f32 %v3458_v59, %v3542_v42  ;;  %v12454_v59 = vld [vmem:[#allocation27_spill] sm:$0xff] }
 0x7eb   :  { %v10361_v43 = vpop.xlane.xlu1 %2790  ;;  %v4744_v42 = vmul.f32 %v4423_v51, %v12454_v59  ;;  %v4018_v51 = vld [vmem:[%s11964_s11 + $0x50] sm:$0xff] }
 0x7ec   :  { %3394 = vadd.xlane.f32.xlu1 %v10138_v53  ;;  %v3710_v47 = vadd.f32 0.001, %v3626_v14 }
 0x7ee   :  { %6147 = vrsqrt.f32 %v3710_v47 }
 0x7ef   :  { %v10370_v23 = vpop.xlane.xlu1 %3378 }
 0x7f0   :  { %2810 = vadd.xlane.f32.xlu0 %v10164_v58  ;;  %v10385_v58 = vmul.f32 0.0051020407, %v9611_v36  ;;  %v3433_v36 = vmul.f32 0.0051020407, %v9627_v34 }
 0x7f3   :  { %v4881_v53 = vpop.permute.xlu1 %4880  ;;  %v10379_v11 = vpop.xlane.xlu0 %2794 }
 0x7f4   :  { %v5280_v49 = vadd.f32 %v4881_v53, %v4692_v35  ;;  %v5281_v32 = vadd.f32 %v4881_v53, %v4693_v57  ;;  %3398 = vadd.xlane.f32.xlu0 %v10176_v39  ;;  %v10404_v57 = vpop.f32.mrb[117].mxu1  ;;  %v3408_v53 = vsel %vm1099_vm2, %v3079_v33, 0.0  ;;  %v4186_v33 = vsub.f32 %v4018_v51, %v4102_v13  ;;  %v6146_v51 = vpop.eup %6145 }
 0x7f5   :  { %12456 = vst [vmem:[#allocation14_spill] sm:$0xff] %v10404_v57  ;;  %v10414_v59 = vadd.f32 %v3408_v53, %v3078_v6  ;;  %v4044_v6 = vld [vmem:[%s11964_s11 + $0x120] sm:$0xff] }
 0x7f6   :  { %5448 = vst [vmem:[%s11965_s12 + $0x60] sm:$0xff] %v5280_v49  ;;  %5449 = vst.msk [vmem:[%s11965_s12 + $0x68] sm:$0xff] %vm1099_vm2, %v5281_v32  ;;  %v3517_v49 = vmul.f32 %v10385_v58, %v10385_v58  ;;  %v10410_v32 = vmul.f32 0.0051020407, %v9621_v37  ;;  %v4128_v37 = vmul.f32 %v10326_v45, %v10221_v24  ;;  %v2824_v24 = vsel %vm1099_vm2, %v10404_v57, 0.0 }
 0x7f7   :  { %v5011_v39 = vpop.permute.xlu1 %5010  ;;  %v10412_v34 = vpop.xlane.xlu0 %3382 }
 0x7f8   :  { %v5332_v14 = vadd.f32 %v5011_v39, %v4744_v42  ;;  %v5333_v35 = vadd.f32 %v5011_v39, %v4745_v55  ;;  %v3601_v7 = vsub.f32 %v3433_v36, %v3517_v49  ;;  %v3543_v47 = vmul.f32 %v10410_v32, %v10410_v32  ;;  %v12458_v36 = vld [vmem:[#allocation32_spill] sm:$0xff] }
 0x7f9   :  { %v3081_v42 = vmul.f32 %v10404_v57, %v10404_v57  ;;  %v4694_v55 = vmul.f32 %v4298_v61, %v12457_v12  ;;  %v4695_v39 = vmul.f32 %v4298_v61, %v12458_v36  ;;  %v10443_v61 = vadd.f32 %v2824_v24, %v10377_v10  ;;  %v12459_v36 = vld [vmem:[#allocation31_spill] sm:$0xff]  ;;  %v12460_v57 = vld [vmem:[#allocation33_spill] sm:$0xff] }
 0x7fa   :  { %5500 = vst [vmem:[%s11965_s12 + $0x200] sm:$0xff] %v5332_v14  ;;  %5501 = vst.msk [vmem:[%s11965_s12 + $0x208] sm:$0xff] %vm1099_vm2, %v5333_v35  ;;  %v3685_v45 = vadd.f32 0.001, %v3601_v7  ;;  %v3627_v13 = vsub.f32 %v3459_v17, %v3543_v47  ;;  %v4212_v35 = vsub.f32 %v4044_v6, %v4128_v37  ;;  %v4746_v63 = vmul.f32 %v4428_v15, %v12459_v36 }
 0x7fb   :  { %v3412_v12 = vsel %vm1099_vm2, %v3081_v42, 0.0  ;;  %v4747_v7 = vmul.f32 %v4428_v15, %v12460_v57  ;;  %v6148_v42 = vpop.eup %6147  ;;  %v3878_v15 = vld [vmem:[%s11963_s10 + $0x130] sm:$0xff]  ;;  %v4103_v57 = vmul.f32 %v10338_v2, %v10240_v0  ;;  %v4129_v0 = vmul.f32 %v10344_v27, %v10263_v18  ;;  %v4045_v2 = vld [vmem:[%s11964_s11 + $0x128] sm:$0xff]  ;;  %v3879_v18 = vld [vmem:[%s11963_s10 + $0x138] sm:$0xff] }
 0x7fc   :  { %v10455_v17 = vadd.f32 %v3412_v12, %v3080_v3  ;;  %6149 = vrsqrt.f32 %v3685_v45  ;;  %v3711_v37 = vadd.f32 0.001, %v3627_v13  ;;  %v4019_v3 = vld [vmem:[%s11964_s11 + $0x58] sm:$0xff] }
 0x7fd   :  { %4900 = vperm.xlu1 %6068, %v4186_v33   ;;  %v3852_v33 = vld [vmem:[%s11963_s10 + $0x60] sm:$0xff]  ;;  %v4187_v24 = vsub.f32 %v4019_v3, %v4103_v57  ;;  %v4213_v45 = vsub.f32 %v4045_v2, %v4129_v0 }
 0x7fe   :  { %v10457_v47 = vmul.f32 %v6146_v51, %v3852_v33  ;;  %6151 = vrsqrt.f32 %v3711_v37  ;;  %v12461_v33 = vld [vmem:[#allocation109_spill] sm:$0xff] }
 0x7ff   :  { %v4886_v14 = vpop.permute.xlu0 %4885  ;;  %v10496_v12 = vmul.f32 0.0051020407, %v12461_v33  ;;  %v12467_v33 = vld [vmem:[#allocation34_spill] sm:$0xff] }
 0x800   :  { %v5282_v53 = vadd.f32 %v4886_v14, %v4694_v55  ;;  %v5283_v49 = vadd.f32 %v4886_v14, %v4695_v39  ;;  %v3853_v14 = vld [vmem:[%s11963_s10 + $0x68] sm:$0xff] }
 0x801   :  { %5030 = vperm.xlu1 %6068, %v4212_v35  }
 0x802   :  { %5450 = vst [vmem:[%s11965_s12 + $0x70] sm:$0xff] %v5282_v53  ;;  %5451 = vst.msk [vmem:[%s11965_s12 + $0x78] sm:$0xff] %vm1099_vm2, %v5283_v49  ;;  %v4303_v53 = vpop.permute.xlu1 %4302 }
 0x803   :  { %v5016_v6 = vpop.permute.xlu0 %5015 }
 0x804   :  { %v5334_v55 = vadd.f32 %v5016_v6, %v4746_v63  ;;  %v5335_v39 = vadd.f32 %v5016_v6, %v4747_v7  ;;  %v10475_v63 = vmul.f32 %v6148_v42, %v3878_v15  ;;  %v12462_v7 = vld [vmem:[#allocation138_spill] sm:$0xff]  ;;  %v10502_v42 = vpop.f32.mrb[118].mxu1 }
 0x805   :  { %4322 = vperm.xlu1 %6068, %v10457_v47   ;;  %v3434_v37 = vmul.f32 0.0051020407, %v12462_v7  ;;  %12463 = vst [vmem:[#allocation16_spill] sm:$0xff] %v10502_v42  ;;  %v10510_v57 = vpop.f32.mrb[119].mxu1  ;;  %v4696_v7 = vmul.f32 %v4303_v53, %v12467_v33  ;;  %v3082_v28 = vmul.f32 %v10502_v42, %v10502_v42 }
 0x806   :  { %5502 = vst [vmem:[%s11965_s12 + $0x210] sm:$0xff] %v5334_v55  ;;  %5503 = vst.msk [vmem:[%s11965_s12 + $0x218] sm:$0xff] %vm1099_vm2, %v5335_v39  ;;  %v6150_v13 = vpop.eup %6149  ;;  %v4433_v49 = vpop.permute.xlu1 %4432  ;;  %v3518_v55 = vmul.f32 %v10496_v12, %v10496_v12  ;;  %v12464_v39 = vld [vmem:[#allocation133_spill] sm:$0xff] }
 0x807   :  { %v10486_v35 = vmul.f32 %v6150_v13, %v3853_v14  ;;  %v4308_v36 = vpop.permute.xlu0 %4307  ;;  %v10507_v15 = vmul.f32 0.0051020407, %v12464_v39  ;;  %12465 = vst [vmem:[#allocation15_spill] sm:$0xff] %v10510_v57 }
 0x808   :  { %v6152_v51 = vpop.eup %6151  ;;  %v3602_v3 = vsub.f32 %v3434_v37, %v3518_v55  ;;  %v12468_v37 = vld [vmem:[#allocation36_spill] sm:$0xff] }
 0x809   :  { %4452 = vperm.xlu1 %6068, %v10475_v63   ;;  %v10492_v27 = vmul.f32 %v6152_v51, %v3879_v18  ;;  %v3544_v14 = vmul.f32 %v10507_v15, %v10507_v15  ;;  %v4697_v55 = vmul.f32 %v4303_v53, %v12468_v37  ;;  %v12471_v53 = vld [vmem:[#allocation37_spill] sm:$0xff] }
 0x80a   :  { %4905 = vperm.xlu0 %6067, %v4187_v24   ;;  %v12466_v24 = vld [vmem:[#allocation160_spill] sm:$0xff]  ;;  %v3686_v51 = vadd.f32 0.001, %v3602_v3  ;;  %v4749_v37 = vmul.f32 %v4433_v49, %v12471_v53 }
 0x80b   :  { %v3460_v0 = vmul.f32 0.0051020407, %v12466_v24 }
 0x80c   :  { %6153 = vrsqrt.f32 %v3686_v51 }
 0x80d   :  { %v3628_v18 = vsub.f32 %v3460_v0, %v3544_v14  ;;  %v12470_v14 = vld [vmem:[#allocation35_spill] sm:$0xff] }
 0x80e   :  { %5035 = vperm.xlu0 %6067, %v4213_v45   ;;  %v4438_v45 = vpop.permute.xlu0 %4437  ;;  %v4748_v33 = vmul.f32 %v4433_v49, %v12470_v14  ;;  %v4020_v49 = vld [vmem:[%s11964_s11 + $0x60] sm:$0xff] }
 0x80f   :  { %v3712_v0 = vadd.f32 0.001, %v3628_v18 }
 0x811   :  { %6155 = vrsqrt.f32 %v3712_v0  ;;  %v4046_v0 = vld [vmem:[%s11964_s11 + $0x130] sm:$0xff] }
 0x812   :  { %4327 = vperm.xlu0 %6067, %v10486_v35  }
 0x816   :  { %4457 = vperm.xlu0 %6067, %v10492_v27  }
 0x82d   :  { %2814 = vadd.xlane.f32.xlu1 %v10209_v56  ;;  %v2828_v56 = vsel %vm1099_vm2, %v10510_v57, 0.0 }
 0x82e   :  { %v10516_v2 = vadd.f32 %v2828_v56, %v10502_v42  ;;  %v12512_v42 = vld [vmem:[#allocation198_spill] sm:$0xff] }
 0x830   :  { %v10500_v6 = vpop.xlane.xlu1 %2798 }
 0x831   :  { %3402 = vadd.xlane.f32.xlu1 %v10267_v22  ;;  %v3083_v22 = vmul.f32 %v10510_v57, %v10510_v57  ;;  %v12478_v57 = vld [vmem:[#allocation41_spill] sm:$0xff] }
 0x833   :  { %v3416_v3 = vsel %vm1099_vm2, %v3083_v22, 0.0  ;;  %v4104_v22 = vmul.f32 %v10457_v47, %v10357_v52  ;;  %v12474_v52 = vld [vmem:[#allocation161_spill] sm:$0xff] }
 0x834   :  { %v10518_v13 = vpop.xlane.xlu1 %3386  ;;  %v3461_v47 = vmul.f32 0.0051020407, %v12474_v52 }
 0x835   :  { %2818 = vadd.xlane.f32.xlu0 %v10296_v54  ;;  %v12469_v54 = vld [vmem:[#allocation130_spill] sm:$0xff] }
 0x836   :  { %v10533_v50 = vmul.f32 0.0051020407, %v12469_v54  ;;  %v12473_v54 = vld [vmem:[#allocation134_spill] sm:$0xff] }
 0x837   :  { %v10556_v14 = vmul.f32 0.0051020407, %v12473_v54 }
 0x838   :  { %v4891_v39 = vpop.permute.xlu1 %4890  ;;  %v10527_v56 = vpop.xlane.xlu0 %2802 }
 0x839   :  { %v5284_v24 = vadd.f32 %v4891_v39, %v4696_v7  ;;  %v5285_v10 = vadd.f32 %v4891_v39, %v4697_v55  ;;  %3406 = vadd.xlane.f32.xlu0 %v10308_v48  ;;  %v12472_v48 = vld [vmem:[#allocation137_spill] sm:$0xff]  ;;  %v10551_v39 = vadd.f32 %v3416_v3, %v3082_v28  ;;  %v4188_v3 = vsub.f32 %v4020_v49, %v4104_v22  ;;  %v6154_v22 = vpop.eup %6153 }
 0x83a   :  { %v3435_v7 = vmul.f32 0.0051020407, %v12472_v48  ;;  %v3545_v53 = vmul.f32 %v10556_v14, %v10556_v14 }
 0x83b   :  { %5452 = vst [vmem:[%s11965_s12 + $0x80] sm:$0xff] %v5284_v24  ;;  %5453 = vst.msk [vmem:[%s11965_s12 + $0x88] sm:$0xff] %vm1099_vm2, %v5285_v10  ;;  %v3519_v24 = vmul.f32 %v10533_v50, %v10533_v50 }
 0x83c   :  { %v5021_v55 = vpop.permute.xlu1 %5020  ;;  %v10558_v10 = vpop.xlane.xlu0 %3390 }
 0x83d   :  { %v5336_v51 = vadd.f32 %v5021_v55, %v4748_v33  ;;  %v5337_v18 = vadd.f32 %v5021_v55, %v4749_v37  ;;  %v3603_v28 = vsub.f32 %v3435_v7, %v3519_v24  ;;  %v4130_v33 = vmul.f32 %v10475_v63, %v10366_v40  ;;  %v12475_v37 = vld [vmem:[#allocation38_spill] sm:$0xff]  ;;  %v12476_v55 = vld [vmem:[#allocation40_spill] sm:$0xff]  ;;  %v12477_v63 = vld [vmem:[#allocation39_spill] sm:$0xff] }
 0x83e   :  { %v4698_v48 = vmul.f32 %v4308_v36, %v12475_v37  ;;  %v3629_v7 = vsub.f32 %v3461_v47, %v3545_v53  ;;  %v3854_v40 = vld [vmem:[%s11963_s10 + $0x70] sm:$0xff]  ;;  %v4750_v16 = vmul.f32 %v4438_v45, %v12477_v63  ;;  %v4021_v37 = vld [vmem:[%s11964_s11 + $0x68] sm:$0xff]  ;;  %v3436_v63 = vmul.f32 0.0051020407, %v9709_v60 }
 0x83f   :  { %5504 = vst [vmem:[%s11965_s12 + $0x220] sm:$0xff] %v5336_v51  ;;  %5505 = vst.msk [vmem:[%s11965_s12 + $0x228] sm:$0xff] %vm1099_vm2, %v5337_v18  ;;  %v4699_v51 = vmul.f32 %v4308_v36, %v12476_v55  ;;  %v3687_v18 = vadd.f32 0.001, %v3603_v28  ;;  %v4214_v54 = vsub.f32 %v4046_v0, %v4130_v33  ;;  %v3938_v47 = vmul.f32 %v6154_v22, %v3854_v40  ;;  %v6156_v33 = vpop.eup %6155 }
 0x840   :  { %v3713_v36 = vadd.f32 0.001, %v3629_v7 }
 0x841   :  { %6157 = vrsqrt.f32 %v3687_v18  ;;  %v3855_v18 = vld [vmem:[%s11963_s10 + $0x78] sm:$0xff] }
 0x842   :  { %4910 = vperm.xlu1 %6068, %v4188_v3   ;;  %v4751_v3 = vmul.f32 %v4438_v45, %v12478_v57  ;;  %v3880_v57 = vld [vmem:[%s11963_s10 + $0x140] sm:$0xff]  ;;  %v4105_v45 = vmul.f32 %v10486_v35, %v10385_v58  ;;  %6159 = vrsqrt.f32 %v3713_v36  ;;  %v4131_v58 = vmul.f32 %v10492_v27, %v10410_v32  ;;  %v4047_v35 = vld [vmem:[%s11964_s11 + $0x138] sm:$0xff]  ;;  %v3881_v32 = vld [vmem:[%s11963_s10 + $0x148] sm:$0xff] }
 0x844   :  { %v4896_v24 = vpop.permute.xlu0 %4895  ;;  %v4215_v55 = vsub.f32 %v4047_v35, %v4131_v58  ;;  %v12482_v35 = vld [vmem:[#allocation44_spill] sm:$0xff] }
 0x845   :  { %v5286_v49 = vadd.f32 %v4896_v24, %v4698_v48  ;;  %v5287_v52 = vadd.f32 %v4896_v24, %v4699_v51  ;;  %v4189_v48 = vsub.f32 %v4021_v37, %v4105_v45 }
 0x846   :  { %5040 = vperm.xlu1 %6068, %v4214_v54   ;;  %v4313_v54 = vpop.permute.xlu1 %4312 }
 0x847   :  { %5454 = vst [vmem:[%s11965_s12 + $0x90] sm:$0xff] %v5286_v49  ;;  %5455 = vst.msk [vmem:[%s11965_s12 + $0x98] sm:$0xff] %vm1099_vm2, %v5287_v52  ;;  %v12479_v49 = vld [vmem:[#allocation164_spill] sm:$0xff] }
 0x848   :  { %v5026_v28 = vpop.permute.xlu0 %5025  ;;  %v10625_v52 = vmul.f32 0.0051020407, %v12479_v49 }
 0x849   :  { %v5338_v0 = vadd.f32 %v5026_v28, %v4750_v16  ;;  %v5339_v53 = vadd.f32 %v5026_v28, %v4751_v3  ;;  %v10604_v16 = vmul.f32 %v6156_v33, %v3880_v57  ;;  %v12480_v28 = vld [vmem:[#allocation166_spill] sm:$0xff] }
 0x84a   :  { %4332 = vperm.xlu1 %6068, %v3938_v47   ;;  %v4443_v22 = vpop.permute.xlu1 %4442  ;;  %v3520_v36 = vmul.f32 %v10625_v52, %v10625_v52  ;;  %v10634_v33 = vmul.f32 0.0051020407, %v12480_v28 }
 0x84b   :  { %5506 = vst [vmem:[%s11965_s12 + $0x230] sm:$0xff] %v5338_v0  ;;  %5507 = vst.msk [vmem:[%s11965_s12 + $0x238] sm:$0xff] %vm1099_vm2, %v5339_v53  ;;  %v6158_v51 = vpop.eup %6157  ;;  %v3462_v53 = vmul.f32 0.0051020407, %v9714_v1  ;;  %v12483_v1 = vld [vmem:[#allocation165_spill] sm:$0xff] }
 0x84c   :  { %v10615_v7 = vmul.f32 %v6158_v51, %v3855_v18  ;;  %v6160_v24 = vpop.eup %6159  ;;  %v4318_v40 = vpop.permute.xlu0 %4317  ;;  %v3604_v0 = vsub.f32 %v3436_v63, %v3520_v36  ;;  %v12484_v63 = vld [vmem:[#allocation43_spill] sm:$0xff]  ;;  %v12485_v36 = vld [vmem:[#allocation45_spill] sm:$0xff] }
 0x84d   :  { %v10621_v27 = vmul.f32 %v6160_v24, %v3881_v32  ;;  %v10649_v32 = vmul.f32 0.0051020407, %v12483_v1  ;;  %v4753_v28 = vmul.f32 %v4443_v22, %v12485_v36 }
 0x84e   :  { %4462 = vperm.xlu1 %6068, %v10604_v16   ;;  %v3688_v60 = vadd.f32 0.001, %v3604_v0  ;;  %v4106_v0 = vmul.f32 %v3938_v47, %v10496_v12  ;;  %v12487_v12 = vld [vmem:[#allocation168_spill] sm:$0xff] }
 0x84f   :  { %4915 = vperm.xlu0 %6067, %v4189_v48   ;;  %v12481_v48 = vld [vmem:[#allocation42_spill] sm:$0xff]  ;;  %v3463_v47 = vmul.f32 0.0051020407, %v12487_v12 }
 0x850   :  { %v4448_v57 = vpop.permute.xlu0 %4447  ;;  %v4700_v58 = vmul.f32 %v4313_v54, %v12481_v48  ;;  %6161 = vrsqrt.f32 %v3688_v60  ;;  %v3521_v60 = vmul.f32 %v10649_v32, %v10649_v32 }
 0x853   :  { %5045 = vperm.xlu0 %6067, %v4215_v55   ;;  %v4701_v55 = vmul.f32 %v4313_v54, %v12482_v35 }
 0x857   :  { %4337 = vperm.xlu0 %6067, %v10615_v7  }
 0x85b   :  { %4467 = vperm.xlu0 %6067, %v10621_v27  }
 0x872   :  { %2822 = vadd.xlane.f32.xlu1 %v10354_v30  ;;  %v3546_v30 = vmul.f32 %v10634_v33, %v10634_v33 }
 0x874   :  { %v3630_v37 = vsub.f32 %v3462_v53, %v3546_v30 }
 0x875   :  { %v10629_v3 = vpop.xlane.xlu1 %2806 }
 0x876   :  { %3410 = vadd.xlane.f32.xlu1 %v10414_v59  ;;  %v3714_v49 = vadd.f32 0.001, %v3630_v37  ;;  %v12486_v37 = vld [vmem:[#allocation167_spill] sm:$0xff] }
 0x877   :  { %v10668_v48 = vmul.f32 0.0051020407, %v12486_v37 }
 0x878   :  { %6163 = vrsqrt.f32 %v3714_v49  ;;  %v12489_v49 = vld [vmem:[#allocation48_spill] sm:$0xff] }
 0x879   :  { %v10638_v45 = vpop.xlane.xlu1 %3394 }
 0x87a   :  { %2826 = vadd.xlane.f32.xlu0 %v10443_v61  ;;  %v4752_v61 = vmul.f32 %v4443_v22, %v12484_v63  ;;  %v4022_v22 = vld [vmem:[%s11964_s11 + $0x70] sm:$0xff]  ;;  %v4703_v63 = vmul.f32 %v4318_v40, %v12489_v49 }
 0x87b   :  { %v4190_v35 = vsub.f32 %v4022_v22, %v4106_v0  ;;  %v12491_v22 = vld [vmem:[#allocation49_spill] sm:$0xff] }
 0x87d   :  { %v4901_v51 = vpop.permute.xlu1 %4900  ;;  %v10645_v18 = vpop.xlane.xlu0 %2810 }
 0x87e   :  { %v5288_v59 = vadd.f32 %v4901_v51, %v4700_v58  ;;  %v5289_v24 = vadd.f32 %v4901_v51, %v4701_v55  ;;  %3414 = vadd.xlane.f32.xlu0 %v10455_v17  ;;  %v3437_v17 = vmul.f32 0.0051020407, %v9711_v20  ;;  %v4132_v55 = vmul.f32 %v10604_v16, %v10507_v15  ;;  %v4048_v51 = vld [vmem:[%s11964_s11 + $0x140] sm:$0xff]  ;;  %v12490_v16 = vld [vmem:[#allocation47_spill] sm:$0xff] }
 0x87f   :  { %v3856_v15 = vld [vmem:[%s11963_s10 + $0x80] sm:$0xff] }
 0x880   :  { %5456 = vst [vmem:[%s11965_s12 + $0xa0] sm:$0xff] %v5288_v59  ;;  %5457 = vst.msk [vmem:[%s11965_s12 + $0xa8] sm:$0xff] %vm1099_vm2, %v5289_v24  ;;  %v3605_v20 = vsub.f32 %v3437_v17, %v3521_v60  ;;  %v3547_v59 = vmul.f32 %v10668_v48, %v10668_v48  ;;  %v12488_v24 = vld [vmem:[#allocation46_spill] sm:$0xff]  ;;  %v4216_v17 = vsub.f32 %v4048_v51, %v4132_v55 }
 0x881   :  { %v5031_v54 = vpop.permute.xlu1 %5030  ;;  %v10670_v58 = vpop.xlane.xlu0 %3398  ;;  %v4702_v1 = vmul.f32 %v4318_v40, %v12488_v24  ;;  %v4755_v60 = vmul.f32 %v4448_v57, %v12491_v22  ;;  %v4107_v55 = vmul.f32 %v10615_v7, %v10533_v50  ;;  %v12492_v51 = vld [vmem:[#allocation170_spill] sm:$0xff]  ;;  %v4023_v24 = vld [vmem:[%s11964_s11 + $0x78] sm:$0xff] }
 0x882   :  { %v5340_v53 = vadd.f32 %v5031_v54, %v4752_v61  ;;  %v5341_v30 = vadd.f32 %v5031_v54, %v4753_v28  ;;  %v3689_v61 = vadd.f32 0.001, %v3605_v20  ;;  %v3631_v36 = vsub.f32 %v3463_v47, %v3547_v59  ;;  %v6162_v54 = vpop.eup %6161 }
 0x883   :  { %v10701_v20 = vmul.f32 %v6162_v54, %v3856_v15  ;;  %v6164_v12 = vpop.eup %6163  ;;  %v2851_v59 = vmul.f32 0.0051020407, %v12492_v51  ;;  %v4191_v49 = vsub.f32 %v4023_v24, %v4107_v55  ;;  %v4025_v51 = vld [vmem:[%s11964_s11 + $0x88] sm:$0xff]  ;;  %v12497_v24 = vld [vmem:[#allocation182_spill] sm:$0xff] }
 0x884   :  { %5508 = vst [vmem:[%s11965_s12 + $0x240] sm:$0xff] %v5340_v53  ;;  %5509 = vst.msk [vmem:[%s11965_s12 + $0x248] sm:$0xff] %vm1099_vm2, %v5341_v30  ;;  %v4754_v30 = vmul.f32 %v4448_v57, %v12490_v16  ;;  %6165 = vrsqrt.f32 %v3689_v61  ;;  %v3715_v40 = vadd.f32 0.001, %v3631_v36  ;;  %v3882_v57 = vld [vmem:[%s11963_s10 + $0x150] sm:$0xff] }
 0x885   :  { %v10721_v7 = vmul.f32 %v6164_v12, %v3882_v57  ;;  %v3523_v61 = vmul.f32 %v2851_v59, %v2851_v59  ;;  %v12494_v36 = vld [vmem:[#allocation172_spill] sm:$0xff]  ;;  %v12496_v57 = vld [vmem:[#allocation178_spill] sm:$0xff] }
 0x886   :  { %6167 = vrsqrt.f32 %v3715_v40  ;;  %v10739_v55 = vmul.f32 0.0051020407, %v12496_v57  ;;  %v4027_v57 = vld [vmem:[%s11964_s11 + $0x98] sm:$0xff] }
 0x887   :  { %4920 = vperm.xlu1 %6068, %v4190_v35  }
 0x889   :  { %v4906_v28 = vpop.permute.xlu0 %4905 }
 0x88a   :  { %v5290_v0 = vadd.f32 %v4906_v28, %v4702_v1  ;;  %v5291_v53 = vadd.f32 %v4906_v28, %v4703_v63  ;;  %v12493_v1 = vld [vmem:[#allocation174_spill] sm:$0xff]  ;;  %v4133_v63 = vmul.f32 %v10621_v27, %v10556_v14  ;;  %v2877_v28 = vmul.f32 0.0051020407, %v12494_v36  ;;  %v3857_v14 = vld [vmem:[%s11963_s10 + $0x88] sm:$0xff] }
 0x88b   :  { %5050 = vperm.xlu1 %6068, %v4216_v17   ;;  %v3439_v50 = vmul.f32 0.0051020407, %v12493_v1  ;;  %v4049_v17 = vld [vmem:[%s11964_s11 + $0x148] sm:$0xff]  ;;  %v3441_v1 = vmul.f32 0.0051020407, %v12497_v24  ;;  %v12501_v24 = vld [vmem:[#allocation192_spill] sm:$0xff] }
 0x88c   :  { %5458 = vst [vmem:[%s11965_s12 + $0xb0] sm:$0xff] %v5290_v0  ;;  %5459 = vst.msk [vmem:[%s11965_s12 + $0xb8] sm:$0xff] %vm1099_vm2, %v5291_v53  ;;  %v12495_v0 = vld [vmem:[#allocation176_spill] sm:$0xff]  ;;  %v4217_v15 = vsub.f32 %v4049_v17, %v4133_v63  ;;  %v3525_v63 = vmul.f32 %v10739_v55, %v10739_v55 }
 0x88d   :  { %v5036_v37 = vpop.permute.xlu0 %5035  ;;  %v3607_v54 = vsub.f32 %v3439_v50, %v3523_v61  ;;  %v3465_v53 = vmul.f32 0.0051020407, %v12495_v0  ;;  %v12498_v61 = vld [vmem:[#allocation180_spill] sm:$0xff] }
 0x88e   :  { %v5342_v47 = vadd.f32 %v5036_v37, %v4754_v30  ;;  %v5343_v35 = vadd.f32 %v5036_v37, %v4755_v60  ;;  %v6166_v16 = vpop.eup %6165  ;;  %v3549_v30 = vmul.f32 %v2877_v28, %v2877_v28  ;;  %v3883_v37 = vld [vmem:[%s11963_s10 + $0x158] sm:$0xff]  ;;  %v10749_v36 = vmul.f32 0.0051020407, %v12498_v61  ;;  %v12502_v61 = vld [vmem:[#allocation188_spill] sm:$0xff] }
 0x88f   :  { %4342 = vperm.xlu1 %6068, %v10701_v20   ;;  %v3691_v27 = vadd.f32 0.001, %v3607_v54  ;;  %v3941_v60 = vmul.f32 %v6166_v16, %v3857_v14  ;;  %v3609_v17 = vsub.f32 %v3441_v1, %v3525_v63  ;;  %v12499_v54 = vld [vmem:[#allocation184_spill] sm:$0xff]  ;;  %v3443_v1 = vmul.f32 0.0051020407, %v12501_v24 }
 0x890   :  { %5510 = vst [vmem:[%s11965_s12 + $0x250] sm:$0xff] %v5342_v47  ;;  %5511 = vst.msk [vmem:[%s11965_s12 + $0x258] sm:$0xff] %vm1099_vm2, %v5343_v35  ;;  %v3633_v22 = vsub.f32 %v3465_v53, %v3549_v30  ;;  %v6168_v40 = vpop.eup %6167  ;;  %v3467_v0 = vmul.f32 0.0051020407, %v12499_v54  ;;  %v3551_v16 = vmul.f32 %v10749_v36, %v10749_v36  ;;  %v12503_v54 = vld [vmem:[#allocation194_spill] sm:$0xff] }
 0x891   :  { %6169 = vrsqrt.f32 %v3691_v27  ;;  %v3967_v47 = vmul.f32 %v6168_v40, %v3883_v37  ;;  %v4109_v35 = vmul.f32 %v3941_v60, %v10649_v32  ;;  %v4051_v32 = vld [vmem:[%s11964_s11 + $0x158] sm:$0xff]  ;;  %v3693_v30 = vadd.f32 0.001, %v3609_v17 }
 0x892   :  { %v3717_v12 = vadd.f32 0.001, %v3633_v22  ;;  %v3635_v14 = vsub.f32 %v3467_v0, %v3551_v16  ;;  %v3469_v0 = vmul.f32 0.0051020407, %v12503_v54 }
 0x893   :  { %4472 = vperm.xlu1 %6068, %v10721_v7   ;;  %v4193_v50 = vsub.f32 %v4025_v51, %v4109_v35  ;;  %v4323_v51 = vpop.permute.xlu1 %4322 }
 0x894   :  { %4925 = vperm.xlu0 %6067, %v4191_v49   ;;  %6171 = vrsqrt.f32 %v3717_v12  ;;  %v4135_v49 = vmul.f32 %v3967_v47, %v10668_v48  ;;  %v3859_v48 = vld [vmem:[%s11963_s10 + $0x98] sm:$0xff]  ;;  %v3719_v40 = vadd.f32 0.001, %v3635_v14  ;;  %v3861_v14 = vld [vmem:[%s11963_s10 + $0xa8] sm:$0xff] }
 0x895   :  { %6173 = vrsqrt.f32 %v3693_v30 }
 0x896   :  { %v4219_v53 = vsub.f32 %v4051_v32, %v4135_v49  ;;  %6175 = vrsqrt.f32 %v3719_v40  ;;  %v10773_v32 = vmul.f32 0.0051020407, %v12502_v61 }
 0x897   :  { %v4453_v16 = vpop.permute.xlu1 %4452 }
 0x898   :  { %5055 = vperm.xlu0 %6067, %v4217_v15   ;;  %v3553_v30 = vmul.f32 %v10773_v32, %v10773_v32 }
 0x89b   :  { %v6170_v15 = vpop.eup %6169 }
 0x89c   :  { %4347 = vperm.xlu0 %6067, %v3941_v60   ;;  %v3943_v27 = vmul.f32 %v6170_v15, %v3859_v48  ;;  %v3885_v60 = vld [vmem:[%s11963_s10 + $0x168] sm:$0xff] }
 0x89e   :  { %v6172_v22 = vpop.eup %6171  ;;  %v4111_v12 = vmul.f32 %v3943_v27, %v2851_v59  ;;  %v4053_v59 = vld [vmem:[%s11964_s11 + $0x168] sm:$0xff] }
 0x89f   :  { %v3969_v37 = vmul.f32 %v6172_v22, %v3885_v60  ;;  %v10789_v60 = vpop.permute.xlu0 %4327 }
 0x8a0   :  { %4477 = vperm.xlu0 %6067, %v3967_v47   ;;  %v12500_v47 = vld [vmem:[#allocation186_spill] sm:$0xff] }
 0x8a1   :  { %v10764_v35 = vmul.f32 0.0051020407, %v12500_v47  ;;  %v4137_v49 = vmul.f32 %v3969_v37, %v2877_v28  ;;  %v6174_v28 = vpop.eup %6173 }
 0x8a2   :  { %v6176_v24 = vpop.eup %6175 }
 0x8a3   :  { %v3527_v63 = vmul.f32 %v10764_v35, %v10764_v35  ;;  %v4221_v48 = vsub.f32 %v4053_v59, %v4137_v49 }
 0x8a4   :  { %4935 = vperm.xlu0 %6067, %v4193_v50   ;;  %v4195_v50 = vsub.f32 %v4027_v57, %v4111_v12  ;;  %v3945_v57 = vmul.f32 %v6174_v28, %v3861_v14 }
 0x8a5   :  { %v3611_v17 = vsub.f32 %v3443_v1, %v3527_v63  ;;  %v12506_v1 = vld [vmem:[#allocation171_spill] sm:$0xff] }
 0x8a6   :  { %v12507_v63 = vld [vmem:[#allocation175_spill] sm:$0xff] }
 0x8a7   :  { %v3695_v40 = vadd.f32 0.001, %v3611_v17  ;;  %v3464_v61 = vmul.f32 0.0051020407, %v12507_v63  ;;  %v12508_v17 = vld [vmem:[#allocation148_spill] sm:$0xff] }
 0x8a8   :  { %5065 = vperm.xlu0 %6067, %v4219_v53   ;;  %v12504_v53 = vld [vmem:[#allocation169_spill] sm:$0xff]  ;;  %v10804_v54 = vmul.f32 0.0051020407, %v12508_v17 }
 0x8a9   :  { %v10780_v15 = vmul.f32 0.0051020407, %v12504_v53  ;;  %6177 = vrsqrt.f32 %v3695_v40 }
 0x8ab   :  { %v3522_v12 = vmul.f32 %v10780_v15, %v10780_v15 }
 0x8ac   :  { %4357 = vperm.xlu0 %6067, %v3943_v27   ;;  %v12505_v27 = vld [vmem:[#allocation173_spill] sm:$0xff] }
 0x8ad   :  { %v3438_v22 = vmul.f32 0.0051020407, %v12505_v27  ;;  %v12509_v27 = vld [vmem:[#allocation156_spill] sm:$0xff] }
 0x8af   :  { %v3606_v49 = vsub.f32 %v3438_v22, %v3522_v12  ;;  %v3445_v22 = vmul.f32 0.0051020407, %v12509_v27 }
 0x8b0   :  { %4487 = vperm.xlu0 %6067, %v3969_v37   ;;  %v3637_v37 = vsub.f32 %v3469_v0, %v3553_v30  ;;  %v10806_v0 = vpop.permute.xlu0 %4457  ;;  %v4029_v30 = vld [vmem:[%s11964_s11 + $0xa8] sm:$0xff] }
 0x8b1   :  { %v3690_v14 = vadd.f32 0.001, %v3606_v49  ;;  %v10825_v49 = vmul.f32 0.0051020407, %v12512_v42 }
 0x8b2   :  { %v3721_v59 = vadd.f32 0.001, %v3637_v37  ;;  %v12510_v37 = vld [vmem:[#allocation50_spill] sm:$0xff] }
 0x8b3   :  { %v4704_v12 = vmul.f32 %v4323_v51, %v12510_v37  ;;  %v12514_v37 = vld [vmem:[#allocation51_spill] sm:$0xff] }
 0x8b4   :  { %4945 = vperm.xlu0 %6067, %v4195_v50   ;;  %v3887_v50 = vld [vmem:[%s11963_s10 + $0x178] sm:$0xff]  ;;  %6179 = vrsqrt.f32 %v3721_v59  ;;  %v4108_v59 = vmul.f32 %v10701_v20, %v10625_v52 }
 0x8b5   :  { %6181 = vrsqrt.f32 %v3690_v14  ;;  %v12516_v14 = vld [vmem:[#allocation177_spill] sm:$0xff] }
 0x8b7   :  { %2830 = vadd.xlane.f32.xlu1 %v10516_v2  ;;  %v10796_v2 = vmul.f32 0.0051020407, %v12506_v1  ;;  %v12511_v1 = vld [vmem:[#allocation52_spill] sm:$0xff] }
 0x8b8   :  { %5075 = vperm.xlu0 %6067, %v4221_v48   ;;  %v3971_v48 = vmul.f32 %v6176_v24, %v3887_v50  ;;  %v4705_v63 = vmul.f32 %v4323_v51, %v12511_v1 }
 0x8b9   :  { %v3548_v28 = vmul.f32 %v10796_v2, %v10796_v2 }
 0x8ba   :  { %v10793_v47 = vpop.xlane.xlu1 %2814  ;;  %v4139_v17 = vmul.f32 %v3971_v48, %v10749_v36  ;;  %v4756_v36 = vmul.f32 %v4453_v16, %v12514_v37  ;;  %v12519_v37 = vld [vmem:[#allocation179_spill] sm:$0xff] }
 0x8bb   :  { %3418 = vadd.xlane.f32.xlu1 %v10551_v39  ;;  %v4113_v39 = vmul.f32 %v3945_v57, %v10739_v55  ;;  %v3632_v40 = vsub.f32 %v3464_v61, %v3548_v28  ;;  %v3529_v55 = vmul.f32 %v10804_v54, %v10804_v54  ;;  %v4055_v61 = vld [vmem:[%s11964_s11 + $0x178] sm:$0xff] }
 0x8bc   :  { %4367 = vperm.xlu0 %6067, %v3945_v57   ;;  %v12513_v28 = vld [vmem:[#allocation153_spill] sm:$0xff]  ;;  %v4223_v20 = vsub.f32 %v4055_v61, %v4139_v17 }
 0x8bd   :  { %v4197_v24 = vsub.f32 %v4029_v30, %v4113_v39  ;;  %v3613_v51 = vsub.f32 %v3445_v22, %v3529_v55  ;;  %v3716_v39 = vadd.f32 0.001, %v3632_v40  ;;  %v3471_v30 = vmul.f32 0.0051020407, %v12513_v28  ;;  %v4024_v40 = vld [vmem:[%s11964_s11 + $0x80] sm:$0xff]  ;;  %v3863_v55 = vld [vmem:[%s11963_s10 + $0xb8] sm:$0xff] }
 0x8be   :  { %v10808_v53 = vpop.xlane.xlu1 %3402  ;;  %v10843_v22 = vmul.f32 0.0051020407, %v12516_v14  ;;  %v4192_v61 = vsub.f32 %v4024_v40, %v4108_v59  ;;  %v3889_v14 = vld [vmem:[%s11963_s10 + $0x188] sm:$0xff]  ;;  %v4050_v59 = vld [vmem:[%s11964_s11 + $0x150] sm:$0xff] }
 0x8bf   :  { %6183 = vrsqrt.f32 %v3716_v39  ;;  %v4134_v39 = vmul.f32 %v10721_v7, %v10634_v33  ;;  %v12522_v33 = vld [vmem:[#allocation201_spill] sm:$0xff] }
 0x8c0   :  { %4497 = vperm.xlu0 %6067, %v3971_v48   ;;  %v12515_v48 = vld [vmem:[#allocation53_spill] sm:$0xff]  ;;  %v3524_v28 = vmul.f32 %v10843_v22, %v10843_v22  ;;  %v3473_v7 = vmul.f32 0.0051020407, %v12522_v33 }
 0x8c1   :  { %v4757_v42 = vmul.f32 %v4453_v16, %v12515_v48  ;;  %v3555_v16 = vmul.f32 %v10825_v49, %v10825_v49  ;;  %v12520_v48 = vld [vmem:[#allocation101_spill] sm:$0xff] }
 0x8c2   :  { %v4911_v57 = vpop.permute.xlu1 %4910  ;;  %v10821_v50 = vpop.xlane.xlu0 %2818  ;;  %v4031_v33 = vld [vmem:[%s11964_s11 + $0xb8] sm:$0xff] }
 0x8c3   :  { %v5292_v27 = vadd.f32 %v4911_v57, %v4704_v12  ;;  %v5293_v9 = vadd.f32 %v4911_v57, %v4705_v63  ;;  %v6178_v12 = vpop.eup %6177  ;;  %v3639_v17 = vsub.f32 %v3471_v30, %v3555_v16  ;;  %v12523_v16 = vld [vmem:[#allocation54_spill] sm:$0xff] }
 0x8c4   :  { %4955 = vperm.xlu0 %6067, %v4197_v24   ;;  %v3697_v24 = vadd.f32 0.001, %v3613_v51  ;;  %v10866_v51 = vmul.f32 0.0051020407, %v12519_v37  ;;  %v6180_v30 = vpop.eup %6179 }
 0x8c5   :  { %5460 = vst [vmem:[%s11965_s12 + $0xc0] sm:$0xff] %v5292_v27  ;;  %5461 = vst.msk [vmem:[%s11965_s12 + $0xc8] sm:$0xff] %vm1099_vm2, %v5293_v9  ;;  %v12517_v9 = vld [vmem:[#allocation181_spill] sm:$0xff] }
 0x8c6   :  { %v5041_v52 = vpop.permute.xlu1 %5040  ;;  %v3440_v57 = vmul.f32 0.0051020407, %v12517_v9  ;;  %v10854_v27 = vpop.xlane.xlu0 %3406  ;;  %6185 = vrsqrt.f32 %v3697_v24  ;;  %v3550_v37 = vmul.f32 %v10866_v51, %v10866_v51 }
 0x8c7   :  { %v5344_v1 = vadd.f32 %v5041_v52, %v4756_v36  ;;  %v5345_v63 = vadd.f32 %v5041_v52, %v4757_v42  ;;  %12518 = vst [vmem:[#allocation17_spill] sm:$0xff] %v10854_v27  ;;  %v3947_v36 = vmul.f32 %v6178_v12, %v3863_v55  ;;  %v10871_v42 = vmul.f32 0.0051020407, %v12520_v48  ;;  %v6182_v9 = vpop.eup %6181 }
 0x8c8   :  { %5085 = vperm.xlu0 %6067, %v4223_v20   ;;  %v3608_v52 = vsub.f32 %v3440_v57, %v3524_v28  ;;  %v12521_v20 = vld [vmem:[#allocation183_spill] sm:$0xff]  ;;  %v3723_v12 = vadd.f32 0.001, %v3639_v17  ;;  %v3973_v57 = vmul.f32 %v6180_v30, %v3889_v14  ;;  %v4218_v28 = vsub.f32 %v4050_v59, %v4134_v39  ;;  %v12526_v30 = vld [vmem:[#allocation57_spill] sm:$0xff] }
 0x8c9   :  { %5512 = vst [vmem:[%s11965_s12 + $0x260] sm:$0xff] %v5344_v1  ;;  %5513 = vst.msk [vmem:[%s11965_s12 + $0x268] sm:$0xff] %vm1099_vm2, %v5345_v63  ;;  %v3466_v40 = vmul.f32 0.0051020407, %v12521_v20  ;;  %v4706_v1 = vmul.f32 %v10789_v60, %v12523_v16  ;;  %v12524_v63 = vld [vmem:[#allocation56_spill] sm:$0xff]  ;;  %v4115_v24 = vmul.f32 %v3947_v36, %v10764_v35  ;;  %v3557_v17 = vmul.f32 %v10871_v42, %v10871_v42  ;;  %v12525_v35 = vld [vmem:[#allocation55_spill] sm:$0xff] }
 0x8ca   :  { %v4707_v55 = vmul.f32 %v10789_v60, %v12524_v63  ;;  %v3858_v60 = vld [vmem:[%s11963_s10 + $0x90] sm:$0xff]  ;;  %v3692_v16 = vadd.f32 0.001, %v3608_v52  ;;  %6187 = vrsqrt.f32 %v3723_v12  ;;  %v4759_v14 = vmul.f32 %v10806_v0, %v12526_v30 }
 0x8cb   :  { %v3634_v63 = vsub.f32 %v3466_v40, %v3550_v37  ;;  %v3641_v39 = vsub.f32 %v3473_v7, %v3557_v17  ;;  %v4199_v52 = vsub.f32 %v4031_v33, %v4115_v24  ;;  %v3942_v40 = vmul.f32 %v6182_v9, %v3858_v60  ;;  %v6184_v7 = vpop.eup %6183  ;;  %v12529_v60 = vld [vmem:[#allocation185_spill] sm:$0xff] }
 0x8cc   :  { %4377 = vperm.xlu0 %6067, %v3947_v36   ;;  %4930 = vperm.xlu1 %6068, %v4192_v61   ;;  %v4758_v36 = vmul.f32 %v10806_v0, %v12525_v35  ;;  %v4141_v12 = vmul.f32 %v3973_v57, %v10773_v32  ;;  %6189 = vrsqrt.f32 %v3692_v16  ;;  %v12528_v32 = vld [vmem:[#allocation205_spill] sm:$0xff]  ;;  %v4026_v35 = vld [vmem:[%s11964_s11 + $0x90] sm:$0xff] }
 0x8cd   :  { %v3718_v17 = vadd.f32 0.001, %v3634_v63  ;;  %v3725_v9 = vadd.f32 0.001, %v3641_v39  ;;  %v4110_v33 = vmul.f32 %v3942_v40, %v10780_v15  ;;  %v10927_v63 = vmul.f32 0.0051020407, %v12529_v60 }
 0x8ce   :  { %v4916_v48 = vpop.permute.xlu0 %4915  ;;  %v3865_v39 = vld [vmem:[%s11963_s10 + $0xc8] sm:$0xff] }
 0x8cf   :  { %v5294_v61 = vadd.f32 %v4916_v48, %v4706_v1  ;;  %v5295_v20 = vadd.f32 %v4916_v48, %v4707_v55  ;;  %v12527_v1 = vld [vmem:[#allocation203_spill] sm:$0xff]  ;;  %6191 = vrsqrt.f32 %v3718_v17  ;;  %v12533_v17 = vld [vmem:[#allocation193_spill] sm:$0xff] }
 0x8d0   :  { %4507 = vperm.xlu0 %6067, %v3973_v57   ;;  %5060 = vperm.xlu1 %6068, %v4218_v28   ;;  %v10909_v55 = vmul.f32 0.0051020407, %v12527_v1  ;;  %v4057_v48 = vld [vmem:[%s11964_s11 + $0x188] sm:$0xff]  ;;  %v3884_v28 = vld [vmem:[%s11963_s10 + $0x160] sm:$0xff]  ;;  %v3475_v57 = vmul.f32 0.0051020407, %v12528_v32  ;;  %v6186_v24 = vpop.eup %6185  ;;  %6193 = vrsqrt.f32 %v3725_v9  ;;  %v3526_v1 = vmul.f32 %v10927_v63, %v10927_v63 }
 0x8d1   :  { %5462 = vst [vmem:[%s11965_s12 + $0xd0] sm:$0xff] %v5294_v61  ;;  %5463 = vst.msk [vmem:[%s11965_s12 + $0xd8] sm:$0xff] %vm1099_vm2, %v5295_v20  ;;  %v4225_v61 = vsub.f32 %v4057_v48, %v4141_v12  ;;  %v3968_v20 = vmul.f32 %v6184_v7, %v3884_v28  ;;  %v3891_v48 = vld [vmem:[%s11963_s10 + $0x198] sm:$0xff]  ;;  %v4052_v28 = vld [vmem:[%s11964_s11 + $0x160] sm:$0xff]  ;;  %v3468_v9 = vmul.f32 0.0051020407, %v12533_v17 }
 0x8d2   :  { %v5046_v59 = vpop.permute.xlu0 %5045  ;;  %v3559_v16 = vmul.f32 %v10909_v55, %v10909_v55  ;;  %v3893_v17 = vld [vmem:[%s11963_s10 + $0x1a8] sm:$0xff] }
 0x8d3   :  { %v5346_v37 = vadd.f32 %v5046_v59, %v4758_v36  ;;  %v5347_v0 = vadd.f32 %v5046_v59, %v4759_v14  ;;  %v12530_v36 = vld [vmem:[#allocation189_spill] sm:$0xff]  ;;  %v12531_v14 = vld [vmem:[#allocation187_spill] sm:$0xff]  ;;  %v4136_v12 = vmul.f32 %v3968_v20, %v10796_v2 }
 0x8d4   :  { %4965 = vperm.xlu0 %6067, %v4199_v52   ;;  %4352 = vperm.xlu1 %6068, %v3942_v40   ;;  %v3442_v30 = vmul.f32 0.0051020407, %v12530_v36  ;;  %v3643_v15 = vsub.f32 %v3475_v57, %v3559_v16  ;;  %v10939_v59 = vmul.f32 0.0051020407, %v12531_v14  ;;  %v3949_v52 = vmul.f32 %v6186_v24, %v3865_v39  ;;  %v6188_v7 = vpop.eup %6187  ;;  %v12534_v57 = vld [vmem:[#allocation211_spill] sm:$0xff]  ;;  %v3860_v36 = vld [vmem:[%s11963_s10 + $0xa0] sm:$0xff] }
 0x8d5   :  { %5514 = vst [vmem:[%s11965_s12 + $0x270] sm:$0xff] %v5346_v37  ;;  %5515 = vst.msk [vmem:[%s11965_s12 + $0x278] sm:$0xff] %vm1099_vm2, %v5347_v0  ;;  %v4194_v40 = vsub.f32 %v4026_v35, %v4110_v33  ;;  %v12532_v37 = vld [vmem:[#allocation207_spill] sm:$0xff]  ;;  %v3477_v24 = vmul.f32 0.0051020407, %v12534_v57  ;;  %v4220_v33 = vsub.f32 %v4052_v28, %v4136_v12  ;;  %v3886_v28 = vld [vmem:[%s11963_s10 + $0x170] sm:$0xff] }
 0x8d6   :  { %v10945_v0 = vmul.f32 0.0051020407, %v12532_v37  ;;  %v3610_v2 = vsub.f32 %v3442_v30, %v3526_v1  ;;  %v3727_v32 = vadd.f32 0.001, %v3643_v15  ;;  %v4117_v60 = vmul.f32 %v3949_v52, %v10804_v54  ;;  %v6190_v16 = vpop.eup %6189  ;;  %v4033_v35 = vld [vmem:[%s11964_s11 + $0xc8] sm:$0xff]  ;;  %v12535_v1 = vld [vmem:[#allocation213_spill] sm:$0xff] }
 0x8d7   :  { %v10968_v37 = vmul.f32 0.0051020407, %v12535_v1  ;;  %v12537_v57 = vld [vmem:[#allocation216_spill] sm:$0xff]  ;;  %v12540_v1 = vld [vmem:[#allocation157_spill] sm:$0xff] }
 0x8d8   :  { %5095 = vperm.xlu0 %6067, %v4225_v61   ;;  %4482 = vperm.xlu1 %6068, %v3968_v20   ;;  %v3552_v61 = vmul.f32 %v10939_v59, %v10939_v59  ;;  %v3975_v20 = vmul.f32 %v6188_v7, %v3891_v48  ;;  %v3561_v39 = vmul.f32 %v10945_v0, %v10945_v0  ;;  %v3694_v15 = vadd.f32 0.001, %v3610_v2  ;;  %v4059_v48 = vld [vmem:[%s11964_s11 + $0x198] sm:$0xff] }
 0x8d9   :  { %6195 = vrsqrt.f32 %v3727_v32  ;;  %v4201_v54 = vsub.f32 %v4033_v35, %v4117_v60  ;;  %v3563_v35 = vmul.f32 %v10968_v37, %v10968_v37 }
 0x8da   :  { %v3636_v30 = vsub.f32 %v3468_v9, %v3552_v61  ;;  %v3645_v14 = vsub.f32 %v3477_v24, %v3561_v39  ;;  %v4143_v12 = vmul.f32 %v3975_v20, %v10825_v49  ;;  %6197 = vrsqrt.f32 %v3694_v15  ;;  %v12536_v49 = vld [vmem:[#allocation147_spill] sm:$0xff] }
 0x8db   :  { %v10980_v2 = vmul.f32 0.0051020407, %v12536_v49  ;;  %v3479_v24 = vmul.f32 0.0051020407, %v12537_v57 }
 0x8dc   :  { %4387 = vperm.xlu0 %6067, %v3949_v52   ;;  %4940 = vperm.xlu1 %6068, %v4194_v40   ;;  %v6192_v40 = vpop.eup %6191  ;;  %v3944_v52 = vmul.f32 %v6190_v16, %v3860_v36  ;;  %v3720_v9 = vadd.f32 0.001, %v3636_v30  ;;  %v3729_v32 = vadd.f32 0.001, %v3645_v14  ;;  %v4227_v61 = vsub.f32 %v4059_v48, %v4143_v12  ;;  %v12538_v16 = vld [vmem:[#allocation150_spill] sm:$0xff]  ;;  %v12539_v14 = vld [vmem:[#allocation197_spill] sm:$0xff] }
 0x8dd   :  { %v6194_v7 = vpop.eup %6193  ;;  %v3444_v39 = vmul.f32 0.0051020407, %v12538_v16  ;;  %v4028_v36 = vld [vmem:[%s11964_s11 + $0xa0] sm:$0xff]  ;;  %v3528_v30 = vmul.f32 %v10980_v2, %v10980_v2  ;;  %v3647_v15 = vsub.f32 %v3479_v24, %v3563_v35  ;;  %v10998_v48 = vmul.f32 0.0051020407, %v12540_v1  ;;  %v4063_v1 = vld [vmem:[%s11964_s11 + $0x1b8] sm:$0xff] }
 0x8de   :  { %v4112_v60 = vmul.f32 %v3944_v52, %v10843_v22  ;;  %6199 = vrsqrt.f32 %v3720_v9  ;;  %v3895_v9 = vld [vmem:[%s11963_s10 + $0x1b8] sm:$0xff] }
 0x8df   :  { %6201 = vrsqrt.f32 %v3729_v32  ;;  %v12542_v32 = vld [vmem:[#allocation155_spill] sm:$0xff]  ;;  %v3565_v35 = vmul.f32 %v10998_v48, %v10998_v48 }
 0x8e0   :  { %4517 = vperm.xlu0 %6067, %v3975_v20   ;;  %5070 = vperm.xlu1 %6068, %v4220_v33   ;;  %v3970_v20 = vmul.f32 %v6192_v40, %v3886_v28  ;;  %v3977_v33 = vmul.f32 %v6194_v7, %v3893_v17  ;;  %v10993_v40 = vmul.f32 0.0051020407, %v12539_v14  ;;  %v4196_v22 = vsub.f32 %v4028_v36, %v4112_v60  ;;  %v4061_v28 = vld [vmem:[%s11964_s11 + $0x1a8] sm:$0xff]  ;;  %v4054_v17 = vld [vmem:[%s11964_s11 + $0x170] sm:$0xff] }
 0x8e1   :  { %v3612_v7 = vsub.f32 %v3444_v39, %v3528_v30  ;;  %v3481_v57 = vmul.f32 0.0051020407, %v12542_v32  ;;  %v3862_v36 = vld [vmem:[%s11963_s10 + $0xb0] sm:$0xff]  ;;  %v11035_v32 = vpop.permute.xlu1 %4332 }
 0x8e2   :  { %v3554_v24 = vmul.f32 %v10993_v40, %v10993_v40  ;;  %v4708_v41 = vmul.f32 %v11035_v32, %v12555_v62 }
 0x8e3   :  { %v6196_v12 = vpop.eup %6195  ;;  %v3696_v39 = vadd.f32 0.001, %v3612_v7  ;;  %v3649_v30 = vsub.f32 %v3481_v57, %v3565_v35 }
 0x8e4   :  { %4975 = vperm.xlu0 %6067, %v4201_v54   ;;  %4362 = vperm.xlu1 %6068, %v3944_v52   ;;  %v4145_v54 = vmul.f32 %v3977_v33, %v10871_v42  ;;  %v4138_v52 = vmul.f32 %v3970_v20, %v10866_v51  ;;  %v12541_v42 = vld [vmem:[#allocation149_spill] sm:$0xff]  ;;  %v3731_v51 = vadd.f32 0.001, %v3647_v15  ;;  %v3979_v60 = vmul.f32 %v6196_v12, %v3895_v9  ;;  %v6198_v16 = vpop.eup %6197  ;;  %v12543_v12 = vld [vmem:[#allocation158_spill] sm:$0xff]  ;;  %v12544_v9 = vld [vmem:[#allocation199_spill] sm:$0xff] }
 0x8e5   :  { %v3470_v49 = vmul.f32 0.0051020407, %v12541_v42  ;;  %v3946_v14 = vmul.f32 %v6198_v16, %v3862_v36  ;;  %v11023_v7 = vmul.f32 0.0051020407, %v12543_v12  ;;  %v3733_v42 = vadd.f32 0.001, %v3649_v30 }
 0x8e6   :  { %6203 = vrsqrt.f32 %v3731_v51 }
 0x8e7   :  { %6205 = vrsqrt.f32 %v3696_v39  ;;  %v4114_v39 = vmul.f32 %v3946_v14, %v10927_v63  ;;  %v3567_v35 = vmul.f32 %v11023_v7, %v11023_v7 }
 0x8e8   :  { %5105 = vperm.xlu0 %6067, %v4227_v61   ;;  %4492 = vperm.xlu1 %6068, %v3970_v20   ;;  %v4229_v61 = vsub.f32 %v4061_v28, %v4145_v54  ;;  %v4222_v20 = vsub.f32 %v4054_v17, %v4138_v52  ;;  %v6200_v15 = vpop.eup %6199  ;;  %v3888_v54 = vld [vmem:[%s11963_s10 + $0x180] sm:$0xff]  ;;  %v3897_v28 = vld [vmem:[%s11963_s10 + $0x1c8] sm:$0xff] }
 0x8e9   :  { %v6202_v52 = vpop.eup %6201  ;;  %v3972_v57 = vmul.f32 %v6200_v15, %v3888_v54 }
 0x8ea   :  { %v3981_v16 = vmul.f32 %v6202_v52, %v3897_v28  ;;  %v4056_v52 = vld [vmem:[%s11964_s11 + $0x180] sm:$0xff] }
 0x8eb   :  { %v4140_v30 = vmul.f32 %v3972_v57, %v10939_v59  ;;  %v4065_v59 = vld [vmem:[%s11964_s11 + $0x1c8] sm:$0xff] }
 0x8ec   :  { %4527 = vperm.xlu0 %6067, %v3977_v33   ;;  %4950 = vperm.xlu1 %6068, %v4196_v22   ;;  %v3638_v33 = vsub.f32 %v3470_v49, %v3554_v24  ;;  %v4147_v22 = vmul.f32 %v3979_v60, %v10909_v55  ;;  %v11032_v55 = vmul.f32 0.0051020407, %v12544_v9  ;;  %v12545_v49 = vld [vmem:[#allocation221_spill] sm:$0xff]  ;;  %v12546_v24 = vld [vmem:[#allocation200_spill] sm:$0xff]  ;;  %v4149_v54 = vmul.f32 %v3981_v16, %v10945_v0 }
 0x8ed   :  { %v3483_v51 = vmul.f32 0.0051020407, %v12545_v49  ;;  %v3899_v9 = vld [vmem:[%s11963_s10 + $0x1d8] sm:$0xff] }
 0x8ee   :  { %v3722_v17 = vadd.f32 0.001, %v3638_v33  ;;  %v3556_v36 = vmul.f32 %v11032_v55, %v11032_v55 }
 0x8ef   :  { %v3651_v33 = vsub.f32 %v3483_v51, %v3567_v35 }
 0x8f0   :  { %5115 = vperm.xlu0 %6067, %v4229_v61   ;;  %5080 = vperm.xlu1 %6068, %v4222_v20   ;;  %v3472_v61 = vmul.f32 0.0051020407, %v12546_v24  ;;  %v4231_v20 = vsub.f32 %v4063_v1, %v4147_v22  ;;  %6207 = vrsqrt.f32 %v3722_v17  ;;  %v12547_v22 = vld [vmem:[#allocation202_spill] sm:$0xff]  ;;  %v6204_v12 = vpop.eup %6203  ;;  %v12548_v1 = vld [vmem:[#allocation223_spill] sm:$0xff]  ;;  %v11057_v17 = vpop.permute.xlu1 %4462 }
 0x8f1   :  { %6209 = vrsqrt.f32 %v3733_v42  ;;  %v11048_v63 = vmul.f32 0.0051020407, %v12547_v22  ;;  %v11055_v28 = vmul.f32 0.0051020407, %v12548_v1  ;;  %v12549_v42 = vld [vmem:[#allocation204_spill] sm:$0xff]  ;;  %v6206_v49 = vpop.eup %6205  ;;  %v3983_v22 = vmul.f32 %v6204_v12, %v3899_v9 }
 0x8f2   :  { %v3640_v15 = vsub.f32 %v3472_v61, %v3556_v36  ;;  %v3474_v0 = vmul.f32 0.0051020407, %v12549_v42  ;;  %v3735_v51 = vadd.f32 0.001, %v3651_v33  ;;  %v11067_v61 = vpop.permute.xlu0 %4337  ;;  %v4233_v36 = vsub.f32 %v4065_v59, %v4149_v54  ;;  %v3890_v54 = vld [vmem:[%s11963_s10 + $0x190] sm:$0xff]  ;;  %v12551_v59 = vld [vmem:[#allocation206_spill] sm:$0xff] }
 0x8f3   :  { %v11083_v9 = vmul.f32 0.0051020407, %v12551_v59  ;;  %v12552_v42 = vld [vmem:[#allocation228_spill] sm:$0xff] }
 0x8f4   :  { %4537 = vperm.xlu0 %6067, %v3979_v60   ;;  %4372 = vperm.xlu1 %6068, %v3946_v14   ;;  %v4030_v60 = vld [vmem:[%s11964_s11 + $0xb0] sm:$0xff]  ;;  %v3724_v35 = vadd.f32 0.001, %v3640_v15  ;;  %6211 = vrsqrt.f32 %v3735_v51  ;;  %v4151_v15 = vmul.f32 %v3983_v22, %v10968_v37  ;;  %v4067_v51 = vld [vmem:[%s11964_s11 + $0x1d8] sm:$0xff]  ;;  %v3901_v37 = vld [vmem:[%s11963_s10 + $0x1e8] sm:$0xff] }
 0x8f5   :  { %v4198_v14 = vsub.f32 %v4030_v60, %v4114_v39  ;;  %v3864_v39 = vld [vmem:[%s11963_s10 + $0xc0] sm:$0xff]  ;;  %v3558_v60 = vmul.f32 %v11048_v63, %v11048_v63  ;;  %v3560_v27 = vmul.f32 %v11083_v9, %v11083_v9 }
 0x8f6   :  { %v3948_v1 = vmul.f32 %v6206_v49, %v3864_v39  ;;  %6213 = vrsqrt.f32 %v3724_v35  ;;  %v12553_v35 = vld [vmem:[#allocation208_spill] sm:$0xff] }
 0x8f7   :  { %v3642_v33 = vsub.f32 %v3474_v0, %v3558_v60  ;;  %v11088_v0 = vpop.permute.xlu0 %4467  ;;  %v3476_v60 = vmul.f32 0.0051020407, %v12553_v35 }
 0x8f8   :  { %5125 = vperm.xlu0 %6067, %v4231_v20   ;;  %4502 = vperm.xlu1 %6068, %v3972_v57   ;;  %v12550_v57 = vld [vmem:[#allocation226_spill] sm:$0xff]  ;;  %v4224_v20 = vsub.f32 %v4056_v52, %v4140_v30  ;;  %v4116_v39 = vmul.f32 %v3948_v1, %v10980_v2 }
 0x8f9   :  { %v3485_v24 = vmul.f32 0.0051020407, %v12550_v57  ;;  %v11086_v57 = vmul.f32 0.0051020407, %v12552_v42 }
 0x8fa   :  { %v6208_v52 = vpop.eup %6207 }
 0x8fb   :  { %v6210_v12 = vpop.eup %6209  ;;  %v3974_v42 = vmul.f32 %v6208_v52, %v3890_v54  ;;  %v3571_v2 = vmul.f32 %v11086_v57, %v11086_v57  ;;  %v3644_v54 = vsub.f32 %v3476_v60, %v3560_v27  ;;  %v4058_v27 = vld [vmem:[%s11964_s11 + $0x190] sm:$0xff] }
 0x8fc   :  { %4547 = vperm.xlu0 %6067, %v3981_v16   ;;  %4960 = vperm.xlu1 %6068, %v4198_v14   ;;  %v3569_v16 = vmul.f32 %v11055_v28, %v11055_v28  ;;  %v3985_v4 = vmul.f32 %v6210_v12, %v3901_v37 }
 0x8fe   :  { %v3653_v30 = vsub.f32 %v3485_v24, %v3569_v16  ;;  %v3726_v24 = vadd.f32 0.001, %v3642_v33  ;;  %v12554_v16 = vld [vmem:[#allocation229_spill] sm:$0xff]  ;;  %v4709_v33 = vmul.f32 %v11035_v32, %v12556_v38  ;;  %v4142_v32 = vmul.f32 %v3974_v42, %v10993_v40  ;;  %v6212_v40 = vpop.eup %6211 }
 0x8ff   :  { %v11076_v14 = vpop.xlane.xlu1 %2822  ;;  %v3487_v59 = vmul.f32 0.0051020407, %v12554_v16  ;;  %v12560_v16 = vld [vmem:[#allocation61_spill] sm:$0xff] }
 0x900   :  { %5135 = vperm.xlu0 %6067, %v4233_v36   ;;  %5090 = vperm.xlu1 %6068, %v4224_v20   ;;  %v4032_v20 = vld [vmem:[%s11964_s11 + $0xc0] sm:$0xff]  ;;  %v3737_v36 = vadd.f32 0.001, %v3653_v30  ;;  %6215 = vrsqrt.f32 %v3726_v24  ;;  %v11134_v24 = vmul.f32 0.0051020407, %v10101_v8  ;;  %v6214_v60 = vpop.eup %6213 }
 0x901   :  { %v4200_v62 = vsub.f32 %v4032_v20, %v4116_v39  ;;  %v3655_v38 = vsub.f32 %v3487_v59, %v3571_v2  ;;  %v4069_v20 = vld [vmem:[%s11964_s11 + $0x1e8] sm:$0xff]  ;;  %v3903_v39 = vld [vmem:[%s11963_s10 + $0x1f8] sm:$0xff]  ;;  %v3892_v8 = vld [vmem:[%s11963_s10 + $0x1a0] sm:$0xff] }
 0x902   :  { %6217 = vrsqrt.f32 %v3737_v36  ;;  %v12561_v36 = vld [vmem:[#allocation214_spill] sm:$0xff] }
 0x903   :  { %v11090_v49 = vpop.xlane.xlu1 %3410 }
 0x904   :  { %4557 = vperm.xlu0 %6067, %v3983_v22   ;;  %4382 = vperm.xlu1 %6068, %v3948_v1   ;;  %v4235_v22 = vsub.f32 %v4067_v51, %v4151_v15  ;;  %v12558_v15 = vld [vmem:[#allocation212_spill] sm:$0xff]  ;;  %v12559_v51 = vld [vmem:[#allocation59_spill] sm:$0xff] }
 0x905   :  { %v11116_v12 = vmul.f32 0.0051020407, %v12558_v15  ;;  %v4760_v37 = vmul.f32 %v11057_v17, %v12559_v51  ;;  %v12562_v15 = vld [vmem:[#allocation62_spill] sm:$0xff] }
 0x906   :  { %v4710_v51 = vmul.f32 %v11067_v61, %v12562_v15 }
 0x907   :  { %v4921_v1 = vpop.permute.xlu1 %4920  ;;  %v11112_v35 = vpop.xlane.xlu0 %2826 }
 0x908   :  { %12557 = vst [vmem:[#allocation18_spill] sm:$0xff] %v11112_v35  ;;  %v5296_v30 = vadd.f32 %v4921_v1, %v4708_v41  ;;  %v5297_v52 = vadd.f32 %v4921_v1, %v4709_v33  ;;  %5145 = vperm.xlu0 %6067, %v4235_v22   ;;  %4512 = vperm.xlu1 %6068, %v3974_v42   ;;  %v3739_v33 = vadd.f32 0.001, %v3655_v38  ;;  %v3489_v22 = vmul.f32 0.0051020407, %v10104_v31 }
 0x909   :  { %v4761_v35 = vmul.f32 %v11057_v17, %v12560_v16  ;;  %v4153_v41 = vmul.f32 %v3985_v4, %v10998_v48  ;;  %v3478_v48 = vmul.f32 0.0051020407, %v12561_v36  ;;  %v4226_v1 = vsub.f32 %v4058_v27, %v4142_v32 }
 0x90a   :  { %5464 = vst [vmem:[%s11965_s12 + $0xe0] sm:$0xff] %v5296_v30  ;;  %5465 = vst.msk [vmem:[%s11965_s12 + $0xe8] sm:$0xff] %vm1099_vm2, %v5297_v52  ;;  %v3728_v30 = vadd.f32 0.001, %v3644_v54  ;;  %v3562_v52 = vmul.f32 %v11116_v12, %v11116_v12  ;;  %v3573_v31 = vmul.f32 %v11134_v24, %v11134_v24  ;;  %6219 = vrsqrt.f32 %v3739_v33  ;;  %v6216_v32 = vpop.eup %6215 }
 0x90b   :  { %v5051_v17 = vpop.permute.xlu1 %5050  ;;  %v11147_v2 = vpop.xlane.xlu0 %3414 }
 0x90c   :  { %v5348_v59 = vadd.f32 %v5051_v17, %v4760_v37  ;;  %v5349_v42 = vadd.f32 %v5051_v17, %v4761_v35  ;;  %4567 = vperm.xlu0 %6067, %v3985_v4   ;;  %4970 = vperm.xlu1 %6068, %v4200_v62   ;;  %v4237_v4 = vsub.f32 %v4069_v20, %v4153_v41  ;;  %6221 = vrsqrt.f32 %v3728_v30  ;;  %v12563_v37 = vld [vmem:[#allocation64_spill] sm:$0xff]  ;;  %v6218_v27 = vpop.eup %6217  ;;  %v4071_v20 = vld [vmem:[%s11964_s11 + $0x1f8] sm:$0xff] }
 0x90d   :  { %v3987_v35 = vmul.f32 %v6212_v40, %v3903_v39  ;;  %v3976_v62 = vmul.f32 %v6214_v60, %v3892_v8  ;;  %v3646_v38 = vsub.f32 %v3478_v48, %v3562_v52  ;;  %v3657_v54 = vsub.f32 %v3489_v22, %v3573_v31  ;;  %v3905_v60 = vld [vmem:[%s11963_s10 + $0x208] sm:$0xff]  ;;  %v12564_v48 = vld [vmem:[#allocation217_spill] sm:$0xff] }
 0x90e   :  { %5516 = vst [vmem:[%s11965_s12 + $0x280] sm:$0xff] %v5348_v59  ;;  %5517 = vst.msk [vmem:[%s11965_s12 + $0x288] sm:$0xff] %vm1099_vm2, %v5349_v42  ;;  %v4711_v16 = vmul.f32 %v11067_v61, %v12563_v37  ;;  %v11166_v40 = vmul.f32 0.0051020407, %v10216_v19  ;;  %v11176_v61 = vmul.f32 0.0051020407, %v12564_v48  ;;  %v3989_v31 = vmul.f32 %v6218_v27, %v3905_v60 }
 0x90f   :  { %v4155_v41 = vmul.f32 %v3987_v35, %v11023_v7  ;;  %v4144_v39 = vmul.f32 %v3976_v62, %v11032_v55  ;;  %v3730_v36 = vadd.f32 0.001, %v3646_v38  ;;  %v4060_v19 = vld [vmem:[%s11964_s11 + $0x1a0] sm:$0xff]  ;;  %v3894_v42 = vld [vmem:[%s11963_s10 + $0x1b0] sm:$0xff]  ;;  %v3741_v33 = vadd.f32 0.001, %v3657_v54 }
 0x910   :  { %5155 = vperm.xlu0 %6067, %v4237_v4   ;;  %5100 = vperm.xlu1 %6068, %v4226_v1   ;;  %v12565_v55 = vld [vmem:[#allocation218_spill] sm:$0xff]  ;;  %v3491_v22 = vmul.f32 0.0051020407, %v10225_v21  ;;  %v12566_v1 = vld [vmem:[#allocation63_spill] sm:$0xff]  ;;  %v12567_v52 = vld [vmem:[#allocation65_spill] sm:$0xff]  ;;  %v3575_v21 = vmul.f32 %v11166_v40, %v11166_v40  ;;  %v3978_v54 = vmul.f32 %v6216_v32, %v3894_v42  ;;  %v4157_v32 = vmul.f32 %v3989_v31, %v11055_v28 }
 0x911   :  { %v3480_v8 = vmul.f32 0.0051020407, %v12565_v55  ;;  %v4762_v30 = vmul.f32 %v11088_v0, %v12566_v1  ;;  %v4763_v4 = vmul.f32 %v11088_v0, %v12567_v52  ;;  %v4228_v38 = vsub.f32 %v4060_v19, %v4144_v39  ;;  %v4073_v60 = vld [vmem:[%s11964_s11 + $0x208] sm:$0xff]  ;;  %v3907_v48 = vld [vmem:[%s11963_s10 + $0x218] sm:$0xff]  ;;  %v3896_v28 = vld [vmem:[%s11963_s10 + $0x1c0] sm:$0xff] }
 0x912   :  { %v3564_v0 = vmul.f32 %v11176_v61, %v11176_v61  ;;  %6223 = vrsqrt.f32 %v3741_v33  ;;  %v3659_v37 = vsub.f32 %v3491_v22, %v3575_v21  ;;  %v3493_v55 = vmul.f32 0.0051020407, %v10370_v23  ;;  %v12570_v23 = vld [vmem:[#allocation70_spill] sm:$0xff] }
 0x913   :  { %v4926_v17 = vpop.permute.xlu0 %4925  ;;  %6225 = vrsqrt.f32 %v3730_v36  ;;  %v4146_v36 = vmul.f32 %v3978_v54, %v11048_v63  ;;  %v4241_v33 = vsub.f32 %v4073_v60, %v4157_v32 }
 0x914   :  { %v5298_v7 = vadd.f32 %v4926_v17, %v4710_v51  ;;  %v5299_v59 = vadd.f32 %v4926_v17, %v4711_v16  ;;  %4577 = vperm.xlu0 %6067, %v3987_v35   ;;  %4522 = vperm.xlu1 %6068, %v3976_v62   ;;  %v4239_v35 = vsub.f32 %v4071_v20, %v4155_v41  ;;  %v12568_v17 = vld [vmem:[#allocation219_spill] sm:$0xff]  ;;  %v6220_v27 = vpop.eup %6219  ;;  %v11213_v20 = vmul.f32 0.0051020407, %v10361_v43  ;;  %v4062_v43 = vld [vmem:[%s11964_s11 + $0x1b0] sm:$0xff] }
 0x915   :  { %v3648_v16 = vsub.f32 %v3480_v8, %v3564_v0  ;;  %v11202_v41 = vmul.f32 0.0051020407, %v12568_v17  ;;  %v3743_v42 = vadd.f32 0.001, %v3659_v37  ;;  %v3991_v22 = vmul.f32 %v6220_v27, %v3907_v48  ;;  %v4075_v37 = vld [vmem:[%s11964_s11 + $0x218] sm:$0xff]  ;;  %v3909_v17 = vld [vmem:[%s11963_s10 + $0x228] sm:$0xff] }
 0x916   :  { %5466 = vst [vmem:[%s11965_s12 + $0xf0] sm:$0xff] %v5298_v7  ;;  %5467 = vst.msk [vmem:[%s11965_s12 + $0xf8] sm:$0xff] %vm1099_vm2, %v5299_v59  ;;  %v6222_v7 = vpop.eup %6221  ;;  %v12569_v59 = vld [vmem:[#allocation220_spill] sm:$0xff]  ;;  %v3577_v1 = vmul.f32 %v11213_v20, %v11213_v20  ;;  %v4230_v52 = vsub.f32 %v4062_v43, %v4146_v36  ;;  %v12574_v43 = vld [vmem:[#allocation71_spill] sm:$0xff] }
 0x917   :  { %v5056_v62 = vpop.permute.xlu0 %5055  ;;  %v3482_v19 = vmul.f32 0.0051020407, %v12569_v59  ;;  %v3732_v63 = vadd.f32 0.001, %v3648_v16  ;;  %v3566_v8 = vmul.f32 %v11202_v41, %v11202_v41  ;;  %6227 = vrsqrt.f32 %v3743_v42  ;;  %v12573_v48 = vld [vmem:[#allocation224_spill] sm:$0xff]  ;;  %v12575_v42 = vld [vmem:[#allocation73_spill] sm:$0xff] }
 0x918   :  { %v5350_v15 = vadd.f32 %v5056_v62, %v4762_v30  ;;  %v5351_v51 = vadd.f32 %v5056_v62, %v4763_v4  ;;  %5165 = vperm.xlu0 %6067, %v4239_v35   ;;  %5110 = vperm.xlu1 %6068, %v4228_v38   ;;  %v3980_v4 = vmul.f32 %v6222_v7, %v3896_v28  ;;  %v12571_v62 = vld [vmem:[#allocation72_spill] sm:$0xff]  ;;  %v3484_v7 = vmul.f32 0.0051020407, %v12573_v48 }
 0x919   :  { %v3650_v35 = vsub.f32 %v3482_v19, %v3566_v8  ;;  %6229 = vrsqrt.f32 %v3732_v63  ;;  %v3495_v19 = vmul.f32 0.0051020407, %v10518_v13 }
 0x91a   :  { %5518 = vst [vmem:[%s11965_s12 + $0x290] sm:$0xff] %v5350_v15  ;;  %5519 = vst.msk [vmem:[%s11965_s12 + $0x298] sm:$0xff] %vm1099_vm2, %v5351_v51  ;;  %v11238_v15 = vmul.f32 0.0051020407, %v10500_v6  ;;  %v4148_v16 = vmul.f32 %v3980_v4, %v11083_v9  ;;  %v4064_v6 = vld [vmem:[%s11964_s11 + $0x1c0] sm:$0xff]  ;;  %v3898_v9 = vld [vmem:[%s11963_s10 + $0x1d0] sm:$0xff] }
 0x91b   :  { %v4348_v39 = vpop.permute.xlu0 %4347  ;;  %v3734_v27 = vadd.f32 0.001, %v3650_v35 }
 0x91c   :  { %4587 = vperm.xlu0 %6067, %v3989_v31   ;;  %4532 = vperm.xlu1 %6068, %v3978_v54   ;;  %v3661_v31 = vsub.f32 %v3493_v55, %v3577_v1  ;;  %v4714_v21 = vmul.f32 %v4348_v39, %v12570_v23  ;;  %v4715_v38 = vmul.f32 %v4348_v39, %v12571_v62  ;;  %v6224_v0 = vpop.eup %6223  ;;  %v12572_v39 = vld [vmem:[#allocation222_spill] sm:$0xff] }
 0x91d   :  { %v4159_v54 = vmul.f32 %v3991_v22, %v11086_v57  ;;  %v6226_v32 = vpop.eup %6225  ;;  %v11248_v60 = vmul.f32 0.0051020407, %v12572_v39  ;;  %v3993_v8 = vmul.f32 %v6224_v0, %v3909_v17  ;;  %v3900_v39 = vld [vmem:[%s11963_s10 + $0x1e0] sm:$0xff] }
 0x91e   :  { %v3745_v59 = vadd.f32 0.001, %v3661_v31  ;;  %v3982_v1 = vmul.f32 %v6226_v32, %v3898_v9 }
 0x91f   :  { %v4478_v30 = vpop.permute.xlu0 %4477  ;;  %v4243_v63 = vsub.f32 %v4075_v37, %v4159_v54  ;;  %v4161_v62 = vmul.f32 %v3993_v8, %v11134_v24  ;;  %v11283_v54 = vmul.f32 0.0051020407, %v10629_v3  ;;  %v12577_v24 = vld [vmem:[#allocation227_spill] sm:$0xff]  ;;  %v4066_v3 = vld [vmem:[%s11964_s11 + $0x1d0] sm:$0xff] }
 0x920   :  { %5175 = vperm.xlu0 %6067, %v4241_v33   ;;  %5120 = vperm.xlu1 %6068, %v4230_v52   ;;  %v4766_v28 = vmul.f32 %v4478_v30, %v12574_v43  ;;  %v4767_v55 = vmul.f32 %v4478_v30, %v12575_v42  ;;  %v3579_v33 = vmul.f32 %v11238_v15, %v11238_v15  ;;  %v12576_v52 = vld [vmem:[#allocation225_spill] sm:$0xff]  ;;  %6231 = vrsqrt.f32 %v3745_v59 }
 0x921   :  { %v3568_v30 = vmul.f32 %v11248_v60, %v11248_v60  ;;  %6233 = vrsqrt.f32 %v3734_v27  ;;  %v4150_v37 = vmul.f32 %v3982_v1, %v11116_v12  ;;  %v3486_v27 = vmul.f32 0.0051020407, %v12577_v24 }
 0x922   :  { %v3663_v23 = vsub.f32 %v3495_v19, %v3579_v33  ;;  %v3581_v48 = vmul.f32 %v11283_v54, %v11283_v54 }
 0x923   :  { %v4936_v51 = vpop.permute.xlu0 %4935  ;;  %v4234_v59 = vsub.f32 %v4066_v3, %v4150_v37 }
 0x924   :  { %v5302_v57 = vadd.f32 %v4936_v51, %v4714_v21  ;;  %v5303_v36 = vadd.f32 %v4936_v51, %v4715_v38  ;;  %4597 = vperm.xlu0 %6067, %v3991_v22   ;;  %4542 = vperm.xlu1 %6068, %v3980_v4   ;;  %v4232_v22 = vsub.f32 %v4064_v6, %v4148_v16  ;;  %v11272_v4 = vmul.f32 0.0051020407, %v12576_v52  ;;  %v6228_v38 = vpop.eup %6227  ;;  %v4077_v51 = vld [vmem:[%s11964_s11 + $0x228] sm:$0xff]  ;;  %v3911_v16 = vld [vmem:[%s11963_s10 + $0x238] sm:$0xff] }
 0x925   :  { %v3652_v21 = vsub.f32 %v3484_v7, %v3568_v30  ;;  %v6230_v17 = vpop.eup %6229  ;;  %v3747_v12 = vadd.f32 0.001, %v3663_v23  ;;  %v4245_v6 = vsub.f32 %v4077_v51, %v4161_v62  ;;  %v3995_v9 = vmul.f32 %v6228_v38, %v3911_v16  ;;  %v3913_v52 = vld [vmem:[%s11963_s10 + $0x248] sm:$0xff]  ;;  %v12581_v16 = vld [vmem:[#allocation81_spill] sm:$0xff] }
 0x926   :  { %5470 = vst [vmem:[%s11965_s12 + $0x110] sm:$0xff] %v5302_v57  ;;  %5471 = vst.msk [vmem:[%s11965_s12 + $0x118] sm:$0xff] %vm1099_vm2, %v5303_v36  ;;  %v3570_v32 = vmul.f32 %v11272_v4, %v11272_v4  ;;  %v3497_v57 = vmul.f32 0.0051020407, %v10638_v45  ;;  %v3984_v19 = vmul.f32 %v6230_v17, %v3900_v39  ;;  %v12578_v45 = vld [vmem:[#allocation78_spill] sm:$0xff]  ;;  %v12580_v51 = vld [vmem:[#allocation79_spill] sm:$0xff] }
 0x927   :  { %v5066_v13 = vpop.permute.xlu0 %5065  ;;  %v3736_v36 = vadd.f32 0.001, %v3652_v21  ;;  %6235 = vrsqrt.f32 %v3747_v12  ;;  %v4163_v33 = vmul.f32 %v3995_v9, %v11166_v40  ;;  %v3902_v40 = vld [vmem:[%s11963_s10 + $0x1f0] sm:$0xff]  ;;  %v3488_v62 = vmul.f32 0.0051020407, %v10029_v26 }
 0x928   :  { %v5354_v35 = vadd.f32 %v5066_v13, %v4766_v28  ;;  %v5355_v31 = vadd.f32 %v5066_v13, %v4767_v55  ;;  %5185 = vperm.xlu0 %6067, %v4243_v63   ;;  %5130 = vperm.xlu1 %6068, %v4232_v22   ;;  %v3654_v43 = vsub.f32 %v3486_v27, %v3570_v32  ;;  %v11305_v28 = vmul.f32 0.0051020407, %v10005_v46  ;;  %v12579_v63 = vld [vmem:[#allocation80_spill] sm:$0xff]  ;;  %v4079_v46 = vld [vmem:[%s11964_s11 + $0x238] sm:$0xff] }
 0x929   :  { %v3665_v42 = vsub.f32 %v3497_v57, %v3581_v48  ;;  %6237 = vrsqrt.f32 %v3736_v36  ;;  %v11311_v22 = vmul.f32 0.0051020407, %v10793_v47  ;;  %v4152_v30 = vmul.f32 %v3984_v19, %v11176_v61  ;;  %v4068_v47 = vld [vmem:[%s11964_s11 + $0x1e0] sm:$0xff] }
 0x92a   :  { %5522 = vst [vmem:[%s11965_s12 + $0x2b0] sm:$0xff] %v5354_v35  ;;  %5523 = vst.msk [vmem:[%s11965_s12 + $0x2b8] sm:$0xff] %vm1099_vm2, %v5355_v31  ;;  %v6232_v13 = vpop.eup %6231  ;;  %v3738_v31 = vadd.f32 0.001, %v3654_v43  ;;  %v3572_v61 = vmul.f32 %v11305_v28, %v11305_v28  ;;  %v4247_v32 = vsub.f32 %v4079_v46, %v4163_v33  ;;  %v11342_v39 = vmul.f32 0.0051020407, %v10111_v5 }
 0x92b   :  { %v4358_v0 = vpop.permute.xlu0 %4357  ;;  %v6234_v35 = vpop.eup %6233  ;;  %v3749_v38 = vadd.f32 0.001, %v3665_v42  ;;  %v3997_v24 = vmul.f32 %v6232_v13, %v3913_v52  ;;  %v3583_v26 = vmul.f32 %v11311_v22, %v11311_v22  ;;  %v4236_v27 = vsub.f32 %v4068_v47, %v4152_v30  ;;  %v3915_v42 = vld [vmem:[%s11963_s10 + $0x258] sm:$0xff] }
 0x92c   :  { %4607 = vperm.xlu0 %6067, %v3993_v8   ;;  %4552 = vperm.xlu1 %6068, %v3982_v1   ;;  %v4718_v55 = vmul.f32 %v4358_v0, %v12578_v45  ;;  %v4719_v8 = vmul.f32 %v4358_v0, %v12579_v63  ;;  %v3499_v0 = vmul.f32 0.0051020407, %v10808_v53  ;;  %v3986_v3 = vmul.f32 %v6234_v35, %v3902_v40  ;;  %v3904_v63 = vld [vmem:[%s11963_s10 + $0x200] sm:$0xff]  ;;  %v12583_v40 = vld [vmem:[#allocation88_spill] sm:$0xff] }
 0x92d   :  { %6239 = vrsqrt.f32 %v3749_v38  ;;  %v4165_v5 = vmul.f32 %v3997_v24, %v11213_v20  ;;  %v3490_v20 = vmul.f32 0.0051020407, %v10136_v44 }
 0x92e   :  { %v3667_v36 = vsub.f32 %v3499_v0, %v3583_v26  ;;  %6241 = vrsqrt.f32 %v3738_v31  ;;  %v4154_v43 = vmul.f32 %v3986_v3, %v11202_v41 }
 0x92f   :  { %v4488_v7 = vpop.permute.xlu0 %4487 }
 0x930   :  { %5195 = vperm.xlu0 %6067, %v4245_v6   ;;  %5140 = vperm.xlu1 %6068, %v4234_v59   ;;  %v4770_v37 = vmul.f32 %v4488_v7, %v12580_v51  ;;  %v4771_v17 = vmul.f32 %v4488_v7, %v12581_v16  ;;  %v3656_v6 = vsub.f32 %v3488_v62, %v3572_v61  ;;  %v11355_v7 = vmul.f32 0.0051020407, %v11076_v14  ;;  %v4070_v14 = vld [vmem:[%s11964_s11 + $0x1f0] sm:$0xff]  ;;  %v4083_v51 = vld [vmem:[%s11964_s11 + $0x258] sm:$0xff] }
 0x931   :  { %v6236_v48 = vpop.eup %6235  ;;  %v3751_v41 = vadd.f32 0.001, %v3667_v36  ;;  %v4238_v30 = vsub.f32 %v4070_v14, %v4154_v43 }
 0x932   :  { %v3740_v33 = vadd.f32 0.001, %v3656_v6  ;;  %v3585_v46 = vmul.f32 %v11355_v7, %v11355_v7  ;;  %v12585_v6 = vld [vmem:[#allocation89_spill] sm:$0xff] }
 0x933   :  { %v4946_v1 = vpop.permute.xlu0 %4945  ;;  %v6238_v45 = vpop.eup %6237  ;;  %6243 = vrsqrt.f32 %v3751_v41 }
 0x934   :  { %v5306_v23 = vadd.f32 %v4946_v1, %v4718_v55  ;;  %v5307_v21 = vadd.f32 %v4946_v1, %v4719_v8  ;;  %4617 = vperm.xlu0 %6067, %v3995_v9   ;;  %4562 = vperm.xlu1 %6068, %v3984_v19   ;;  %v11344_v9 = vpop.permute.xlu1 %4342  ;;  %v4081_v19 = vld [vmem:[%s11964_s11 + $0x248] sm:$0xff]  ;;  %v3574_v55 = vmul.f32 %v11342_v39, %v11342_v39  ;;  %v3501_v8 = vmul.f32 0.0051020407, %v11090_v49  ;;  %v12582_v49 = vld [vmem:[#allocation86_spill] sm:$0xff] }
 0x935   :  { %v4249_v13 = vsub.f32 %v4081_v19, %v4165_v5  ;;  %v3999_v1 = vmul.f32 %v6236_v48, %v3915_v42  ;;  %v3988_v52 = vmul.f32 %v6238_v45, %v3904_v63  ;;  %6245 = vrsqrt.f32 %v3740_v33  ;;  %v12586_v33 = vld [vmem:[#allocation66_spill] sm:$0xff] }
 0x936   :  { %5474 = vst [vmem:[%s11965_s12 + $0x130] sm:$0xff] %v5306_v23  ;;  %5475 = vst.msk [vmem:[%s11965_s12 + $0x138] sm:$0xff] %vm1099_vm2, %v5307_v21  ;;  %v3658_v35 = vsub.f32 %v3490_v20, %v3574_v55  ;;  %v11379_v23 = vmul.f32 0.0051020407, %v10234_v29  ;;  %v3669_v21 = vsub.f32 %v3501_v8, %v3585_v46  ;;  %v3917_v29 = vld [vmem:[%s11963_s10 + $0x268] sm:$0xff] }
 0x937   :  { %v5076_v53 = vpop.permute.xlu0 %5075  ;;  %v4167_v62 = vmul.f32 %v3999_v1, %v11238_v15  ;;  %v6240_v38 = vpop.eup %6239  ;;  %v4072_v15 = vld [vmem:[%s11964_s11 + $0x200] sm:$0xff]  ;;  %v11412_v42 = vmul.f32 0.0051020407, %v10379_v11 }
 0x938   :  { %v5358_v12 = vadd.f32 %v5076_v53, %v4770_v37  ;;  %v5359_v57 = vadd.f32 %v5076_v53, %v4771_v17  ;;  %5205 = vperm.xlu0 %6067, %v4247_v32   ;;  %5150 = vperm.xlu1 %6068, %v4236_v27   ;;  %v11376_v31 = vpop.permute.xlu1 %4472  ;;  %v4156_v37 = vmul.f32 %v3988_v52, %v11248_v60  ;;  %v6242_v16 = vpop.eup %6241  ;;  %v3742_v17 = vadd.f32 0.001, %v3658_v35  ;;  %v3906_v53 = vld [vmem:[%s11963_s10 + $0x210] sm:$0xff] }
 0x939   :  { %v3576_v60 = vmul.f32 %v11379_v23, %v11379_v23  ;;  %v3492_v27 = vmul.f32 0.0051020407, %v10265_v25  ;;  %v4251_v48 = vsub.f32 %v4083_v51, %v4167_v62  ;;  %v3990_v43 = vmul.f32 %v6242_v16, %v3906_v53  ;;  %v12589_v16 = vld [vmem:[#allocation69_spill] sm:$0xff] }
 0x93a   :  { %5526 = vst [vmem:[%s11965_s12 + $0x2d0] sm:$0xff] %v5358_v12  ;;  %5527 = vst.msk [vmem:[%s11965_s12 + $0x2d8] sm:$0xff] %vm1099_vm2, %v5359_v57  ;;  %v12584_v57 = vld [vmem:[#allocation87_spill] sm:$0xff]  ;;  %v4240_v19 = vsub.f32 %v4072_v15, %v4156_v37 }
 0x93b   :  { %v4368_v59 = vpop.permute.xlu0 %4367  ;;  %v3660_v41 = vsub.f32 %v3492_v27, %v3576_v60  ;;  %v4158_v35 = vmul.f32 %v3990_v43, %v11272_v4  ;;  %v3908_v4 = vld [vmem:[%s11963_s10 + $0x220] sm:$0xff]  ;;  %v11456_v60 = vmul.f32 0.0051020407, %v10527_v56 }
 0x93c   :  { %4627 = vperm.xlu0 %6067, %v3997_v24   ;;  %4572 = vperm.xlu1 %6068, %v3986_v3   ;;  %v4722_v47 = vmul.f32 %v4368_v59, %v12582_v49  ;;  %v4723_v61 = vmul.f32 %v4368_v59, %v12583_v40  ;;  %v3753_v3 = vadd.f32 0.001, %v3669_v21  ;;  %v4001_v59 = vmul.f32 %v6240_v38, %v3917_v29  ;;  %v3919_v21 = vld [vmem:[%s11963_s10 + $0x278] sm:$0xff]  ;;  %v4074_v40 = vld [vmem:[%s11964_s11 + $0x210] sm:$0xff]  ;;  %v12588_v29 = vld [vmem:[#allocation67_spill] sm:$0xff] }
 0x93d   :  { %v6244_v8 = vpop.eup %6243  ;;  %v3578_v49 = vmul.f32 %v11412_v42, %v11412_v42 }
 0x93e   :  { %6247 = vrsqrt.f32 %v3753_v3  ;;  %v4169_v11 = vmul.f32 %v4001_v59, %v11283_v54  ;;  %v4003_v37 = vmul.f32 %v6244_v8, %v3919_v21  ;;  %v12590_v3 = vld [vmem:[#allocation94_spill] sm:$0xff] }
 0x93f   :  { %v4498_v44 = vpop.permute.xlu0 %4497  ;;  %6249 = vrsqrt.f32 %v3742_v17  ;;  %v6246_v54 = vpop.eup %6245  ;;  %v4765_v17 = vmul.f32 %v11376_v31, %v12589_v16 }
 0x940   :  { %5215 = vperm.xlu0 %6067, %v4249_v13   ;;  %5160 = vperm.xlu1 %6068, %v4238_v30   ;;  %v4774_v36 = vmul.f32 %v4498_v44, %v12584_v57  ;;  %v4775_v5 = vmul.f32 %v4498_v44, %v12585_v6  ;;  %v4712_v13 = vmul.f32 %v11344_v9, %v12586_v33  ;;  %v12593_v33 = vld [vmem:[#allocation97_spill] sm:$0xff] }
 0x943   :  { %v4956_v0 = vpop.permute.xlu0 %4955 }
 0x944   :  { %v5310_v32 = vadd.f32 %v4956_v0, %v4722_v47  ;;  %v5311_v24 = vadd.f32 %v4956_v0, %v4723_v61  ;;  %4637 = vperm.xlu0 %6067, %v3999_v1   ;;  %v2831_v26 = vpop.xlane.xlu1 %2830  ;;  %4582 = vperm.xlu1 %6068, %v3988_v52   ;;  %v12587_v1 = vld [vmem:[#allocation68_spill] sm:$0xff]  ;;  %v4085_v52 = vld [vmem:[%s11964_s11 + $0x268] sm:$0xff]  ;;  %v3494_v47 = vmul.f32 0.0051020407, %v10412_v34  ;;  %v3744_v0 = vadd.f32 0.001, %v3660_v41 }
 0x945   :  { %v11400_v12 = vmul.f32 0.0051020407, %v2831_v26  ;;  %v4713_v46 = vmul.f32 %v11344_v9, %v12587_v1  ;;  %v4253_v51 = vsub.f32 %v4085_v52, %v4169_v11  ;;  %v4764_v34 = vmul.f32 %v11376_v31, %v12588_v29  ;;  %v12592_v11 = vld [vmem:[#allocation95_spill] sm:$0xff] }
 0x946   :  { %5478 = vst [vmem:[%s11965_s12 + $0x150] sm:$0xff] %v5310_v32  ;;  %5479 = vst.msk [vmem:[%s11965_s12 + $0x158] sm:$0xff] %vm1099_vm2, %v5311_v24  ;;  %v4242_v24 = vsub.f32 %v4074_v40, %v4158_v35  ;;  %v3992_v26 = vmul.f32 %v6246_v54, %v3908_v4  ;;  %v3662_v15 = vsub.f32 %v3494_v47, %v3578_v49  ;;  %v3496_v41 = vmul.f32 0.0051020407, %v10558_v10  ;;  %v12594_v40 = vld [vmem:[#allocation74_spill] sm:$0xff] }
 0x947   :  { %v5086_v25 = vpop.permute.xlu0 %5085  ;;  %v3587_v14 = vmul.f32 %v11400_v12, %v11400_v12  ;;  %v11494_v49 = vmul.f32 0.0051020407, %v10645_v18 }
 0x948   :  { %v5362_v45 = vadd.f32 %v5086_v25, %v4774_v36  ;;  %v5363_v55 = vadd.f32 %v5086_v25, %v4775_v5  ;;  %5225 = vperm.xlu0 %6067, %v4251_v48   ;;  %v3419_v20 = vpop.xlane.xlu1 %3418  ;;  %5170 = vperm.xlu1 %6068, %v4240_v19   ;;  %v12591_v36 = vld [vmem:[#allocation96_spill] sm:$0xff]  ;;  %v4171_v5 = vmul.f32 %v4003_v37, %v11311_v22  ;;  %v6248_v48 = vpop.eup %6247  ;;  %v4087_v25 = vld [vmem:[%s11964_s11 + $0x278] sm:$0xff]  ;;  %v3921_v22 = vld [vmem:[%s11963_s10 + $0x288] sm:$0xff] }
 0x949   :  { %v3503_v63 = vmul.f32 0.0051020407, %v3419_v20  ;;  %v6250_v19 = vpop.eup %6249  ;;  %v4076_v20 = vld [vmem:[%s11964_s11 + $0x220] sm:$0xff] }
 0x94a   :  { %5530 = vst [vmem:[%s11965_s12 + $0x2f0] sm:$0xff] %v5362_v45  ;;  %5531 = vst.msk [vmem:[%s11965_s12 + $0x2f8] sm:$0xff] %vm1099_vm2, %v5363_v55  ;;  %v4255_v1 = vsub.f32 %v4087_v25, %v4171_v5  ;;  %v11532_v5 = vmul.f32 0.0051020407, %v10821_v50  ;;  %v12598_v25 = vld [vmem:[#allocation105_spill] sm:$0xff] }
 0x94b   :  { %v3671_v44 = vsub.f32 %v3503_v63, %v3587_v14  ;;  %v4378_v30 = vpop.permute.xlu0 %4377  ;;  %v3746_v14 = vadd.f32 0.001, %v3662_v15  ;;  %v3580_v63 = vmul.f32 %v11456_v60, %v11456_v60 }
 0x94c   :  { %4647 = vperm.xlu0 %6067, %v4001_v59   ;;  %v4931_v9 = vpop.permute.xlu1 %4930  ;;  %4592 = vperm.xlu1 %6068, %v3990_v43   ;;  %v4726_v57 = vmul.f32 %v4378_v30, %v12590_v3  ;;  %v4727_v6 = vmul.f32 %v4378_v30, %v12591_v36  ;;  %v4160_v59 = vmul.f32 %v3992_v26, %v11305_v28  ;;  %v3910_v28 = vld [vmem:[%s11963_s10 + $0x230] sm:$0xff] }
 0x94d   :  { %v3755_v61 = vadd.f32 0.001, %v3671_v44  ;;  %v5300_v62 = vadd.f32 %v4931_v9, %v4712_v13  ;;  %v5301_v38 = vadd.f32 %v4931_v9, %v4713_v46  ;;  %v4005_v46 = vmul.f32 %v6248_v48, %v3921_v22 }
 0x94e   :  { %v4244_v30 = vsub.f32 %v4076_v20, %v4160_v59  ;;  %v3994_v52 = vmul.f32 %v6250_v19, %v3910_v28  ;;  %v3664_v54 = vsub.f32 %v3496_v41, %v3580_v63  ;;  %v12599_v19 = vld [vmem:[#allocation107_spill] sm:$0xff]  ;;  %v4091_v20 = vld [vmem:[%s11964_s11 + $0x298] sm:$0xff]  ;;  %v4080_v41 = vld [vmem:[%s11964_s11 + $0x240] sm:$0xff] }
 0x94f   :  { %5468 = vst [vmem:[%s11965_s12 + $0x100] sm:$0xff] %v5300_v62  ;;  %5469 = vst.msk [vmem:[%s11965_s12 + $0x108] sm:$0xff] %vm1099_vm2, %v5301_v38  ;;  %v4508_v32 = vpop.permute.xlu0 %4507  ;;  %6251 = vrsqrt.f32 %v3755_v61  ;;  %v4173_v47 = vmul.f32 %v4005_v46, %v11355_v7  ;;  %v12595_v61 = vld [vmem:[#allocation76_spill] sm:$0xff] }
 0x950   :  { %5235 = vperm.xlu0 %6067, %v4253_v51   ;;  %v5061_v53 = vpop.permute.xlu1 %5060  ;;  %5180 = vperm.xlu1 %6068, %v4242_v24   ;;  %6253 = vrsqrt.f32 %v3744_v0  ;;  %v4778_v8 = vmul.f32 %v4508_v32, %v12592_v11  ;;  %v4779_v13 = vmul.f32 %v4508_v32, %v12593_v33  ;;  %v4162_v18 = vmul.f32 %v3994_v52, %v11342_v39  ;;  %v4089_v0 = vld [vmem:[%s11964_s11 + $0x288] sm:$0xff]  ;;  %v3923_v51 = vld [vmem:[%s11963_s10 + $0x298] sm:$0xff]  ;;  %v4078_v7 = vld [vmem:[%s11964_s11 + $0x230] sm:$0xff] }
 0x951   :  { %v5352_v31 = vadd.f32 %v5061_v53, %v4764_v34  ;;  %v5353_v27 = vadd.f32 %v5061_v53, %v4765_v17  ;;  %6255 = vrsqrt.f32 %v3746_v14  ;;  %v3912_v34 = vld [vmem:[%s11963_s10 + $0x240] sm:$0xff]  ;;  %v3748_v39 = vadd.f32 0.001, %v3664_v54  ;;  %v12596_v53 = vld [vmem:[#allocation75_spill] sm:$0xff]  ;;  %v3914_v11 = vld [vmem:[%s11963_s10 + $0x250] sm:$0xff] }
 0x952   :  { %v3582_v32 = vmul.f32 %v11494_v49, %v11494_v49  ;;  %v3498_v24 = vmul.f32 0.0051020407, %v10670_v58  ;;  %v4246_v36 = vsub.f32 %v4078_v7, %v4162_v18 }
 0x953   :  { %5520 = vst [vmem:[%s11965_s12 + $0x2a0] sm:$0xff] %v5352_v31  ;;  %5521 = vst.msk [vmem:[%s11965_s12 + $0x2a8] sm:$0xff] %vm1099_vm2, %v5353_v27  ;;  %v4966_v56 = vpop.permute.xlu0 %4965  ;;  %v12597_v27 = vld [vmem:[#allocation77_spill] sm:$0xff]  ;;  %6257 = vrsqrt.f32 %v3748_v39  ;;  %v3916_v39 = vld [vmem:[%s11963_s10 + $0x260] sm:$0xff] }
 0x954   :  { %v5314_v43 = vadd.f32 %v4966_v56, %v4726_v57  ;;  %v5315_v45 = vadd.f32 %v4966_v56, %v4727_v6  ;;  %4657 = vperm.xlu0 %6067, %v4003_v37   ;;  %v4353_v55 = vpop.permute.xlu1 %4352  ;;  %4602 = vperm.xlu1 %6068, %v3992_v26   ;;  %v4257_v26 = vsub.f32 %v4089_v0, %v4173_v47  ;;  %v12605_v0 = vld [vmem:[#allocation84_spill] sm:$0xff] }
 0x955   :  { %v4716_v4 = vmul.f32 %v4353_v55, %v12594_v40  ;;  %v4717_v62 = vmul.f32 %v4353_v55, %v12595_v61  ;;  %v3666_v59 = vsub.f32 %v3498_v24, %v3582_v32 }
 0x956   :  { %5482 = vst [vmem:[%s11965_s12 + $0x170] sm:$0xff] %v5314_v43  ;;  %5483 = vst.msk [vmem:[%s11965_s12 + $0x178] sm:$0xff] %vm1099_vm2, %v5315_v45 }
 0x957   :  { %v5096_v44 = vpop.permute.xlu0 %5095 }
 0x958   :  { %v5366_v10 = vadd.f32 %v5096_v44, %v4778_v8  ;;  %v5367_v35 = vadd.f32 %v5096_v44, %v4779_v13  ;;  %5245 = vperm.xlu0 %6067, %v4255_v1   ;;  %v4483_v21 = vpop.permute.xlu1 %4482  ;;  %5190 = vperm.xlu1 %6068, %v4244_v30   ;;  %v12600_v8 = vld [vmem:[#allocation17_spill] sm:$0xff]  ;;  %v3750_v13 = vadd.f32 0.001, %v3666_v59  ;;  %v12601_v1 = vld [vmem:[#allocation106_spill] sm:$0xff]  ;;  %v12602_v44 = vld [vmem:[#allocation108_spill] sm:$0xff] }
 0x959   :  { %v6252_v9 = vpop.eup %6251  ;;  %v4768_v31 = vmul.f32 %v4483_v21, %v12596_v53  ;;  %v4769_v3 = vmul.f32 %v4483_v21, %v12597_v27  ;;  %v3500_v33 = vmul.f32 0.0051020407, %v12600_v8  ;;  %v12607_v53 = vld [vmem:[#allocation113_spill] sm:$0xff]  ;;  %v12608_v27 = vld [vmem:[#allocation83_spill] sm:$0xff] }
 0x95a   :  { %5534 = vst [vmem:[%s11965_s12 + $0x310] sm:$0xff] %v5366_v10  ;;  %5535 = vst.msk [vmem:[%s11965_s12 + $0x318] sm:$0xff] %vm1099_vm2, %v5367_v35  ;;  %v6254_v37 = vpop.eup %6253  ;;  %v4007_v15 = vmul.f32 %v6252_v9, %v3923_v51  ;;  %6259 = vrsqrt.f32 %v3750_v13 }
 0x95b   :  { %v4388_v38 = vpop.permute.xlu0 %4387  ;;  %v3996_v6 = vmul.f32 %v6254_v37, %v3912_v34  ;;  %v6256_v28 = vpop.eup %6255  ;;  %v4082_v34 = vld [vmem:[%s11964_s11 + $0x250] sm:$0xff] }
 0x95c   :  { %4667 = vperm.xlu0 %6067, %v4005_v46   ;;  %v4941_v29 = vpop.permute.xlu1 %4940  ;;  %4612 = vperm.xlu1 %6068, %v3994_v52   ;;  %v4730_v22 = vmul.f32 %v4388_v38, %v12598_v25  ;;  %v4731_v43 = vmul.f32 %v4388_v38, %v12599_v19  ;;  %v4175_v45 = vmul.f32 %v4007_v15, %v11400_v12  ;;  %v12604_v38 = vld [vmem:[#allocation82_spill] sm:$0xff] }
 0x95d   :  { %v5304_v16 = vadd.f32 %v4941_v29, %v4716_v4  ;;  %v5305_v17 = vadd.f32 %v4941_v29, %v4717_v62  ;;  %v4164_v55 = vmul.f32 %v3996_v6, %v11379_v23  ;;  %v3584_v23 = vmul.f32 %v11532_v5, %v11532_v5  ;;  %v12603_v4 = vld [vmem:[#allocation18_spill] sm:$0xff]  ;;  %v6258_v62 = vpop.eup %6257 }
 0x95e   :  { %v4259_v52 = vsub.f32 %v4091_v20, %v4175_v45  ;;  %v3998_v21 = vmul.f32 %v6256_v28, %v3914_v11  ;;  %v11567_v61 = vmul.f32 0.0051020407, %v12603_v4  ;;  %v4084_v20 = vld [vmem:[%s11964_s11 + $0x260] sm:$0xff]  ;;  %v3918_v28 = vld [vmem:[%s11963_s10 + $0x270] sm:$0xff] }
 0x95f   :  { %5472 = vst [vmem:[%s11965_s12 + $0x120] sm:$0xff] %v5304_v16  ;;  %5473 = vst.msk [vmem:[%s11965_s12 + $0x128] sm:$0xff] %vm1099_vm2, %v5305_v17  ;;  %v4518_v57 = vpop.permute.xlu0 %4517  ;;  %v4248_v35 = vsub.f32 %v4080_v41, %v4164_v55  ;;  %v3668_v40 = vsub.f32 %v3500_v33, %v3584_v23  ;;  %v12611_v41 = vld [vmem:[#allocation117_spill] sm:$0xff] }
 0x960   :  { %5255 = vperm.xlu0 %6067, %v4257_v26   ;;  %v5071_v58 = vpop.permute.xlu1 %5070  ;;  %5200 = vperm.xlu1 %6068, %v4246_v36   ;;  %v4782_v46 = vmul.f32 %v4518_v57, %v12601_v1  ;;  %v4783_v30 = vmul.f32 %v4518_v57, %v12602_v44  ;;  %v4166_v29 = vmul.f32 %v3998_v21, %v11412_v42  ;;  %v3502_v26 = vmul.f32 0.0051020407, %v11147_v2  ;;  %v12609_v57 = vld [vmem:[#allocation85_spill] sm:$0xff] }
 0x961   :  { %v5356_v48 = vadd.f32 %v5071_v58, %v4768_v31  ;;  %v5357_v56 = vadd.f32 %v5071_v58, %v4769_v3  ;;  %v3752_v16 = vadd.f32 0.001, %v3668_v40  ;;  %v3586_v24 = vmul.f32 %v11567_v61, %v11567_v61 }
 0x962   :  { %v4250_v58 = vsub.f32 %v4082_v34, %v4166_v29  ;;  %v4000_v2 = vmul.f32 %v6258_v62, %v3916_v39  ;;  %v12614_v62 = vld [vmem:[#allocation120_spill] sm:$0xff] }
 0x963   :  { %5524 = vst [vmem:[%s11965_s12 + $0x2c0] sm:$0xff] %v5356_v48  ;;  %5525 = vst.msk [vmem:[%s11965_s12 + $0x2c8] sm:$0xff] %vm1099_vm2, %v5357_v56  ;;  %v4976_v50 = vpop.permute.xlu0 %4975  ;;  %6261 = vrsqrt.f32 %v3752_v16  ;;  %v3670_v19 = vsub.f32 %v3502_v26, %v3586_v24 }
 0x964   :  { %v5318_v14 = vadd.f32 %v4976_v50, %v4730_v22  ;;  %v5319_v63 = vadd.f32 %v4976_v50, %v4731_v43  ;;  %4677 = vperm.xlu0 %6067, %v4007_v15   ;;  %v4363_v12 = vpop.permute.xlu1 %4362  ;;  %4622 = vperm.xlu1 %6068, %v3996_v6   ;;  %v12606_v15 = vld [vmem:[#allocation112_spill] sm:$0xff]  ;;  %v4168_v45 = vmul.f32 %v4000_v2, %v11456_v60  ;;  %v6260_v50 = vpop.eup %6259 }
 0x965   :  { %v4720_v18 = vmul.f32 %v4363_v12, %v12604_v38  ;;  %v4721_v51 = vmul.f32 %v4363_v12, %v12605_v0  ;;  %v4002_v33 = vmul.f32 %v6260_v50, %v3918_v28  ;;  %v4090_v28 = vld [vmem:[%s11964_s11 + $0x290] sm:$0xff] }
 0x966   :  { %5486 = vst [vmem:[%s11965_s12 + $0x190] sm:$0xff] %v5318_v14  ;;  %5487 = vst.msk [vmem:[%s11965_s12 + $0x198] sm:$0xff] %vm1099_vm2, %v5319_v63  ;;  %v3754_v14 = vadd.f32 0.001, %v3670_v19  ;;  %v12610_v63 = vld [vmem:[#allocation116_spill] sm:$0xff]  ;;  %v4252_v8 = vsub.f32 %v4084_v20, %v4168_v45 }
 0x967   :  { %v5106_v10 = vpop.permute.xlu0 %5105 }
 0x968   :  { %v5370_v54 = vadd.f32 %v5106_v10, %v4782_v46  ;;  %v5371_v47 = vadd.f32 %v5106_v10, %v4783_v30  ;;  %5265 = vperm.xlu0 %6067, %v4259_v52   ;;  %v4493_v9 = vpop.permute.xlu1 %4492  ;;  %5210 = vperm.xlu1 %6068, %v4248_v35   ;;  %6263 = vrsqrt.f32 %v3754_v14  ;;  %v12612_v46 = vld [vmem:[#allocation90_spill] sm:$0xff]  ;;  %v12613_v30 = vld [vmem:[#allocation92_spill] sm:$0xff]  ;;  %v4170_v35 = vmul.f32 %v4002_v33, %v11494_v49  ;;  %v12617_v49 = vld [vmem:[#allocation93_spill] sm:$0xff] }
 0x969   :  { %v4772_v3 = vmul.f32 %v4493_v9, %v12608_v27  ;;  %v4773_v36 = vmul.f32 %v4493_v9, %v12609_v57  ;;  %v3920_v9 = vld [vmem:[%s11963_s10 + $0x280] sm:$0xff]  ;;  %v12618_v57 = vld [vmem:[#allocation124_spill] sm:$0xff] }
 0x96a   :  { %5538 = vst [vmem:[%s11965_s12 + $0x330] sm:$0xff] %v5370_v54  ;;  %5539 = vst.msk [vmem:[%s11965_s12 + $0x338] sm:$0xff] %vm1099_vm2, %v5371_v47  ;;  %v4086_v47 = vld [vmem:[%s11964_s11 + $0x270] sm:$0xff]  ;;  %v4088_v27 = vld [vmem:[%s11964_s11 + $0x280] sm:$0xff] }
 0x96b   :  { %v4528_v37 = vpop.permute.xlu0 %4527  ;;  %v4254_v34 = vsub.f32 %v4086_v47, %v4170_v35 }
 0x96c   :  { %v4951_v7 = vpop.permute.xlu1 %4950  ;;  %4632 = vperm.xlu1 %6068, %v3998_v21   ;;  %v4786_v42 = vmul.f32 %v4528_v37, %v12606_v15  ;;  %v4787_v31 = vmul.f32 %v4528_v37, %v12607_v53 }
 0x96d   :  { %v5308_v17 = vadd.f32 %v4951_v7, %v4720_v18  ;;  %v5309_v32 = vadd.f32 %v4951_v7, %v4721_v51  ;;  %v6262_v21 = vpop.eup %6261  ;;  %v12615_v18 = vld [vmem:[#allocation121_spill] sm:$0xff]  ;;  %v12616_v51 = vld [vmem:[#allocation91_spill] sm:$0xff] }
 0x96e   :  { %v4004_v39 = vmul.f32 %v6262_v21, %v3920_v9  ;;  %v12627_v9 = vld [vmem:[#allocation136_spill] sm:$0xff] }
 0x96f   :  { %5476 = vst [vmem:[%s11965_s12 + $0x140] sm:$0xff] %v5308_v17  ;;  %5477 = vst.msk [vmem:[%s11965_s12 + $0x148] sm:$0xff] %vm1099_vm2, %v5309_v32  ;;  %v5116_v6 = vpop.permute.xlu0 %5115 }
 0x970   :  { %v5374_v48 = vadd.f32 %v5116_v6, %v4786_v42  ;;  %v5375_v56 = vadd.f32 %v5116_v6, %v4787_v31  ;;  %v5081_v59 = vpop.permute.xlu1 %5080  ;;  %5220 = vperm.xlu1 %6068, %v4250_v58   ;;  %v4172_v42 = vmul.f32 %v4004_v39, %v11532_v5  ;;  %v12619_v6 = vld [vmem:[#allocation125_spill] sm:$0xff] }
 0x971   :  { %v5360_v25 = vadd.f32 %v5081_v59, %v4772_v3  ;;  %v5361_v22 = vadd.f32 %v5081_v59, %v4773_v36  ;;  %v3922_v3 = vld [vmem:[%s11963_s10 + $0x290] sm:$0xff] }
 0x972   :  { %5542 = vst [vmem:[%s11965_s12 + $0x350] sm:$0xff] %v5374_v48  ;;  %5543 = vst.msk [vmem:[%s11965_s12 + $0x358] sm:$0xff] %vm1099_vm2, %v5375_v56  ;;  %v6264_v53 = vpop.eup %6263  ;;  %v4256_v48 = vsub.f32 %v4088_v27, %v4172_v42  ;;  %v12633_v42 = vld [vmem:[#allocation115_spill] sm:$0xff] }
 0x973   :  { %5528 = vst [vmem:[%s11965_s12 + $0x2e0] sm:$0xff] %v5360_v25  ;;  %5529 = vst.msk [vmem:[%s11965_s12 + $0x2e8] sm:$0xff] %vm1099_vm2, %v5361_v22  ;;  %v4538_v43 = vpop.permute.xlu0 %4537  ;;  %v4006_v56 = vmul.f32 %v6264_v53, %v3922_v3  ;;  %v12620_v22 = vld [vmem:[#allocation98_spill] sm:$0xff] }
 0x974   :  { %v4373_v55 = vpop.permute.xlu1 %4372  ;;  %4642 = vperm.xlu1 %6068, %v4000_v2   ;;  %v4790_v12 = vmul.f32 %v4538_v43, %v12610_v63  ;;  %v4791_v11 = vmul.f32 %v4538_v43, %v12611_v41  ;;  %v12621_v43 = vld [vmem:[#allocation100_spill] sm:$0xff] }
 0x975   :  { %v4724_v44 = vmul.f32 %v4373_v55, %v12612_v46  ;;  %v4725_v52 = vmul.f32 %v4373_v55, %v12613_v30  ;;  %v4174_v55 = vmul.f32 %v4006_v56, %v11567_v61 }
 0x977   :  { %v5126_v23 = vpop.permute.xlu0 %5125 }
 0x978   :  { %v5378_v60 = vadd.f32 %v5126_v23, %v4790_v12  ;;  %v5379_v13 = vadd.f32 %v5126_v23, %v4791_v11  ;;  %v4503_v1 = vpop.permute.xlu1 %4502  ;;  %5230 = vperm.xlu1 %6068, %v4252_v8   ;;  %v12622_v12 = vld [vmem:[#allocation128_spill] sm:$0xff]  ;;  %v12623_v11 = vld [vmem:[#allocation129_spill] sm:$0xff]  ;;  %v12624_v8 = vld [vmem:[#allocation99_spill] sm:$0xff] }
 0x979   :  { %v4776_v37 = vmul.f32 %v4503_v1, %v12616_v51  ;;  %v4777_v29 = vmul.f32 %v4503_v1, %v12617_v49  ;;  %v4258_v1 = vsub.f32 %v4090_v28, %v4174_v55 }
 0x97a   :  { %5546 = vst [vmem:[%s11965_s12 + $0x370] sm:$0xff] %v5378_v60  ;;  %5547 = vst.msk [vmem:[%s11965_s12 + $0x378] sm:$0xff] %vm1099_vm2, %v5379_v13  ;;  %v12625_v60 = vld [vmem:[#allocation102_spill] sm:$0xff] }
 0x97b   :  { %v4548_v10 = vpop.permute.xlu0 %4547 }
 0x97c   :  { %v4961_v54 = vpop.permute.xlu1 %4960  ;;  %4652 = vperm.xlu1 %6068, %v4002_v33   ;;  %v4794_v38 = vmul.f32 %v4548_v10, %v12614_v62  ;;  %v4795_v0 = vmul.f32 %v4548_v10, %v12615_v18 }
 0x97d   :  { %v5312_v40 = vadd.f32 %v4961_v54, %v4724_v44  ;;  %v5313_v4 = vadd.f32 %v4961_v54, %v4725_v52  ;;  %v12626_v54 = vld [vmem:[#allocation135_spill] sm:$0xff] }
 0x97f   :  { %5480 = vst [vmem:[%s11965_s12 + $0x160] sm:$0xff] %v5312_v40  ;;  %5481 = vst.msk [vmem:[%s11965_s12 + $0x168] sm:$0xff] %vm1099_vm2, %v5313_v4  ;;  %v5136_v7 = vpop.permute.xlu0 %5135  ;;  %v12628_v4 = vld [vmem:[#allocation110_spill] sm:$0xff] }
 0x980   :  { %v5382_v16 = vadd.f32 %v5136_v7, %v4794_v38  ;;  %v5383_v17 = vadd.f32 %v5136_v7, %v4795_v0  ;;  %v5091_v32 = vpop.permute.xlu1 %5090  ;;  %5240 = vperm.xlu1 %6068, %v4254_v34   ;;  %v12629_v38 = vld [vmem:[#allocation111_spill] sm:$0xff] }
 0x981   :  { %v5364_v24 = vadd.f32 %v5091_v32, %v4776_v37  ;;  %v5365_v26 = vadd.f32 %v5091_v32, %v4777_v29  ;;  %v12631_v32 = vld [vmem:[#allocation143_spill] sm:$0xff] }
 0x982   :  { %5550 = vst [vmem:[%s11965_s12 + $0x390] sm:$0xff] %v5382_v16  ;;  %5551 = vst.msk [vmem:[%s11965_s12 + $0x398] sm:$0xff] %vm1099_vm2, %v5383_v17  ;;  %v12630_v16 = vld [vmem:[#allocation142_spill] sm:$0xff] }
 0x983   :  { %5532 = vst [vmem:[%s11965_s12 + $0x300] sm:$0xff] %v5364_v24  ;;  %5533 = vst.msk [vmem:[%s11965_s12 + $0x308] sm:$0xff] %vm1099_vm2, %v5365_v26  ;;  %v4558_v15 = vpop.permute.xlu0 %4557  ;;  %v12632_v26 = vld [vmem:[#allocation114_spill] sm:$0xff] }
 0x984   :  { %v4383_v31 = vpop.permute.xlu1 %4382  ;;  %4662 = vperm.xlu1 %6068, %v4004_v39   ;;  %v4798_v36 = vmul.f32 %v4558_v15, %v12618_v57  ;;  %v4799_v58 = vmul.f32 %v4558_v15, %v12619_v6 }
 0x985   :  { %v4728_v19 = vmul.f32 %v4383_v31, %v12620_v22  ;;  %v4729_v45 = vmul.f32 %v4383_v31, %v12621_v43 }
 0x987   :  { %v5146_v2 = vpop.permute.xlu0 %5145 }
 0x988   :  { %v5386_v59 = vadd.f32 %v5146_v2, %v4798_v36  ;;  %v5387_v5 = vadd.f32 %v5146_v2, %v4799_v58  ;;  %v4513_v25 = vpop.permute.xlu1 %4512  ;;  %5250 = vperm.xlu1 %6068, %v4256_v48   ;;  %v12634_v48 = vld [vmem:[#allocation151_spill] sm:$0xff] }
 0x989   :  { %v4780_v33 = vmul.f32 %v4513_v25, %v12624_v8  ;;  %v4781_v13 = vmul.f32 %v4513_v25, %v12625_v60  ;;  %v12636_v25 = vld [vmem:[#allocation118_spill] sm:$0xff] }
 0x98a   :  { %5554 = vst [vmem:[%s11965_s12 + $0x3b0] sm:$0xff] %v5386_v59  ;;  %5555 = vst.msk [vmem:[%s11965_s12 + $0x3b8] sm:$0xff] %vm1099_vm2, %v5387_v5  ;;  %v12635_v59 = vld [vmem:[#allocation152_spill] sm:$0xff] }
 0x98b   :  { %v4568_v50 = vpop.permute.xlu0 %4567 }
 0x98c   :  { %v4971_v20 = vpop.permute.xlu1 %4970  ;;  %4672 = vperm.xlu1 %6068, %v4006_v56   ;;  %v4802_v41 = vmul.f32 %v4568_v50, %v12622_v12  ;;  %v4803_v23 = vmul.f32 %v4568_v50, %v12623_v11 }
 0x98d   :  { %v5316_v14 = vadd.f32 %v4971_v20, %v4728_v19  ;;  %v5317_v63 = vadd.f32 %v4971_v20, %v4729_v45  ;;  %v12637_v19 = vld [vmem:[#allocation119_spill] sm:$0xff] }
 0x98f   :  { %5484 = vst [vmem:[%s11965_s12 + $0x180] sm:$0xff] %v5316_v14  ;;  %5485 = vst.msk [vmem:[%s11965_s12 + $0x188] sm:$0xff] %vm1099_vm2, %v5317_v63  ;;  %v5156_v61 = vpop.permute.xlu0 %5155 }
 0x990   :  { %v5390_v46 = vadd.f32 %v5156_v61, %v4802_v41  ;;  %v5391_v44 = vadd.f32 %v5156_v61, %v4803_v23  ;;  %v5101_v30 = vpop.permute.xlu1 %5100  ;;  %5260 = vperm.xlu1 %6068, %v4258_v1   ;;  %v12638_v41 = vld [vmem:[#allocation141_spill] sm:$0xff]  ;;  %v12639_v23 = vld [vmem:[#allocation144_spill] sm:$0xff] }
 0x991   :  { %v5368_v52 = vadd.f32 %v5101_v30, %v4780_v33  ;;  %v5369_v10 = vadd.f32 %v5101_v30, %v4781_v13  ;;  %v12640_v33 = vld [vmem:[#allocation122_spill] sm:$0xff]  ;;  %v12641_v13 = vld [vmem:[#allocation123_spill] sm:$0xff] }
 0x992   :  { %5558 = vst [vmem:[%s11965_s12 + $0x3d0] sm:$0xff] %v5390_v46  ;;  %5559 = vst.msk [vmem:[%s11965_s12 + $0x3d8] sm:$0xff] %vm1099_vm2, %v5391_v44 }
 0x993   :  { %5536 = vst [vmem:[%s11965_s12 + $0x320] sm:$0xff] %v5368_v52  ;;  %5537 = vst.msk [vmem:[%s11965_s12 + $0x328] sm:$0xff] %vm1099_vm2, %v5369_v10  ;;  %v4578_v35 = vpop.permute.xlu0 %4577 }
 0x994   :  { %v4523_v21 = vpop.permute.xlu1 %4522  ;;  %v4806_v47 = vmul.f32 %v4578_v35, %v12626_v54  ;;  %v4807_v40 = vmul.f32 %v4578_v35, %v12627_v9  ;;  %v12642_v54 = vld [vmem:[#allocation190_spill] sm:$0xff]  ;;  %v12643_v9 = vld [vmem:[#allocation191_spill] sm:$0xff] }
 0x995   :  { %v4784_v62 = vmul.f32 %v4523_v21, %v12628_v4  ;;  %v4785_v18 = vmul.f32 %v4523_v21, %v12629_v38  ;;  %v12644_v4 = vld [vmem:[#allocation126_spill] sm:$0xff]  ;;  %v12645_v38 = vld [vmem:[#allocation127_spill] sm:$0xff] }
 0x997   :  { %v5166_v0 = vpop.permute.xlu0 %5165 }
 0x998   :  { %v5394_v51 = vadd.f32 %v5166_v0, %v4806_v47  ;;  %v5395_v37 = vadd.f32 %v5166_v0, %v4807_v40  ;;  %v5111_v49 = vpop.permute.xlu1 %5110 }
 0x999   :  { %v5372_v29 = vadd.f32 %v5111_v49, %v4784_v62  ;;  %v5373_v7 = vadd.f32 %v5111_v49, %v4785_v18 }
 0x99a   :  { %5562 = vst [vmem:[%s11965_s12 + $0x3f0] sm:$0xff] %v5394_v51  ;;  %5563 = vst.msk [vmem:[%s11965_s12 + $0x3f8] sm:$0xff] %vm1099_vm2, %v5395_v37 }
 0x99b   :  { %5540 = vst [vmem:[%s11965_s12 + $0x340] sm:$0xff] %v5372_v29  ;;  %5541 = vst.msk [vmem:[%s11965_s12 + $0x348] sm:$0xff] %vm1099_vm2, %v5373_v7  ;;  %v4588_v34 = vpop.permute.xlu0 %4587 }
 0x99c   :  { %v4533_v39 = vpop.permute.xlu1 %4532  ;;  %v4810_v17 = vmul.f32 %v4588_v34, %v12630_v16  ;;  %v4811_v24 = vmul.f32 %v4588_v34, %v12631_v32  ;;  %v12646_v16 = vld [vmem:[#allocation209_spill] sm:$0xff]  ;;  %v12647_v32 = vld [vmem:[#allocation210_spill] sm:$0xff] }
 0x99d   :  { %v4788_v15 = vmul.f32 %v4533_v39, %v12632_v26  ;;  %v4789_v53 = vmul.f32 %v4533_v39, %v12633_v42  ;;  %v12648_v26 = vld [vmem:[#allocation131_spill] sm:$0xff]  ;;  %v12649_v42 = vld [vmem:[#allocation132_spill] sm:$0xff] }
 0x99f   :  { %v5176_v31 = vpop.permute.xlu0 %5175 }
 0x9a0   :  { %v5398_v27 = vadd.f32 %v5176_v31, %v4810_v17  ;;  %v5399_v3 = vadd.f32 %v5176_v31, %v4811_v24  ;;  %v5121_v57 = vpop.permute.xlu1 %5120 }
 0x9a1   :  { %v5376_v36 = vadd.f32 %v5121_v57, %v4788_v15  ;;  %v5377_v6 = vadd.f32 %v5121_v57, %v4789_v53 }
 0x9a2   :  { %5566 = vst [vmem:[%s11965_s12 + $0x410] sm:$0xff] %v5398_v27  ;;  %5567 = vst.msk [vmem:[%s11965_s12 + $0x418] sm:$0xff] %vm1099_vm2, %v5399_v3 }
 0x9a3   :  { %5544 = vst [vmem:[%s11965_s12 + $0x360] sm:$0xff] %v5376_v36  ;;  %5545 = vst.msk [vmem:[%s11965_s12 + $0x368] sm:$0xff] %vm1099_vm2, %v5377_v6  ;;  %v4598_v58 = vpop.permute.xlu0 %4597 }
 0x9a4   :  { %v4543_v2 = vpop.permute.xlu1 %4542  ;;  %v4814_v56 = vmul.f32 %v4598_v58, %v12634_v48  ;;  %v4815_v5 = vmul.f32 %v4598_v58, %v12635_v59  ;;  %v12650_v48 = vld [vmem:[#allocation230_spill] sm:$0xff]  ;;  %v12651_v59 = vld [vmem:[#allocation231_spill] sm:$0xff] }
 0x9a5   :  { %v4792_v22 = vmul.f32 %v4543_v2, %v12636_v25  ;;  %v4793_v43 = vmul.f32 %v4543_v2, %v12637_v19  ;;  %v12652_v25 = vld [vmem:[#allocation139_spill] sm:$0xff]  ;;  %v12653_v19 = vld [vmem:[#allocation140_spill] sm:$0xff] }
 0x9a7   :  { %v5186_v45 = vpop.permute.xlu0 %5185 }
 0x9a8   :  { %v5402_v50 = vadd.f32 %v5186_v45, %v4814_v56  ;;  %v5403_v55 = vadd.f32 %v5186_v45, %v4815_v5  ;;  %v5131_v20 = vpop.permute.xlu1 %5130 }
 0x9a9   :  { %v5380_v28 = vadd.f32 %v5131_v20, %v4792_v22  ;;  %v5381_v14 = vadd.f32 %v5131_v20, %v4793_v43 }
 0x9aa   :  { %5570 = vst [vmem:[%s11965_s12 + $0x430] sm:$0xff] %v5402_v50  ;;  %5571 = vst.msk [vmem:[%s11965_s12 + $0x438] sm:$0xff] %vm1099_vm2, %v5403_v55 }
 0x9ab   :  { %5548 = vst [vmem:[%s11965_s12 + $0x380] sm:$0xff] %v5380_v28  ;;  %5549 = vst.msk [vmem:[%s11965_s12 + $0x388] sm:$0xff] %vm1099_vm2, %v5381_v14  ;;  %v4608_v63 = vpop.permute.xlu0 %4607 }
 0x9ac   :  { %v4553_v12 = vpop.permute.xlu1 %4552  ;;  %v4818_v11 = vmul.f32 %v4608_v63, %v12638_v41  ;;  %v4819_v8 = vmul.f32 %v4608_v63, %v12639_v23  ;;  %v12654_v41 = vld [vmem:[#allocation3_spill] sm:$0xff]  ;;  %v12655_v23 = vld [vmem:[#allocation5_spill] sm:$0xff] }
 0x9ad   :  { %v4796_v60 = vmul.f32 %v4553_v12, %v12640_v33  ;;  %v4797_v61 = vmul.f32 %v4553_v12, %v12641_v13  ;;  %v12656_v33 = vld [vmem:[#allocation145_spill] sm:$0xff]  ;;  %v12657_v13 = vld [vmem:[#allocation146_spill] sm:$0xff] }
 0x9af   :  { %v5196_v1 = vpop.permute.xlu0 %5195 }
 0x9b0   :  { %v5406_v46 = vadd.f32 %v5196_v1, %v4818_v11  ;;  %v5407_v44 = vadd.f32 %v5196_v1, %v4819_v8  ;;  %v5141_v30 = vpop.permute.xlu1 %5140 }
 0x9b1   :  { %v5384_v52 = vadd.f32 %v5141_v30, %v4796_v60  ;;  %v5385_v10 = vadd.f32 %v5141_v30, %v4797_v61 }
 0x9b2   :  { %5574 = vst [vmem:[%s11965_s12 + $0x450] sm:$0xff] %v5406_v46  ;;  %5575 = vst.msk [vmem:[%s11965_s12 + $0x458] sm:$0xff] %vm1099_vm2, %v5407_v44 }
 0x9b3   :  { %5552 = vst [vmem:[%s11965_s12 + $0x3a0] sm:$0xff] %v5384_v52  ;;  %5553 = vst.msk [vmem:[%s11965_s12 + $0x3a8] sm:$0xff] %vm1099_vm2, %v5385_v10  ;;  %v4618_v35 = vpop.permute.xlu0 %4617 }
 0x9b4   :  { %v4563_v21 = vpop.permute.xlu1 %4562  ;;  %v4822_v47 = vmul.f32 %v4618_v35, %v12642_v54  ;;  %v4823_v40 = vmul.f32 %v4618_v35, %v12643_v9  ;;  %v12658_v54 = vld [vmem:[#allocation6_spill] sm:$0xff]  ;;  %v12659_v9 = vld [vmem:[#allocation8_spill] sm:$0xff] }
 0x9b5   :  { %v4800_v62 = vmul.f32 %v4563_v21, %v12644_v4  ;;  %v4801_v18 = vmul.f32 %v4563_v21, %v12645_v38  ;;  %v12660_v4 = vld [vmem:[#allocation103_spill] sm:$0xff] }
 0x9b6   :  { %v12661_v38 = vld [vmem:[#allocation159_spill] sm:$0xff] }
 0x9b7   :  { %v5206_v0 = vpop.permute.xlu0 %5205 }
 0x9b8   :  { %v5410_v51 = vadd.f32 %v5206_v0, %v4822_v47  ;;  %v5411_v37 = vadd.f32 %v5206_v0, %v4823_v40  ;;  %v5151_v49 = vpop.permute.xlu1 %5150 }
 0x9b9   :  { %v5388_v29 = vadd.f32 %v5151_v49, %v4800_v62  ;;  %v5389_v7 = vadd.f32 %v5151_v49, %v4801_v18 }
 0x9ba   :  { %5578 = vst [vmem:[%s11965_s12 + $0x470] sm:$0xff] %v5410_v51  ;;  %5579 = vst.msk [vmem:[%s11965_s12 + $0x478] sm:$0xff] %vm1099_vm2, %v5411_v37 }
 0x9bb   :  { %5556 = vst [vmem:[%s11965_s12 + $0x3c0] sm:$0xff] %v5388_v29  ;;  %5557 = vst.msk [vmem:[%s11965_s12 + $0x3c8] sm:$0xff] %vm1099_vm2, %v5389_v7  ;;  %v4628_v34 = vpop.permute.xlu0 %4627 }
 0x9bc   :  { %v4573_v39 = vpop.permute.xlu1 %4572  ;;  %v4826_v17 = vmul.f32 %v4628_v34, %v12646_v16  ;;  %v4827_v24 = vmul.f32 %v4628_v34, %v12647_v32  ;;  %v12662_v16 = vld [vmem:[#allocation12_spill] sm:$0xff]  ;;  %v12663_v32 = vld [vmem:[#allocation11_spill] sm:$0xff] }
 0x9bd   :  { %v4804_v15 = vmul.f32 %v4573_v39, %v12648_v26  ;;  %v4805_v53 = vmul.f32 %v4573_v39, %v12649_v42  ;;  %v12664_v26 = vld [vmem:[#allocation162_spill] sm:$0xff]  ;;  %v12665_v42 = vld [vmem:[#allocation163_spill] sm:$0xff] }
 0x9bf   :  { %v5216_v31 = vpop.permute.xlu0 %5215 }
 0x9c0   :  { %v5414_v27 = vadd.f32 %v5216_v31, %v4826_v17  ;;  %v5415_v3 = vadd.f32 %v5216_v31, %v4827_v24  ;;  %v5161_v57 = vpop.permute.xlu1 %5160 }
 0x9c1   :  { %v5392_v36 = vadd.f32 %v5161_v57, %v4804_v15  ;;  %v5393_v6 = vadd.f32 %v5161_v57, %v4805_v53 }
 0x9c2   :  { %5582 = vst [vmem:[%s11965_s12 + $0x490] sm:$0xff] %v5414_v27  ;;  %5583 = vst.msk [vmem:[%s11965_s12 + $0x498] sm:$0xff] %vm1099_vm2, %v5415_v3 }
 0x9c3   :  { %5560 = vst [vmem:[%s11965_s12 + $0x3e0] sm:$0xff] %v5392_v36  ;;  %5561 = vst.msk [vmem:[%s11965_s12 + $0x3e8] sm:$0xff] %vm1099_vm2, %v5393_v6  ;;  %v4638_v58 = vpop.permute.xlu0 %4637 }
 0x9c4   :  { %v4583_v2 = vpop.permute.xlu1 %4582  ;;  %v4830_v56 = vmul.f32 %v4638_v58, %v12650_v48  ;;  %v4831_v5 = vmul.f32 %v4638_v58, %v12651_v59  ;;  %v12666_v48 = vld [vmem:[#allocation16_spill] sm:$0xff]  ;;  %v12667_v59 = vld [vmem:[#allocation15_spill] sm:$0xff] }
 0x9c5   :  { %v4808_v22 = vmul.f32 %v4583_v2, %v12652_v25  ;;  %v4809_v43 = vmul.f32 %v4583_v2, %v12653_v19  ;;  %v12668_v25 = vld [vmem:[#allocation195_spill] sm:$0xff]  ;;  %v12669_v19 = vld [vmem:[#allocation196_spill] sm:$0xff] }
 0x9c7   :  { %v5226_v45 = vpop.permute.xlu0 %5225 }
 0x9c8   :  { %v5418_v50 = vadd.f32 %v5226_v45, %v4830_v56  ;;  %v5419_v55 = vadd.f32 %v5226_v45, %v4831_v5  ;;  %v5171_v20 = vpop.permute.xlu1 %5170 }
 0x9c9   :  { %v5396_v28 = vadd.f32 %v5171_v20, %v4808_v22  ;;  %v5397_v14 = vadd.f32 %v5171_v20, %v4809_v43 }
 0x9ca   :  { %5586 = vst [vmem:[%s11965_s12 + $0x4b0] sm:$0xff] %v5418_v50  ;;  %5587 = vst.msk [vmem:[%s11965_s12 + $0x4b8] sm:$0xff] %vm1099_vm2, %v5419_v55 }
 0x9cb   :  { %5564 = vst [vmem:[%s11965_s12 + $0x400] sm:$0xff] %v5396_v28  ;;  %5565 = vst.msk [vmem:[%s11965_s12 + $0x408] sm:$0xff] %vm1099_vm2, %v5397_v14  ;;  %v4648_v63 = vpop.permute.xlu0 %4647 }
 0x9cc   :  { %v4593_v12 = vpop.permute.xlu1 %4592  ;;  %v4834_v11 = vmul.f32 %v4648_v63, %v12654_v41  ;;  %v4835_v8 = vmul.f32 %v4648_v63, %v12655_v23 }
 0x9cd   :  { %v4812_v60 = vmul.f32 %v4593_v12, %v12656_v33  ;;  %v4813_v61 = vmul.f32 %v4593_v12, %v12657_v13  ;;  %v12670_v12 = vld [vmem:[#allocation154_spill] sm:$0xff] }
 0x9cf   :  { %v5236_v1 = vpop.permute.xlu0 %5235 }
 0x9d0   :  { %v5422_v46 = vadd.f32 %v5236_v1, %v4834_v11  ;;  %v5423_v44 = vadd.f32 %v5236_v1, %v4835_v8  ;;  %v5181_v30 = vpop.permute.xlu1 %5180  ;;  %v12671_v11 = vld [vmem:[#allocation215_spill] sm:$0xff] }
 0x9d1   :  { %v5400_v52 = vadd.f32 %v5181_v30, %v4812_v60  ;;  %v5401_v10 = vadd.f32 %v5181_v30, %v4813_v61  ;;  %v12672_v61 = vld [vmem:[#allocation2_spill] sm:$0xff] }
 0x9d2   :  { %5590 = vst [vmem:[%s11965_s12 + $0x4d0] sm:$0xff] %v5422_v46  ;;  %5591 = vst.msk [vmem:[%s11965_s12 + $0x4d8] sm:$0xff] %vm1099_vm2, %v5423_v44  ;;  %v12673_v46 = vld [vmem:[#allocation4_spill] sm:$0xff] }
 0x9d3   :  { %5568 = vst [vmem:[%s11965_s12 + $0x420] sm:$0xff] %v5400_v52  ;;  %5569 = vst.msk [vmem:[%s11965_s12 + $0x428] sm:$0xff] %vm1099_vm2, %v5401_v10  ;;  %v4658_v35 = vpop.permute.xlu0 %4657 }
 0x9d4   :  { %v4603_v21 = vpop.permute.xlu1 %4602  ;;  %v4838_v47 = vmul.f32 %v4658_v35, %v12658_v54  ;;  %v4839_v40 = vmul.f32 %v4658_v35, %v12659_v9 }
 0x9d5   :  { %v4816_v62 = vmul.f32 %v4603_v21, %v12660_v4  ;;  %v4817_v18 = vmul.f32 %v4603_v21, %v12661_v38  ;;  %v12674_v21 = vld [vmem:[#allocation7_spill] sm:$0xff] }
 0x9d7   :  { %v5246_v0 = vpop.permute.xlu0 %5245 }
 0x9d8   :  { %v5426_v51 = vadd.f32 %v5246_v0, %v4838_v47  ;;  %v5427_v37 = vadd.f32 %v5246_v0, %v4839_v40  ;;  %v5191_v49 = vpop.permute.xlu1 %5190  ;;  %v12675_v47 = vld [vmem:[#allocation9_spill] sm:$0xff] }
 0x9d9   :  { %v5404_v29 = vadd.f32 %v5191_v49, %v4816_v62  ;;  %v5405_v7 = vadd.f32 %v5191_v49, %v4817_v18  ;;  %v12676_v18 = vld [vmem:[#allocation104_spill] sm:$0xff] }
 0x9da   :  { %5594 = vst [vmem:[%s11965_s12 + $0x4f0] sm:$0xff] %v5426_v51  ;;  %5595 = vst.msk [vmem:[%s11965_s12 + $0x4f8] sm:$0xff] %vm1099_vm2, %v5427_v37  ;;  %v12677_v51 = vld [vmem:[#allocation10_spill] sm:$0xff] }
 0x9db   :  { %5572 = vst [vmem:[%s11965_s12 + $0x440] sm:$0xff] %v5404_v29  ;;  %5573 = vst.msk [vmem:[%s11965_s12 + $0x448] sm:$0xff] %vm1099_vm2, %v5405_v7  ;;  %v4668_v34 = vpop.permute.xlu0 %4667 }
 0x9dc   :  { %v4613_v39 = vpop.permute.xlu1 %4612  ;;  %v4842_v17 = vmul.f32 %v4668_v34, %v12662_v16  ;;  %v4843_v24 = vmul.f32 %v4668_v34, %v12663_v32 }
 0x9dd   :  { %v4820_v15 = vmul.f32 %v4613_v39, %v12664_v26  ;;  %v4821_v53 = vmul.f32 %v4613_v39, %v12665_v42  ;;  %v12678_v39 = vld [vmem:[#allocation13_spill] sm:$0xff] }
 0x9df   :  { %v5256_v31 = vpop.permute.xlu0 %5255 }
 0x9e0   :  { %v5430_v27 = vadd.f32 %v5256_v31, %v4842_v17  ;;  %v5431_v3 = vadd.f32 %v5256_v31, %v4843_v24  ;;  %v5201_v57 = vpop.permute.xlu1 %5200  ;;  %v12679_v17 = vld [vmem:[#allocation14_spill] sm:$0xff] }
 0x9e1   :  { %v5408_v36 = vadd.f32 %v5201_v57, %v4820_v15  ;;  %v5409_v6 = vadd.f32 %v5201_v57, %v4821_v53 }
 0x9e2   :  { %5598 = vst [vmem:[%s11965_s12 + $0x510] sm:$0xff] %v5430_v27  ;;  %5599 = vst.msk [vmem:[%s11965_s12 + $0x518] sm:$0xff] %vm1099_vm2, %v5431_v3 }
 0x9e3   :  { %5576 = vst [vmem:[%s11965_s12 + $0x460] sm:$0xff] %v5408_v36  ;;  %5577 = vst.msk [vmem:[%s11965_s12 + $0x468] sm:$0xff] %vm1099_vm2, %v5409_v6  ;;  %v4678_v58 = vpop.permute.xlu0 %4677 }
 0x9e4   :  { %v4623_v2 = vpop.permute.xlu1 %4622  ;;  %v4846_v56 = vmul.f32 %v4678_v58, %v12666_v48  ;;  %v4847_v5 = vmul.f32 %v4678_v58, %v12667_v59 }
 0x9e5   :  { %v4824_v22 = vmul.f32 %v4623_v2, %v12668_v25  ;;  %v4825_v43 = vmul.f32 %v4623_v2, %v12669_v19 }
 0x9e7   :  { %v5266_v45 = vpop.permute.xlu0 %5265 }
 0x9e8   :  { %v5434_v50 = vadd.f32 %v5266_v45, %v4846_v56  ;;  %v5435_v55 = vadd.f32 %v5266_v45, %v4847_v5  ;;  %v5211_v20 = vpop.permute.xlu1 %5210 }
 0x9e9   :  { %v5412_v28 = vadd.f32 %v5211_v20, %v4824_v22  ;;  %v5413_v14 = vadd.f32 %v5211_v20, %v4825_v43 }
 0x9ea   :  { %5602 = vst [vmem:[%s11965_s12 + $0x530] sm:$0xff] %v5434_v50  ;;  %5603 = vst.msk [vmem:[%s11965_s12 + $0x538] sm:$0xff] %vm1099_vm2, %v5435_v55 }
 0x9eb   :  { %5580 = vst [vmem:[%s11965_s12 + $0x480] sm:$0xff] %v5412_v28  ;;  %5581 = vst.msk [vmem:[%s11965_s12 + $0x488] sm:$0xff] %vm1099_vm2, %v5413_v14 }
 0x9ec   :  { %v4633_v63 = vpop.permute.xlu1 %4632 }
 0x9ed   :  { %v4828_v41 = vmul.f32 %v4633_v63, %v12670_v12  ;;  %v4829_v23 = vmul.f32 %v4633_v63, %v12671_v11 }
 0x9f0   :  { %v5221_v8 = vpop.permute.xlu1 %5220 }
 0x9f1   :  { %v5416_v33 = vadd.f32 %v5221_v8, %v4828_v41  ;;  %v5417_v60 = vadd.f32 %v5221_v8, %v4829_v23 }
 0x9f3   :  { %5584 = vst [vmem:[%s11965_s12 + $0x4a0] sm:$0xff] %v5416_v33  ;;  %5585 = vst.msk [vmem:[%s11965_s12 + $0x4a8] sm:$0xff] %vm1099_vm2, %v5417_v60 }
 0x9f4   :  { %v4643_v13 = vpop.permute.xlu1 %4642 }
 0x9f5   :  { %v4832_v1 = vmul.f32 %v4643_v13, %v12672_v61  ;;  %v4833_v44 = vmul.f32 %v4643_v13, %v12673_v46 }
 0x9f8   :  { %v5231_v30 = vpop.permute.xlu1 %5230 }
 0x9f9   :  { %v5420_v52 = vadd.f32 %v5231_v30, %v4832_v1  ;;  %v5421_v10 = vadd.f32 %v5231_v30, %v4833_v44 }
 0x9fb   :  { %5588 = vst [vmem:[%s11965_s12 + $0x4c0] sm:$0xff] %v5420_v52  ;;  %5589 = vst.msk [vmem:[%s11965_s12 + $0x4c8] sm:$0xff] %vm1099_vm2, %v5421_v10 }
 0x9fc   :  { %v4653_v35 = vpop.permute.xlu1 %4652 }
 0x9fd   :  { %v4836_v54 = vmul.f32 %v4653_v35, %v12674_v21  ;;  %v4837_v9 = vmul.f32 %v4653_v35, %v12675_v47 }
 0xa00   :  { %v5241_v40 = vpop.permute.xlu1 %5240 }
 0xa01   :  { %v5424_v4 = vadd.f32 %v5241_v40, %v4836_v54  ;;  %v5425_v62 = vadd.f32 %v5241_v40, %v4837_v9 }
 0xa03   :  { %5592 = vst [vmem:[%s11965_s12 + $0x4e0] sm:$0xff] %v5424_v4  ;;  %5593 = vst.msk [vmem:[%s11965_s12 + $0x4e8] sm:$0xff] %vm1099_vm2, %v5425_v62 }
 0xa04   :  { %v4663_v38 = vpop.permute.xlu1 %4662 }
 0xa05   :  { %v4840_v0 = vmul.f32 %v4663_v38, %v12676_v18  ;;  %v4841_v37 = vmul.f32 %v4663_v38, %v12677_v51 }
 0xa08   :  { %v5251_v49 = vpop.permute.xlu1 %5250 }
 0xa09   :  { %v5428_v29 = vadd.f32 %v5251_v49, %v4840_v0  ;;  %v5429_v7 = vadd.f32 %v5251_v49, %v4841_v37 }
 0xa0b   :  { %5596 = vst [vmem:[%s11965_s12 + $0x500] sm:$0xff] %v5428_v29  ;;  %5597 = vst.msk [vmem:[%s11965_s12 + $0x508] sm:$0xff] %vm1099_vm2, %v5429_v7 }
 0xa0c   :  { %v4673_v34 = vpop.permute.xlu1 %4672 }
 0xa0d   :  { %v4844_v16 = vmul.f32 %v4673_v34, %v12678_v39  ;;  %v4845_v32 = vmul.f32 %v4673_v34, %v12679_v17 }
 0xa10   :  { %v5261_v24 = vpop.permute.xlu1 %5260 }
 0xa11   :  { %v5432_v26 = vadd.f32 %v5261_v24, %v4844_v16  ;;  %v5433_v15 = vadd.f32 %v5261_v24, %v4845_v32 }
 0xa13   :  { %5600 = vst [vmem:[%s11965_s12 + $0x520] sm:$0xff] %v5432_v26  ;;  %5601 = vst.msk [vmem:[%s11965_s12 + $0x528] sm:$0xff] %vm1099_vm2, %v5433_v15 }

</bundles_post_ra>
